<compile_context>
chip_gen: v5e
topology: v5e:2x2
jax: 0.10.0
libtpu: 0.0.40
codegen_flags: <defaults>
</compile_context>

<pallas_src>
import functools

import jax
import jax.numpy as jnp
from jax.experimental import pallas as pl
from jax.experimental.pallas import tpu as pltpu

EPS = 1e-5
LRELU_SLOPE = 0.2
_VMEM_LIMIT = 32 * 1024 * 1024   # explicit scoped-VMEM budget, safe on v5e/v6e/v7x


# --------------------------------------------------------------------------- #
# Conv1d(k=3) kernel with fused BN+LeakyReLU prologue, residual add,
# and fused per-channel batch-stat emission for the NEXT BatchNorm.
# --------------------------------------------------------------------------- #
def _make_conv_kernel(*, stride, pad_left, l_valid, l_out, n_l_tiles,
                      use_prologue, use_residual, emit_stats, norm_count):
    P = stride                 # number of repacked input planes (1 or 2)
    extra = 2 // stride        # extra input columns needed per plane beyond TILE_L

    def kernel(*refs):
        i = 0
        x_ref = refs[i]; i += 1                    # (P, Cin, Lplane) f32
        w_ref = refs[i]; i += 1                    # (3, Cout, Cin)   bf16
        b_ref = refs[i]; i += 1                    # (Cout, 1)        f32
        sum_ref = sq_ref = g_ref = beta_ref = r_ref = None
        if use_prologue:
            sum_ref = refs[i]; i += 1              # (Cin, 1) f32  (sum of prev conv out)
            sq_ref = refs[i]; i += 1               # (Cin, 1) f32  (sum of squares)
            g_ref = refs[i]; i += 1                # (Cin, 1) f32  (BN gamma)
            beta_ref = refs[i]; i += 1             # (Cin, 1) f32  (BN beta)
        if use_residual:
            r_ref = refs[i]; i += 1                # (Cout, TL) f32
        o_ref = refs[i]; i += 1                    # (Cout, TL)
        osum_ref = osq_ref = None
        if emit_stats:
            osum_ref = refs[i]; i += 1             # (Cout, 1) resident accumulator
            osq_ref = refs[i]; i += 1              # (Cout, 1) resident accumulator

        cout, tl = o_ref.shape
        # Static base when there is a single L tile -> no dynamic lane offsets.
        if n_l_tiles == 1:
            base = 0
        else:
            base = pl.multiple_of(pl.program_id(1) * tl, tl)

        # BatchNorm affine derived in-kernel from fused batch statistics (tiny VPU/EUP
        # work on a (Cin, 1) vector, recomputed per grid step — negligible).
        if use_prologue:
            inv_n = 1.0 / norm_count
            mean = sum_ref[...] * inv_n
            var = jnp.maximum(sq_ref[...] * inv_n - mean * mean, 0.0)   # biased var
            scale = g_ref[...] * jax.lax.rsqrt(var + EPS)
            shift = beta_ref[...] - mean * scale

        # Load + (optionally) activate each input plane ONCE, then slice per tap.
        slabs = []
        for p_i in range(P):
            sl = x_ref[p_i, :, pl.ds(base, tl + extra)]                 # (Cin, TL+extra)
            if use_prologue:
                sl = sl * scale + shift                                 # BatchNorm affine
                sl = jnp.where(sl > 0, sl, LRELU_SLOPE * sl)            # LeakyReLU(0.2)
                lane = jax.lax.broadcasted_iota(jnp.int32, (1, tl + extra), 1)
                col = (base + lane) * stride + p_i                      # padded input col
                valid = (col >= pad_left) & (col < pad_left + l_valid)  # keep zero-pad = 0
                sl = jnp.where(valid, sl, 0.0)
            slabs.append(sl.astype(jnp.bfloat16))

        acc = jnp.zeros((cout, tl), jnp.float32)
        for t in range(3):                                              # 3 taps, unrolled
            plane, off = t % stride, t // stride
            xs = slabs[plane][:, off:off + tl]                          # (Cin, TL) bf16
            acc = acc + jnp.dot(w_ref[t], xs, preferred_element_type=jnp.float32)

        out = acc + b_ref[...]
        if use_residual:
            out = out + r_ref[...]
        o_ref[...] = out.astype(o_ref.dtype)

        # Fused per-channel batch statistics of THIS conv's output, for the next BN.
        if emit_stats:
            h = out
            if n_l_tiles * tl != l_out:                                 # mask padded tail
                lane = base + jax.lax.broadcasted_iota(jnp.int32, (1, tl), 1)
                h = jnp.where(lane < l_out, h, 0.0)
            if n_l_tiles == 1:
                first = pl.program_id(0) == 0
            else:
                first = (pl.program_id(0) == 0) & (pl.program_id(1) == 0)

            @pl.when(first)
            def _():
                osum_ref[...] = jnp.zeros_like(osum_ref)
                osq_ref[...] = jnp.zeros_like(osq_ref)

            osum_ref[...] += jnp.sum(h, axis=1, keepdims=True)
            osq_ref[...] += jnp.sum(h * h, axis=1, keepdims=True)

    return kernel


# --------------------------------------------------------------------------- #
# Wrapper (pallas_call plumbing)
# --------------------------------------------------------------------------- #
def conv1d_fused(x_bcl, weight, bias, *, stride=1, padding=1,
                 norm=None, residual=None, emit_stats=False, tile_l=512):
    """Conv1d(kernel=3) with optional fused BN+LeakyReLU prologue, residual add,
    and fused per-channel output-stat emission.

    x_bcl    : (B, Cin, L) f32
    weight   : (Cout, Cin, 3)  (PyTorch layout)
    bias     : (Cout,)
    norm     : optional dict(sum, sq, gamma, beta, count) -> prologue
               h = leaky_relu(batchnorm(x)) using fused batch statistics.
    residual : optional (B, Cout, L_out) added to the conv output (fused + aliased).
    emit_stats : also return per-channel (sum, sumsq) of this conv's output.
    """
    B, Cin, L = x_bcl.shape
    Cout = weight.shape[0]
    L_out = (L + 2 * padding - 3) // stride + 1

    TL = L_out if L_out <= tile_l else tile_l
    ntiles = pl.cdiv(L_out, TL)
    LoutP = TL * ntiles                               # output length padded to tile grid
    Lplane = LoutP + (2 // stride)                    # per-plane input columns needed
    pad_right = stride * Lplane - L - padding
    xp = jnp.pad(x_bcl, ((0, 0), (0, 0), (padding, pad_right)))

    if stride == 1:
        x_planes = xp[:, None]                                         # (B, 1, Cin, Lplane)
    else:  # even/odd plane repack: no strided loads needed in-kernel
        x_planes = jnp.transpose(
            xp.reshape(B, Cin, Lplane, stride), (0, 3, 1, 2))           # (B, s, Cin, Lplane)
    P = x_planes.shape[1]

    w3 = jnp.transpose(weight, (2, 0, 1)).astype(jnp.bfloat16)          # (3, Cout, Cin)
    b2 = bias.reshape(Cout, 1).astype(jnp.float32)

    in_specs = [pl.BlockSpec((None, P, Cin, Lplane), lambda b, j: (b, 0, 0, 0)),
                pl.BlockSpec((3, Cout, Cin), lambda b, j: (0, 0, 0)),   # resident weights
                pl.BlockSpec((Cout, 1), lambda b, j: (0, 0))]
    args = [x_planes, w3, b2]

    use_prologue = norm is not None
    norm_count = 1.0
    if use_prologue:
        cvec = pl.BlockSpec((Cin, 1), lambda b, j: (0, 0))
        in_specs += [cvec, cvec, cvec, cvec]
        args += [norm["sum"].reshape(Cin, 1).astype(jnp.float32),
                 norm["sq"].reshape(Cin, 1).astype(jnp.float32),
                 norm["gamma"].reshape(Cin, 1).astype(jnp.float32),
                 norm["beta"].reshape(Cin, 1).astype(jnp.float32)]
        norm_count = float(norm["count"])

    use_residual = residual is not None
    io_aliases = {}
    if use_residual:
        r = residual
        if r.shape[2] != LoutP:
            r = jnp.pad(r, ((0, 0), (0, 0), (0, LoutP - r.shape[2])))
        in_specs.append(pl.BlockSpec((None, Cout, TL), lambda b, j: (b, 0, j)))
        args.append(r)
        io_aliases = {len(args) - 1: 0}               # reuse residual buffer as output

    main_shape = jax.ShapeDtypeStruct((B, Cout, LoutP), jnp.float32)
    main_spec = pl.BlockSpec((None, Cout, TL), lambda b, j: (b, 0, j))
    stat_shape = jax.ShapeDtypeStruct((Cout, 1), jnp.float32)
    stat_spec = pl.BlockSpec((Cout, 1), lambda b, j: (0, 0))
    if emit_stats:
        out_shape = (main_shape, stat_shape, stat_shape)
        out_specs = (main_spec, stat_spec, stat_spec)
        dims = ("arbitrary", "arbitrary")             # stats accumulate across the grid
    else:
        out_shape = main_shape
        out_specs = main_spec
        dims = ("parallel", "parallel")

    kernel = _make_conv_kernel(stride=stride, pad_left=padding, l_valid=L,
                               l_out=L_out, n_l_tiles=ntiles,
                               use_prologue=use_prologue, use_residual=use_residual,
                               emit_stats=emit_stats, norm_count=norm_count)
    result = pl.pallas_call(
        kernel,
        out_shape=out_shape,
        grid=(B, ntiles),
        in_specs=in_specs,
        out_specs=out_specs,
        input_output_aliases=io_aliases,
        compiler_params=pltpu.CompilerParams(
            dimension_semantics=dims,
            vmem_limit_bytes=_VMEM_LIMIT),
    )(*args)

    if emit_stats:
        out, osum, osq = result
    else:
        out = result
    if LoutP != L_out:
        out = out[:, :, :L_out]
    if emit_stats:
        return out, osum.reshape(Cout), osq.reshape(Cout)
    return out


# --------------------------------------------------------------------------- #
# Module forward (composed from Pallas kernels)
# --------------------------------------------------------------------------- #
def resnet_block(x, x_sum, x_sq, p, *, downsample):
    """ResnetBlock with temb=None, dropout=0.0, nin_shortcut (k=3 conv).
    x_sum / x_sq are the fused per-channel batch stats of x (for norm1)."""
    B, _, L = x.shape
    s = 2 if downsample else 1
    # conv1(lrelu(norm1(x))) — also emits stats of its output for norm2.
    h, h_sum, h_sq = conv1d_fused(
        x, p["conv1_w"], p["conv1_b"], stride=s, padding=1,
        norm=dict(sum=x_sum, sq=x_sq, gamma=p["norm1_g"], beta=p["norm1_b"],
                  count=B * L),
        emit_stats=True)
    # shortcut = nin_shortcut(x)
    x_sc = conv1d_fused(x, p["nin_w"], p["nin_b"], stride=s, padding=1)
    # dropout(p=0.0) -> identity.
    # x_sc + conv2(lrelu(norm2(h))) — also emits stats for the NEXT block's norm1.
    L1 = h.shape[2]
    out, o_sum, o_sq = conv1d_fused(
        h, p["conv2_w"], p["conv2_b"], stride=1, padding=1,
        norm=dict(sum=h_sum, sq=h_sq, gamma=p["norm2_g"], beta=p["norm2_b"],
                  count=B * L1),
        residual=x_sc, emit_stats=True)
    return out, o_sum, o_sq


def encoder_convd_forward(x_btn, params, *, downsample_rate):
    # x: (B, T, N) -> transpose(1, 2) -> (B, N, T)
    x = jnp.transpose(x_btn, (0, 2, 1))
    B = x.shape[0]
    h, h_sum, h_sq = conv1d_fused(x, params["conv_in_w"], params["conv_in_b"],
                                  stride=1, padding=0, emit_stats=True)
    for lvl in range(downsample_rate - 1):
        h, h_sum, h_sq = resnet_block(h, h_sum, h_sq, params["down"][lvl][0],
                                      downsample=True)
        h, h_sum, h_sq = resnet_block(h, h_sum, h_sq, params["down"][lvl][1],
                                      downsample=False)
    h, h_sum, h_sq = resnet_block(h, h_sum, h_sq, params["mid"], downsample=False)
    L = h.shape[2]
    h = conv1d_fused(h, params["conv_out_w"], params["conv_out_b"],
                     stride=1, padding=1,
                     norm=dict(sum=h_sum, sq=h_sq, gamma=params["norm_out_g"],
                               beta=params["norm_out_b"], count=B * L))
    h = jnp.transpose(h, (0, 2, 1))                   # (B, L_out, z_channels)
    # TODO(synk): `out_transencoder` (TransformerEncoder) definition is not provided in
    # the reference source, so the output here is the pre-transformer feature map.
    return h


# --------------------------------------------------------------------------- #
# Deterministic parameter initialization (shapes from Encoder_convd.__init__)
# --------------------------------------------------------------------------- #
def init_params(key, *, ch, ch_mult, downsample_rate, in_channels, z_channels):
    key_iter = iter(jax.random.split(key, 256))

    def conv_p(cin, cout):
        scale = 1.0 / jnp.sqrt(jnp.float32(cin * 3))
        w = jax.random.normal(next(key_iter), (cout, cin, 3), jnp.float32) * scale
        b = jax.random.normal(next(key_iter), (cout,), jnp.float32) * 0.01
        return w, b

    def bn_p(c):
        g = 1.0 + 0.1 * jax.random.normal(next(key_iter), (c,), jnp.float32)
        b = 0.1 * jax.random.normal(next(key_iter), (c,), jnp.float32)
        return g, b

    def resblock_p(cin, cout):
        n1g, n1b = bn_p(cin)
        c1w, c1b = conv_p(cin, cout)
        n2g, n2b = bn_p(cout)
        c2w, c2b = conv_p(cout, cout)
        nsw, nsb = conv_p(cin, cout)
        return dict(norm1_g=n1g, norm1_b=n1b, conv1_w=c1w, conv1_b=c1b,
                    norm2_g=n2g, norm2_b=n2b, conv2_w=c2w, conv2_b=c2b,
                    nin_w=nsw, nin_b=nsb)

    params = {}
    params["conv_in_w"], params["conv_in_b"] = conv_p(in_channels, ch)

    in_ch_mult = (1,) + tuple(ch_mult)
    params["down"] = []
    block_in = ch
    for i_level in range(downsample_rate - 1):
        block_in = ch * in_ch_mult[i_level]
        block_out = ch * ch_mult[i_level]
        params["down"].append([resblock_p(block_in, block_out),
                               resblock_p(block_out, block_out)])
        block_in = block_out

    params["mid"] = resblock_p(block_in, block_in)
    params["norm_out_g"], params["norm_out_b"] = bn_p(block_in)
    params["conv_out_w"], params["conv_out_b"] = conv_p(block_in, z_channels)
    return params


# --------------------------------------------------------------------------- #
if __name__ == "__main__":
    # Small, shape-consistent config: ch=8, ch_mult=(1,2,2,4), downsample_rate=4,
    # in_channels=4, z_channels=8.  T=34 so conv_in (no pad) -> 32 -> /2/2/2 -> 4.
    B, T, N = 2, 34, 4
    CH, CH_MULT, DS_RATE, Z_CH = 8, (1, 2, 2, 4), 4, 8

    key = jax.random.PRNGKey(0)
    k_x, k_p = jax.random.split(key)
    x = jax.random.normal(k_x, (B, T, N), jnp.float32)
    params = init_params(k_p, ch=CH, ch_mult=CH_MULT, downsample_rate=DS_RATE,
                         in_channels=N, z_channels=Z_CH)

    fwd = jax.jit(functools.partial(encoder_convd_forward, downsample_rate=DS_RATE))
    out = fwd(x, params)
    jax.block_until_ready(out)

    assert out.shape == (B, 4, Z_CH), out.shape
    assert jnp.all(jnp.isfinite(out))
    print("KERNEL_OK")
</pallas_src>

<mosaic_0001>
module attributes {stable_mosaic.version = 11 : i64} {
  func.func @kernel(%arg0: i32, %arg1: i32, %arg2: memref<1x1x4x34xf32, #tpu.memory_space<vmem>>, %arg3: memref<3x8x4xbf16, #tpu.memory_space<vmem>>, %arg4: memref<8x1xf32, #tpu.memory_space<vmem>>, %arg5: memref<1x8x32xf32, #tpu.memory_space<vmem>>, %arg6: memref<8x1xf32, #tpu.memory_space<vmem>>, %arg7: memref<8x1xf32, #tpu.memory_space<vmem>>) attributes {dimension_semantics = [#tpu.dimension_semantics<arbitrary>, #tpu.dimension_semantics<arbitrary>], iteration_bounds = array<i64: 2, 1>, scalar_prefetch = 0 : i64, scratch_operands = 0 : i64, tpu.core_type = #tpu.core_type<tc>, window_params = [{transform_indices = @transform_0, window_bounds = array<i64: 1, 1, 4, 34>}, {pipeline_mode = #tpu.pipeline_mode<synchronous>, transform_indices = @transform_1, window_bounds = array<i64: 3, 8, 4>}, {pipeline_mode = #tpu.pipeline_mode<synchronous>, transform_indices = @transform_2, window_bounds = array<i64: 8, 1>}, {transform_indices = @transform_3, window_bounds = array<i64: 1, 8, 32>}, {pipeline_mode = #tpu.pipeline_mode<synchronous>, transform_indices = @transform_4, window_bounds = array<i64: 8, 1>}, {pipeline_mode = #tpu.pipeline_mode<synchronous>, transform_indices = @transform_5, window_bounds = array<i64: 8, 1>}]} {
    %c0 = arith.constant 0 : index
    %c0_0 = arith.constant 0 : index
    %c0_1 = arith.constant 0 : index
    %c0_2 = arith.constant 0 : index
    %0 = vector.load %arg2[%c0, %c0_0, %c0_1, %c0_2] : memref<1x1x4x34xf32, #tpu.memory_space<vmem>>, vector<1x1x4x34xf32>
    %1 = vector.shape_cast %0 : vector<1x1x4x34xf32> to vector<4x34xf32>
    %2 = arith.truncf %1 : vector<4x34xf32> to vector<4x34xbf16>
    %cst = arith.constant 0.000000e+00 : f32
    %3 = vector.broadcast %cst : f32 to vector<8x32xf32>
    %4 = vector.extract_strided_slice %2 {offsets = [0, 0], sizes = [4, 32], strides = [1, 1]} : vector<4x34xbf16> to vector<4x32xbf16>
    %c0_3 = arith.constant 0 : index
    %c0_4 = arith.constant 0 : index
    %c0_5 = arith.constant 0 : index
    %5 = vector.load %arg3[%c0_3, %c0_4, %c0_5] : memref<3x8x4xbf16, #tpu.memory_space<vmem>>, vector<1x8x4xbf16>
    %6 = vector.shape_cast %5 : vector<1x8x4xbf16> to vector<8x4xbf16>
    %cst_6 = arith.constant dense<0.000000e+00> : vector<8x32xf32>
    %7 = tpu.matmul %6, %4, %cst_6 {dimension_numbers = #tpu.dot_dimension_numbers<[1], [0], [0], [1], [0, 0, 1, 1], [], []>} : vector<8x4xbf16>, vector<4x32xbf16>, vector<8x32xf32> -> vector<8x32xf32>
    %8 = arith.addf %3, %7 : vector<8x32xf32>
    %9 = vector.extract_strided_slice %2 {offsets = [0, 1], sizes = [4, 32], strides = [1, 1]} : vector<4x34xbf16> to vector<4x32xbf16>
    %c1 = arith.constant 1 : index
    %c0_7 = arith.constant 0 : index
    %c0_8 = arith.constant 0 : index
    %10 = vector.load %arg3[%c1, %c0_7, %c0_8] : memref<3x8x4xbf16, #tpu.memory_space<vmem>>, vector<1x8x4xbf16>
    %11 = vector.shape_cast %10 : vector<1x8x4xbf16> to vector<8x4xbf16>
    %cst_9 = arith.constant dense<0.000000e+00> : vector<8x32xf32>
    %12 = tpu.matmul %11, %9, %cst_9 {dimension_numbers = #tpu.dot_dimension_numbers<[1], [0], [0], [1], [0, 0, 1, 1], [], []>} : vector<8x4xbf16>, vector<4x32xbf16>, vector<8x32xf32> -> vector<8x32xf32>
    %13 = arith.addf %8, %12 : vector<8x32xf32>
    %14 = vector.extract_strided_slice %2 {offsets = [0, 2], sizes = [4, 32], strides = [1, 1]} : vector<4x34xbf16> to vector<4x32xbf16>
    %c2 = arith.constant 2 : index
    %c0_10 = arith.constant 0 : index
    %c0_11 = arith.constant 0 : index
    %15 = vector.load %arg3[%c2, %c0_10, %c0_11] : memref<3x8x4xbf16, #tpu.memory_space<vmem>>, vector<1x8x4xbf16>
    %16 = vector.shape_cast %15 : vector<1x8x4xbf16> to vector<8x4xbf16>
    %cst_12 = arith.constant dense<0.000000e+00> : vector<8x32xf32>
    %17 = tpu.matmul %16, %14, %cst_12 {dimension_numbers = #tpu.dot_dimension_numbers<[1], [0], [0], [1], [0, 0, 1, 1], [], []>} : vector<8x4xbf16>, vector<4x32xbf16>, vector<8x32xf32> -> vector<8x32xf32>
    %18 = arith.addf %13, %17 : vector<8x32xf32>
    %c0_13 = arith.constant 0 : index
    %c0_14 = arith.constant 0 : index
    %19 = vector.load %arg4[%c0_13, %c0_14] : memref<8x1xf32, #tpu.memory_space<vmem>>, vector<8x1xf32>
    %20 = vector.broadcast %19 : vector<8x1xf32> to vector<8x32xf32>
    %21 = arith.addf %18, %20 : vector<8x32xf32>
    %c0_15 = arith.constant 0 : index
    %c0_16 = arith.constant 0 : index
    %c0_17 = arith.constant 0 : index
    %22 = vector.load %arg5[%c0_15, %c0_16, %c0_17] : memref<1x8x32xf32, #tpu.memory_space<vmem>>, vector<1x8x32xf32>
    %23 = vector.shape_cast %22 : vector<1x8x32xf32> to vector<8x32xf32>
    %24 = vector.shape_cast %21 : vector<8x32xf32> to vector<1x8x32xf32>
    tpu.vector_store %arg5[%c0_15, %c0_16, %c0_17], %24 {strides = array<i32>} : memref<1x8x32xf32, #tpu.memory_space<vmem>>, vector<1x8x32xf32>,
    %c0_i32 = arith.constant 0 : i32
    %25 = arith.cmpi eq, %arg0, %c0_i32 : i32
    %26 = arith.extui %25 : i1 to i32
    %c0_i32_18 = arith.constant 0 : i32
    %27 = arith.cmpi ne, %26, %c0_i32_18 : i32
    scf.if %27 {
      %cst_29 = arith.constant 0.000000e+00 : f32
      %39 = vector.broadcast %cst_29 : f32 to vector<8x1xf32>
      %c0_30 = arith.constant 0 : index
      %c0_31 = arith.constant 0 : index
      %40 = vector.load %arg6[%c0_30, %c0_31] : memref<8x1xf32, #tpu.memory_space<vmem>>, vector<8x1xf32>
      tpu.vector_store %arg6[%c0_30, %c0_31], %39 {strides = array<i32>} : memref<8x1xf32, #tpu.memory_space<vmem>>, vector<8x1xf32>,
      %cst_32 = arith.constant 0.000000e+00 : f32
      %41 = vector.broadcast %cst_32 : f32 to vector<8x1xf32>
      %c0_33 = arith.constant 0 : index
      %c0_34 = arith.constant 0 : index
      %42 = vector.load %arg7[%c0_33, %c0_34] : memref<8x1xf32, #tpu.memory_space<vmem>>, vector<8x1xf32>
      tpu.vector_store %arg7[%c0_33, %c0_34], %41 {strides = array<i32>} : memref<8x1xf32, #tpu.memory_space<vmem>>, vector<8x1xf32>,
    } else {
    }
    %c0_19 = arith.constant 0 : index
    %c0_20 = arith.constant 0 : index
    %28 = vector.load %arg6[%c0_19, %c0_20] : memref<8x1xf32, #tpu.memory_space<vmem>>, vector<8x1xf32>
    %cst_21 = arith.constant dense<0.000000e+00> : vector<8xf32>
    %29 = vector.multi_reduction <add>, %21, %cst_21 [1] : vector<8x32xf32> to vector<8xf32>
    %30 = vector.shape_cast %29 : vector<8xf32> to vector<8x1xf32>
    %31 = arith.addf %28, %30 : vector<8x1xf32>
    %c0_22 = arith.constant 0 : index
    %c0_23 = arith.constant 0 : index
    %32 = vector.load %arg6[%c0_22, %c0_23] : memref<8x1xf32, #tpu.memory_space<vmem>>, vector<8x1xf32>
    tpu.vector_store %arg6[%c0_22, %c0_23], %31 {strides = array<i32>} : memref<8x1xf32, #tpu.memory_space<vmem>>, vector<8x1xf32>,
    %c0_24 = arith.constant 0 : index
    %c0_25 = arith.constant 0 : index
    %33 = vector.load %arg7[%c0_24, %c0_25] : memref<8x1xf32, #tpu.memory_space<vmem>>, vector<8x1xf32>
    %34 = arith.mulf %21, %21 : vector<8x32xf32>
    %cst_26 = arith.constant dense<0.000000e+00> : vector<8xf32>
    %35 = vector.multi_reduction <add>, %34, %cst_26 [1] : vector<8x32xf32> to vector<8xf32>
    %36 = vector.shape_cast %35 : vector<8xf32> to vector<8x1xf32>
    %37 = arith.addf %33, %36 : vector<8x1xf32>
    %c0_27 = arith.constant 0 : index
    %c0_28 = arith.constant 0 : index
    %38 = vector.load %arg7[%c0_27, %c0_28] : memref<8x1xf32, #tpu.memory_space<vmem>>, vector<8x1xf32>
    tpu.vector_store %arg7[%c0_27, %c0_28], %37 {strides = array<i32>} : memref<8x1xf32, #tpu.memory_space<vmem>>, vector<8x1xf32>,
    return
  }
  func.func @transform_0(%arg0: i32, %arg1: i32) -> (i32, i32, i32, i32) {
    %c0_i32 = arith.constant 0 : i32
    %c0_i32_0 = arith.constant 0 : i32
    %c0_i32_1 = arith.constant 0 : i32
    %c0_i32_2 = arith.constant 0 : i32
    return %arg0, %c0_i32, %c0_i32_0, %c0_i32_1 : i32, i32, i32, i32
  }
  func.func @transform_1(%arg0: i32, %arg1: i32) -> (i32, i32, i32) {
    %c0_i32 = arith.constant 0 : i32
    %c0_i32_0 = arith.constant 0 : i32
    %c0_i32_1 = arith.constant 0 : i32
    %c0_i32_2 = arith.constant 0 : i32
    return %c0_i32, %c0_i32_0, %c0_i32_1 : i32, i32, i32
  }
  func.func @transform_2(%arg0: i32, %arg1: i32) -> (i32, i32) {
    %c0_i32 = arith.constant 0 : i32
    %c0_i32_0 = arith.constant 0 : i32
    %c0_i32_1 = arith.constant 0 : i32
    return %c0_i32, %c0_i32_0 : i32, i32
  }
  func.func @transform_3(%arg0: i32, %arg1: i32) -> (i32, i32, i32) {
    %c0_i32 = arith.constant 0 : i32
    %c0_i32_0 = arith.constant 0 : i32
    return %arg0, %c0_i32, %arg1 : i32, i32, i32
  }
  func.func @transform_4(%arg0: i32, %arg1: i32) -> (i32, i32) {
    %c0_i32 = arith.constant 0 : i32
    %c0_i32_0 = arith.constant 0 : i32
    %c0_i32_1 = arith.constant 0 : i32
    return %c0_i32, %c0_i32_0 : i32, i32
  }
  func.func @transform_5(%arg0: i32, %arg1: i32) -> (i32, i32) {
    %c0_i32 = arith.constant 0 : i32
    %c0_i32_0 = arith.constant 0 : i32
    %c0_i32_1 = arith.constant 0 : i32
    return %c0_i32, %c0_i32_0 : i32, i32
  }
}

module attributes {stable_mosaic.version = 11 : i64} {
  func.func @kernel(%arg0: i32, %arg1: i32, %arg2: memref<1x2x8x17xf32, #tpu.memory_space<vmem>>, %arg3: memref<3x8x8xbf16, #tpu.memory_space<vmem>>, %arg4: memref<8x1xf32, #tpu.memory_space<vmem>>, %arg5: memref<8x1xf32, #tpu.memory_space<vmem>>, %arg6: memref<8x1xf32, #tpu.memory_space<vmem>>, %arg7: memref<8x1xf32, #tpu.memory_space<vmem>>, %arg8: memref<8x1xf32, #tpu.memory_space<vmem>>, %arg9: memref<1x8x16xf32, #tpu.memory_space<vmem>>, %arg10: memref<8x1xf32, #tpu.memory_space<vmem>>, %arg11: memref<8x1xf32, #tpu.memory_space<vmem>>) attributes {dimension_semantics = [#tpu.dimension_semantics<arbitrary>, #tpu.dimension_semantics<arbitrary>], iteration_bounds = array<i64: 2, 1>, scalar_prefetch = 0 : i64, scratch_operands = 0 : i64, tpu.core_type = #tpu.core_type<tc>, window_params = [{transform_indices = @transform_0, window_bounds = array<i64: 1, 2, 8, 17>}, {pipeline_mode = #tpu.pipeline_mode<synchronous>, transform_indices = @transform_1, window_bounds = array<i64: 3, 8, 8>}, {pipeline_mode = #tpu.pipeline_mode<synchronous>, transform_indices = @transform_2, window_bounds = array<i64: 8, 1>}, {pipeline_mode = #tpu.pipeline_mode<synchronous>, transform_indices = @transform_3, window_bounds = array<i64: 8, 1>}, {pipeline_mode = #tpu.pipeline_mode<synchronous>, transform_indices = @transform_4, window_bounds = array<i64: 8, 1>}, {pipeline_mode = #tpu.pipeline_mode<synchronous>, transform_indices = @transform_5, window_bounds = array<i64: 8, 1>}, {pipeline_mode = #tpu.pipeline_mode<synchronous>, transform_indices = @transform_6, window_bounds = array<i64: 8, 1>}, {transform_indices = @transform_7, window_bounds = array<i64: 1, 8, 16>}, {pipeline_mode = #tpu.pipeline_mode<synchronous>, transform_indices = @transform_8, window_bounds = array<i64: 8, 1>}, {pipeline_mode = #tpu.pipeline_mode<synchronous>, transform_indices = @transform_9, window_bounds = array<i64: 8, 1>}]} {
    %c0 = arith.constant 0 : index
    %c0_0 = arith.constant 0 : index
    %0 = vector.load %arg5[%c0, %c0_0] : memref<8x1xf32, #tpu.memory_space<vmem>>, vector<8x1xf32>
    %cst = arith.constant 1.562500e-02 : f32
    %1 = vector.broadcast %cst : f32 to vector<8x1xf32>
    %2 = arith.mulf %0, %1 : vector<8x1xf32>
    %c0_1 = arith.constant 0 : index
    %c0_2 = arith.constant 0 : index
    %3 = vector.load %arg6[%c0_1, %c0_2] : memref<8x1xf32, #tpu.memory_space<vmem>>, vector<8x1xf32>
    %cst_3 = arith.constant 1.562500e-02 : f32
    %4 = vector.broadcast %cst_3 : f32 to vector<8x1xf32>
    %5 = arith.mulf %3, %4 : vector<8x1xf32>
    %6 = arith.mulf %2, %2 : vector<8x1xf32>
    %7 = arith.subf %5, %6 : vector<8x1xf32>
    %cst_4 = arith.constant 0.000000e+00 : f32
    %8 = vector.broadcast %cst_4 : f32 to vector<8x1xf32>
    %9 = arith.maximumf %7, %8 : vector<8x1xf32>
    %c0_5 = arith.constant 0 : index
    %c0_6 = arith.constant 0 : index
    %10 = vector.load %arg7[%c0_5, %c0_6] : memref<8x1xf32, #tpu.memory_space<vmem>>, vector<8x1xf32>
    %cst_7 = arith.constant 9.99999974E-6 : f32
    %11 = vector.broadcast %cst_7 : f32 to vector<8x1xf32>
    %12 = arith.addf %9, %11 : vector<8x1xf32>
    %13 = math.rsqrt %12 : vector<8x1xf32>
    %14 = arith.mulf %10, %13 : vector<8x1xf32>
    %c0_8 = arith.constant 0 : index
    %c0_9 = arith.constant 0 : index
    %15 = vector.load %arg8[%c0_8, %c0_9] : memref<8x1xf32, #tpu.memory_space<vmem>>, vector<8x1xf32>
    %16 = arith.mulf %2, %14 : vector<8x1xf32>
    %17 = arith.subf %15, %16 : vector<8x1xf32>
    %c0_10 = arith.constant 0 : index
    %c0_11 = arith.constant 0 : index
    %c0_12 = arith.constant 0 : index
    %c0_13 = arith.constant 0 : index
    %18 = vector.load %arg2[%c0_10, %c0_11, %c0_12, %c0_13] : memref<1x2x8x17xf32, #tpu.memory_space<vmem>>, vector<1x1x8x17xf32>
    %19 = vector.shape_cast %18 : vector<1x1x8x17xf32> to vector<8x17xf32>
    %20 = vector.broadcast %14 : vector<8x1xf32> to vector<8x17xf32>
    %21 = arith.mulf %19, %20 : vector<8x17xf32>
    %22 = vector.broadcast %17 : vector<8x1xf32> to vector<8x17xf32>
    %23 = arith.addf %21, %22 : vector<8x17xf32>
    %cst_14 = arith.constant 0.000000e+00 : f32
    %24 = vector.broadcast %cst_14 : f32 to vector<8x17xf32>
    %25 = arith.cmpf ogt, %23, %24 : vector<8x17xf32>
    %cst_15 = arith.constant 2.000000e-01 : f32
    %26 = vector.broadcast %cst_15 : f32 to vector<8x17xf32>
    %27 = arith.mulf %26, %23 : vector<8x17xf32>
    %28 = arith.select %25, %23, %27 : vector<8x17xi1>, vector<8x17xf32>
    %29 = tpu.iota {dimensions = array<i32: 1>} : vector<1x17xi32>
    %c0_i32 = arith.constant 0 : i32
    %30 = vector.broadcast %c0_i32 : i32 to vector<1x17xi32>
    %31 = arith.addi %30, %29 : vector<1x17xi32>
    %c2_i32 = arith.constant 2 : i32
    %32 = vector.broadcast %c2_i32 : i32 to vector<1x17xi32>
    %33 = arith.muli %31, %32 : vector<1x17xi32>
    %c0_i32_16 = arith.constant 0 : i32
    %34 = vector.broadcast %c0_i32_16 : i32 to vector<1x17xi32>
    %35 = arith.addi %33, %34 : vector<1x17xi32>
    %c1_i32 = arith.constant 1 : i32
    %36 = vector.broadcast %c1_i32 : i32 to vector<1x17xi32>
    %37 = arith.cmpi sge, %35, %36 : vector<1x17xi32>
    %c33_i32 = arith.constant 33 : i32
    %38 = vector.broadcast %c33_i32 : i32 to vector<1x17xi32>
    %39 = arith.cmpi slt, %35, %38 : vector<1x17xi32>
    %40 = arith.andi %37, %39 : vector<1x17xi1>
    %cst_17 = arith.constant 0.000000e+00 : f32
    %41 = vector.shape_cast %40 : vector<1x17xi1> to vector<1x17xi1>
    %42 = vector.broadcast %41 : vector<1x17xi1> to vector<8x17xi1>
    %43 = vector.broadcast %cst_17 : f32 to vector<8x17xf32>
    %44 = arith.select %42, %28, %43 : vector<8x17xi1>, vector<8x17xf32>
    %45 = arith.truncf %44 : vector<8x17xf32> to vector<8x17xbf16>
    %c0_18 = arith.constant 0 : index
    %c1 = arith.constant 1 : index
    %c0_19 = arith.constant 0 : index
    %c0_20 = arith.constant 0 : index
    %46 = vector.load %arg2[%c0_18, %c1, %c0_19, %c0_20] : memref<1x2x8x17xf32, #tpu.memory_space<vmem>>, vector<1x1x8x17xf32>
    %47 = vector.shape_cast %46 : vector<1x1x8x17xf32> to vector<8x17xf32>
    %48 = vector.broadcast %14 : vector<8x1xf32> to vector<8x17xf32>
    %49 = arith.mulf %47, %48 : vector<8x17xf32>
    %50 = vector.broadcast %17 : vector<8x1xf32> to vector<8x17xf32>
    %51 = arith.addf %49, %50 : vector<8x17xf32>
    %cst_21 = arith.constant 0.000000e+00 : f32
    %52 = vector.broadcast %cst_21 : f32 to vector<8x17xf32>
    %53 = arith.cmpf ogt, %51, %52 : vector<8x17xf32>
    %cst_22 = arith.constant 2.000000e-01 : f32
    %54 = vector.broadcast %cst_22 : f32 to vector<8x17xf32>
    %55 = arith.mulf %54, %51 : vector<8x17xf32>
    %56 = arith.select %53, %51, %55 : vector<8x17xi1>, vector<8x17xf32>
    %57 = tpu.iota {dimensions = array<i32: 1>} : vector<1x17xi32>
    %c0_i32_23 = arith.constant 0 : i32
    %58 = vector.broadcast %c0_i32_23 : i32 to vector<1x17xi32>
    %59 = arith.addi %58, %57 : vector<1x17xi32>
    %c2_i32_24 = arith.constant 2 : i32
    %60 = vector.broadcast %c2_i32_24 : i32 to vector<1x17xi32>
    %61 = arith.muli %59, %60 : vector<1x17xi32>
    %c1_i32_25 = arith.constant 1 : i32
    %62 = vector.broadcast %c1_i32_25 : i32 to vector<1x17xi32>
    %63 = arith.addi %61, %62 : vector<1x17xi32>
    %c1_i32_26 = arith.constant 1 : i32
    %64 = vector.broadcast %c1_i32_26 : i32 to vector<1x17xi32>
    %65 = arith.cmpi sge, %63, %64 : vector<1x17xi32>
    %c33_i32_27 = arith.constant 33 : i32
    %66 = vector.broadcast %c33_i32_27 : i32 to vector<1x17xi32>
    %67 = arith.cmpi slt, %63, %66 : vector<1x17xi32>
    %68 = arith.andi %65, %67 : vector<1x17xi1>
    %cst_28 = arith.constant 0.000000e+00 : f32
    %69 = vector.shape_cast %68 : vector<1x17xi1> to vector<1x17xi1>
    %70 = vector.broadcast %69 : vector<1x17xi1> to vector<8x17xi1>
    %71 = vector.broadcast %cst_28 : f32 to vector<8x17xf32>
    %72 = arith.select %70, %56, %71 : vector<8x17xi1>, vector<8x17xf32>
    %73 = arith.truncf %72 : vector<8x17xf32> to vector<8x17xbf16>
    %cst_29 = arith.constant 0.000000e+00 : f32
    %74 = vector.broadcast %cst_29 : f32 to vector<8x16xf32>
    %75 = vector.extract_strided_slice %45 {offsets = [0, 0], sizes = [8, 16], strides = [1, 1]} : vector<8x17xbf16> to vector<8x16xbf16>
    %c0_30 = arith.constant 0 : index
    %c0_31 = arith.constant 0 : index
    %c0_32 = arith.constant 0 : index
    %76 = vector.load %arg3[%c0_30, %c0_31, %c0_32] : memref<3x8x8xbf16, #tpu.memory_space<vmem>>, vector<1x8x8xbf16>
    %77 = vector.shape_cast %76 : vector<1x8x8xbf16> to vector<8x8xbf16>
    %cst_33 = arith.constant dense<0.000000e+00> : vector<8x16xf32>
    %78 = tpu.matmul %77, %75, %cst_33 {dimension_numbers = #tpu.dot_dimension_numbers<[1], [0], [0], [1], [0, 0, 1, 1], [], []>} : vector<8x8xbf16>, vector<8x16xbf16>, vector<8x16xf32> -> vector<8x16xf32>
    %79 = arith.addf %74, %78 : vector<8x16xf32>
    %80 = vector.extract_strided_slice %73 {offsets = [0, 0], sizes = [8, 16], strides = [1, 1]} : vector<8x17xbf16> to vector<8x16xbf16>
    %c1_34 = arith.constant 1 : index
    %c0_35 = arith.constant 0 : index
    %c0_36 = arith.constant 0 : index
    %81 = vector.load %arg3[%c1_34, %c0_35, %c0_36] : memref<3x8x8xbf16, #tpu.memory_space<vmem>>, vector<1x8x8xbf16>
    %82 = vector.shape_cast %81 : vector<1x8x8xbf16> to vector<8x8xbf16>
    %cst_37 = arith.constant dense<0.000000e+00> : vector<8x16xf32>
    %83 = tpu.matmul %82, %80, %cst_37 {dimension_numbers = #tpu.dot_dimension_numbers<[1], [0], [0], [1], [0, 0, 1, 1], [], []>} : vector<8x8xbf16>, vector<8x16xbf16>, vector<8x16xf32> -> vector<8x16xf32>
    %84 = arith.addf %79, %83 : vector<8x16xf32>
    %85 = vector.extract_strided_slice %45 {offsets = [0, 1], sizes = [8, 16], strides = [1, 1]} : vector<8x17xbf16> to vector<8x16xbf16>
    %c2 = arith.constant 2 : index
    %c0_38 = arith.constant 0 : index
    %c0_39 = arith.constant 0 : index
    %86 = vector.load %arg3[%c2, %c0_38, %c0_39] : memref<3x8x8xbf16, #tpu.memory_space<vmem>>, vector<1x8x8xbf16>
    %87 = vector.shape_cast %86 : vector<1x8x8xbf16> to vector<8x8xbf16>
    %cst_40 = arith.constant dense<0.000000e+00> : vector<8x16xf32>
    %88 = tpu.matmul %87, %85, %cst_40 {dimension_numbers = #tpu.dot_dimension_numbers<[1], [0], [0], [1], [0, 0, 1, 1], [], []>} : vector<8x8xbf16>, vector<8x16xbf16>, vector<8x16xf32> -> vector<8x16xf32>
    %89 = arith.addf %84, %88 : vector<8x16xf32>
    %c0_41 = arith.constant 0 : index
    %c0_42 = arith.constant 0 : index
    %90 = vector.load %arg4[%c0_41, %c0_42] : memref<8x1xf32, #tpu.memory_space<vmem>>, vector<8x1xf32>
    %91 = vector.broadcast %90 : vector<8x1xf32> to vector<8x16xf32>
    %92 = arith.addf %89, %91 : vector<8x16xf32>
    %c0_43 = arith.constant 0 : index
    %c0_44 = arith.constant 0 : index
    %c0_45 = arith.constant 0 : index
    %93 = vector.load %arg9[%c0_43, %c0_44, %c0_45] : memref<1x8x16xf32, #tpu.memory_space<vmem>>, vector<1x8x16xf32>
    %94 = vector.shape_cast %93 : vector<1x8x16xf32> to vector<8x16xf32>
    %95 = vector.shape_cast %92 : vector<8x16xf32> to vector<1x8x16xf32>
    tpu.vector_store %arg9[%c0_43, %c0_44, %c0_45], %95 {strides = array<i32>} : memref<1x8x16xf32, #tpu.memory_space<vmem>>, vector<1x8x16xf32>,
    %c0_i32_46 = arith.constant 0 : i32
    %96 = arith.cmpi eq, %arg0, %c0_i32_46 : i32
    %97 = arith.extui %96 : i1 to i32
    %c0_i32_47 = arith.constant 0 : i32
    %98 = arith.cmpi ne, %97, %c0_i32_47 : i32
    scf.if %98 {
      %cst_58 = arith.constant 0.000000e+00 : f32
      %110 = vector.broadcast %cst_58 : f32 to vector<8x1xf32>
      %c0_59 = arith.constant 0 : index
      %c0_60 = arith.constant 0 : index
      %111 = vector.load %arg10[%c0_59, %c0_60] : memref<8x1xf32, #tpu.memory_space<vmem>>, vector<8x1xf32>
      tpu.vector_store %arg10[%c0_59, %c0_60], %110 {strides = array<i32>} : memref<8x1xf32, #tpu.memory_space<vmem>>, vector<8x1xf32>,
      %cst_61 = arith.constant 0.000000e+00 : f32
      %112 = vector.broadcast %cst_61 : f32 to vector<8x1xf32>
      %c0_62 = arith.constant 0 : index
      %c0_63 = arith.constant 0 : index
      %113 = vector.load %arg11[%c0_62, %c0_63] : memref<8x1xf32, #tpu.memory_space<vmem>>, vector<8x1xf32>
      tpu.vector_store %arg11[%c0_62, %c0_63], %112 {strides = array<i32>} : memref<8x1xf32, #tpu.memory_space<vmem>>, vector<8x1xf32>,
    } else {
    }
    %c0_48 = arith.constant 0 : index
    %c0_49 = arith.constant 0 : index
    %99 = vector.load %arg10[%c0_48, %c0_49] : memref<8x1xf32, #tpu.memory_space<vmem>>, vector<8x1xf32>
    %cst_50 = arith.constant dense<0.000000e+00> : vector<8xf32>
    %100 = vector.multi_reduction <add>, %92, %cst_50 [1] : vector<8x16xf32> to vector<8xf32>
    %101 = vector.shape_cast %100 : vector<8xf32> to vector<8x1xf32>
    %102 = arith.addf %99, %101 : vector<8x1xf32>
    %c0_51 = arith.constant 0 : index
    %c0_52 = arith.constant 0 : index
    %103 = vector.load %arg10[%c0_51, %c0_52] : memref<8x1xf32, #tpu.memory_space<vmem>>, vector<8x1xf32>
    tpu.vector_store %arg10[%c0_51, %c0_52], %102 {strides = array<i32>} : memref<8x1xf32, #tpu.memory_space<vmem>>, vector<8x1xf32>,
    %c0_53 = arith.constant 0 : index
    %c0_54 = arith.constant 0 : index
    %104 = vector.load %arg11[%c0_53, %c0_54] : memref<8x1xf32, #tpu.memory_space<vmem>>, vector<8x1xf32>
    %105 = arith.mulf %92, %92 : vector<8x16xf32>
    %cst_55 = arith.constant dense<0.000000e+00> : vector<8xf32>
    %106 = vector.multi_reduction <add>, %105, %cst_55 [1] : vector<8x16xf32> to vector<8xf32>
    %107 = vector.shape_cast %106 : vector<8xf32> to vector<8x1xf32>
    %108 = arith.addf %104, %107 : vector<8x1xf32>
    %c0_56 = arith.constant 0 : index
    %c0_57 = arith.constant 0 : index
    %109 = vector.load %arg11[%c0_56, %c0_57] : memref<8x1xf32, #tpu.memory_space<vmem>>, vector<8x1xf32>
    tpu.vector_store %arg11[%c0_56, %c0_57], %108 {strides = array<i32>} : memref<8x1xf32, #tpu.memory_space<vmem>>, vector<8x1xf32>,
    return
  }
  func.func @transform_0(%arg0: i32, %arg1: i32) -> (i32, i32, i32, i32) {
    %c0_i32 = arith.constant 0 : i32
    %c0_i32_0 = arith.constant 0 : i32
    %c0_i32_1 = arith.constant 0 : i32
    %c0_i32_2 = arith.constant 0 : i32
    return %arg0, %c0_i32, %c0_i32_0, %c0_i32_1 : i32, i32, i32, i32
  }
  func.func @transform_1(%arg0: i32, %arg1: i32) -> (i32, i32, i32) {
    %c0_i32 = arith.constant 0 : i32
    %c0_i32_0 = arith.constant 0 : i32
    %c0_i32_1 = arith.constant 0 : i32
    %c0_i32_2 = arith.constant 0 : i32
    return %c0_i32, %c0_i32_0, %c0_i32_1 : i32, i32, i32
  }
  func.func @transform_2(%arg0: i32, %arg1: i32) -> (i32, i32) {
    %c0_i32 = arith.constant 0 : i32
    %c0_i32_0 = arith.constant 0 : i32
    %c0_i32_1 = arith.constant 0 : i32
    return %c0_i32, %c0_i32_0 : i32, i32
  }
  func.func @transform_3(%arg0: i32, %arg1: i32) -> (i32, i32) {
    %c0_i32 = arith.constant 0 : i32
    %c0_i32_0 = arith.constant 0 : i32
    %c0_i32_1 = arith.constant 0 : i32
    return %c0_i32, %c0_i32_0 : i32, i32
  }
  func.func @transform_4(%arg0: i32, %arg1: i32) -> (i32, i32) {
    %c0_i32 = arith.constant 0 : i32
    %c0_i32_0 = arith.constant 0 : i32
    %c0_i32_1 = arith.constant 0 : i32
    return %c0_i32, %c0_i32_0 : i32, i32
  }
  func.func @transform_5(%arg0: i32, %arg1: i32) -> (i32, i32) {
    %c0_i32 = arith.constant 0 : i32
    %c0_i32_0 = arith.constant 0 : i32
    %c0_i32_1 = arith.constant 0 : i32
    return %c0_i32, %c0_i32_0 : i32, i32
  }
  func.func @transform_6(%arg0: i32, %arg1: i32) -> (i32, i32) {
    %c0_i32 = arith.constant 0 : i32
    %c0_i32_0 = arith.constant 0 : i32
    %c0_i32_1 = arith.constant 0 : i32
    return %c0_i32, %c0_i32_0 : i32, i32
  }
  func.func @transform_7(%arg0: i32, %arg1: i32) -> (i32, i32, i32) {
    %c0_i32 = arith.constant 0 : i32
    %c0_i32_0 = arith.constant 0 : i32
    return %arg0, %c0_i32, %arg1 : i32, i32, i32
  }
  func.func @transform_8(%arg0: i32, %arg1: i32) -> (i32, i32) {
    %c0_i32 = arith.constant 0 : i32
    %c0_i32_0 = arith.constant 0 : i32
    %c0_i32_1 = arith.constant 0 : i32
    return %c0_i32, %c0_i32_0 : i32, i32
  }
  func.func @transform_9(%arg0: i32, %arg1: i32) -> (i32, i32) {
    %c0_i32 = arith.constant 0 : i32
    %c0_i32_0 = arith.constant 0 : i32
    %c0_i32_1 = arith.constant 0 : i32
    return %c0_i32, %c0_i32_0 : i32, i32
  }
}

module attributes {stable_mosaic.version = 11 : i64} {
  func.func @kernel(%arg0: i32, %arg1: i32, %arg2: memref<1x2x8x17xf32, #tpu.memory_space<vmem>>, %arg3: memref<3x8x8xbf16, #tpu.memory_space<vmem>>, %arg4: memref<8x1xf32, #tpu.memory_space<vmem>>, %arg5: memref<1x8x16xf32, #tpu.memory_space<vmem>>) attributes {dimension_semantics = [#tpu.dimension_semantics<parallel>, #tpu.dimension_semantics<parallel>], iteration_bounds = array<i64: 2, 1>, scalar_prefetch = 0 : i64, scratch_operands = 0 : i64, tpu.core_type = #tpu.core_type<tc>, window_params = [{transform_indices = @transform_0, window_bounds = array<i64: 1, 2, 8, 17>}, {pipeline_mode = #tpu.pipeline_mode<synchronous>, transform_indices = @transform_1, window_bounds = array<i64: 3, 8, 8>}, {pipeline_mode = #tpu.pipeline_mode<synchronous>, transform_indices = @transform_2, window_bounds = array<i64: 8, 1>}, {transform_indices = @transform_3, window_bounds = array<i64: 1, 8, 16>}]} {
    %c0 = arith.constant 0 : index
    %c0_0 = arith.constant 0 : index
    %c0_1 = arith.constant 0 : index
    %c0_2 = arith.constant 0 : index
    %0 = vector.load %arg2[%c0, %c0_0, %c0_1, %c0_2] : memref<1x2x8x17xf32, #tpu.memory_space<vmem>>, vector<1x1x8x17xf32>
    %1 = vector.shape_cast %0 : vector<1x1x8x17xf32> to vector<8x17xf32>
    %2 = arith.truncf %1 : vector<8x17xf32> to vector<8x17xbf16>
    %c0_3 = arith.constant 0 : index
    %c1 = arith.constant 1 : index
    %c0_4 = arith.constant 0 : index
    %c0_5 = arith.constant 0 : index
    %3 = vector.load %arg2[%c0_3, %c1, %c0_4, %c0_5] : memref<1x2x8x17xf32, #tpu.memory_space<vmem>>, vector<1x1x8x17xf32>
    %4 = vector.shape_cast %3 : vector<1x1x8x17xf32> to vector<8x17xf32>
    %5 = arith.truncf %4 : vector<8x17xf32> to vector<8x17xbf16>
    %cst = arith.constant 0.000000e+00 : f32
    %6 = vector.broadcast %cst : f32 to vector<8x16xf32>
    %7 = vector.extract_strided_slice %2 {offsets = [0, 0], sizes = [8, 16], strides = [1, 1]} : vector<8x17xbf16> to vector<8x16xbf16>
    %c0_6 = arith.constant 0 : index
    %c0_7 = arith.constant 0 : index
    %c0_8 = arith.constant 0 : index
    %8 = vector.load %arg3[%c0_6, %c0_7, %c0_8] : memref<3x8x8xbf16, #tpu.memory_space<vmem>>, vector<1x8x8xbf16>
    %9 = vector.shape_cast %8 : vector<1x8x8xbf16> to vector<8x8xbf16>
    %cst_9 = arith.constant dense<0.000000e+00> : vector<8x16xf32>
    %10 = tpu.matmul %9, %7, %cst_9 {dimension_numbers = #tpu.dot_dimension_numbers<[1], [0], [0], [1], [0, 0, 1, 1], [], []>} : vector<8x8xbf16>, vector<8x16xbf16>, vector<8x16xf32> -> vector<8x16xf32>
    %11 = arith.addf %6, %10 : vector<8x16xf32>
    %12 = vector.extract_strided_slice %5 {offsets = [0, 0], sizes = [8, 16], strides = [1, 1]} : vector<8x17xbf16> to vector<8x16xbf16>
    %c1_10 = arith.constant 1 : index
    %c0_11 = arith.constant 0 : index
    %c0_12 = arith.constant 0 : index
    %13 = vector.load %arg3[%c1_10, %c0_11, %c0_12] : memref<3x8x8xbf16, #tpu.memory_space<vmem>>, vector<1x8x8xbf16>
    %14 = vector.shape_cast %13 : vector<1x8x8xbf16> to vector<8x8xbf16>
    %cst_13 = arith.constant dense<0.000000e+00> : vector<8x16xf32>
    %15 = tpu.matmul %14, %12, %cst_13 {dimension_numbers = #tpu.dot_dimension_numbers<[1], [0], [0], [1], [0, 0, 1, 1], [], []>} : vector<8x8xbf16>, vector<8x16xbf16>, vector<8x16xf32> -> vector<8x16xf32>
    %16 = arith.addf %11, %15 : vector<8x16xf32>
    %17 = vector.extract_strided_slice %2 {offsets = [0, 1], sizes = [8, 16], strides = [1, 1]} : vector<8x17xbf16> to vector<8x16xbf16>
    %c2 = arith.constant 2 : index
    %c0_14 = arith.constant 0 : index
    %c0_15 = arith.constant 0 : index
    %18 = vector.load %arg3[%c2, %c0_14, %c0_15] : memref<3x8x8xbf16, #tpu.memory_space<vmem>>, vector<1x8x8xbf16>
    %19 = vector.shape_cast %18 : vector<1x8x8xbf16> to vector<8x8xbf16>
    %cst_16 = arith.constant dense<0.000000e+00> : vector<8x16xf32>
    %20 = tpu.matmul %19, %17, %cst_16 {dimension_numbers = #tpu.dot_dimension_numbers<[1], [0], [0], [1], [0, 0, 1, 1], [], []>} : vector<8x8xbf16>, vector<8x16xbf16>, vector<8x16xf32> -> vector<8x16xf32>
    %21 = arith.addf %16, %20 : vector<8x16xf32>
    %c0_17 = arith.constant 0 : index
    %c0_18 = arith.constant 0 : index
    %22 = vector.load %arg4[%c0_17, %c0_18] : memref<8x1xf32, #tpu.memory_space<vmem>>, vector<8x1xf32>
    %23 = vector.broadcast %22 : vector<8x1xf32> to vector<8x16xf32>
    %24 = arith.addf %21, %23 : vector<8x16xf32>
    %c0_19 = arith.constant 0 : index
    %c0_20 = arith.constant 0 : index
    %c0_21 = arith.constant 0 : index
    %25 = vector.load %arg5[%c0_19, %c0_20, %c0_21] : memref<1x8x16xf32, #tpu.memory_space<vmem>>, vector<1x8x16xf32>
    %26 = vector.shape_cast %25 : vector<1x8x16xf32> to vector<8x16xf32>
    %27 = vector.shape_cast %24 : vector<8x16xf32> to vector<1x8x16xf32>
    tpu.vector_store %arg5[%c0_19, %c0_20, %c0_21], %27 {strides = array<i32>} : memref<1x8x16xf32, #tpu.memory_space<vmem>>, vector<1x8x16xf32>,
    return
  }
  func.func @transform_0(%arg0: i32, %arg1: i32) -> (i32, i32, i32, i32) {
    %c0_i32 = arith.constant 0 : i32
    %c0_i32_0 = arith.constant 0 : i32
    %c0_i32_1 = arith.constant 0 : i32
    %c0_i32_2 = arith.constant 0 : i32
    return %arg0, %c0_i32, %c0_i32_0, %c0_i32_1 : i32, i32, i32, i32
  }
  func.func @transform_1(%arg0: i32, %arg1: i32) -> (i32, i32, i32) {
    %c0_i32 = arith.constant 0 : i32
    %c0_i32_0 = arith.constant 0 : i32
    %c0_i32_1 = arith.constant 0 : i32
    %c0_i32_2 = arith.constant 0 : i32
    return %c0_i32, %c0_i32_0, %c0_i32_1 : i32, i32, i32
  }
  func.func @transform_2(%arg0: i32, %arg1: i32) -> (i32, i32) {
    %c0_i32 = arith.constant 0 : i32
    %c0_i32_0 = arith.constant 0 : i32
    %c0_i32_1 = arith.constant 0 : i32
    return %c0_i32, %c0_i32_0 : i32, i32
  }
  func.func @transform_3(%arg0: i32, %arg1: i32) -> (i32, i32, i32) {
    %c0_i32 = arith.constant 0 : i32
    %c0_i32_0 = arith.constant 0 : i32
    return %arg0, %c0_i32, %arg1 : i32, i32, i32
  }
}

module attributes {stable_mosaic.version = 11 : i64} {
  func.func @kernel(%arg0: i32, %arg1: i32, %arg2: memref<1x1x8x18xf32, #tpu.memory_space<vmem>>, %arg3: memref<3x8x8xbf16, #tpu.memory_space<vmem>>, %arg4: memref<8x1xf32, #tpu.memory_space<vmem>>, %arg5: memref<8x1xf32, #tpu.memory_space<vmem>>, %arg6: memref<8x1xf32, #tpu.memory_space<vmem>>, %arg7: memref<8x1xf32, #tpu.memory_space<vmem>>, %arg8: memref<8x1xf32, #tpu.memory_space<vmem>>, %arg9: memref<1x8x16xf32, #tpu.memory_space<vmem>>, %arg10: memref<1x8x16xf32, #tpu.memory_space<vmem>>, %arg11: memref<8x1xf32, #tpu.memory_space<vmem>>, %arg12: memref<8x1xf32, #tpu.memory_space<vmem>>) attributes {dimension_semantics = [#tpu.dimension_semantics<arbitrary>, #tpu.dimension_semantics<arbitrary>], iteration_bounds = array<i64: 2, 1>, scalar_prefetch = 0 : i64, scratch_operands = 0 : i64, tpu.core_type = #tpu.core_type<tc>, window_params = [{transform_indices = @transform_0, window_bounds = array<i64: 1, 1, 8, 18>}, {pipeline_mode = #tpu.pipeline_mode<synchronous>, transform_indices = @transform_1, window_bounds = array<i64: 3, 8, 8>}, {pipeline_mode = #tpu.pipeline_mode<synchronous>, transform_indices = @transform_2, window_bounds = array<i64: 8, 1>}, {pipeline_mode = #tpu.pipeline_mode<synchronous>, transform_indices = @transform_3, window_bounds = array<i64: 8, 1>}, {pipeline_mode = #tpu.pipeline_mode<synchronous>, transform_indices = @transform_4, window_bounds = array<i64: 8, 1>}, {pipeline_mode = #tpu.pipeline_mode<synchronous>, transform_indices = @transform_5, window_bounds = array<i64: 8, 1>}, {pipeline_mode = #tpu.pipeline_mode<synchronous>, transform_indices = @transform_6, window_bounds = array<i64: 8, 1>}, {transform_indices = @transform_7, window_bounds = array<i64: 1, 8, 16>}, {transform_indices = @transform_8, window_bounds = array<i64: 1, 8, 16>}, {pipeline_mode = #tpu.pipeline_mode<synchronous>, transform_indices = @transform_9, window_bounds = array<i64: 8, 1>}, {pipeline_mode = #tpu.pipeline_mode<synchronous>, transform_indices = @transform_10, window_bounds = array<i64: 8, 1>}]} {
    %c0 = arith.constant 0 : index
    %c0_0 = arith.constant 0 : index
    %0 = vector.load %arg5[%c0, %c0_0] : memref<8x1xf32, #tpu.memory_space<vmem>>, vector<8x1xf32>
    %cst = arith.constant 3.125000e-02 : f32
    %1 = vector.broadcast %cst : f32 to vector<8x1xf32>
    %2 = arith.mulf %0, %1 : vector<8x1xf32>
    %c0_1 = arith.constant 0 : index
    %c0_2 = arith.constant 0 : index
    %3 = vector.load %arg6[%c0_1, %c0_2] : memref<8x1xf32, #tpu.memory_space<vmem>>, vector<8x1xf32>
    %cst_3 = arith.constant 3.125000e-02 : f32
    %4 = vector.broadcast %cst_3 : f32 to vector<8x1xf32>
    %5 = arith.mulf %3, %4 : vector<8x1xf32>
    %6 = arith.mulf %2, %2 : vector<8x1xf32>
    %7 = arith.subf %5, %6 : vector<8x1xf32>
    %cst_4 = arith.constant 0.000000e+00 : f32
    %8 = vector.broadcast %cst_4 : f32 to vector<8x1xf32>
    %9 = arith.maximumf %7, %8 : vector<8x1xf32>
    %c0_5 = arith.constant 0 : index
    %c0_6 = arith.constant 0 : index
    %10 = vector.load %arg7[%c0_5, %c0_6] : memref<8x1xf32, #tpu.memory_space<vmem>>, vector<8x1xf32>
    %cst_7 = arith.constant 9.99999974E-6 : f32
    %11 = vector.broadcast %cst_7 : f32 to vector<8x1xf32>
    %12 = arith.addf %9, %11 : vector<8x1xf32>
    %13 = math.rsqrt %12 : vector<8x1xf32>
    %14 = arith.mulf %10, %13 : vector<8x1xf32>
    %c0_8 = arith.constant 0 : index
    %c0_9 = arith.constant 0 : index
    %15 = vector.load %arg8[%c0_8, %c0_9] : memref<8x1xf32, #tpu.memory_space<vmem>>, vector<8x1xf32>
    %16 = arith.mulf %2, %14 : vector<8x1xf32>
    %17 = arith.subf %15, %16 : vector<8x1xf32>
    %c0_10 = arith.constant 0 : index
    %c0_11 = arith.constant 0 : index
    %c0_12 = arith.constant 0 : index
    %c0_13 = arith.constant 0 : index
    %18 = vector.load %arg2[%c0_10, %c0_11, %c0_12, %c0_13] : memref<1x1x8x18xf32, #tpu.memory_space<vmem>>, vector<1x1x8x18xf32>
    %19 = vector.shape_cast %18 : vector<1x1x8x18xf32> to vector<8x18xf32>
    %20 = vector.broadcast %14 : vector<8x1xf32> to vector<8x18xf32>
    %21 = arith.mulf %19, %20 : vector<8x18xf32>
    %22 = vector.broadcast %17 : vector<8x1xf32> to vector<8x18xf32>
    %23 = arith.addf %21, %22 : vector<8x18xf32>
    %cst_14 = arith.constant 0.000000e+00 : f32
    %24 = vector.broadcast %cst_14 : f32 to vector<8x18xf32>
    %25 = arith.cmpf ogt, %23, %24 : vector<8x18xf32>
    %cst_15 = arith.constant 2.000000e-01 : f32
    %26 = vector.broadcast %cst_15 : f32 to vector<8x18xf32>
    %27 = arith.mulf %26, %23 : vector<8x18xf32>
    %28 = arith.select %25, %23, %27 : vector<8x18xi1>, vector<8x18xf32>
    %29 = tpu.iota {dimensions = array<i32: 1>} : vector<1x18xi32>
    %c0_i32 = arith.constant 0 : i32
    %30 = vector.broadcast %c0_i32 : i32 to vector<1x18xi32>
    %31 = arith.addi %30, %29 : vector<1x18xi32>
    %c1_i32 = arith.constant 1 : i32
    %32 = vector.broadcast %c1_i32 : i32 to vector<1x18xi32>
    %33 = arith.muli %31, %32 : vector<1x18xi32>
    %c0_i32_16 = arith.constant 0 : i32
    %34 = vector.broadcast %c0_i32_16 : i32 to vector<1x18xi32>
    %35 = arith.addi %33, %34 : vector<1x18xi32>
    %c1_i32_17 = arith.constant 1 : i32
    %36 = vector.broadcast %c1_i32_17 : i32 to vector<1x18xi32>
    %37 = arith.cmpi sge, %35, %36 : vector<1x18xi32>
    %c17_i32 = arith.constant 17 : i32
    %38 = vector.broadcast %c17_i32 : i32 to vector<1x18xi32>
    %39 = arith.cmpi slt, %35, %38 : vector<1x18xi32>
    %40 = arith.andi %37, %39 : vector<1x18xi1>
    %cst_18 = arith.constant 0.000000e+00 : f32
    %41 = vector.shape_cast %40 : vector<1x18xi1> to vector<1x18xi1>
    %42 = vector.broadcast %41 : vector<1x18xi1> to vector<8x18xi1>
    %43 = vector.broadcast %cst_18 : f32 to vector<8x18xf32>
    %44 = arith.select %42, %28, %43 : vector<8x18xi1>, vector<8x18xf32>
    %45 = arith.truncf %44 : vector<8x18xf32> to vector<8x18xbf16>
    %cst_19 = arith.constant 0.000000e+00 : f32
    %46 = vector.broadcast %cst_19 : f32 to vector<8x16xf32>
    %47 = vector.extract_strided_slice %45 {offsets = [0, 0], sizes = [8, 16], strides = [1, 1]} : vector<8x18xbf16> to vector<8x16xbf16>
    %c0_20 = arith.constant 0 : index
    %c0_21 = arith.constant 0 : index
    %c0_22 = arith.constant 0 : index
    %48 = vector.load %arg3[%c0_20, %c0_21, %c0_22] : memref<3x8x8xbf16, #tpu.memory_space<vmem>>, vector<1x8x8xbf16>
    %49 = vector.shape_cast %48 : vector<1x8x8xbf16> to vector<8x8xbf16>
    %cst_23 = arith.constant dense<0.000000e+00> : vector<8x16xf32>
    %50 = tpu.matmul %49, %47, %cst_23 {dimension_numbers = #tpu.dot_dimension_numbers<[1], [0], [0], [1], [0, 0, 1, 1], [], []>} : vector<8x8xbf16>, vector<8x16xbf16>, vector<8x16xf32> -> vector<8x16xf32>
    %51 = arith.addf %46, %50 : vector<8x16xf32>
    %52 = vector.extract_strided_slice %45 {offsets = [0, 1], sizes = [8, 16], strides = [1, 1]} : vector<8x18xbf16> to vector<8x16xbf16>
    %c1 = arith.constant 1 : index
    %c0_24 = arith.constant 0 : index
    %c0_25 = arith.constant 0 : index
    %53 = vector.load %arg3[%c1, %c0_24, %c0_25] : memref<3x8x8xbf16, #tpu.memory_space<vmem>>, vector<1x8x8xbf16>
    %54 = vector.shape_cast %53 : vector<1x8x8xbf16> to vector<8x8xbf16>
    %cst_26 = arith.constant dense<0.000000e+00> : vector<8x16xf32>
    %55 = tpu.matmul %54, %52, %cst_26 {dimension_numbers = #tpu.dot_dimension_numbers<[1], [0], [0], [1], [0, 0, 1, 1], [], []>} : vector<8x8xbf16>, vector<8x16xbf16>, vector<8x16xf32> -> vector<8x16xf32>
    %56 = arith.addf %51, %55 : vector<8x16xf32>
    %57 = vector.extract_strided_slice %45 {offsets = [0, 2], sizes = [8, 16], strides = [1, 1]} : vector<8x18xbf16> to vector<8x16xbf16>
    %c2 = arith.constant 2 : index
    %c0_27 = arith.constant 0 : index
    %c0_28 = arith.constant 0 : index
    %58 = vector.load %arg3[%c2, %c0_27, %c0_28] : memref<3x8x8xbf16, #tpu.memory_space<vmem>>, vector<1x8x8xbf16>
    %59 = vector.shape_cast %58 : vector<1x8x8xbf16> to vector<8x8xbf16>
    %cst_29 = arith.constant dense<0.000000e+00> : vector<8x16xf32>
    %60 = tpu.matmul %59, %57, %cst_29 {dimension_numbers = #tpu.dot_dimension_numbers<[1], [0], [0], [1], [0, 0, 1, 1], [], []>} : vector<8x8xbf16>, vector<8x16xbf16>, vector<8x16xf32> -> vector<8x16xf32>
    %61 = arith.addf %56, %60 : vector<8x16xf32>
    %c0_30 = arith.constant 0 : index
    %c0_31 = arith.constant 0 : index
    %62 = vector.load %arg4[%c0_30, %c0_31] : memref<8x1xf32, #tpu.memory_space<vmem>>, vector<8x1xf32>
    %63 = vector.broadcast %62 : vector<8x1xf32> to vector<8x16xf32>
    %64 = arith.addf %61, %63 : vector<8x16xf32>
    %c0_32 = arith.constant 0 : index
    %c0_33 = arith.constant 0 : index
    %c0_34 = arith.constant 0 : index
    %65 = vector.load %arg9[%c0_32, %c0_33, %c0_34] : memref<1x8x16xf32, #tpu.memory_space<vmem>>, vector<1x8x16xf32>
    %66 = vector.shape_cast %65 : vector<1x8x16xf32> to vector<8x16xf32>
    %67 = arith.addf %64, %66 : vector<8x16xf32>
    %c0_35 = arith.constant 0 : index
    %c0_36 = arith.constant 0 : index
    %c0_37 = arith.constant 0 : index
    %68 = vector.load %arg10[%c0_35, %c0_36, %c0_37] : memref<1x8x16xf32, #tpu.memory_space<vmem>>, vector<1x8x16xf32>
    %69 = vector.shape_cast %68 : vector<1x8x16xf32> to vector<8x16xf32>
    %70 = vector.shape_cast %67 : vector<8x16xf32> to vector<1x8x16xf32>
    tpu.vector_store %arg10[%c0_35, %c0_36, %c0_37], %70 {strides = array<i32>} : memref<1x8x16xf32, #tpu.memory_space<vmem>>, vector<1x8x16xf32>,
    %c0_i32_38 = arith.constant 0 : i32
    %71 = arith.cmpi eq, %arg0, %c0_i32_38 : i32
    %72 = arith.extui %71 : i1 to i32
    %c0_i32_39 = arith.constant 0 : i32
    %73 = arith.cmpi ne, %72, %c0_i32_39 : i32
    scf.if %73 {
      %cst_50 = arith.constant 0.000000e+00 : f32
      %85 = vector.broadcast %cst_50 : f32 to vector<8x1xf32>
      %c0_51 = arith.constant 0 : index
      %c0_52 = arith.constant 0 : index
      %86 = vector.load %arg11[%c0_51, %c0_52] : memref<8x1xf32, #tpu.memory_space<vmem>>, vector<8x1xf32>
      tpu.vector_store %arg11[%c0_51, %c0_52], %85 {strides = array<i32>} : memref<8x1xf32, #tpu.memory_space<vmem>>, vector<8x1xf32>,
      %cst_53 = arith.constant 0.000000e+00 : f32
      %87 = vector.broadcast %cst_53 : f32 to vector<8x1xf32>
      %c0_54 = arith.constant 0 : index
      %c0_55 = arith.constant 0 : index
      %88 = vector.load %arg12[%c0_54, %c0_55] : memref<8x1xf32, #tpu.memory_space<vmem>>, vector<8x1xf32>
      tpu.vector_store %arg12[%c0_54, %c0_55], %87 {strides = array<i32>} : memref<8x1xf32, #tpu.memory_space<vmem>>, vector<8x1xf32>,
    } else {
    }
    %c0_40 = arith.constant 0 : index
    %c0_41 = arith.constant 0 : index
    %74 = vector.load %arg11[%c0_40, %c0_41] : memref<8x1xf32, #tpu.memory_space<vmem>>, vector<8x1xf32>
    %cst_42 = arith.constant dense<0.000000e+00> : vector<8xf32>
    %75 = vector.multi_reduction <add>, %67, %cst_42 [1] : vector<8x16xf32> to vector<8xf32>
    %76 = vector.shape_cast %75 : vector<8xf32> to vector<8x1xf32>
    %77 = arith.addf %74, %76 : vector<8x1xf32>
    %c0_43 = arith.constant 0 : index
    %c0_44 = arith.constant 0 : index
    %78 = vector.load %arg11[%c0_43, %c0_44] : memref<8x1xf32, #tpu.memory_space<vmem>>, vector<8x1xf32>
    tpu.vector_store %arg11[%c0_43, %c0_44], %77 {strides = array<i32>} : memref<8x1xf32, #tpu.memory_space<vmem>>, vector<8x1xf32>,
    %c0_45 = arith.constant 0 : index
    %c0_46 = arith.constant 0 : index
    %79 = vector.load %arg12[%c0_45, %c0_46] : memref<8x1xf32, #tpu.memory_space<vmem>>, vector<8x1xf32>
    %80 = arith.mulf %67, %67 : vector<8x16xf32>
    %cst_47 = arith.constant dense<0.000000e+00> : vector<8xf32>
    %81 = vector.multi_reduction <add>, %80, %cst_47 [1] : vector<8x16xf32> to vector<8xf32>
    %82 = vector.shape_cast %81 : vector<8xf32> to vector<8x1xf32>
    %83 = arith.addf %79, %82 : vector<8x1xf32>
    %c0_48 = arith.constant 0 : index
    %c0_49 = arith.constant 0 : index
    %84 = vector.load %arg12[%c0_48, %c0_49] : memref<8x1xf32, #tpu.memory_space<vmem>>, vector<8x1xf32>
    tpu.vector_store %arg12[%c0_48, %c0_49], %83 {strides = array<i32>} : memref<8x1xf32, #tpu.memory_space<vmem>>, vector<8x1xf32>,
    return
  }
  func.func @transform_0(%arg0: i32, %arg1: i32) -> (i32, i32, i32, i32) {
    %c0_i32 = arith.constant 0 : i32
    %c0_i32_0 = arith.constant 0 : i32
    %c0_i32_1 = arith.constant 0 : i32
    %c0_i32_2 = arith.constant 0 : i32
    return %arg0, %c0_i32, %c0_i32_0, %c0_i32_1 : i32, i32, i32, i32
  }
  func.func @transform_1(%arg0: i32, %arg1: i32) -> (i32, i32, i32) {
    %c0_i32 = arith.constant 0 : i32
    %c0_i32_0 = arith.constant 0 : i32
    %c0_i32_1 = arith.constant 0 : i32
    %c0_i32_2 = arith.constant 0 : i32
    return %c0_i32, %c0_i32_0, %c0_i32_1 : i32, i32, i32
  }
  func.func @transform_2(%arg0: i32, %arg1: i32) -> (i32, i32) {
    %c0_i32 = arith.constant 0 : i32
    %c0_i32_0 = arith.constant 0 : i32
    %c0_i32_1 = arith.constant 0 : i32
    return %c0_i32, %c0_i32_0 : i32, i32
  }
  func.func @transform_3(%arg0: i32, %arg1: i32) -> (i32, i32) {
    %c0_i32 = arith.constant 0 : i32
    %c0_i32_0 = arith.constant 0 : i32
    %c0_i32_1 = arith.constant 0 : i32
    return %c0_i32, %c0_i32_0 : i32, i32
  }
  func.func @transform_4(%arg0: i32, %arg1: i32) -> (i32, i32) {
    %c0_i32 = arith.constant 0 : i32
    %c0_i32_0 = arith.constant 0 : i32
    %c0_i32_1 = arith.constant 0 : i32
    return %c0_i32, %c0_i32_0 : i32, i32
  }
  func.func @transform_5(%arg0: i32, %arg1: i32) -> (i32, i32) {
    %c0_i32 = arith.constant 0 : i32
    %c0_i32_0 = arith.constant 0 : i32
    %c0_i32_1 = arith.constant 0 : i32
    return %c0_i32, %c0_i32_0 : i32, i32
  }
  func.func @transform_6(%arg0: i32, %arg1: i32) -> (i32, i32) {
    %c0_i32 = arith.constant 0 : i32
    %c0_i32_0 = arith.constant 0 : i32
    %c0_i32_1 = arith.constant 0 : i32
    return %c0_i32, %c0_i32_0 : i32, i32
  }
  func.func @transform_7(%arg0: i32, %arg1: i32) -> (i32, i32, i32) {
    %c0_i32 = arith.constant 0 : i32
    %c0_i32_0 = arith.constant 0 : i32
    return %arg0, %c0_i32, %arg1 : i32, i32, i32
  }
  func.func @transform_8(%arg0: i32, %arg1: i32) -> (i32, i32, i32) {
    %c0_i32 = arith.constant 0 : i32
    %c0_i32_0 = arith.constant 0 : i32
    return %arg0, %c0_i32, %arg1 : i32, i32, i32
  }
  func.func @transform_9(%arg0: i32, %arg1: i32) -> (i32, i32) {
    %c0_i32 = arith.constant 0 : i32
    %c0_i32_0 = arith.constant 0 : i32
    %c0_i32_1 = arith.constant 0 : i32
    return %c0_i32, %c0_i32_0 : i32, i32
  }
  func.func @transform_10(%arg0: i32, %arg1: i32) -> (i32, i32) {
    %c0_i32 = arith.constant 0 : i32
    %c0_i32_0 = arith.constant 0 : i32
    %c0_i32_1 = arith.constant 0 : i32
    return %c0_i32, %c0_i32_0 : i32, i32
  }
}

module attributes {stable_mosaic.version = 11 : i64} {
  func.func @kernel(%arg0: i32, %arg1: i32, %arg2: memref<1x1x8x18xf32, #tpu.memory_space<vmem>>, %arg3: memref<3x8x8xbf16, #tpu.memory_space<vmem>>, %arg4: memref<8x1xf32, #tpu.memory_space<vmem>>, %arg5: memref<8x1xf32, #tpu.memory_space<vmem>>, %arg6: memref<8x1xf32, #tpu.memory_space<vmem>>, %arg7: memref<8x1xf32, #tpu.memory_space<vmem>>, %arg8: memref<8x1xf32, #tpu.memory_space<vmem>>, %arg9: memref<1x8x16xf32, #tpu.memory_space<vmem>>, %arg10: memref<8x1xf32, #tpu.memory_space<vmem>>, %arg11: memref<8x1xf32, #tpu.memory_space<vmem>>) attributes {dimension_semantics = [#tpu.dimension_semantics<arbitrary>, #tpu.dimension_semantics<arbitrary>], iteration_bounds = array<i64: 2, 1>, scalar_prefetch = 0 : i64, scratch_operands = 0 : i64, tpu.core_type = #tpu.core_type<tc>, window_params = [{transform_indices = @transform_0, window_bounds = array<i64: 1, 1, 8, 18>}, {pipeline_mode = #tpu.pipeline_mode<synchronous>, transform_indices = @transform_1, window_bounds = array<i64: 3, 8, 8>}, {pipeline_mode = #tpu.pipeline_mode<synchronous>, transform_indices = @transform_2, window_bounds = array<i64: 8, 1>}, {pipeline_mode = #tpu.pipeline_mode<synchronous>, transform_indices = @transform_3, window_bounds = array<i64: 8, 1>}, {pipeline_mode = #tpu.pipeline_mode<synchronous>, transform_indices = @transform_4, window_bounds = array<i64: 8, 1>}, {pipeline_mode = #tpu.pipeline_mode<synchronous>, transform_indices = @transform_5, window_bounds = array<i64: 8, 1>}, {pipeline_mode = #tpu.pipeline_mode<synchronous>, transform_indices = @transform_6, window_bounds = array<i64: 8, 1>}, {transform_indices = @transform_7, window_bounds = array<i64: 1, 8, 16>}, {pipeline_mode = #tpu.pipeline_mode<synchronous>, transform_indices = @transform_8, window_bounds = array<i64: 8, 1>}, {pipeline_mode = #tpu.pipeline_mode<synchronous>, transform_indices = @transform_9, window_bounds = array<i64: 8, 1>}]} {
    %c0 = arith.constant 0 : index
    %c0_0 = arith.constant 0 : index
    %0 = vector.load %arg5[%c0, %c0_0] : memref<8x1xf32, #tpu.memory_space<vmem>>, vector<8x1xf32>
    %cst = arith.constant 3.125000e-02 : f32
    %1 = vector.broadcast %cst : f32 to vector<8x1xf32>
    %2 = arith.mulf %0, %1 : vector<8x1xf32>
    %c0_1 = arith.constant 0 : index
    %c0_2 = arith.constant 0 : index
    %3 = vector.load %arg6[%c0_1, %c0_2] : memref<8x1xf32, #tpu.memory_space<vmem>>, vector<8x1xf32>
    %cst_3 = arith.constant 3.125000e-02 : f32
    %4 = vector.broadcast %cst_3 : f32 to vector<8x1xf32>
    %5 = arith.mulf %3, %4 : vector<8x1xf32>
    %6 = arith.mulf %2, %2 : vector<8x1xf32>
    %7 = arith.subf %5, %6 : vector<8x1xf32>
    %cst_4 = arith.constant 0.000000e+00 : f32
    %8 = vector.broadcast %cst_4 : f32 to vector<8x1xf32>
    %9 = arith.maximumf %7, %8 : vector<8x1xf32>
    %c0_5 = arith.constant 0 : index
    %c0_6 = arith.constant 0 : index
    %10 = vector.load %arg7[%c0_5, %c0_6] : memref<8x1xf32, #tpu.memory_space<vmem>>, vector<8x1xf32>
    %cst_7 = arith.constant 9.99999974E-6 : f32
    %11 = vector.broadcast %cst_7 : f32 to vector<8x1xf32>
    %12 = arith.addf %9, %11 : vector<8x1xf32>
    %13 = math.rsqrt %12 : vector<8x1xf32>
    %14 = arith.mulf %10, %13 : vector<8x1xf32>
    %c0_8 = arith.constant 0 : index
    %c0_9 = arith.constant 0 : index
    %15 = vector.load %arg8[%c0_8, %c0_9] : memref<8x1xf32, #tpu.memory_space<vmem>>, vector<8x1xf32>
    %16 = arith.mulf %2, %14 : vector<8x1xf32>
    %17 = arith.subf %15, %16 : vector<8x1xf32>
    %c0_10 = arith.constant 0 : index
    %c0_11 = arith.constant 0 : index
    %c0_12 = arith.constant 0 : index
    %c0_13 = arith.constant 0 : index
    %18 = vector.load %arg2[%c0_10, %c0_11, %c0_12, %c0_13] : memref<1x1x8x18xf32, #tpu.memory_space<vmem>>, vector<1x1x8x18xf32>
    %19 = vector.shape_cast %18 : vector<1x1x8x18xf32> to vector<8x18xf32>
    %20 = vector.broadcast %14 : vector<8x1xf32> to vector<8x18xf32>
    %21 = arith.mulf %19, %20 : vector<8x18xf32>
    %22 = vector.broadcast %17 : vector<8x1xf32> to vector<8x18xf32>
    %23 = arith.addf %21, %22 : vector<8x18xf32>
    %cst_14 = arith.constant 0.000000e+00 : f32
    %24 = vector.broadcast %cst_14 : f32 to vector<8x18xf32>
    %25 = arith.cmpf ogt, %23, %24 : vector<8x18xf32>
    %cst_15 = arith.constant 2.000000e-01 : f32
    %26 = vector.broadcast %cst_15 : f32 to vector<8x18xf32>
    %27 = arith.mulf %26, %23 : vector<8x18xf32>
    %28 = arith.select %25, %23, %27 : vector<8x18xi1>, vector<8x18xf32>
    %29 = tpu.iota {dimensions = array<i32: 1>} : vector<1x18xi32>
    %c0_i32 = arith.constant 0 : i32
    %30 = vector.broadcast %c0_i32 : i32 to vector<1x18xi32>
    %31 = arith.addi %30, %29 : vector<1x18xi32>
    %c1_i32 = arith.constant 1 : i32
    %32 = vector.broadcast %c1_i32 : i32 to vector<1x18xi32>
    %33 = arith.muli %31, %32 : vector<1x18xi32>
    %c0_i32_16 = arith.constant 0 : i32
    %34 = vector.broadcast %c0_i32_16 : i32 to vector<1x18xi32>
    %35 = arith.addi %33, %34 : vector<1x18xi32>
    %c1_i32_17 = arith.constant 1 : i32
    %36 = vector.broadcast %c1_i32_17 : i32 to vector<1x18xi32>
    %37 = arith.cmpi sge, %35, %36 : vector<1x18xi32>
    %c17_i32 = arith.constant 17 : i32
    %38 = vector.broadcast %c17_i32 : i32 to vector<1x18xi32>
    %39 = arith.cmpi slt, %35, %38 : vector<1x18xi32>
    %40 = arith.andi %37, %39 : vector<1x18xi1>
    %cst_18 = arith.constant 0.000000e+00 : f32
    %41 = vector.shape_cast %40 : vector<1x18xi1> to vector<1x18xi1>
    %42 = vector.broadcast %41 : vector<1x18xi1> to vector<8x18xi1>
    %43 = vector.broadcast %cst_18 : f32 to vector<8x18xf32>
    %44 = arith.select %42, %28, %43 : vector<8x18xi1>, vector<8x18xf32>
    %45 = arith.truncf %44 : vector<8x18xf32> to vector<8x18xbf16>
    %cst_19 = arith.constant 0.000000e+00 : f32
    %46 = vector.broadcast %cst_19 : f32 to vector<8x16xf32>
    %47 = vector.extract_strided_slice %45 {offsets = [0, 0], sizes = [8, 16], strides = [1, 1]} : vector<8x18xbf16> to vector<8x16xbf16>
    %c0_20 = arith.constant 0 : index
    %c0_21 = arith.constant 0 : index
    %c0_22 = arith.constant 0 : index
    %48 = vector.load %arg3[%c0_20, %c0_21, %c0_22] : memref<3x8x8xbf16, #tpu.memory_space<vmem>>, vector<1x8x8xbf16>
    %49 = vector.shape_cast %48 : vector<1x8x8xbf16> to vector<8x8xbf16>
    %cst_23 = arith.constant dense<0.000000e+00> : vector<8x16xf32>
    %50 = tpu.matmul %49, %47, %cst_23 {dimension_numbers = #tpu.dot_dimension_numbers<[1], [0], [0], [1], [0, 0, 1, 1], [], []>} : vector<8x8xbf16>, vector<8x16xbf16>, vector<8x16xf32> -> vector<8x16xf32>
    %51 = arith.addf %46, %50 : vector<8x16xf32>
    %52 = vector.extract_strided_slice %45 {offsets = [0, 1], sizes = [8, 16], strides = [1, 1]} : vector<8x18xbf16> to vector<8x16xbf16>
    %c1 = arith.constant 1 : index
    %c0_24 = arith.constant 0 : index
    %c0_25 = arith.constant 0 : index
    %53 = vector.load %arg3[%c1, %c0_24, %c0_25] : memref<3x8x8xbf16, #tpu.memory_space<vmem>>, vector<1x8x8xbf16>
    %54 = vector.shape_cast %53 : vector<1x8x8xbf16> to vector<8x8xbf16>
    %cst_26 = arith.constant dense<0.000000e+00> : vector<8x16xf32>
    %55 = tpu.matmul %54, %52, %cst_26 {dimension_numbers = #tpu.dot_dimension_numbers<[1], [0], [0], [1], [0, 0, 1, 1], [], []>} : vector<8x8xbf16>, vector<8x16xbf16>, vector<8x16xf32> -> vector<8x16xf32>
    %56 = arith.addf %51, %55 : vector<8x16xf32>
    %57 = vector.extract_strided_slice %45 {offsets = [0, 2], sizes = [8, 16], strides = [1, 1]} : vector<8x18xbf16> to vector<8x16xbf16>
    %c2 = arith.constant 2 : index
    %c0_27 = arith.constant 0 : index
    %c0_28 = arith.constant 0 : index
    %58 = vector.load %arg3[%c2, %c0_27, %c0_28] : memref<3x8x8xbf16, #tpu.memory_space<vmem>>, vector<1x8x8xbf16>
    %59 = vector.shape_cast %58 : vector<1x8x8xbf16> to vector<8x8xbf16>
    %cst_29 = arith.constant dense<0.000000e+00> : vector<8x16xf32>
    %60 = tpu.matmul %59, %57, %cst_29 {dimension_numbers = #tpu.dot_dimension_numbers<[1], [0], [0], [1], [0, 0, 1, 1], [], []>} : vector<8x8xbf16>, vector<8x16xbf16>, vector<8x16xf32> -> vector<8x16xf32>
    %61 = arith.addf %56, %60 : vector<8x16xf32>
    %c0_30 = arith.constant 0 : index
    %c0_31 = arith.constant 0 : index
    %62 = vector.load %arg4[%c0_30, %c0_31] : memref<8x1xf32, #tpu.memory_space<vmem>>, vector<8x1xf32>
    %63 = vector.broadcast %62 : vector<8x1xf32> to vector<8x16xf32>
    %64 = arith.addf %61, %63 : vector<8x16xf32>
    %c0_32 = arith.constant 0 : index
    %c0_33 = arith.constant 0 : index
    %c0_34 = arith.constant 0 : index
    %65 = vector.load %arg9[%c0_32, %c0_33, %c0_34] : memref<1x8x16xf32, #tpu.memory_space<vmem>>, vector<1x8x16xf32>
    %66 = vector.shape_cast %65 : vector<1x8x16xf32> to vector<8x16xf32>
    %67 = vector.shape_cast %64 : vector<8x16xf32> to vector<1x8x16xf32>
    tpu.vector_store %arg9[%c0_32, %c0_33, %c0_34], %67 {strides = array<i32>} : memref<1x8x16xf32, #tpu.memory_space<vmem>>, vector<1x8x16xf32>,
    %c0_i32_35 = arith.constant 0 : i32
    %68 = arith.cmpi eq, %arg0, %c0_i32_35 : i32
    %69 = arith.extui %68 : i1 to i32
    %c0_i32_36 = arith.constant 0 : i32
    %70 = arith.cmpi ne, %69, %c0_i32_36 : i32
    scf.if %70 {
      %cst_47 = arith.constant 0.000000e+00 : f32
      %82 = vector.broadcast %cst_47 : f32 to vector<8x1xf32>
      %c0_48 = arith.constant 0 : index
      %c0_49 = arith.constant 0 : index
      %83 = vector.load %arg10[%c0_48, %c0_49] : memref<8x1xf32, #tpu.memory_space<vmem>>, vector<8x1xf32>
      tpu.vector_store %arg10[%c0_48, %c0_49], %82 {strides = array<i32>} : memref<8x1xf32, #tpu.memory_space<vmem>>, vector<8x1xf32>,
      %cst_50 = arith.constant 0.000000e+00 : f32
      %84 = vector.broadcast %cst_50 : f32 to vector<8x1xf32>
      %c0_51 = arith.constant 0 : index
      %c0_52 = arith.constant 0 : index
      %85 = vector.load %arg11[%c0_51, %c0_52] : memref<8x1xf32, #tpu.memory_space<vmem>>, vector<8x1xf32>
      tpu.vector_store %arg11[%c0_51, %c0_52], %84 {strides = array<i32>} : memref<8x1xf32, #tpu.memory_space<vmem>>, vector<8x1xf32>,
    } else {
    }
    %c0_37 = arith.constant 0 : index
    %c0_38 = arith.constant 0 : index
    %71 = vector.load %arg10[%c0_37, %c0_38] : memref<8x1xf32, #tpu.memory_space<vmem>>, vector<8x1xf32>
    %cst_39 = arith.constant dense<0.000000e+00> : vector<8xf32>
    %72 = vector.multi_reduction <add>, %64, %cst_39 [1] : vector<8x16xf32> to vector<8xf32>
    %73 = vector.shape_cast %72 : vector<8xf32> to vector<8x1xf32>
    %74 = arith.addf %71, %73 : vector<8x1xf32>
    %c0_40 = arith.constant 0 : index
    %c0_41 = arith.constant 0 : index
    %75 = vector.load %arg10[%c0_40, %c0_41] : memref<8x1xf32, #tpu.memory_space<vmem>>, vector<8x1xf32>
    tpu.vector_store %arg10[%c0_40, %c0_41], %74 {strides = array<i32>} : memref<8x1xf32, #tpu.memory_space<vmem>>, vector<8x1xf32>,
    %c0_42 = arith.constant 0 : index
    %c0_43 = arith.constant 0 : index
    %76 = vector.load %arg11[%c0_42, %c0_43] : memref<8x1xf32, #tpu.memory_space<vmem>>, vector<8x1xf32>
    %77 = arith.mulf %64, %64 : vector<8x16xf32>
    %cst_44 = arith.constant dense<0.000000e+00> : vector<8xf32>
    %78 = vector.multi_reduction <add>, %77, %cst_44 [1] : vector<8x16xf32> to vector<8xf32>
    %79 = vector.shape_cast %78 : vector<8xf32> to vector<8x1xf32>
    %80 = arith.addf %76, %79 : vector<8x1xf32>
    %c0_45 = arith.constant 0 : index
    %c0_46 = arith.constant 0 : index
    %81 = vector.load %arg11[%c0_45, %c0_46] : memref<8x1xf32, #tpu.memory_space<vmem>>, vector<8x1xf32>
    tpu.vector_store %arg11[%c0_45, %c0_46], %80 {strides = array<i32>} : memref<8x1xf32, #tpu.memory_space<vmem>>, vector<8x1xf32>,
    return
  }
  func.func @transform_0(%arg0: i32, %arg1: i32) -> (i32, i32, i32, i32) {
    %c0_i32 = arith.constant 0 : i32
    %c0_i32_0 = arith.constant 0 : i32
    %c0_i32_1 = arith.constant 0 : i32
    %c0_i32_2 = arith.constant 0 : i32
    return %arg0, %c0_i32, %c0_i32_0, %c0_i32_1 : i32, i32, i32, i32
  }
  func.func @transform_1(%arg0: i32, %arg1: i32) -> (i32, i32, i32) {
    %c0_i32 = arith.constant 0 : i32
    %c0_i32_0 = arith.constant 0 : i32
    %c0_i32_1 = arith.constant 0 : i32
    %c0_i32_2 = arith.constant 0 : i32
    return %c0_i32, %c0_i32_0, %c0_i32_1 : i32, i32, i32
  }
  func.func @transform_2(%arg0: i32, %arg1: i32) -> (i32, i32) {
    %c0_i32 = arith.constant 0 : i32
    %c0_i32_0 = arith.constant 0 : i32
    %c0_i32_1 = arith.constant 0 : i32
    return %c0_i32, %c0_i32_0 : i32, i32
  }
  func.func @transform_3(%arg0: i32, %arg1: i32) -> (i32, i32) {
    %c0_i32 = arith.constant 0 : i32
    %c0_i32_0 = arith.constant 0 : i32
    %c0_i32_1 = arith.constant 0 : i32
    return %c0_i32, %c0_i32_0 : i32, i32
  }
  func.func @transform_4(%arg0: i32, %arg1: i32) -> (i32, i32) {
    %c0_i32 = arith.constant 0 : i32
    %c0_i32_0 = arith.constant 0 : i32
    %c0_i32_1 = arith.constant 0 : i32
    return %c0_i32, %c0_i32_0 : i32, i32
  }
  func.func @transform_5(%arg0: i32, %arg1: i32) -> (i32, i32) {
    %c0_i32 = arith.constant 0 : i32
    %c0_i32_0 = arith.constant 0 : i32
    %c0_i32_1 = arith.constant 0 : i32
    return %c0_i32, %c0_i32_0 : i32, i32
  }
  func.func @transform_6(%arg0: i32, %arg1: i32) -> (i32, i32) {
    %c0_i32 = arith.constant 0 : i32
    %c0_i32_0 = arith.constant 0 : i32
    %c0_i32_1 = arith.constant 0 : i32
    return %c0_i32, %c0_i32_0 : i32, i32
  }
  func.func @transform_7(%arg0: i32, %arg1: i32) -> (i32, i32, i32) {
    %c0_i32 = arith.constant 0 : i32
    %c0_i32_0 = arith.constant 0 : i32
    return %arg0, %c0_i32, %arg1 : i32, i32, i32
  }
  func.func @transform_8(%arg0: i32, %arg1: i32) -> (i32, i32) {
    %c0_i32 = arith.constant 0 : i32
    %c0_i32_0 = arith.constant 0 : i32
    %c0_i32_1 = arith.constant 0 : i32
    return %c0_i32, %c0_i32_0 : i32, i32
  }
  func.func @transform_9(%arg0: i32, %arg1: i32) -> (i32, i32) {
    %c0_i32 = arith.constant 0 : i32
    %c0_i32_0 = arith.constant 0 : i32
    %c0_i32_1 = arith.constant 0 : i32
    return %c0_i32, %c0_i32_0 : i32, i32
  }
}

module attributes {stable_mosaic.version = 11 : i64} {
  func.func @kernel(%arg0: i32, %arg1: i32, %arg2: memref<1x1x8x18xf32, #tpu.memory_space<vmem>>, %arg3: memref<3x8x8xbf16, #tpu.memory_space<vmem>>, %arg4: memref<8x1xf32, #tpu.memory_space<vmem>>, %arg5: memref<1x8x16xf32, #tpu.memory_space<vmem>>) attributes {dimension_semantics = [#tpu.dimension_semantics<parallel>, #tpu.dimension_semantics<parallel>], iteration_bounds = array<i64: 2, 1>, scalar_prefetch = 0 : i64, scratch_operands = 0 : i64, tpu.core_type = #tpu.core_type<tc>, window_params = [{transform_indices = @transform_0, window_bounds = array<i64: 1, 1, 8, 18>}, {pipeline_mode = #tpu.pipeline_mode<synchronous>, transform_indices = @transform_1, window_bounds = array<i64: 3, 8, 8>}, {pipeline_mode = #tpu.pipeline_mode<synchronous>, transform_indices = @transform_2, window_bounds = array<i64: 8, 1>}, {transform_indices = @transform_3, window_bounds = array<i64: 1, 8, 16>}]} {
    %c0 = arith.constant 0 : index
    %c0_0 = arith.constant 0 : index
    %c0_1 = arith.constant 0 : index
    %c0_2 = arith.constant 0 : index
    %0 = vector.load %arg2[%c0, %c0_0, %c0_1, %c0_2] : memref<1x1x8x18xf32, #tpu.memory_space<vmem>>, vector<1x1x8x18xf32>
    %1 = vector.shape_cast %0 : vector<1x1x8x18xf32> to vector<8x18xf32>
    %2 = arith.truncf %1 : vector<8x18xf32> to vector<8x18xbf16>
    %cst = arith.constant 0.000000e+00 : f32
    %3 = vector.broadcast %cst : f32 to vector<8x16xf32>
    %4 = vector.extract_strided_slice %2 {offsets = [0, 0], sizes = [8, 16], strides = [1, 1]} : vector<8x18xbf16> to vector<8x16xbf16>
    %c0_3 = arith.constant 0 : index
    %c0_4 = arith.constant 0 : index
    %c0_5 = arith.constant 0 : index
    %5 = vector.load %arg3[%c0_3, %c0_4, %c0_5] : memref<3x8x8xbf16, #tpu.memory_space<vmem>>, vector<1x8x8xbf16>
    %6 = vector.shape_cast %5 : vector<1x8x8xbf16> to vector<8x8xbf16>
    %cst_6 = arith.constant dense<0.000000e+00> : vector<8x16xf32>
    %7 = tpu.matmul %6, %4, %cst_6 {dimension_numbers = #tpu.dot_dimension_numbers<[1], [0], [0], [1], [0, 0, 1, 1], [], []>} : vector<8x8xbf16>, vector<8x16xbf16>, vector<8x16xf32> -> vector<8x16xf32>
    %8 = arith.addf %3, %7 : vector<8x16xf32>
    %9 = vector.extract_strided_slice %2 {offsets = [0, 1], sizes = [8, 16], strides = [1, 1]} : vector<8x18xbf16> to vector<8x16xbf16>
    %c1 = arith.constant 1 : index
    %c0_7 = arith.constant 0 : index
    %c0_8 = arith.constant 0 : index
    %10 = vector.load %arg3[%c1, %c0_7, %c0_8] : memref<3x8x8xbf16, #tpu.memory_space<vmem>>, vector<1x8x8xbf16>
    %11 = vector.shape_cast %10 : vector<1x8x8xbf16> to vector<8x8xbf16>
    %cst_9 = arith.constant dense<0.000000e+00> : vector<8x16xf32>
    %12 = tpu.matmul %11, %9, %cst_9 {dimension_numbers = #tpu.dot_dimension_numbers<[1], [0], [0], [1], [0, 0, 1, 1], [], []>} : vector<8x8xbf16>, vector<8x16xbf16>, vector<8x16xf32> -> vector<8x16xf32>
    %13 = arith.addf %8, %12 : vector<8x16xf32>
    %14 = vector.extract_strided_slice %2 {offsets = [0, 2], sizes = [8, 16], strides = [1, 1]} : vector<8x18xbf16> to vector<8x16xbf16>
    %c2 = arith.constant 2 : index
    %c0_10 = arith.constant 0 : index
    %c0_11 = arith.constant 0 : index
    %15 = vector.load %arg3[%c2, %c0_10, %c0_11] : memref<3x8x8xbf16, #tpu.memory_space<vmem>>, vector<1x8x8xbf16>
    %16 = vector.shape_cast %15 : vector<1x8x8xbf16> to vector<8x8xbf16>
    %cst_12 = arith.constant dense<0.000000e+00> : vector<8x16xf32>
    %17 = tpu.matmul %16, %14, %cst_12 {dimension_numbers = #tpu.dot_dimension_numbers<[1], [0], [0], [1], [0, 0, 1, 1], [], []>} : vector<8x8xbf16>, vector<8x16xbf16>, vector<8x16xf32> -> vector<8x16xf32>
    %18 = arith.addf %13, %17 : vector<8x16xf32>
    %c0_13 = arith.constant 0 : index
    %c0_14 = arith.constant 0 : index
    %19 = vector.load %arg4[%c0_13, %c0_14] : memref<8x1xf32, #tpu.memory_space<vmem>>, vector<8x1xf32>
    %20 = vector.broadcast %19 : vector<8x1xf32> to vector<8x16xf32>
    %21 = arith.addf %18, %20 : vector<8x16xf32>
    %c0_15 = arith.constant 0 : index
    %c0_16 = arith.constant 0 : index
    %c0_17 = arith.constant 0 : index
    %22 = vector.load %arg5[%c0_15, %c0_16, %c0_17] : memref<1x8x16xf32, #tpu.memory_space<vmem>>, vector<1x8x16xf32>
    %23 = vector.shape_cast %22 : vector<1x8x16xf32> to vector<8x16xf32>
    %24 = vector.shape_cast %21 : vector<8x16xf32> to vector<1x8x16xf32>
    tpu.vector_store %arg5[%c0_15, %c0_16, %c0_17], %24 {strides = array<i32>} : memref<1x8x16xf32, #tpu.memory_space<vmem>>, vector<1x8x16xf32>,
    return
  }
  func.func @transform_0(%arg0: i32, %arg1: i32) -> (i32, i32, i32, i32) {
    %c0_i32 = arith.constant 0 : i32
    %c0_i32_0 = arith.constant 0 : i32
    %c0_i32_1 = arith.constant 0 : i32
    %c0_i32_2 = arith.constant 0 : i32
    return %arg0, %c0_i32, %c0_i32_0, %c0_i32_1 : i32, i32, i32, i32
  }
  func.func @transform_1(%arg0: i32, %arg1: i32) -> (i32, i32, i32) {
    %c0_i32 = arith.constant 0 : i32
    %c0_i32_0 = arith.constant 0 : i32
    %c0_i32_1 = arith.constant 0 : i32
    %c0_i32_2 = arith.constant 0 : i32
    return %c0_i32, %c0_i32_0, %c0_i32_1 : i32, i32, i32
  }
  func.func @transform_2(%arg0: i32, %arg1: i32) -> (i32, i32) {
    %c0_i32 = arith.constant 0 : i32
    %c0_i32_0 = arith.constant 0 : i32
    %c0_i32_1 = arith.constant 0 : i32
    return %c0_i32, %c0_i32_0 : i32, i32
  }
  func.func @transform_3(%arg0: i32, %arg1: i32) -> (i32, i32, i32) {
    %c0_i32 = arith.constant 0 : i32
    %c0_i32_0 = arith.constant 0 : i32
    return %arg0, %c0_i32, %arg1 : i32, i32, i32
  }
}

module attributes {stable_mosaic.version = 11 : i64} {
  func.func @kernel(%arg0: i32, %arg1: i32, %arg2: memref<1x2x8x9xf32, #tpu.memory_space<vmem>>, %arg3: memref<3x16x8xbf16, #tpu.memory_space<vmem>>, %arg4: memref<16x1xf32, #tpu.memory_space<vmem>>, %arg5: memref<8x1xf32, #tpu.memory_space<vmem>>, %arg6: memref<8x1xf32, #tpu.memory_space<vmem>>, %arg7: memref<8x1xf32, #tpu.memory_space<vmem>>, %arg8: memref<8x1xf32, #tpu.memory_space<vmem>>, %arg9: memref<1x16x8xf32, #tpu.memory_space<vmem>>, %arg10: memref<16x1xf32, #tpu.memory_space<vmem>>, %arg11: memref<16x1xf32, #tpu.memory_space<vmem>>) attributes {dimension_semantics = [#tpu.dimension_semantics<arbitrary>, #tpu.dimension_semantics<arbitrary>], iteration_bounds = array<i64: 2, 1>, scalar_prefetch = 0 : i64, scratch_operands = 0 : i64, tpu.core_type = #tpu.core_type<tc>, window_params = [{transform_indices = @transform_0, window_bounds = array<i64: 1, 2, 8, 9>}, {pipeline_mode = #tpu.pipeline_mode<synchronous>, transform_indices = @transform_1, window_bounds = array<i64: 3, 16, 8>}, {pipeline_mode = #tpu.pipeline_mode<synchronous>, transform_indices = @transform_2, window_bounds = array<i64: 16, 1>}, {pipeline_mode = #tpu.pipeline_mode<synchronous>, transform_indices = @transform_3, window_bounds = array<i64: 8, 1>}, {pipeline_mode = #tpu.pipeline_mode<synchronous>, transform_indices = @transform_4, window_bounds = array<i64: 8, 1>}, {pipeline_mode = #tpu.pipeline_mode<synchronous>, transform_indices = @transform_5, window_bounds = array<i64: 8, 1>}, {pipeline_mode = #tpu.pipeline_mode<synchronous>, transform_indices = @transform_6, window_bounds = array<i64: 8, 1>}, {transform_indices = @transform_7, window_bounds = array<i64: 1, 16, 8>}, {pipeline_mode = #tpu.pipeline_mode<synchronous>, transform_indices = @transform_8, window_bounds = array<i64: 16, 1>}, {pipeline_mode = #tpu.pipeline_mode<synchronous>, transform_indices = @transform_9, window_bounds = array<i64: 16, 1>}]} {
    %c0 = arith.constant 0 : index
    %c0_0 = arith.constant 0 : index
    %0 = vector.load %arg5[%c0, %c0_0] : memref<8x1xf32, #tpu.memory_space<vmem>>, vector<8x1xf32>
    %cst = arith.constant 3.125000e-02 : f32
    %1 = vector.broadcast %cst : f32 to vector<8x1xf32>
    %2 = arith.mulf %0, %1 : vector<8x1xf32>
    %c0_1 = arith.constant 0 : index
    %c0_2 = arith.constant 0 : index
    %3 = vector.load %arg6[%c0_1, %c0_2] : memref<8x1xf32, #tpu.memory_space<vmem>>, vector<8x1xf32>
    %cst_3 = arith.constant 3.125000e-02 : f32
    %4 = vector.broadcast %cst_3 : f32 to vector<8x1xf32>
    %5 = arith.mulf %3, %4 : vector<8x1xf32>
    %6 = arith.mulf %2, %2 : vector<8x1xf32>
    %7 = arith.subf %5, %6 : vector<8x1xf32>
    %cst_4 = arith.constant 0.000000e+00 : f32
    %8 = vector.broadcast %cst_4 : f32 to vector<8x1xf32>
    %9 = arith.maximumf %7, %8 : vector<8x1xf32>
    %c0_5 = arith.constant 0 : index
    %c0_6 = arith.constant 0 : index
    %10 = vector.load %arg7[%c0_5, %c0_6] : memref<8x1xf32, #tpu.memory_space<vmem>>, vector<8x1xf32>
    %cst_7 = arith.constant 9.99999974E-6 : f32
    %11 = vector.broadcast %cst_7 : f32 to vector<8x1xf32>
    %12 = arith.addf %9, %11 : vector<8x1xf32>
    %13 = math.rsqrt %12 : vector<8x1xf32>
    %14 = arith.mulf %10, %13 : vector<8x1xf32>
    %c0_8 = arith.constant 0 : index
    %c0_9 = arith.constant 0 : index
    %15 = vector.load %arg8[%c0_8, %c0_9] : memref<8x1xf32, #tpu.memory_space<vmem>>, vector<8x1xf32>
    %16 = arith.mulf %2, %14 : vector<8x1xf32>
    %17 = arith.subf %15, %16 : vector<8x1xf32>
    %c0_10 = arith.constant 0 : index
    %c0_11 = arith.constant 0 : index
    %c0_12 = arith.constant 0 : index
    %c0_13 = arith.constant 0 : index
    %18 = vector.load %arg2[%c0_10, %c0_11, %c0_12, %c0_13] : memref<1x2x8x9xf32, #tpu.memory_space<vmem>>, vector<1x1x8x9xf32>
    %19 = vector.shape_cast %18 : vector<1x1x8x9xf32> to vector<8x9xf32>
    %20 = vector.broadcast %14 : vector<8x1xf32> to vector<8x9xf32>
    %21 = arith.mulf %19, %20 : vector<8x9xf32>
    %22 = vector.broadcast %17 : vector<8x1xf32> to vector<8x9xf32>
    %23 = arith.addf %21, %22 : vector<8x9xf32>
    %cst_14 = arith.constant 0.000000e+00 : f32
    %24 = vector.broadcast %cst_14 : f32 to vector<8x9xf32>
    %25 = arith.cmpf ogt, %23, %24 : vector<8x9xf32>
    %cst_15 = arith.constant 2.000000e-01 : f32
    %26 = vector.broadcast %cst_15 : f32 to vector<8x9xf32>
    %27 = arith.mulf %26, %23 : vector<8x9xf32>
    %28 = arith.select %25, %23, %27 : vector<8x9xi1>, vector<8x9xf32>
    %29 = tpu.iota {dimensions = array<i32: 1>} : vector<1x9xi32>
    %c0_i32 = arith.constant 0 : i32
    %30 = vector.broadcast %c0_i32 : i32 to vector<1x9xi32>
    %31 = arith.addi %30, %29 : vector<1x9xi32>
    %c2_i32 = arith.constant 2 : i32
    %32 = vector.broadcast %c2_i32 : i32 to vector<1x9xi32>
    %33 = arith.muli %31, %32 : vector<1x9xi32>
    %c0_i32_16 = arith.constant 0 : i32
    %34 = vector.broadcast %c0_i32_16 : i32 to vector<1x9xi32>
    %35 = arith.addi %33, %34 : vector<1x9xi32>
    %c1_i32 = arith.constant 1 : i32
    %36 = vector.broadcast %c1_i32 : i32 to vector<1x9xi32>
    %37 = arith.cmpi sge, %35, %36 : vector<1x9xi32>
    %c17_i32 = arith.constant 17 : i32
    %38 = vector.broadcast %c17_i32 : i32 to vector<1x9xi32>
    %39 = arith.cmpi slt, %35, %38 : vector<1x9xi32>
    %40 = arith.andi %37, %39 : vector<1x9xi1>
    %cst_17 = arith.constant 0.000000e+00 : f32
    %41 = vector.shape_cast %40 : vector<1x9xi1> to vector<1x9xi1>
    %42 = vector.broadcast %41 : vector<1x9xi1> to vector<8x9xi1>
    %43 = vector.broadcast %cst_17 : f32 to vector<8x9xf32>
    %44 = arith.select %42, %28, %43 : vector<8x9xi1>, vector<8x9xf32>
    %45 = arith.truncf %44 : vector<8x9xf32> to vector<8x9xbf16>
    %c0_18 = arith.constant 0 : index
    %c1 = arith.constant 1 : index
    %c0_19 = arith.constant 0 : index
    %c0_20 = arith.constant 0 : index
    %46 = vector.load %arg2[%c0_18, %c1, %c0_19, %c0_20] : memref<1x2x8x9xf32, #tpu.memory_space<vmem>>, vector<1x1x8x9xf32>
    %47 = vector.shape_cast %46 : vector<1x1x8x9xf32> to vector<8x9xf32>
    %48 = vector.broadcast %14 : vector<8x1xf32> to vector<8x9xf32>
    %49 = arith.mulf %47, %48 : vector<8x9xf32>
    %50 = vector.broadcast %17 : vector<8x1xf32> to vector<8x9xf32>
    %51 = arith.addf %49, %50 : vector<8x9xf32>
    %cst_21 = arith.constant 0.000000e+00 : f32
    %52 = vector.broadcast %cst_21 : f32 to vector<8x9xf32>
    %53 = arith.cmpf ogt, %51, %52 : vector<8x9xf32>
    %cst_22 = arith.constant 2.000000e-01 : f32
    %54 = vector.broadcast %cst_22 : f32 to vector<8x9xf32>
    %55 = arith.mulf %54, %51 : vector<8x9xf32>
    %56 = arith.select %53, %51, %55 : vector<8x9xi1>, vector<8x9xf32>
    %57 = tpu.iota {dimensions = array<i32: 1>} : vector<1x9xi32>
    %c0_i32_23 = arith.constant 0 : i32
    %58 = vector.broadcast %c0_i32_23 : i32 to vector<1x9xi32>
    %59 = arith.addi %58, %57 : vector<1x9xi32>
    %c2_i32_24 = arith.constant 2 : i32
    %60 = vector.broadcast %c2_i32_24 : i32 to vector<1x9xi32>
    %61 = arith.muli %59, %60 : vector<1x9xi32>
    %c1_i32_25 = arith.constant 1 : i32
    %62 = vector.broadcast %c1_i32_25 : i32 to vector<1x9xi32>
    %63 = arith.addi %61, %62 : vector<1x9xi32>
    %c1_i32_26 = arith.constant 1 : i32
    %64 = vector.broadcast %c1_i32_26 : i32 to vector<1x9xi32>
    %65 = arith.cmpi sge, %63, %64 : vector<1x9xi32>
    %c17_i32_27 = arith.constant 17 : i32
    %66 = vector.broadcast %c17_i32_27 : i32 to vector<1x9xi32>
    %67 = arith.cmpi slt, %63, %66 : vector<1x9xi32>
    %68 = arith.andi %65, %67 : vector<1x9xi1>
    %cst_28 = arith.constant 0.000000e+00 : f32
    %69 = vector.shape_cast %68 : vector<1x9xi1> to vector<1x9xi1>
    %70 = vector.broadcast %69 : vector<1x9xi1> to vector<8x9xi1>
    %71 = vector.broadcast %cst_28 : f32 to vector<8x9xf32>
    %72 = arith.select %70, %56, %71 : vector<8x9xi1>, vector<8x9xf32>
    %73 = arith.truncf %72 : vector<8x9xf32> to vector<8x9xbf16>
    %cst_29 = arith.constant 0.000000e+00 : f32
    %74 = vector.broadcast %cst_29 : f32 to vector<16x8xf32>
    %75 = vector.extract_strided_slice %45 {offsets = [0, 0], sizes = [8, 8], strides = [1, 1]} : vector<8x9xbf16> to vector<8x8xbf16>
    %c0_30 = arith.constant 0 : index
    %c0_31 = arith.constant 0 : index
    %c0_32 = arith.constant 0 : index
    %76 = vector.load %arg3[%c0_30, %c0_31, %c0_32] : memref<3x16x8xbf16, #tpu.memory_space<vmem>>, vector<1x16x8xbf16>
    %77 = vector.shape_cast %76 : vector<1x16x8xbf16> to vector<16x8xbf16>
    %cst_33 = arith.constant dense<0.000000e+00> : vector<16x8xf32>
    %78 = tpu.matmul %77, %75, %cst_33 {dimension_numbers = #tpu.dot_dimension_numbers<[1], [0], [0], [1], [0, 0, 1, 1], [], []>} : vector<16x8xbf16>, vector<8x8xbf16>, vector<16x8xf32> -> vector<16x8xf32>
    %79 = arith.addf %74, %78 : vector<16x8xf32>
    %80 = vector.extract_strided_slice %73 {offsets = [0, 0], sizes = [8, 8], strides = [1, 1]} : vector<8x9xbf16> to vector<8x8xbf16>
    %c1_34 = arith.constant 1 : index
    %c0_35 = arith.constant 0 : index
    %c0_36 = arith.constant 0 : index
    %81 = vector.load %arg3[%c1_34, %c0_35, %c0_36] : memref<3x16x8xbf16, #tpu.memory_space<vmem>>, vector<1x16x8xbf16>
    %82 = vector.shape_cast %81 : vector<1x16x8xbf16> to vector<16x8xbf16>
    %cst_37 = arith.constant dense<0.000000e+00> : vector<16x8xf32>
    %83 = tpu.matmul %82, %80, %cst_37 {dimension_numbers = #tpu.dot_dimension_numbers<[1], [0], [0], [1], [0, 0, 1, 1], [], []>} : vector<16x8xbf16>, vector<8x8xbf16>, vector<16x8xf32> -> vector<16x8xf32>
    %84 = arith.addf %79, %83 : vector<16x8xf32>
    %85 = vector.extract_strided_slice %45 {offsets = [0, 1], sizes = [8, 8], strides = [1, 1]} : vector<8x9xbf16> to vector<8x8xbf16>
    %c2 = arith.constant 2 : index
    %c0_38 = arith.constant 0 : index
    %c0_39 = arith.constant 0 : index
    %86 = vector.load %arg3[%c2, %c0_38, %c0_39] : memref<3x16x8xbf16, #tpu.memory_space<vmem>>, vector<1x16x8xbf16>
    %87 = vector.shape_cast %86 : vector<1x16x8xbf16> to vector<16x8xbf16>
    %cst_40 = arith.constant dense<0.000000e+00> : vector<16x8xf32>
    %88 = tpu.matmul %87, %85, %cst_40 {dimension_numbers = #tpu.dot_dimension_numbers<[1], [0], [0], [1], [0, 0, 1, 1], [], []>} : vector<16x8xbf16>, vector<8x8xbf16>, vector<16x8xf32> -> vector<16x8xf32>
    %89 = arith.addf %84, %88 : vector<16x8xf32>
    %c0_41 = arith.constant 0 : index
    %c0_42 = arith.constant 0 : index
    %90 = vector.load %arg4[%c0_41, %c0_42] : memref<16x1xf32, #tpu.memory_space<vmem>>, vector<16x1xf32>
    %91 = vector.broadcast %90 : vector<16x1xf32> to vector<16x8xf32>
    %92 = arith.addf %89, %91 : vector<16x8xf32>
    %c0_43 = arith.constant 0 : index
    %c0_44 = arith.constant 0 : index
    %c0_45 = arith.constant 0 : index
    %93 = vector.load %arg9[%c0_43, %c0_44, %c0_45] : memref<1x16x8xf32, #tpu.memory_space<vmem>>, vector<1x16x8xf32>
    %94 = vector.shape_cast %93 : vector<1x16x8xf32> to vector<16x8xf32>
    %95 = vector.shape_cast %92 : vector<16x8xf32> to vector<1x16x8xf32>
    tpu.vector_store %arg9[%c0_43, %c0_44, %c0_45], %95 {strides = array<i32>} : memref<1x16x8xf32, #tpu.memory_space<vmem>>, vector<1x16x8xf32>,
    %c0_i32_46 = arith.constant 0 : i32
    %96 = arith.cmpi eq, %arg0, %c0_i32_46 : i32
    %97 = arith.extui %96 : i1 to i32
    %c0_i32_47 = arith.constant 0 : i32
    %98 = arith.cmpi ne, %97, %c0_i32_47 : i32
    scf.if %98 {
      %cst_58 = arith.constant 0.000000e+00 : f32
      %110 = vector.broadcast %cst_58 : f32 to vector<16x1xf32>
      %c0_59 = arith.constant 0 : index
      %c0_60 = arith.constant 0 : index
      %111 = vector.load %arg10[%c0_59, %c0_60] : memref<16x1xf32, #tpu.memory_space<vmem>>, vector<16x1xf32>
      tpu.vector_store %arg10[%c0_59, %c0_60], %110 {strides = array<i32>} : memref<16x1xf32, #tpu.memory_space<vmem>>, vector<16x1xf32>,
      %cst_61 = arith.constant 0.000000e+00 : f32
      %112 = vector.broadcast %cst_61 : f32 to vector<16x1xf32>
      %c0_62 = arith.constant 0 : index
      %c0_63 = arith.constant 0 : index
      %113 = vector.load %arg11[%c0_62, %c0_63] : memref<16x1xf32, #tpu.memory_space<vmem>>, vector<16x1xf32>
      tpu.vector_store %arg11[%c0_62, %c0_63], %112 {strides = array<i32>} : memref<16x1xf32, #tpu.memory_space<vmem>>, vector<16x1xf32>,
    } else {
    }
    %c0_48 = arith.constant 0 : index
    %c0_49 = arith.constant 0 : index
    %99 = vector.load %arg10[%c0_48, %c0_49] : memref<16x1xf32, #tpu.memory_space<vmem>>, vector<16x1xf32>
    %cst_50 = arith.constant dense<0.000000e+00> : vector<16xf32>
    %100 = vector.multi_reduction <add>, %92, %cst_50 [1] : vector<16x8xf32> to vector<16xf32>
    %101 = vector.shape_cast %100 : vector<16xf32> to vector<16x1xf32>
    %102 = arith.addf %99, %101 : vector<16x1xf32>
    %c0_51 = arith.constant 0 : index
    %c0_52 = arith.constant 0 : index
    %103 = vector.load %arg10[%c0_51, %c0_52] : memref<16x1xf32, #tpu.memory_space<vmem>>, vector<16x1xf32>
    tpu.vector_store %arg10[%c0_51, %c0_52], %102 {strides = array<i32>} : memref<16x1xf32, #tpu.memory_space<vmem>>, vector<16x1xf32>,
    %c0_53 = arith.constant 0 : index
    %c0_54 = arith.constant 0 : index
    %104 = vector.load %arg11[%c0_53, %c0_54] : memref<16x1xf32, #tpu.memory_space<vmem>>, vector<16x1xf32>
    %105 = arith.mulf %92, %92 : vector<16x8xf32>
    %cst_55 = arith.constant dense<0.000000e+00> : vector<16xf32>
    %106 = vector.multi_reduction <add>, %105, %cst_55 [1] : vector<16x8xf32> to vector<16xf32>
    %107 = vector.shape_cast %106 : vector<16xf32> to vector<16x1xf32>
    %108 = arith.addf %104, %107 : vector<16x1xf32>
    %c0_56 = arith.constant 0 : index
    %c0_57 = arith.constant 0 : index
    %109 = vector.load %arg11[%c0_56, %c0_57] : memref<16x1xf32, #tpu.memory_space<vmem>>, vector<16x1xf32>
    tpu.vector_store %arg11[%c0_56, %c0_57], %108 {strides = array<i32>} : memref<16x1xf32, #tpu.memory_space<vmem>>, vector<16x1xf32>,
    return
  }
  func.func @transform_0(%arg0: i32, %arg1: i32) -> (i32, i32, i32, i32) {
    %c0_i32 = arith.constant 0 : i32
    %c0_i32_0 = arith.constant 0 : i32
    %c0_i32_1 = arith.constant 0 : i32
    %c0_i32_2 = arith.constant 0 : i32
    return %arg0, %c0_i32, %c0_i32_0, %c0_i32_1 : i32, i32, i32, i32
  }
  func.func @transform_1(%arg0: i32, %arg1: i32) -> (i32, i32, i32) {
    %c0_i32 = arith.constant 0 : i32
    %c0_i32_0 = arith.constant 0 : i32
    %c0_i32_1 = arith.constant 0 : i32
    %c0_i32_2 = arith.constant 0 : i32
    return %c0_i32, %c0_i32_0, %c0_i32_1 : i32, i32, i32
  }
  func.func @transform_2(%arg0: i32, %arg1: i32) -> (i32, i32) {
    %c0_i32 = arith.constant 0 : i32
    %c0_i32_0 = arith.constant 0 : i32
    %c0_i32_1 = arith.constant 0 : i32
    return %c0_i32, %c0_i32_0 : i32, i32
  }
  func.func @transform_3(%arg0: i32, %arg1: i32) -> (i32, i32) {
    %c0_i32 = arith.constant 0 : i32
    %c0_i32_0 = arith.constant 0 : i32
    %c0_i32_1 = arith.constant 0 : i32
    return %c0_i32, %c0_i32_0 : i32, i32
  }
  func.func @transform_4(%arg0: i32, %arg1: i32) -> (i32, i32) {
    %c0_i32 = arith.constant 0 : i32
    %c0_i32_0 = arith.constant 0 : i32
    %c0_i32_1 = arith.constant 0 : i32
    return %c0_i32, %c0_i32_0 : i32, i32
  }
  func.func @transform_5(%arg0: i32, %arg1: i32) -> (i32, i32) {
    %c0_i32 = arith.constant 0 : i32
    %c0_i32_0 = arith.constant 0 : i32
    %c0_i32_1 = arith.constant 0 : i32
    return %c0_i32, %c0_i32_0 : i32, i32
  }
  func.func @transform_6(%arg0: i32, %arg1: i32) -> (i32, i32) {
    %c0_i32 = arith.constant 0 : i32
    %c0_i32_0 = arith.constant 0 : i32
    %c0_i32_1 = arith.constant 0 : i32
    return %c0_i32, %c0_i32_0 : i32, i32
  }
  func.func @transform_7(%arg0: i32, %arg1: i32) -> (i32, i32, i32) {
    %c0_i32 = arith.constant 0 : i32
    %c0_i32_0 = arith.constant 0 : i32
    return %arg0, %c0_i32, %arg1 : i32, i32, i32
  }
  func.func @transform_8(%arg0: i32, %arg1: i32) -> (i32, i32) {
    %c0_i32 = arith.constant 0 : i32
    %c0_i32_0 = arith.constant 0 : i32
    %c0_i32_1 = arith.constant 0 : i32
    return %c0_i32, %c0_i32_0 : i32, i32
  }
  func.func @transform_9(%arg0: i32, %arg1: i32) -> (i32, i32) {
    %c0_i32 = arith.constant 0 : i32
    %c0_i32_0 = arith.constant 0 : i32
    %c0_i32_1 = arith.constant 0 : i32
    return %c0_i32, %c0_i32_0 : i32, i32
  }
}

module attributes {stable_mosaic.version = 11 : i64} {
  func.func @kernel(%arg0: i32, %arg1: i32, %arg2: memref<1x1x16x10xf32, #tpu.memory_space<vmem>>, %arg3: memref<3x16x16xbf16, #tpu.memory_space<vmem>>, %arg4: memref<16x1xf32, #tpu.memory_space<vmem>>, %arg5: memref<16x1xf32, #tpu.memory_space<vmem>>, %arg6: memref<16x1xf32, #tpu.memory_space<vmem>>, %arg7: memref<16x1xf32, #tpu.memory_space<vmem>>, %arg8: memref<16x1xf32, #tpu.memory_space<vmem>>, %arg9: memref<1x16x8xf32, #tpu.memory_space<vmem>>, %arg10: memref<1x16x8xf32, #tpu.memory_space<vmem>>, %arg11: memref<16x1xf32, #tpu.memory_space<vmem>>, %arg12: memref<16x1xf32, #tpu.memory_space<vmem>>) attributes {dimension_semantics = [#tpu.dimension_semantics<arbitrary>, #tpu.dimension_semantics<arbitrary>], iteration_bounds = array<i64: 2, 1>, scalar_prefetch = 0 : i64, scratch_operands = 0 : i64, tpu.core_type = #tpu.core_type<tc>, window_params = [{transform_indices = @transform_0, window_bounds = array<i64: 1, 1, 16, 10>}, {pipeline_mode = #tpu.pipeline_mode<synchronous>, transform_indices = @transform_1, window_bounds = array<i64: 3, 16, 16>}, {pipeline_mode = #tpu.pipeline_mode<synchronous>, transform_indices = @transform_2, window_bounds = array<i64: 16, 1>}, {pipeline_mode = #tpu.pipeline_mode<synchronous>, transform_indices = @transform_3, window_bounds = array<i64: 16, 1>}, {pipeline_mode = #tpu.pipeline_mode<synchronous>, transform_indices = @transform_4, window_bounds = array<i64: 16, 1>}, {pipeline_mode = #tpu.pipeline_mode<synchronous>, transform_indices = @transform_5, window_bounds = array<i64: 16, 1>}, {pipeline_mode = #tpu.pipeline_mode<synchronous>, transform_indices = @transform_6, window_bounds = array<i64: 16, 1>}, {transform_indices = @transform_7, window_bounds = array<i64: 1, 16, 8>}, {transform_indices = @transform_8, window_bounds = array<i64: 1, 16, 8>}, {pipeline_mode = #tpu.pipeline_mode<synchronous>, transform_indices = @transform_9, window_bounds = array<i64: 16, 1>}, {pipeline_mode = #tpu.pipeline_mode<synchronous>, transform_indices = @transform_10, window_bounds = array<i64: 16, 1>}]} {
    %c0 = arith.constant 0 : index
    %c0_0 = arith.constant 0 : index
    %0 = vector.load %arg5[%c0, %c0_0] : memref<16x1xf32, #tpu.memory_space<vmem>>, vector<16x1xf32>
    %cst = arith.constant 6.250000e-02 : f32
    %1 = vector.broadcast %cst : f32 to vector<16x1xf32>
    %2 = arith.mulf %0, %1 : vector<16x1xf32>
    %c0_1 = arith.constant 0 : index
    %c0_2 = arith.constant 0 : index
    %3 = vector.load %arg6[%c0_1, %c0_2] : memref<16x1xf32, #tpu.memory_space<vmem>>, vector<16x1xf32>
    %cst_3 = arith.constant 6.250000e-02 : f32
    %4 = vector.broadcast %cst_3 : f32 to vector<16x1xf32>
    %5 = arith.mulf %3, %4 : vector<16x1xf32>
    %6 = arith.mulf %2, %2 : vector<16x1xf32>
    %7 = arith.subf %5, %6 : vector<16x1xf32>
    %cst_4 = arith.constant 0.000000e+00 : f32
    %8 = vector.broadcast %cst_4 : f32 to vector<16x1xf32>
    %9 = arith.maximumf %7, %8 : vector<16x1xf32>
    %c0_5 = arith.constant 0 : index
    %c0_6 = arith.constant 0 : index
    %10 = vector.load %arg7[%c0_5, %c0_6] : memref<16x1xf32, #tpu.memory_space<vmem>>, vector<16x1xf32>
    %cst_7 = arith.constant 9.99999974E-6 : f32
    %11 = vector.broadcast %cst_7 : f32 to vector<16x1xf32>
    %12 = arith.addf %9, %11 : vector<16x1xf32>
    %13 = math.rsqrt %12 : vector<16x1xf32>
    %14 = arith.mulf %10, %13 : vector<16x1xf32>
    %c0_8 = arith.constant 0 : index
    %c0_9 = arith.constant 0 : index
    %15 = vector.load %arg8[%c0_8, %c0_9] : memref<16x1xf32, #tpu.memory_space<vmem>>, vector<16x1xf32>
    %16 = arith.mulf %2, %14 : vector<16x1xf32>
    %17 = arith.subf %15, %16 : vector<16x1xf32>
    %c0_10 = arith.constant 0 : index
    %c0_11 = arith.constant 0 : index
    %c0_12 = arith.constant 0 : index
    %c0_13 = arith.constant 0 : index
    %18 = vector.load %arg2[%c0_10, %c0_11, %c0_12, %c0_13] : memref<1x1x16x10xf32, #tpu.memory_space<vmem>>, vector<1x1x16x10xf32>
    %19 = vector.shape_cast %18 : vector<1x1x16x10xf32> to vector<16x10xf32>
    %20 = vector.broadcast %14 : vector<16x1xf32> to vector<16x10xf32>
    %21 = arith.mulf %19, %20 : vector<16x10xf32>
    %22 = vector.broadcast %17 : vector<16x1xf32> to vector<16x10xf32>
    %23 = arith.addf %21, %22 : vector<16x10xf32>
    %cst_14 = arith.constant 0.000000e+00 : f32
    %24 = vector.broadcast %cst_14 : f32 to vector<16x10xf32>
    %25 = arith.cmpf ogt, %23, %24 : vector<16x10xf32>
    %cst_15 = arith.constant 2.000000e-01 : f32
    %26 = vector.broadcast %cst_15 : f32 to vector<16x10xf32>
    %27 = arith.mulf %26, %23 : vector<16x10xf32>
    %28 = arith.select %25, %23, %27 : vector<16x10xi1>, vector<16x10xf32>
    %29 = tpu.iota {dimensions = array<i32: 1>} : vector<1x10xi32>
    %c0_i32 = arith.constant 0 : i32
    %30 = vector.broadcast %c0_i32 : i32 to vector<1x10xi32>
    %31 = arith.addi %30, %29 : vector<1x10xi32>
    %c1_i32 = arith.constant 1 : i32
    %32 = vector.broadcast %c1_i32 : i32 to vector<1x10xi32>
    %33 = arith.muli %31, %32 : vector<1x10xi32>
    %c0_i32_16 = arith.constant 0 : i32
    %34 = vector.broadcast %c0_i32_16 : i32 to vector<1x10xi32>
    %35 = arith.addi %33, %34 : vector<1x10xi32>
    %c1_i32_17 = arith.constant 1 : i32
    %36 = vector.broadcast %c1_i32_17 : i32 to vector<1x10xi32>
    %37 = arith.cmpi sge, %35, %36 : vector<1x10xi32>
    %c9_i32 = arith.constant 9 : i32
    %38 = vector.broadcast %c9_i32 : i32 to vector<1x10xi32>
    %39 = arith.cmpi slt, %35, %38 : vector<1x10xi32>
    %40 = arith.andi %37, %39 : vector<1x10xi1>
    %cst_18 = arith.constant 0.000000e+00 : f32
    %41 = vector.shape_cast %40 : vector<1x10xi1> to vector<1x10xi1>
    %42 = vector.broadcast %41 : vector<1x10xi1> to vector<16x10xi1>
    %43 = vector.broadcast %cst_18 : f32 to vector<16x10xf32>
    %44 = arith.select %42, %28, %43 : vector<16x10xi1>, vector<16x10xf32>
    %45 = arith.truncf %44 : vector<16x10xf32> to vector<16x10xbf16>
    %cst_19 = arith.constant 0.000000e+00 : f32
    %46 = vector.broadcast %cst_19 : f32 to vector<16x8xf32>
    %47 = vector.extract_strided_slice %45 {offsets = [0, 0], sizes = [16, 8], strides = [1, 1]} : vector<16x10xbf16> to vector<16x8xbf16>
    %c0_20 = arith.constant 0 : index
    %c0_21 = arith.constant 0 : index
    %c0_22 = arith.constant 0 : index
    %48 = vector.load %arg3[%c0_20, %c0_21, %c0_22] : memref<3x16x16xbf16, #tpu.memory_space<vmem>>, vector<1x16x16xbf16>
    %49 = vector.shape_cast %48 : vector<1x16x16xbf16> to vector<16x16xbf16>
    %cst_23 = arith.constant dense<0.000000e+00> : vector<16x8xf32>
    %50 = tpu.matmul %49, %47, %cst_23 {dimension_numbers = #tpu.dot_dimension_numbers<[1], [0], [0], [1], [0, 0, 1, 1], [], []>} : vector<16x16xbf16>, vector<16x8xbf16>, vector<16x8xf32> -> vector<16x8xf32>
    %51 = arith.addf %46, %50 : vector<16x8xf32>
    %52 = vector.extract_strided_slice %45 {offsets = [0, 1], sizes = [16, 8], strides = [1, 1]} : vector<16x10xbf16> to vector<16x8xbf16>
    %c1 = arith.constant 1 : index
    %c0_24 = arith.constant 0 : index
    %c0_25 = arith.constant 0 : index
    %53 = vector.load %arg3[%c1, %c0_24, %c0_25] : memref<3x16x16xbf16, #tpu.memory_space<vmem>>, vector<1x16x16xbf16>
    %54 = vector.shape_cast %53 : vector<1x16x16xbf16> to vector<16x16xbf16>
    %cst_26 = arith.constant dense<0.000000e+00> : vector<16x8xf32>
    %55 = tpu.matmul %54, %52, %cst_26 {dimension_numbers = #tpu.dot_dimension_numbers<[1], [0], [0], [1], [0, 0, 1, 1], [], []>} : vector<16x16xbf16>, vector<16x8xbf16>, vector<16x8xf32> -> vector<16x8xf32>
    %56 = arith.addf %51, %55 : vector<16x8xf32>
    %57 = vector.extract_strided_slice %45 {offsets = [0, 2], sizes = [16, 8], strides = [1, 1]} : vector<16x10xbf16> to vector<16x8xbf16>
    %c2 = arith.constant 2 : index
    %c0_27 = arith.constant 0 : index
    %c0_28 = arith.constant 0 : index
    %58 = vector.load %arg3[%c2, %c0_27, %c0_28] : memref<3x16x16xbf16, #tpu.memory_space<vmem>>, vector<1x16x16xbf16>
    %59 = vector.shape_cast %58 : vector<1x16x16xbf16> to vector<16x16xbf16>
    %cst_29 = arith.constant dense<0.000000e+00> : vector<16x8xf32>
    %60 = tpu.matmul %59, %57, %cst_29 {dimension_numbers = #tpu.dot_dimension_numbers<[1], [0], [0], [1], [0, 0, 1, 1], [], []>} : vector<16x16xbf16>, vector<16x8xbf16>, vector<16x8xf32> -> vector<16x8xf32>
    %61 = arith.addf %56, %60 : vector<16x8xf32>
    %c0_30 = arith.constant 0 : index
    %c0_31 = arith.constant 0 : index
    %62 = vector.load %arg4[%c0_30, %c0_31] : memref<16x1xf32, #tpu.memory_space<vmem>>, vector<16x1xf32>
    %63 = vector.broadcast %62 : vector<16x1xf32> to vector<16x8xf32>
    %64 = arith.addf %61, %63 : vector<16x8xf32>
    %c0_32 = arith.constant 0 : index
    %c0_33 = arith.constant 0 : index
    %c0_34 = arith.constant 0 : index
    %65 = vector.load %arg9[%c0_32, %c0_33, %c0_34] : memref<1x16x8xf32, #tpu.memory_space<vmem>>, vector<1x16x8xf32>
    %66 = vector.shape_cast %65 : vector<1x16x8xf32> to vector<16x8xf32>
    %67 = arith.addf %64, %66 : vector<16x8xf32>
    %c0_35 = arith.constant 0 : index
    %c0_36 = arith.constant 0 : index
    %c0_37 = arith.constant 0 : index
    %68 = vector.load %arg10[%c0_35, %c0_36, %c0_37] : memref<1x16x8xf32, #tpu.memory_space<vmem>>, vector<1x16x8xf32>
    %69 = vector.shape_cast %68 : vector<1x16x8xf32> to vector<16x8xf32>
    %70 = vector.shape_cast %67 : vector<16x8xf32> to vector<1x16x8xf32>
    tpu.vector_store %arg10[%c0_35, %c0_36, %c0_37], %70 {strides = array<i32>} : memref<1x16x8xf32, #tpu.memory_space<vmem>>, vector<1x16x8xf32>,
    %c0_i32_38 = arith.constant 0 : i32
    %71 = arith.cmpi eq, %arg0, %c0_i32_38 : i32
    %72 = arith.extui %71 : i1 to i32
    %c0_i32_39 = arith.constant 0 : i32
    %73 = arith.cmpi ne, %72, %c0_i32_39 : i32
    scf.if %73 {
      %cst_50 = arith.constant 0.000000e+00 : f32
      %85 = vector.broadcast %cst_50 : f32 to vector<16x1xf32>
      %c0_51 = arith.constant 0 : index
      %c0_52 = arith.constant 0 : index
      %86 = vector.load %arg11[%c0_51, %c0_52] : memref<16x1xf32, #tpu.memory_space<vmem>>, vector<16x1xf32>
      tpu.vector_store %arg11[%c0_51, %c0_52], %85 {strides = array<i32>} : memref<16x1xf32, #tpu.memory_space<vmem>>, vector<16x1xf32>,
      %cst_53 = arith.constant 0.000000e+00 : f32
      %87 = vector.broadcast %cst_53 : f32 to vector<16x1xf32>
      %c0_54 = arith.constant 0 : index
      %c0_55 = arith.constant 0 : index
      %88 = vector.load %arg12[%c0_54, %c0_55] : memref<16x1xf32, #tpu.memory_space<vmem>>, vector<16x1xf32>
      tpu.vector_store %arg12[%c0_54, %c0_55], %87 {strides = array<i32>} : memref<16x1xf32, #tpu.memory_space<vmem>>, vector<16x1xf32>,
    } else {
    }
    %c0_40 = arith.constant 0 : index
    %c0_41 = arith.constant 0 : index
    %74 = vector.load %arg11[%c0_40, %c0_41] : memref<16x1xf32, #tpu.memory_space<vmem>>, vector<16x1xf32>
    %cst_42 = arith.constant dense<0.000000e+00> : vector<16xf32>
    %75 = vector.multi_reduction <add>, %67, %cst_42 [1] : vector<16x8xf32> to vector<16xf32>
    %76 = vector.shape_cast %75 : vector<16xf32> to vector<16x1xf32>
    %77 = arith.addf %74, %76 : vector<16x1xf32>
    %c0_43 = arith.constant 0 : index
    %c0_44 = arith.constant 0 : index
    %78 = vector.load %arg11[%c0_43, %c0_44] : memref<16x1xf32, #tpu.memory_space<vmem>>, vector<16x1xf32>
    tpu.vector_store %arg11[%c0_43, %c0_44], %77 {strides = array<i32>} : memref<16x1xf32, #tpu.memory_space<vmem>>, vector<16x1xf32>,
    %c0_45 = arith.constant 0 : index
    %c0_46 = arith.constant 0 : index
    %79 = vector.load %arg12[%c0_45, %c0_46] : memref<16x1xf32, #tpu.memory_space<vmem>>, vector<16x1xf32>
    %80 = arith.mulf %67, %67 : vector<16x8xf32>
    %cst_47 = arith.constant dense<0.000000e+00> : vector<16xf32>
    %81 = vector.multi_reduction <add>, %80, %cst_47 [1] : vector<16x8xf32> to vector<16xf32>
    %82 = vector.shape_cast %81 : vector<16xf32> to vector<16x1xf32>
    %83 = arith.addf %79, %82 : vector<16x1xf32>
    %c0_48 = arith.constant 0 : index
    %c0_49 = arith.constant 0 : index
    %84 = vector.load %arg12[%c0_48, %c0_49] : memref<16x1xf32, #tpu.memory_space<vmem>>, vector<16x1xf32>
    tpu.vector_store %arg12[%c0_48, %c0_49], %83 {strides = array<i32>} : memref<16x1xf32, #tpu.memory_space<vmem>>, vector<16x1xf32>,
    return
  }
  func.func @transform_0(%arg0: i32, %arg1: i32) -> (i32, i32, i32, i32) {
    %c0_i32 = arith.constant 0 : i32
    %c0_i32_0 = arith.constant 0 : i32
    %c0_i32_1 = arith.constant 0 : i32
    %c0_i32_2 = arith.constant 0 : i32
    return %arg0, %c0_i32, %c0_i32_0, %c0_i32_1 : i32, i32, i32, i32
  }
  func.func @transform_1(%arg0: i32, %arg1: i32) -> (i32, i32, i32) {
    %c0_i32 = arith.constant 0 : i32
    %c0_i32_0 = arith.constant 0 : i32
    %c0_i32_1 = arith.constant 0 : i32
    %c0_i32_2 = arith.constant 0 : i32
    return %c0_i32, %c0_i32_0, %c0_i32_1 : i32, i32, i32
  }
  func.func @transform_2(%arg0: i32, %arg1: i32) -> (i32, i32) {
    %c0_i32 = arith.constant 0 : i32
    %c0_i32_0 = arith.constant 0 : i32
    %c0_i32_1 = arith.constant 0 : i32
    return %c0_i32, %c0_i32_0 : i32, i32
  }
  func.func @transform_3(%arg0: i32, %arg1: i32) -> (i32, i32) {
    %c0_i32 = arith.constant 0 : i32
    %c0_i32_0 = arith.constant 0 : i32
    %c0_i32_1 = arith.constant 0 : i32
    return %c0_i32, %c0_i32_0 : i32, i32
  }
  func.func @transform_4(%arg0: i32, %arg1: i32) -> (i32, i32) {
    %c0_i32 = arith.constant 0 : i32
    %c0_i32_0 = arith.constant 0 : i32
    %c0_i32_1 = arith.constant 0 : i32
    return %c0_i32, %c0_i32_0 : i32, i32
  }
  func.func @transform_5(%arg0: i32, %arg1: i32) -> (i32, i32) {
    %c0_i32 = arith.constant 0 : i32
    %c0_i32_0 = arith.constant 0 : i32
    %c0_i32_1 = arith.constant 0 : i32
    return %c0_i32, %c0_i32_0 : i32, i32
  }
  func.func @transform_6(%arg0: i32, %arg1: i32) -> (i32, i32) {
    %c0_i32 = arith.constant 0 : i32
    %c0_i32_0 = arith.constant 0 : i32
    %c0_i32_1 = arith.constant 0 : i32
    return %c0_i32, %c0_i32_0 : i32, i32
  }
  func.func @transform_7(%arg0: i32, %arg1: i32) -> (i32, i32, i32) {
    %c0_i32 = arith.constant 0 : i32
    %c0_i32_0 = arith.constant 0 : i32
    return %arg0, %c0_i32, %arg1 : i32, i32, i32
  }
  func.func @transform_8(%arg0: i32, %arg1: i32) -> (i32, i32, i32) {
    %c0_i32 = arith.constant 0 : i32
    %c0_i32_0 = arith.constant 0 : i32
    return %arg0, %c0_i32, %arg1 : i32, i32, i32
  }
  func.func @transform_9(%arg0: i32, %arg1: i32) -> (i32, i32) {
    %c0_i32 = arith.constant 0 : i32
    %c0_i32_0 = arith.constant 0 : i32
    %c0_i32_1 = arith.constant 0 : i32
    return %c0_i32, %c0_i32_0 : i32, i32
  }
  func.func @transform_10(%arg0: i32, %arg1: i32) -> (i32, i32) {
    %c0_i32 = arith.constant 0 : i32
    %c0_i32_0 = arith.constant 0 : i32
    %c0_i32_1 = arith.constant 0 : i32
    return %c0_i32, %c0_i32_0 : i32, i32
  }
}

module attributes {stable_mosaic.version = 11 : i64} {
  func.func @kernel(%arg0: i32, %arg1: i32, %arg2: memref<1x1x16x10xf32, #tpu.memory_space<vmem>>, %arg3: memref<3x16x16xbf16, #tpu.memory_space<vmem>>, %arg4: memref<16x1xf32, #tpu.memory_space<vmem>>, %arg5: memref<16x1xf32, #tpu.memory_space<vmem>>, %arg6: memref<16x1xf32, #tpu.memory_space<vmem>>, %arg7: memref<16x1xf32, #tpu.memory_space<vmem>>, %arg8: memref<16x1xf32, #tpu.memory_space<vmem>>, %arg9: memref<1x16x8xf32, #tpu.memory_space<vmem>>, %arg10: memref<16x1xf32, #tpu.memory_space<vmem>>, %arg11: memref<16x1xf32, #tpu.memory_space<vmem>>) attributes {dimension_semantics = [#tpu.dimension_semantics<arbitrary>, #tpu.dimension_semantics<arbitrary>], iteration_bounds = array<i64: 2, 1>, scalar_prefetch = 0 : i64, scratch_operands = 0 : i64, tpu.core_type = #tpu.core_type<tc>, window_params = [{transform_indices = @transform_0, window_bounds = array<i64: 1, 1, 16, 10>}, {pipeline_mode = #tpu.pipeline_mode<synchronous>, transform_indices = @transform_1, window_bounds = array<i64: 3, 16, 16>}, {pipeline_mode = #tpu.pipeline_mode<synchronous>, transform_indices = @transform_2, window_bounds = array<i64: 16, 1>}, {pipeline_mode = #tpu.pipeline_mode<synchronous>, transform_indices = @transform_3, window_bounds = array<i64: 16, 1>}, {pipeline_mode = #tpu.pipeline_mode<synchronous>, transform_indices = @transform_4, window_bounds = array<i64: 16, 1>}, {pipeline_mode = #tpu.pipeline_mode<synchronous>, transform_indices = @transform_5, window_bounds = array<i64: 16, 1>}, {pipeline_mode = #tpu.pipeline_mode<synchronous>, transform_indices = @transform_6, window_bounds = array<i64: 16, 1>}, {transform_indices = @transform_7, window_bounds = array<i64: 1, 16, 8>}, {pipeline_mode = #tpu.pipeline_mode<synchronous>, transform_indices = @transform_8, window_bounds = array<i64: 16, 1>}, {pipeline_mode = #tpu.pipeline_mode<synchronous>, transform_indices = @transform_9, window_bounds = array<i64: 16, 1>}]} {
    %c0 = arith.constant 0 : index
    %c0_0 = arith.constant 0 : index
    %0 = vector.load %arg5[%c0, %c0_0] : memref<16x1xf32, #tpu.memory_space<vmem>>, vector<16x1xf32>
    %cst = arith.constant 6.250000e-02 : f32
    %1 = vector.broadcast %cst : f32 to vector<16x1xf32>
    %2 = arith.mulf %0, %1 : vector<16x1xf32>
    %c0_1 = arith.constant 0 : index
    %c0_2 = arith.constant 0 : index
    %3 = vector.load %arg6[%c0_1, %c0_2] : memref<16x1xf32, #tpu.memory_space<vmem>>, vector<16x1xf32>
    %cst_3 = arith.constant 6.250000e-02 : f32
    %4 = vector.broadcast %cst_3 : f32 to vector<16x1xf32>
    %5 = arith.mulf %3, %4 : vector<16x1xf32>
    %6 = arith.mulf %2, %2 : vector<16x1xf32>
    %7 = arith.subf %5, %6 : vector<16x1xf32>
    %cst_4 = arith.constant 0.000000e+00 : f32
    %8 = vector.broadcast %cst_4 : f32 to vector<16x1xf32>
    %9 = arith.maximumf %7, %8 : vector<16x1xf32>
    %c0_5 = arith.constant 0 : index
    %c0_6 = arith.constant 0 : index
    %10 = vector.load %arg7[%c0_5, %c0_6] : memref<16x1xf32, #tpu.memory_space<vmem>>, vector<16x1xf32>
    %cst_7 = arith.constant 9.99999974E-6 : f32
    %11 = vector.broadcast %cst_7 : f32 to vector<16x1xf32>
    %12 = arith.addf %9, %11 : vector<16x1xf32>
    %13 = math.rsqrt %12 : vector<16x1xf32>
    %14 = arith.mulf %10, %13 : vector<16x1xf32>
    %c0_8 = arith.constant 0 : index
    %c0_9 = arith.constant 0 : index
    %15 = vector.load %arg8[%c0_8, %c0_9] : memref<16x1xf32, #tpu.memory_space<vmem>>, vector<16x1xf32>
    %16 = arith.mulf %2, %14 : vector<16x1xf32>
    %17 = arith.subf %15, %16 : vector<16x1xf32>
    %c0_10 = arith.constant 0 : index
    %c0_11 = arith.constant 0 : index
    %c0_12 = arith.constant 0 : index
    %c0_13 = arith.constant 0 : index
    %18 = vector.load %arg2[%c0_10, %c0_11, %c0_12, %c0_13] : memref<1x1x16x10xf32, #tpu.memory_space<vmem>>, vector<1x1x16x10xf32>
    %19 = vector.shape_cast %18 : vector<1x1x16x10xf32> to vector<16x10xf32>
    %20 = vector.broadcast %14 : vector<16x1xf32> to vector<16x10xf32>
    %21 = arith.mulf %19, %20 : vector<16x10xf32>
    %22 = vector.broadcast %17 : vector<16x1xf32> to vector<16x10xf32>
    %23 = arith.addf %21, %22 : vector<16x10xf32>
    %cst_14 = arith.constant 0.000000e+00 : f32
    %24 = vector.broadcast %cst_14 : f32 to vector<16x10xf32>
    %25 = arith.cmpf ogt, %23, %24 : vector<16x10xf32>
    %cst_15 = arith.constant 2.000000e-01 : f32
    %26 = vector.broadcast %cst_15 : f32 to vector<16x10xf32>
    %27 = arith.mulf %26, %23 : vector<16x10xf32>
    %28 = arith.select %25, %23, %27 : vector<16x10xi1>, vector<16x10xf32>
    %29 = tpu.iota {dimensions = array<i32: 1>} : vector<1x10xi32>
    %c0_i32 = arith.constant 0 : i32
    %30 = vector.broadcast %c0_i32 : i32 to vector<1x10xi32>
    %31 = arith.addi %30, %29 : vector<1x10xi32>
    %c1_i32 = arith.constant 1 : i32
    %32 = vector.broadcast %c1_i32 : i32 to vector<1x10xi32>
    %33 = arith.muli %31, %32 : vector<1x10xi32>
    %c0_i32_16 = arith.constant 0 : i32
    %34 = vector.broadcast %c0_i32_16 : i32 to vector<1x10xi32>
    %35 = arith.addi %33, %34 : vector<1x10xi32>
    %c1_i32_17 = arith.constant 1 : i32
    %36 = vector.broadcast %c1_i32_17 : i32 to vector<1x10xi32>
    %37 = arith.cmpi sge, %35, %36 : vector<1x10xi32>
    %c9_i32 = arith.constant 9 : i32
    %38 = vector.broadcast %c9_i32 : i32 to vector<1x10xi32>
    %39 = arith.cmpi slt, %35, %38 : vector<1x10xi32>
    %40 = arith.andi %37, %39 : vector<1x10xi1>
    %cst_18 = arith.constant 0.000000e+00 : f32
    %41 = vector.shape_cast %40 : vector<1x10xi1> to vector<1x10xi1>
    %42 = vector.broadcast %41 : vector<1x10xi1> to vector<16x10xi1>
    %43 = vector.broadcast %cst_18 : f32 to vector<16x10xf32>
    %44 = arith.select %42, %28, %43 : vector<16x10xi1>, vector<16x10xf32>
    %45 = arith.truncf %44 : vector<16x10xf32> to vector<16x10xbf16>
    %cst_19 = arith.constant 0.000000e+00 : f32
    %46 = vector.broadcast %cst_19 : f32 to vector<16x8xf32>
    %47 = vector.extract_strided_slice %45 {offsets = [0, 0], sizes = [16, 8], strides = [1, 1]} : vector<16x10xbf16> to vector<16x8xbf16>
    %c0_20 = arith.constant 0 : index
    %c0_21 = arith.constant 0 : index
    %c0_22 = arith.constant 0 : index
    %48 = vector.load %arg3[%c0_20, %c0_21, %c0_22] : memref<3x16x16xbf16, #tpu.memory_space<vmem>>, vector<1x16x16xbf16>
    %49 = vector.shape_cast %48 : vector<1x16x16xbf16> to vector<16x16xbf16>
    %cst_23 = arith.constant dense<0.000000e+00> : vector<16x8xf32>
    %50 = tpu.matmul %49, %47, %cst_23 {dimension_numbers = #tpu.dot_dimension_numbers<[1], [0], [0], [1], [0, 0, 1, 1], [], []>} : vector<16x16xbf16>, vector<16x8xbf16>, vector<16x8xf32> -> vector<16x8xf32>
    %51 = arith.addf %46, %50 : vector<16x8xf32>
    %52 = vector.extract_strided_slice %45 {offsets = [0, 1], sizes = [16, 8], strides = [1, 1]} : vector<16x10xbf16> to vector<16x8xbf16>
    %c1 = arith.constant 1 : index
    %c0_24 = arith.constant 0 : index
    %c0_25 = arith.constant 0 : index
    %53 = vector.load %arg3[%c1, %c0_24, %c0_25] : memref<3x16x16xbf16, #tpu.memory_space<vmem>>, vector<1x16x16xbf16>
    %54 = vector.shape_cast %53 : vector<1x16x16xbf16> to vector<16x16xbf16>
    %cst_26 = arith.constant dense<0.000000e+00> : vector<16x8xf32>
    %55 = tpu.matmul %54, %52, %cst_26 {dimension_numbers = #tpu.dot_dimension_numbers<[1], [0], [0], [1], [0, 0, 1, 1], [], []>} : vector<16x16xbf16>, vector<16x8xbf16>, vector<16x8xf32> -> vector<16x8xf32>
    %56 = arith.addf %51, %55 : vector<16x8xf32>
    %57 = vector.extract_strided_slice %45 {offsets = [0, 2], sizes = [16, 8], strides = [1, 1]} : vector<16x10xbf16> to vector<16x8xbf16>
    %c2 = arith.constant 2 : index
    %c0_27 = arith.constant 0 : index
    %c0_28 = arith.constant 0 : index
    %58 = vector.load %arg3[%c2, %c0_27, %c0_28] : memref<3x16x16xbf16, #tpu.memory_space<vmem>>, vector<1x16x16xbf16>
    %59 = vector.shape_cast %58 : vector<1x16x16xbf16> to vector<16x16xbf16>
    %cst_29 = arith.constant dense<0.000000e+00> : vector<16x8xf32>
    %60 = tpu.matmul %59, %57, %cst_29 {dimension_numbers = #tpu.dot_dimension_numbers<[1], [0], [0], [1], [0, 0, 1, 1], [], []>} : vector<16x16xbf16>, vector<16x8xbf16>, vector<16x8xf32> -> vector<16x8xf32>
    %61 = arith.addf %56, %60 : vector<16x8xf32>
    %c0_30 = arith.constant 0 : index
    %c0_31 = arith.constant 0 : index
    %62 = vector.load %arg4[%c0_30, %c0_31] : memref<16x1xf32, #tpu.memory_space<vmem>>, vector<16x1xf32>
    %63 = vector.broadcast %62 : vector<16x1xf32> to vector<16x8xf32>
    %64 = arith.addf %61, %63 : vector<16x8xf32>
    %c0_32 = arith.constant 0 : index
    %c0_33 = arith.constant 0 : index
    %c0_34 = arith.constant 0 : index
    %65 = vector.load %arg9[%c0_32, %c0_33, %c0_34] : memref<1x16x8xf32, #tpu.memory_space<vmem>>, vector<1x16x8xf32>
    %66 = vector.shape_cast %65 : vector<1x16x8xf32> to vector<16x8xf32>
    %67 = vector.shape_cast %64 : vector<16x8xf32> to vector<1x16x8xf32>
    tpu.vector_store %arg9[%c0_32, %c0_33, %c0_34], %67 {strides = array<i32>} : memref<1x16x8xf32, #tpu.memory_space<vmem>>, vector<1x16x8xf32>,
    %c0_i32_35 = arith.constant 0 : i32
    %68 = arith.cmpi eq, %arg0, %c0_i32_35 : i32
    %69 = arith.extui %68 : i1 to i32
    %c0_i32_36 = arith.constant 0 : i32
    %70 = arith.cmpi ne, %69, %c0_i32_36 : i32
    scf.if %70 {
      %cst_47 = arith.constant 0.000000e+00 : f32
      %82 = vector.broadcast %cst_47 : f32 to vector<16x1xf32>
      %c0_48 = arith.constant 0 : index
      %c0_49 = arith.constant 0 : index
      %83 = vector.load %arg10[%c0_48, %c0_49] : memref<16x1xf32, #tpu.memory_space<vmem>>, vector<16x1xf32>
      tpu.vector_store %arg10[%c0_48, %c0_49], %82 {strides = array<i32>} : memref<16x1xf32, #tpu.memory_space<vmem>>, vector<16x1xf32>,
      %cst_50 = arith.constant 0.000000e+00 : f32
      %84 = vector.broadcast %cst_50 : f32 to vector<16x1xf32>
      %c0_51 = arith.constant 0 : index
      %c0_52 = arith.constant 0 : index
      %85 = vector.load %arg11[%c0_51, %c0_52] : memref<16x1xf32, #tpu.memory_space<vmem>>, vector<16x1xf32>
      tpu.vector_store %arg11[%c0_51, %c0_52], %84 {strides = array<i32>} : memref<16x1xf32, #tpu.memory_space<vmem>>, vector<16x1xf32>,
    } else {
    }
    %c0_37 = arith.constant 0 : index
    %c0_38 = arith.constant 0 : index
    %71 = vector.load %arg10[%c0_37, %c0_38] : memref<16x1xf32, #tpu.memory_space<vmem>>, vector<16x1xf32>
    %cst_39 = arith.constant dense<0.000000e+00> : vector<16xf32>
    %72 = vector.multi_reduction <add>, %64, %cst_39 [1] : vector<16x8xf32> to vector<16xf32>
    %73 = vector.shape_cast %72 : vector<16xf32> to vector<16x1xf32>
    %74 = arith.addf %71, %73 : vector<16x1xf32>
    %c0_40 = arith.constant 0 : index
    %c0_41 = arith.constant 0 : index
    %75 = vector.load %arg10[%c0_40, %c0_41] : memref<16x1xf32, #tpu.memory_space<vmem>>, vector<16x1xf32>
    tpu.vector_store %arg10[%c0_40, %c0_41], %74 {strides = array<i32>} : memref<16x1xf32, #tpu.memory_space<vmem>>, vector<16x1xf32>,
    %c0_42 = arith.constant 0 : index
    %c0_43 = arith.constant 0 : index
    %76 = vector.load %arg11[%c0_42, %c0_43] : memref<16x1xf32, #tpu.memory_space<vmem>>, vector<16x1xf32>
    %77 = arith.mulf %64, %64 : vector<16x8xf32>
    %cst_44 = arith.constant dense<0.000000e+00> : vector<16xf32>
    %78 = vector.multi_reduction <add>, %77, %cst_44 [1] : vector<16x8xf32> to vector<16xf32>
    %79 = vector.shape_cast %78 : vector<16xf32> to vector<16x1xf32>
    %80 = arith.addf %76, %79 : vector<16x1xf32>
    %c0_45 = arith.constant 0 : index
    %c0_46 = arith.constant 0 : index
    %81 = vector.load %arg11[%c0_45, %c0_46] : memref<16x1xf32, #tpu.memory_space<vmem>>, vector<16x1xf32>
    tpu.vector_store %arg11[%c0_45, %c0_46], %80 {strides = array<i32>} : memref<16x1xf32, #tpu.memory_space<vmem>>, vector<16x1xf32>,
    return
  }
  func.func @transform_0(%arg0: i32, %arg1: i32) -> (i32, i32, i32, i32) {
    %c0_i32 = arith.constant 0 : i32
    %c0_i32_0 = arith.constant 0 : i32
    %c0_i32_1 = arith.constant 0 : i32
    %c0_i32_2 = arith.constant 0 : i32
    return %arg0, %c0_i32, %c0_i32_0, %c0_i32_1 : i32, i32, i32, i32
  }
  func.func @transform_1(%arg0: i32, %arg1: i32) -> (i32, i32, i32) {
    %c0_i32 = arith.constant 0 : i32
    %c0_i32_0 = arith.constant 0 : i32
    %c0_i32_1 = arith.constant 0 : i32
    %c0_i32_2 = arith.constant 0 : i32
    return %c0_i32, %c0_i32_0, %c0_i32_1 : i32, i32, i32
  }
  func.func @transform_2(%arg0: i32, %arg1: i32) -> (i32, i32) {
    %c0_i32 = arith.constant 0 : i32
    %c0_i32_0 = arith.constant 0 : i32
    %c0_i32_1 = arith.constant 0 : i32
    return %c0_i32, %c0_i32_0 : i32, i32
  }
  func.func @transform_3(%arg0: i32, %arg1: i32) -> (i32, i32) {
    %c0_i32 = arith.constant 0 : i32
    %c0_i32_0 = arith.constant 0 : i32
    %c0_i32_1 = arith.constant 0 : i32
    return %c0_i32, %c0_i32_0 : i32, i32
  }
  func.func @transform_4(%arg0: i32, %arg1: i32) -> (i32, i32) {
    %c0_i32 = arith.constant 0 : i32
    %c0_i32_0 = arith.constant 0 : i32
    %c0_i32_1 = arith.constant 0 : i32
    return %c0_i32, %c0_i32_0 : i32, i32
  }
  func.func @transform_5(%arg0: i32, %arg1: i32) -> (i32, i32) {
    %c0_i32 = arith.constant 0 : i32
    %c0_i32_0 = arith.constant 0 : i32
    %c0_i32_1 = arith.constant 0 : i32
    return %c0_i32, %c0_i32_0 : i32, i32
  }
  func.func @transform_6(%arg0: i32, %arg1: i32) -> (i32, i32) {
    %c0_i32 = arith.constant 0 : i32
    %c0_i32_0 = arith.constant 0 : i32
    %c0_i32_1 = arith.constant 0 : i32
    return %c0_i32, %c0_i32_0 : i32, i32
  }
  func.func @transform_7(%arg0: i32, %arg1: i32) -> (i32, i32, i32) {
    %c0_i32 = arith.constant 0 : i32
    %c0_i32_0 = arith.constant 0 : i32
    return %arg0, %c0_i32, %arg1 : i32, i32, i32
  }
  func.func @transform_8(%arg0: i32, %arg1: i32) -> (i32, i32) {
    %c0_i32 = arith.constant 0 : i32
    %c0_i32_0 = arith.constant 0 : i32
    %c0_i32_1 = arith.constant 0 : i32
    return %c0_i32, %c0_i32_0 : i32, i32
  }
  func.func @transform_9(%arg0: i32, %arg1: i32) -> (i32, i32) {
    %c0_i32 = arith.constant 0 : i32
    %c0_i32_0 = arith.constant 0 : i32
    %c0_i32_1 = arith.constant 0 : i32
    return %c0_i32, %c0_i32_0 : i32, i32
  }
}

module attributes {stable_mosaic.version = 11 : i64} {
  func.func @kernel(%arg0: i32, %arg1: i32, %arg2: memref<1x2x8x9xf32, #tpu.memory_space<vmem>>, %arg3: memref<3x16x8xbf16, #tpu.memory_space<vmem>>, %arg4: memref<16x1xf32, #tpu.memory_space<vmem>>, %arg5: memref<1x16x8xf32, #tpu.memory_space<vmem>>) attributes {dimension_semantics = [#tpu.dimension_semantics<parallel>, #tpu.dimension_semantics<parallel>], iteration_bounds = array<i64: 2, 1>, scalar_prefetch = 0 : i64, scratch_operands = 0 : i64, tpu.core_type = #tpu.core_type<tc>, window_params = [{transform_indices = @transform_0, window_bounds = array<i64: 1, 2, 8, 9>}, {pipeline_mode = #tpu.pipeline_mode<synchronous>, transform_indices = @transform_1, window_bounds = array<i64: 3, 16, 8>}, {pipeline_mode = #tpu.pipeline_mode<synchronous>, transform_indices = @transform_2, window_bounds = array<i64: 16, 1>}, {transform_indices = @transform_3, window_bounds = array<i64: 1, 16, 8>}]} {
    %c0 = arith.constant 0 : index
    %c0_0 = arith.constant 0 : index
    %c0_1 = arith.constant 0 : index
    %c0_2 = arith.constant 0 : index
    %0 = vector.load %arg2[%c0, %c0_0, %c0_1, %c0_2] : memref<1x2x8x9xf32, #tpu.memory_space<vmem>>, vector<1x1x8x9xf32>
    %1 = vector.shape_cast %0 : vector<1x1x8x9xf32> to vector<8x9xf32>
    %2 = arith.truncf %1 : vector<8x9xf32> to vector<8x9xbf16>
    %c0_3 = arith.constant 0 : index
    %c1 = arith.constant 1 : index
    %c0_4 = arith.constant 0 : index
    %c0_5 = arith.constant 0 : index
    %3 = vector.load %arg2[%c0_3, %c1, %c0_4, %c0_5] : memref<1x2x8x9xf32, #tpu.memory_space<vmem>>, vector<1x1x8x9xf32>
    %4 = vector.shape_cast %3 : vector<1x1x8x9xf32> to vector<8x9xf32>
    %5 = arith.truncf %4 : vector<8x9xf32> to vector<8x9xbf16>
    %cst = arith.constant 0.000000e+00 : f32
    %6 = vector.broadcast %cst : f32 to vector<16x8xf32>
    %7 = vector.extract_strided_slice %2 {offsets = [0, 0], sizes = [8, 8], strides = [1, 1]} : vector<8x9xbf16> to vector<8x8xbf16>
    %c0_6 = arith.constant 0 : index
    %c0_7 = arith.constant 0 : index
    %c0_8 = arith.constant 0 : index
    %8 = vector.load %arg3[%c0_6, %c0_7, %c0_8] : memref<3x16x8xbf16, #tpu.memory_space<vmem>>, vector<1x16x8xbf16>
    %9 = vector.shape_cast %8 : vector<1x16x8xbf16> to vector<16x8xbf16>
    %cst_9 = arith.constant dense<0.000000e+00> : vector<16x8xf32>
    %10 = tpu.matmul %9, %7, %cst_9 {dimension_numbers = #tpu.dot_dimension_numbers<[1], [0], [0], [1], [0, 0, 1, 1], [], []>} : vector<16x8xbf16>, vector<8x8xbf16>, vector<16x8xf32> -> vector<16x8xf32>
    %11 = arith.addf %6, %10 : vector<16x8xf32>
    %12 = vector.extract_strided_slice %5 {offsets = [0, 0], sizes = [8, 8], strides = [1, 1]} : vector<8x9xbf16> to vector<8x8xbf16>
    %c1_10 = arith.constant 1 : index
    %c0_11 = arith.constant 0 : index
    %c0_12 = arith.constant 0 : index
    %13 = vector.load %arg3[%c1_10, %c0_11, %c0_12] : memref<3x16x8xbf16, #tpu.memory_space<vmem>>, vector<1x16x8xbf16>
    %14 = vector.shape_cast %13 : vector<1x16x8xbf16> to vector<16x8xbf16>
    %cst_13 = arith.constant dense<0.000000e+00> : vector<16x8xf32>
    %15 = tpu.matmul %14, %12, %cst_13 {dimension_numbers = #tpu.dot_dimension_numbers<[1], [0], [0], [1], [0, 0, 1, 1], [], []>} : vector<16x8xbf16>, vector<8x8xbf16>, vector<16x8xf32> -> vector<16x8xf32>
    %16 = arith.addf %11, %15 : vector<16x8xf32>
    %17 = vector.extract_strided_slice %2 {offsets = [0, 1], sizes = [8, 8], strides = [1, 1]} : vector<8x9xbf16> to vector<8x8xbf16>
    %c2 = arith.constant 2 : index
    %c0_14 = arith.constant 0 : index
    %c0_15 = arith.constant 0 : index
    %18 = vector.load %arg3[%c2, %c0_14, %c0_15] : memref<3x16x8xbf16, #tpu.memory_space<vmem>>, vector<1x16x8xbf16>
    %19 = vector.shape_cast %18 : vector<1x16x8xbf16> to vector<16x8xbf16>
    %cst_16 = arith.constant dense<0.000000e+00> : vector<16x8xf32>
    %20 = tpu.matmul %19, %17, %cst_16 {dimension_numbers = #tpu.dot_dimension_numbers<[1], [0], [0], [1], [0, 0, 1, 1], [], []>} : vector<16x8xbf16>, vector<8x8xbf16>, vector<16x8xf32> -> vector<16x8xf32>
    %21 = arith.addf %16, %20 : vector<16x8xf32>
    %c0_17 = arith.constant 0 : index
    %c0_18 = arith.constant 0 : index
    %22 = vector.load %arg4[%c0_17, %c0_18] : memref<16x1xf32, #tpu.memory_space<vmem>>, vector<16x1xf32>
    %23 = vector.broadcast %22 : vector<16x1xf32> to vector<16x8xf32>
    %24 = arith.addf %21, %23 : vector<16x8xf32>
    %c0_19 = arith.constant 0 : index
    %c0_20 = arith.constant 0 : index
    %c0_21 = arith.constant 0 : index
    %25 = vector.load %arg5[%c0_19, %c0_20, %c0_21] : memref<1x16x8xf32, #tpu.memory_space<vmem>>, vector<1x16x8xf32>
    %26 = vector.shape_cast %25 : vector<1x16x8xf32> to vector<16x8xf32>
    %27 = vector.shape_cast %24 : vector<16x8xf32> to vector<1x16x8xf32>
    tpu.vector_store %arg5[%c0_19, %c0_20, %c0_21], %27 {strides = array<i32>} : memref<1x16x8xf32, #tpu.memory_space<vmem>>, vector<1x16x8xf32>,
    return
  }
  func.func @transform_0(%arg0: i32, %arg1: i32) -> (i32, i32, i32, i32) {
    %c0_i32 = arith.constant 0 : i32
    %c0_i32_0 = arith.constant 0 : i32
    %c0_i32_1 = arith.constant 0 : i32
    %c0_i32_2 = arith.constant 0 : i32
    return %arg0, %c0_i32, %c0_i32_0, %c0_i32_1 : i32, i32, i32, i32
  }
  func.func @transform_1(%arg0: i32, %arg1: i32) -> (i32, i32, i32) {
    %c0_i32 = arith.constant 0 : i32
    %c0_i32_0 = arith.constant 0 : i32
    %c0_i32_1 = arith.constant 0 : i32
    %c0_i32_2 = arith.constant 0 : i32
    return %c0_i32, %c0_i32_0, %c0_i32_1 : i32, i32, i32
  }
  func.func @transform_2(%arg0: i32, %arg1: i32) -> (i32, i32) {
    %c0_i32 = arith.constant 0 : i32
    %c0_i32_0 = arith.constant 0 : i32
    %c0_i32_1 = arith.constant 0 : i32
    return %c0_i32, %c0_i32_0 : i32, i32
  }
  func.func @transform_3(%arg0: i32, %arg1: i32) -> (i32, i32, i32) {
    %c0_i32 = arith.constant 0 : i32
    %c0_i32_0 = arith.constant 0 : i32
    return %arg0, %c0_i32, %arg1 : i32, i32, i32
  }
}

module attributes {stable_mosaic.version = 11 : i64} {
  func.func @kernel(%arg0: i32, %arg1: i32, %arg2: memref<1x1x16x10xf32, #tpu.memory_space<vmem>>, %arg3: memref<3x16x16xbf16, #tpu.memory_space<vmem>>, %arg4: memref<16x1xf32, #tpu.memory_space<vmem>>, %arg5: memref<1x16x8xf32, #tpu.memory_space<vmem>>) attributes {dimension_semantics = [#tpu.dimension_semantics<parallel>, #tpu.dimension_semantics<parallel>], iteration_bounds = array<i64: 2, 1>, scalar_prefetch = 0 : i64, scratch_operands = 0 : i64, tpu.core_type = #tpu.core_type<tc>, window_params = [{transform_indices = @transform_0, window_bounds = array<i64: 1, 1, 16, 10>}, {pipeline_mode = #tpu.pipeline_mode<synchronous>, transform_indices = @transform_1, window_bounds = array<i64: 3, 16, 16>}, {pipeline_mode = #tpu.pipeline_mode<synchronous>, transform_indices = @transform_2, window_bounds = array<i64: 16, 1>}, {transform_indices = @transform_3, window_bounds = array<i64: 1, 16, 8>}]} {
    %c0 = arith.constant 0 : index
    %c0_0 = arith.constant 0 : index
    %c0_1 = arith.constant 0 : index
    %c0_2 = arith.constant 0 : index
    %0 = vector.load %arg2[%c0, %c0_0, %c0_1, %c0_2] : memref<1x1x16x10xf32, #tpu.memory_space<vmem>>, vector<1x1x16x10xf32>
    %1 = vector.shape_cast %0 : vector<1x1x16x10xf32> to vector<16x10xf32>
    %2 = arith.truncf %1 : vector<16x10xf32> to vector<16x10xbf16>
    %cst = arith.constant 0.000000e+00 : f32
    %3 = vector.broadcast %cst : f32 to vector<16x8xf32>
    %4 = vector.extract_strided_slice %2 {offsets = [0, 0], sizes = [16, 8], strides = [1, 1]} : vector<16x10xbf16> to vector<16x8xbf16>
    %c0_3 = arith.constant 0 : index
    %c0_4 = arith.constant 0 : index
    %c0_5 = arith.constant 0 : index
    %5 = vector.load %arg3[%c0_3, %c0_4, %c0_5] : memref<3x16x16xbf16, #tpu.memory_space<vmem>>, vector<1x16x16xbf16>
    %6 = vector.shape_cast %5 : vector<1x16x16xbf16> to vector<16x16xbf16>
    %cst_6 = arith.constant dense<0.000000e+00> : vector<16x8xf32>
    %7 = tpu.matmul %6, %4, %cst_6 {dimension_numbers = #tpu.dot_dimension_numbers<[1], [0], [0], [1], [0, 0, 1, 1], [], []>} : vector<16x16xbf16>, vector<16x8xbf16>, vector<16x8xf32> -> vector<16x8xf32>
    %8 = arith.addf %3, %7 : vector<16x8xf32>
    %9 = vector.extract_strided_slice %2 {offsets = [0, 1], sizes = [16, 8], strides = [1, 1]} : vector<16x10xbf16> to vector<16x8xbf16>
    %c1 = arith.constant 1 : index
    %c0_7 = arith.constant 0 : index
    %c0_8 = arith.constant 0 : index
    %10 = vector.load %arg3[%c1, %c0_7, %c0_8] : memref<3x16x16xbf16, #tpu.memory_space<vmem>>, vector<1x16x16xbf16>
    %11 = vector.shape_cast %10 : vector<1x16x16xbf16> to vector<16x16xbf16>
    %cst_9 = arith.constant dense<0.000000e+00> : vector<16x8xf32>
    %12 = tpu.matmul %11, %9, %cst_9 {dimension_numbers = #tpu.dot_dimension_numbers<[1], [0], [0], [1], [0, 0, 1, 1], [], []>} : vector<16x16xbf16>, vector<16x8xbf16>, vector<16x8xf32> -> vector<16x8xf32>
    %13 = arith.addf %8, %12 : vector<16x8xf32>
    %14 = vector.extract_strided_slice %2 {offsets = [0, 2], sizes = [16, 8], strides = [1, 1]} : vector<16x10xbf16> to vector<16x8xbf16>
    %c2 = arith.constant 2 : index
    %c0_10 = arith.constant 0 : index
    %c0_11 = arith.constant 0 : index
    %15 = vector.load %arg3[%c2, %c0_10, %c0_11] : memref<3x16x16xbf16, #tpu.memory_space<vmem>>, vector<1x16x16xbf16>
    %16 = vector.shape_cast %15 : vector<1x16x16xbf16> to vector<16x16xbf16>
    %cst_12 = arith.constant dense<0.000000e+00> : vector<16x8xf32>
    %17 = tpu.matmul %16, %14, %cst_12 {dimension_numbers = #tpu.dot_dimension_numbers<[1], [0], [0], [1], [0, 0, 1, 1], [], []>} : vector<16x16xbf16>, vector<16x8xbf16>, vector<16x8xf32> -> vector<16x8xf32>
    %18 = arith.addf %13, %17 : vector<16x8xf32>
    %c0_13 = arith.constant 0 : index
    %c0_14 = arith.constant 0 : index
    %19 = vector.load %arg4[%c0_13, %c0_14] : memref<16x1xf32, #tpu.memory_space<vmem>>, vector<16x1xf32>
    %20 = vector.broadcast %19 : vector<16x1xf32> to vector<16x8xf32>
    %21 = arith.addf %18, %20 : vector<16x8xf32>
    %c0_15 = arith.constant 0 : index
    %c0_16 = arith.constant 0 : index
    %c0_17 = arith.constant 0 : index
    %22 = vector.load %arg5[%c0_15, %c0_16, %c0_17] : memref<1x16x8xf32, #tpu.memory_space<vmem>>, vector<1x16x8xf32>
    %23 = vector.shape_cast %22 : vector<1x16x8xf32> to vector<16x8xf32>
    %24 = vector.shape_cast %21 : vector<16x8xf32> to vector<1x16x8xf32>
    tpu.vector_store %arg5[%c0_15, %c0_16, %c0_17], %24 {strides = array<i32>} : memref<1x16x8xf32, #tpu.memory_space<vmem>>, vector<1x16x8xf32>,
    return
  }
  func.func @transform_0(%arg0: i32, %arg1: i32) -> (i32, i32, i32, i32) {
    %c0_i32 = arith.constant 0 : i32
    %c0_i32_0 = arith.constant 0 : i32
    %c0_i32_1 = arith.constant 0 : i32
    %c0_i32_2 = arith.constant 0 : i32
    return %arg0, %c0_i32, %c0_i32_0, %c0_i32_1 : i32, i32, i32, i32
  }
  func.func @transform_1(%arg0: i32, %arg1: i32) -> (i32, i32, i32) {
    %c0_i32 = arith.constant 0 : i32
    %c0_i32_0 = arith.constant 0 : i32
    %c0_i32_1 = arith.constant 0 : i32
    %c0_i32_2 = arith.constant 0 : i32
    return %c0_i32, %c0_i32_0, %c0_i32_1 : i32, i32, i32
  }
  func.func @transform_2(%arg0: i32, %arg1: i32) -> (i32, i32) {
    %c0_i32 = arith.constant 0 : i32
    %c0_i32_0 = arith.constant 0 : i32
    %c0_i32_1 = arith.constant 0 : i32
    return %c0_i32, %c0_i32_0 : i32, i32
  }
  func.func @transform_3(%arg0: i32, %arg1: i32) -> (i32, i32, i32) {
    %c0_i32 = arith.constant 0 : i32
    %c0_i32_0 = arith.constant 0 : i32
    return %arg0, %c0_i32, %arg1 : i32, i32, i32
  }
}

module attributes {stable_mosaic.version = 11 : i64} {
  func.func @kernel(%arg0: i32, %arg1: i32, %arg2: memref<1x2x16x5xf32, #tpu.memory_space<vmem>>, %arg3: memref<3x16x16xbf16, #tpu.memory_space<vmem>>, %arg4: memref<16x1xf32, #tpu.memory_space<vmem>>, %arg5: memref<1x16x4xf32, #tpu.memory_space<vmem>>) attributes {dimension_semantics = [#tpu.dimension_semantics<parallel>, #tpu.dimension_semantics<parallel>], iteration_bounds = array<i64: 2, 1>, scalar_prefetch = 0 : i64, scratch_operands = 0 : i64, tpu.core_type = #tpu.core_type<tc>, window_params = [{transform_indices = @transform_0, window_bounds = array<i64: 1, 2, 16, 5>}, {pipeline_mode = #tpu.pipeline_mode<synchronous>, transform_indices = @transform_1, window_bounds = array<i64: 3, 16, 16>}, {pipeline_mode = #tpu.pipeline_mode<synchronous>, transform_indices = @transform_2, window_bounds = array<i64: 16, 1>}, {transform_indices = @transform_3, window_bounds = array<i64: 1, 16, 4>}]} {
    %c0 = arith.constant 0 : index
    %c0_0 = arith.constant 0 : index
    %c0_1 = arith.constant 0 : index
    %c0_2 = arith.constant 0 : index
    %0 = vector.load %arg2[%c0, %c0_0, %c0_1, %c0_2] : memref<1x2x16x5xf32, #tpu.memory_space<vmem>>, vector<1x1x16x5xf32>
    %1 = vector.shape_cast %0 : vector<1x1x16x5xf32> to vector<16x5xf32>
    %2 = arith.truncf %1 : vector<16x5xf32> to vector<16x5xbf16>
    %c0_3 = arith.constant 0 : index
    %c1 = arith.constant 1 : index
    %c0_4 = arith.constant 0 : index
    %c0_5 = arith.constant 0 : index
    %3 = vector.load %arg2[%c0_3, %c1, %c0_4, %c0_5] : memref<1x2x16x5xf32, #tpu.memory_space<vmem>>, vector<1x1x16x5xf32>
    %4 = vector.shape_cast %3 : vector<1x1x16x5xf32> to vector<16x5xf32>
    %5 = arith.truncf %4 : vector<16x5xf32> to vector<16x5xbf16>
    %cst = arith.constant 0.000000e+00 : f32
    %6 = vector.broadcast %cst : f32 to vector<16x4xf32>
    %7 = vector.extract_strided_slice %2 {offsets = [0, 0], sizes = [16, 4], strides = [1, 1]} : vector<16x5xbf16> to vector<16x4xbf16>
    %c0_6 = arith.constant 0 : index
    %c0_7 = arith.constant 0 : index
    %c0_8 = arith.constant 0 : index
    %8 = vector.load %arg3[%c0_6, %c0_7, %c0_8] : memref<3x16x16xbf16, #tpu.memory_space<vmem>>, vector<1x16x16xbf16>
    %9 = vector.shape_cast %8 : vector<1x16x16xbf16> to vector<16x16xbf16>
    %cst_9 = arith.constant dense<0.000000e+00> : vector<16x4xf32>
    %10 = tpu.matmul %9, %7, %cst_9 {dimension_numbers = #tpu.dot_dimension_numbers<[1], [0], [0], [1], [0, 0, 1, 1], [], []>} : vector<16x16xbf16>, vector<16x4xbf16>, vector<16x4xf32> -> vector<16x4xf32>
    %11 = arith.addf %6, %10 : vector<16x4xf32>
    %12 = vector.extract_strided_slice %5 {offsets = [0, 0], sizes = [16, 4], strides = [1, 1]} : vector<16x5xbf16> to vector<16x4xbf16>
    %c1_10 = arith.constant 1 : index
    %c0_11 = arith.constant 0 : index
    %c0_12 = arith.constant 0 : index
    %13 = vector.load %arg3[%c1_10, %c0_11, %c0_12] : memref<3x16x16xbf16, #tpu.memory_space<vmem>>, vector<1x16x16xbf16>
    %14 = vector.shape_cast %13 : vector<1x16x16xbf16> to vector<16x16xbf16>
    %cst_13 = arith.constant dense<0.000000e+00> : vector<16x4xf32>
    %15 = tpu.matmul %14, %12, %cst_13 {dimension_numbers = #tpu.dot_dimension_numbers<[1], [0], [0], [1], [0, 0, 1, 1], [], []>} : vector<16x16xbf16>, vector<16x4xbf16>, vector<16x4xf32> -> vector<16x4xf32>
    %16 = arith.addf %11, %15 : vector<16x4xf32>
    %17 = vector.extract_strided_slice %2 {offsets = [0, 1], sizes = [16, 4], strides = [1, 1]} : vector<16x5xbf16> to vector<16x4xbf16>
    %c2 = arith.constant 2 : index
    %c0_14 = arith.constant 0 : index
    %c0_15 = arith.constant 0 : index
    %18 = vector.load %arg3[%c2, %c0_14, %c0_15] : memref<3x16x16xbf16, #tpu.memory_space<vmem>>, vector<1x16x16xbf16>
    %19 = vector.shape_cast %18 : vector<1x16x16xbf16> to vector<16x16xbf16>
    %cst_16 = arith.constant dense<0.000000e+00> : vector<16x4xf32>
    %20 = tpu.matmul %19, %17, %cst_16 {dimension_numbers = #tpu.dot_dimension_numbers<[1], [0], [0], [1], [0, 0, 1, 1], [], []>} : vector<16x16xbf16>, vector<16x4xbf16>, vector<16x4xf32> -> vector<16x4xf32>
    %21 = arith.addf %16, %20 : vector<16x4xf32>
    %c0_17 = arith.constant 0 : index
    %c0_18 = arith.constant 0 : index
    %22 = vector.load %arg4[%c0_17, %c0_18] : memref<16x1xf32, #tpu.memory_space<vmem>>, vector<16x1xf32>
    %23 = vector.broadcast %22 : vector<16x1xf32> to vector<16x4xf32>
    %24 = arith.addf %21, %23 : vector<16x4xf32>
    %c0_19 = arith.constant 0 : index
    %c0_20 = arith.constant 0 : index
    %c0_21 = arith.constant 0 : index
    %25 = vector.load %arg5[%c0_19, %c0_20, %c0_21] : memref<1x16x4xf32, #tpu.memory_space<vmem>>, vector<1x16x4xf32>
    %26 = vector.shape_cast %25 : vector<1x16x4xf32> to vector<16x4xf32>
    %27 = vector.shape_cast %24 : vector<16x4xf32> to vector<1x16x4xf32>
    tpu.vector_store %arg5[%c0_19, %c0_20, %c0_21], %27 {strides = array<i32>} : memref<1x16x4xf32, #tpu.memory_space<vmem>>, vector<1x16x4xf32>,
    return
  }
  func.func @transform_0(%arg0: i32, %arg1: i32) -> (i32, i32, i32, i32) {
    %c0_i32 = arith.constant 0 : i32
    %c0_i32_0 = arith.constant 0 : i32
    %c0_i32_1 = arith.constant 0 : i32
    %c0_i32_2 = arith.constant 0 : i32
    return %arg0, %c0_i32, %c0_i32_0, %c0_i32_1 : i32, i32, i32, i32
  }
  func.func @transform_1(%arg0: i32, %arg1: i32) -> (i32, i32, i32) {
    %c0_i32 = arith.constant 0 : i32
    %c0_i32_0 = arith.constant 0 : i32
    %c0_i32_1 = arith.constant 0 : i32
    %c0_i32_2 = arith.constant 0 : i32
    return %c0_i32, %c0_i32_0, %c0_i32_1 : i32, i32, i32
  }
  func.func @transform_2(%arg0: i32, %arg1: i32) -> (i32, i32) {
    %c0_i32 = arith.constant 0 : i32
    %c0_i32_0 = arith.constant 0 : i32
    %c0_i32_1 = arith.constant 0 : i32
    return %c0_i32, %c0_i32_0 : i32, i32
  }
  func.func @transform_3(%arg0: i32, %arg1: i32) -> (i32, i32, i32) {
    %c0_i32 = arith.constant 0 : i32
    %c0_i32_0 = arith.constant 0 : i32
    return %arg0, %c0_i32, %arg1 : i32, i32, i32
  }
}

module attributes {stable_mosaic.version = 11 : i64} {
  func.func @kernel(%arg0: i32, %arg1: i32, %arg2: memref<1x2x16x5xf32, #tpu.memory_space<vmem>>, %arg3: memref<3x16x16xbf16, #tpu.memory_space<vmem>>, %arg4: memref<16x1xf32, #tpu.memory_space<vmem>>, %arg5: memref<16x1xf32, #tpu.memory_space<vmem>>, %arg6: memref<16x1xf32, #tpu.memory_space<vmem>>, %arg7: memref<16x1xf32, #tpu.memory_space<vmem>>, %arg8: memref<16x1xf32, #tpu.memory_space<vmem>>, %arg9: memref<1x16x4xf32, #tpu.memory_space<vmem>>, %arg10: memref<16x1xf32, #tpu.memory_space<vmem>>, %arg11: memref<16x1xf32, #tpu.memory_space<vmem>>) attributes {dimension_semantics = [#tpu.dimension_semantics<arbitrary>, #tpu.dimension_semantics<arbitrary>], iteration_bounds = array<i64: 2, 1>, scalar_prefetch = 0 : i64, scratch_operands = 0 : i64, tpu.core_type = #tpu.core_type<tc>, window_params = [{transform_indices = @transform_0, window_bounds = array<i64: 1, 2, 16, 5>}, {pipeline_mode = #tpu.pipeline_mode<synchronous>, transform_indices = @transform_1, window_bounds = array<i64: 3, 16, 16>}, {pipeline_mode = #tpu.pipeline_mode<synchronous>, transform_indices = @transform_2, window_bounds = array<i64: 16, 1>}, {pipeline_mode = #tpu.pipeline_mode<synchronous>, transform_indices = @transform_3, window_bounds = array<i64: 16, 1>}, {pipeline_mode = #tpu.pipeline_mode<synchronous>, transform_indices = @transform_4, window_bounds = array<i64: 16, 1>}, {pipeline_mode = #tpu.pipeline_mode<synchronous>, transform_indices = @transform_5, window_bounds = array<i64: 16, 1>}, {pipeline_mode = #tpu.pipeline_mode<synchronous>, transform_indices = @transform_6, window_bounds = array<i64: 16, 1>}, {transform_indices = @transform_7, window_bounds = array<i64: 1, 16, 4>}, {pipeline_mode = #tpu.pipeline_mode<synchronous>, transform_indices = @transform_8, window_bounds = array<i64: 16, 1>}, {pipeline_mode = #tpu.pipeline_mode<synchronous>, transform_indices = @transform_9, window_bounds = array<i64: 16, 1>}]} {
    %c0 = arith.constant 0 : index
    %c0_0 = arith.constant 0 : index
    %0 = vector.load %arg5[%c0, %c0_0] : memref<16x1xf32, #tpu.memory_space<vmem>>, vector<16x1xf32>
    %cst = arith.constant 6.250000e-02 : f32
    %1 = vector.broadcast %cst : f32 to vector<16x1xf32>
    %2 = arith.mulf %0, %1 : vector<16x1xf32>
    %c0_1 = arith.constant 0 : index
    %c0_2 = arith.constant 0 : index
    %3 = vector.load %arg6[%c0_1, %c0_2] : memref<16x1xf32, #tpu.memory_space<vmem>>, vector<16x1xf32>
    %cst_3 = arith.constant 6.250000e-02 : f32
    %4 = vector.broadcast %cst_3 : f32 to vector<16x1xf32>
    %5 = arith.mulf %3, %4 : vector<16x1xf32>
    %6 = arith.mulf %2, %2 : vector<16x1xf32>
    %7 = arith.subf %5, %6 : vector<16x1xf32>
    %cst_4 = arith.constant 0.000000e+00 : f32
    %8 = vector.broadcast %cst_4 : f32 to vector<16x1xf32>
    %9 = arith.maximumf %7, %8 : vector<16x1xf32>
    %c0_5 = arith.constant 0 : index
    %c0_6 = arith.constant 0 : index
    %10 = vector.load %arg7[%c0_5, %c0_6] : memref<16x1xf32, #tpu.memory_space<vmem>>, vector<16x1xf32>
    %cst_7 = arith.constant 9.99999974E-6 : f32
    %11 = vector.broadcast %cst_7 : f32 to vector<16x1xf32>
    %12 = arith.addf %9, %11 : vector<16x1xf32>
    %13 = math.rsqrt %12 : vector<16x1xf32>
    %14 = arith.mulf %10, %13 : vector<16x1xf32>
    %c0_8 = arith.constant 0 : index
    %c0_9 = arith.constant 0 : index
    %15 = vector.load %arg8[%c0_8, %c0_9] : memref<16x1xf32, #tpu.memory_space<vmem>>, vector<16x1xf32>
    %16 = arith.mulf %2, %14 : vector<16x1xf32>
    %17 = arith.subf %15, %16 : vector<16x1xf32>
    %c0_10 = arith.constant 0 : index
    %c0_11 = arith.constant 0 : index
    %c0_12 = arith.constant 0 : index
    %c0_13 = arith.constant 0 : index
    %18 = vector.load %arg2[%c0_10, %c0_11, %c0_12, %c0_13] : memref<1x2x16x5xf32, #tpu.memory_space<vmem>>, vector<1x1x16x5xf32>
    %19 = vector.shape_cast %18 : vector<1x1x16x5xf32> to vector<16x5xf32>
    %20 = vector.broadcast %14 : vector<16x1xf32> to vector<16x5xf32>
    %21 = arith.mulf %19, %20 : vector<16x5xf32>
    %22 = vector.broadcast %17 : vector<16x1xf32> to vector<16x5xf32>
    %23 = arith.addf %21, %22 : vector<16x5xf32>
    %cst_14 = arith.constant 0.000000e+00 : f32
    %24 = vector.broadcast %cst_14 : f32 to vector<16x5xf32>
    %25 = arith.cmpf ogt, %23, %24 : vector<16x5xf32>
    %cst_15 = arith.constant 2.000000e-01 : f32
    %26 = vector.broadcast %cst_15 : f32 to vector<16x5xf32>
    %27 = arith.mulf %26, %23 : vector<16x5xf32>
    %28 = arith.select %25, %23, %27 : vector<16x5xi1>, vector<16x5xf32>
    %29 = tpu.iota {dimensions = array<i32: 1>} : vector<1x5xi32>
    %c0_i32 = arith.constant 0 : i32
    %30 = vector.broadcast %c0_i32 : i32 to vector<1x5xi32>
    %31 = arith.addi %30, %29 : vector<1x5xi32>
    %c2_i32 = arith.constant 2 : i32
    %32 = vector.broadcast %c2_i32 : i32 to vector<1x5xi32>
    %33 = arith.muli %31, %32 : vector<1x5xi32>
    %c0_i32_16 = arith.constant 0 : i32
    %34 = vector.broadcast %c0_i32_16 : i32 to vector<1x5xi32>
    %35 = arith.addi %33, %34 : vector<1x5xi32>
    %c1_i32 = arith.constant 1 : i32
    %36 = vector.broadcast %c1_i32 : i32 to vector<1x5xi32>
    %37 = arith.cmpi sge, %35, %36 : vector<1x5xi32>
    %c9_i32 = arith.constant 9 : i32
    %38 = vector.broadcast %c9_i32 : i32 to vector<1x5xi32>
    %39 = arith.cmpi slt, %35, %38 : vector<1x5xi32>
    %40 = arith.andi %37, %39 : vector<1x5xi1>
    %cst_17 = arith.constant 0.000000e+00 : f32
    %41 = vector.shape_cast %40 : vector<1x5xi1> to vector<1x5xi1>
    %42 = vector.broadcast %41 : vector<1x5xi1> to vector<16x5xi1>
    %43 = vector.broadcast %cst_17 : f32 to vector<16x5xf32>
    %44 = arith.select %42, %28, %43 : vector<16x5xi1>, vector<16x5xf32>
    %45 = arith.truncf %44 : vector<16x5xf32> to vector<16x5xbf16>
    %c0_18 = arith.constant 0 : index
    %c1 = arith.constant 1 : index
    %c0_19 = arith.constant 0 : index
    %c0_20 = arith.constant 0 : index
    %46 = vector.load %arg2[%c0_18, %c1, %c0_19, %c0_20] : memref<1x2x16x5xf32, #tpu.memory_space<vmem>>, vector<1x1x16x5xf32>
    %47 = vector.shape_cast %46 : vector<1x1x16x5xf32> to vector<16x5xf32>
    %48 = vector.broadcast %14 : vector<16x1xf32> to vector<16x5xf32>
    %49 = arith.mulf %47, %48 : vector<16x5xf32>
    %50 = vector.broadcast %17 : vector<16x1xf32> to vector<16x5xf32>
    %51 = arith.addf %49, %50 : vector<16x5xf32>
    %cst_21 = arith.constant 0.000000e+00 : f32
    %52 = vector.broadcast %cst_21 : f32 to vector<16x5xf32>
    %53 = arith.cmpf ogt, %51, %52 : vector<16x5xf32>
    %cst_22 = arith.constant 2.000000e-01 : f32
    %54 = vector.broadcast %cst_22 : f32 to vector<16x5xf32>
    %55 = arith.mulf %54, %51 : vector<16x5xf32>
    %56 = arith.select %53, %51, %55 : vector<16x5xi1>, vector<16x5xf32>
    %57 = tpu.iota {dimensions = array<i32: 1>} : vector<1x5xi32>
    %c0_i32_23 = arith.constant 0 : i32
    %58 = vector.broadcast %c0_i32_23 : i32 to vector<1x5xi32>
    %59 = arith.addi %58, %57 : vector<1x5xi32>
    %c2_i32_24 = arith.constant 2 : i32
    %60 = vector.broadcast %c2_i32_24 : i32 to vector<1x5xi32>
    %61 = arith.muli %59, %60 : vector<1x5xi32>
    %c1_i32_25 = arith.constant 1 : i32
    %62 = vector.broadcast %c1_i32_25 : i32 to vector<1x5xi32>
    %63 = arith.addi %61, %62 : vector<1x5xi32>
    %c1_i32_26 = arith.constant 1 : i32
    %64 = vector.broadcast %c1_i32_26 : i32 to vector<1x5xi32>
    %65 = arith.cmpi sge, %63, %64 : vector<1x5xi32>
    %c9_i32_27 = arith.constant 9 : i32
    %66 = vector.broadcast %c9_i32_27 : i32 to vector<1x5xi32>
    %67 = arith.cmpi slt, %63, %66 : vector<1x5xi32>
    %68 = arith.andi %65, %67 : vector<1x5xi1>
    %cst_28 = arith.constant 0.000000e+00 : f32
    %69 = vector.shape_cast %68 : vector<1x5xi1> to vector<1x5xi1>
    %70 = vector.broadcast %69 : vector<1x5xi1> to vector<16x5xi1>
    %71 = vector.broadcast %cst_28 : f32 to vector<16x5xf32>
    %72 = arith.select %70, %56, %71 : vector<16x5xi1>, vector<16x5xf32>
    %73 = arith.truncf %72 : vector<16x5xf32> to vector<16x5xbf16>
    %cst_29 = arith.constant 0.000000e+00 : f32
    %74 = vector.broadcast %cst_29 : f32 to vector<16x4xf32>
    %75 = vector.extract_strided_slice %45 {offsets = [0, 0], sizes = [16, 4], strides = [1, 1]} : vector<16x5xbf16> to vector<16x4xbf16>
    %c0_30 = arith.constant 0 : index
    %c0_31 = arith.constant 0 : index
    %c0_32 = arith.constant 0 : index
    %76 = vector.load %arg3[%c0_30, %c0_31, %c0_32] : memref<3x16x16xbf16, #tpu.memory_space<vmem>>, vector<1x16x16xbf16>
    %77 = vector.shape_cast %76 : vector<1x16x16xbf16> to vector<16x16xbf16>
    %cst_33 = arith.constant dense<0.000000e+00> : vector<16x4xf32>
    %78 = tpu.matmul %77, %75, %cst_33 {dimension_numbers = #tpu.dot_dimension_numbers<[1], [0], [0], [1], [0, 0, 1, 1], [], []>} : vector<16x16xbf16>, vector<16x4xbf16>, vector<16x4xf32> -> vector<16x4xf32>
    %79 = arith.addf %74, %78 : vector<16x4xf32>
    %80 = vector.extract_strided_slice %73 {offsets = [0, 0], sizes = [16, 4], strides = [1, 1]} : vector<16x5xbf16> to vector<16x4xbf16>
    %c1_34 = arith.constant 1 : index
    %c0_35 = arith.constant 0 : index
    %c0_36 = arith.constant 0 : index
    %81 = vector.load %arg3[%c1_34, %c0_35, %c0_36] : memref<3x16x16xbf16, #tpu.memory_space<vmem>>, vector<1x16x16xbf16>
    %82 = vector.shape_cast %81 : vector<1x16x16xbf16> to vector<16x16xbf16>
    %cst_37 = arith.constant dense<0.000000e+00> : vector<16x4xf32>
    %83 = tpu.matmul %82, %80, %cst_37 {dimension_numbers = #tpu.dot_dimension_numbers<[1], [0], [0], [1], [0, 0, 1, 1], [], []>} : vector<16x16xbf16>, vector<16x4xbf16>, vector<16x4xf32> -> vector<16x4xf32>
    %84 = arith.addf %79, %83 : vector<16x4xf32>
    %85 = vector.extract_strided_slice %45 {offsets = [0, 1], sizes = [16, 4], strides = [1, 1]} : vector<16x5xbf16> to vector<16x4xbf16>
    %c2 = arith.constant 2 : index
    %c0_38 = arith.constant 0 : index
    %c0_39 = arith.constant 0 : index
    %86 = vector.load %arg3[%c2, %c0_38, %c0_39] : memref<3x16x16xbf16, #tpu.memory_space<vmem>>, vector<1x16x16xbf16>
    %87 = vector.shape_cast %86 : vector<1x16x16xbf16> to vector<16x16xbf16>
    %cst_40 = arith.constant dense<0.000000e+00> : vector<16x4xf32>
    %88 = tpu.matmul %87, %85, %cst_40 {dimension_numbers = #tpu.dot_dimension_numbers<[1], [0], [0], [1], [0, 0, 1, 1], [], []>} : vector<16x16xbf16>, vector<16x4xbf16>, vector<16x4xf32> -> vector<16x4xf32>
    %89 = arith.addf %84, %88 : vector<16x4xf32>
    %c0_41 = arith.constant 0 : index
    %c0_42 = arith.constant 0 : index
    %90 = vector.load %arg4[%c0_41, %c0_42] : memref<16x1xf32, #tpu.memory_space<vmem>>, vector<16x1xf32>
    %91 = vector.broadcast %90 : vector<16x1xf32> to vector<16x4xf32>
    %92 = arith.addf %89, %91 : vector<16x4xf32>
    %c0_43 = arith.constant 0 : index
    %c0_44 = arith.constant 0 : index
    %c0_45 = arith.constant 0 : index
    %93 = vector.load %arg9[%c0_43, %c0_44, %c0_45] : memref<1x16x4xf32, #tpu.memory_space<vmem>>, vector<1x16x4xf32>
    %94 = vector.shape_cast %93 : vector<1x16x4xf32> to vector<16x4xf32>
    %95 = vector.shape_cast %92 : vector<16x4xf32> to vector<1x16x4xf32>
    tpu.vector_store %arg9[%c0_43, %c0_44, %c0_45], %95 {strides = array<i32>} : memref<1x16x4xf32, #tpu.memory_space<vmem>>, vector<1x16x4xf32>,
    %c0_i32_46 = arith.constant 0 : i32
    %96 = arith.cmpi eq, %arg0, %c0_i32_46 : i32
    %97 = arith.extui %96 : i1 to i32
    %c0_i32_47 = arith.constant 0 : i32
    %98 = arith.cmpi ne, %97, %c0_i32_47 : i32
    scf.if %98 {
      %cst_58 = arith.constant 0.000000e+00 : f32
      %110 = vector.broadcast %cst_58 : f32 to vector<16x1xf32>
      %c0_59 = arith.constant 0 : index
      %c0_60 = arith.constant 0 : index
      %111 = vector.load %arg10[%c0_59, %c0_60] : memref<16x1xf32, #tpu.memory_space<vmem>>, vector<16x1xf32>
      tpu.vector_store %arg10[%c0_59, %c0_60], %110 {strides = array<i32>} : memref<16x1xf32, #tpu.memory_space<vmem>>, vector<16x1xf32>,
      %cst_61 = arith.constant 0.000000e+00 : f32
      %112 = vector.broadcast %cst_61 : f32 to vector<16x1xf32>
      %c0_62 = arith.constant 0 : index
      %c0_63 = arith.constant 0 : index
      %113 = vector.load %arg11[%c0_62, %c0_63] : memref<16x1xf32, #tpu.memory_space<vmem>>, vector<16x1xf32>
      tpu.vector_store %arg11[%c0_62, %c0_63], %112 {strides = array<i32>} : memref<16x1xf32, #tpu.memory_space<vmem>>, vector<16x1xf32>,
    } else {
    }
    %c0_48 = arith.constant 0 : index
    %c0_49 = arith.constant 0 : index
    %99 = vector.load %arg10[%c0_48, %c0_49] : memref<16x1xf32, #tpu.memory_space<vmem>>, vector<16x1xf32>
    %cst_50 = arith.constant dense<0.000000e+00> : vector<16xf32>
    %100 = vector.multi_reduction <add>, %92, %cst_50 [1] : vector<16x4xf32> to vector<16xf32>
    %101 = vector.shape_cast %100 : vector<16xf32> to vector<16x1xf32>
    %102 = arith.addf %99, %101 : vector<16x1xf32>
    %c0_51 = arith.constant 0 : index
    %c0_52 = arith.constant 0 : index
    %103 = vector.load %arg10[%c0_51, %c0_52] : memref<16x1xf32, #tpu.memory_space<vmem>>, vector<16x1xf32>
    tpu.vector_store %arg10[%c0_51, %c0_52], %102 {strides = array<i32>} : memref<16x1xf32, #tpu.memory_space<vmem>>, vector<16x1xf32>,
    %c0_53 = arith.constant 0 : index
    %c0_54 = arith.constant 0 : index
    %104 = vector.load %arg11[%c0_53, %c0_54] : memref<16x1xf32, #tpu.memory_space<vmem>>, vector<16x1xf32>
    %105 = arith.mulf %92, %92 : vector<16x4xf32>
    %cst_55 = arith.constant dense<0.000000e+00> : vector<16xf32>
    %106 = vector.multi_reduction <add>, %105, %cst_55 [1] : vector<16x4xf32> to vector<16xf32>
    %107 = vector.shape_cast %106 : vector<16xf32> to vector<16x1xf32>
    %108 = arith.addf %104, %107 : vector<16x1xf32>
    %c0_56 = arith.constant 0 : index
    %c0_57 = arith.constant 0 : index
    %109 = vector.load %arg11[%c0_56, %c0_57] : memref<16x1xf32, #tpu.memory_space<vmem>>, vector<16x1xf32>
    tpu.vector_store %arg11[%c0_56, %c0_57], %108 {strides = array<i32>} : memref<16x1xf32, #tpu.memory_space<vmem>>, vector<16x1xf32>,
    return
  }
  func.func @transform_0(%arg0: i32, %arg1: i32) -> (i32, i32, i32, i32) {
    %c0_i32 = arith.constant 0 : i32
    %c0_i32_0 = arith.constant 0 : i32
    %c0_i32_1 = arith.constant 0 : i32
    %c0_i32_2 = arith.constant 0 : i32
    return %arg0, %c0_i32, %c0_i32_0, %c0_i32_1 : i32, i32, i32, i32
  }
  func.func @transform_1(%arg0: i32, %arg1: i32) -> (i32, i32, i32) {
    %c0_i32 = arith.constant 0 : i32
    %c0_i32_0 = arith.constant 0 : i32
    %c0_i32_1 = arith.constant 0 : i32
    %c0_i32_2 = arith.constant 0 : i32
    return %c0_i32, %c0_i32_0, %c0_i32_1 : i32, i32, i32
  }
  func.func @transform_2(%arg0: i32, %arg1: i32) -> (i32, i32) {
    %c0_i32 = arith.constant 0 : i32
    %c0_i32_0 = arith.constant 0 : i32
    %c0_i32_1 = arith.constant 0 : i32
    return %c0_i32, %c0_i32_0 : i32, i32
  }
  func.func @transform_3(%arg0: i32, %arg1: i32) -> (i32, i32) {
    %c0_i32 = arith.constant 0 : i32
    %c0_i32_0 = arith.constant 0 : i32
    %c0_i32_1 = arith.constant 0 : i32
    return %c0_i32, %c0_i32_0 : i32, i32
  }
  func.func @transform_4(%arg0: i32, %arg1: i32) -> (i32, i32) {
    %c0_i32 = arith.constant 0 : i32
    %c0_i32_0 = arith.constant 0 : i32
    %c0_i32_1 = arith.constant 0 : i32
    return %c0_i32, %c0_i32_0 : i32, i32
  }
  func.func @transform_5(%arg0: i32, %arg1: i32) -> (i32, i32) {
    %c0_i32 = arith.constant 0 : i32
    %c0_i32_0 = arith.constant 0 : i32
    %c0_i32_1 = arith.constant 0 : i32
    return %c0_i32, %c0_i32_0 : i32, i32
  }
  func.func @transform_6(%arg0: i32, %arg1: i32) -> (i32, i32) {
    %c0_i32 = arith.constant 0 : i32
    %c0_i32_0 = arith.constant 0 : i32
    %c0_i32_1 = arith.constant 0 : i32
    return %c0_i32, %c0_i32_0 : i32, i32
  }
  func.func @transform_7(%arg0: i32, %arg1: i32) -> (i32, i32, i32) {
    %c0_i32 = arith.constant 0 : i32
    %c0_i32_0 = arith.constant 0 : i32
    return %arg0, %c0_i32, %arg1 : i32, i32, i32
  }
  func.func @transform_8(%arg0: i32, %arg1: i32) -> (i32, i32) {
    %c0_i32 = arith.constant 0 : i32
    %c0_i32_0 = arith.constant 0 : i32
    %c0_i32_1 = arith.constant 0 : i32
    return %c0_i32, %c0_i32_0 : i32, i32
  }
  func.func @transform_9(%arg0: i32, %arg1: i32) -> (i32, i32) {
    %c0_i32 = arith.constant 0 : i32
    %c0_i32_0 = arith.constant 0 : i32
    %c0_i32_1 = arith.constant 0 : i32
    return %c0_i32, %c0_i32_0 : i32, i32
  }
}

module attributes {stable_mosaic.version = 11 : i64} {
  func.func @kernel(%arg0: i32, %arg1: i32, %arg2: memref<1x1x16x6xf32, #tpu.memory_space<vmem>>, %arg3: memref<3x16x16xbf16, #tpu.memory_space<vmem>>, %arg4: memref<16x1xf32, #tpu.memory_space<vmem>>, %arg5: memref<16x1xf32, #tpu.memory_space<vmem>>, %arg6: memref<16x1xf32, #tpu.memory_space<vmem>>, %arg7: memref<16x1xf32, #tpu.memory_space<vmem>>, %arg8: memref<16x1xf32, #tpu.memory_space<vmem>>, %arg9: memref<1x16x4xf32, #tpu.memory_space<vmem>>, %arg10: memref<1x16x4xf32, #tpu.memory_space<vmem>>, %arg11: memref<16x1xf32, #tpu.memory_space<vmem>>, %arg12: memref<16x1xf32, #tpu.memory_space<vmem>>) attributes {dimension_semantics = [#tpu.dimension_semantics<arbitrary>, #tpu.dimension_semantics<arbitrary>], iteration_bounds = array<i64: 2, 1>, scalar_prefetch = 0 : i64, scratch_operands = 0 : i64, tpu.core_type = #tpu.core_type<tc>, window_params = [{transform_indices = @transform_0, window_bounds = array<i64: 1, 1, 16, 6>}, {pipeline_mode = #tpu.pipeline_mode<synchronous>, transform_indices = @transform_1, window_bounds = array<i64: 3, 16, 16>}, {pipeline_mode = #tpu.pipeline_mode<synchronous>, transform_indices = @transform_2, window_bounds = array<i64: 16, 1>}, {pipeline_mode = #tpu.pipeline_mode<synchronous>, transform_indices = @transform_3, window_bounds = array<i64: 16, 1>}, {pipeline_mode = #tpu.pipeline_mode<synchronous>, transform_indices = @transform_4, window_bounds = array<i64: 16, 1>}, {pipeline_mode = #tpu.pipeline_mode<synchronous>, transform_indices = @transform_5, window_bounds = array<i64: 16, 1>}, {pipeline_mode = #tpu.pipeline_mode<synchronous>, transform_indices = @transform_6, window_bounds = array<i64: 16, 1>}, {transform_indices = @transform_7, window_bounds = array<i64: 1, 16, 4>}, {transform_indices = @transform_8, window_bounds = array<i64: 1, 16, 4>}, {pipeline_mode = #tpu.pipeline_mode<synchronous>, transform_indices = @transform_9, window_bounds = array<i64: 16, 1>}, {pipeline_mode = #tpu.pipeline_mode<synchronous>, transform_indices = @transform_10, window_bounds = array<i64: 16, 1>}]} {
    %c0 = arith.constant 0 : index
    %c0_0 = arith.constant 0 : index
    %0 = vector.load %arg5[%c0, %c0_0] : memref<16x1xf32, #tpu.memory_space<vmem>>, vector<16x1xf32>
    %cst = arith.constant 1.250000e-01 : f32
    %1 = vector.broadcast %cst : f32 to vector<16x1xf32>
    %2 = arith.mulf %0, %1 : vector<16x1xf32>
    %c0_1 = arith.constant 0 : index
    %c0_2 = arith.constant 0 : index
    %3 = vector.load %arg6[%c0_1, %c0_2] : memref<16x1xf32, #tpu.memory_space<vmem>>, vector<16x1xf32>
    %cst_3 = arith.constant 1.250000e-01 : f32
    %4 = vector.broadcast %cst_3 : f32 to vector<16x1xf32>
    %5 = arith.mulf %3, %4 : vector<16x1xf32>
    %6 = arith.mulf %2, %2 : vector<16x1xf32>
    %7 = arith.subf %5, %6 : vector<16x1xf32>
    %cst_4 = arith.constant 0.000000e+00 : f32
    %8 = vector.broadcast %cst_4 : f32 to vector<16x1xf32>
    %9 = arith.maximumf %7, %8 : vector<16x1xf32>
    %c0_5 = arith.constant 0 : index
    %c0_6 = arith.constant 0 : index
    %10 = vector.load %arg7[%c0_5, %c0_6] : memref<16x1xf32, #tpu.memory_space<vmem>>, vector<16x1xf32>
    %cst_7 = arith.constant 9.99999974E-6 : f32
    %11 = vector.broadcast %cst_7 : f32 to vector<16x1xf32>
    %12 = arith.addf %9, %11 : vector<16x1xf32>
    %13 = math.rsqrt %12 : vector<16x1xf32>
    %14 = arith.mulf %10, %13 : vector<16x1xf32>
    %c0_8 = arith.constant 0 : index
    %c0_9 = arith.constant 0 : index
    %15 = vector.load %arg8[%c0_8, %c0_9] : memref<16x1xf32, #tpu.memory_space<vmem>>, vector<16x1xf32>
    %16 = arith.mulf %2, %14 : vector<16x1xf32>
    %17 = arith.subf %15, %16 : vector<16x1xf32>
    %c0_10 = arith.constant 0 : index
    %c0_11 = arith.constant 0 : index
    %c0_12 = arith.constant 0 : index
    %c0_13 = arith.constant 0 : index
    %18 = vector.load %arg2[%c0_10, %c0_11, %c0_12, %c0_13] : memref<1x1x16x6xf32, #tpu.memory_space<vmem>>, vector<1x1x16x6xf32>
    %19 = vector.shape_cast %18 : vector<1x1x16x6xf32> to vector<16x6xf32>
    %20 = vector.broadcast %14 : vector<16x1xf32> to vector<16x6xf32>
    %21 = arith.mulf %19, %20 : vector<16x6xf32>
    %22 = vector.broadcast %17 : vector<16x1xf32> to vector<16x6xf32>
    %23 = arith.addf %21, %22 : vector<16x6xf32>
    %cst_14 = arith.constant 0.000000e+00 : f32
    %24 = vector.broadcast %cst_14 : f32 to vector<16x6xf32>
    %25 = arith.cmpf ogt, %23, %24 : vector<16x6xf32>
    %cst_15 = arith.constant 2.000000e-01 : f32
    %26 = vector.broadcast %cst_15 : f32 to vector<16x6xf32>
    %27 = arith.mulf %26, %23 : vector<16x6xf32>
    %28 = arith.select %25, %23, %27 : vector<16x6xi1>, vector<16x6xf32>
    %29 = tpu.iota {dimensions = array<i32: 1>} : vector<1x6xi32>
    %c0_i32 = arith.constant 0 : i32
    %30 = vector.broadcast %c0_i32 : i32 to vector<1x6xi32>
    %31 = arith.addi %30, %29 : vector<1x6xi32>
    %c1_i32 = arith.constant 1 : i32
    %32 = vector.broadcast %c1_i32 : i32 to vector<1x6xi32>
    %33 = arith.muli %31, %32 : vector<1x6xi32>
    %c0_i32_16 = arith.constant 0 : i32
    %34 = vector.broadcast %c0_i32_16 : i32 to vector<1x6xi32>
    %35 = arith.addi %33, %34 : vector<1x6xi32>
    %c1_i32_17 = arith.constant 1 : i32
    %36 = vector.broadcast %c1_i32_17 : i32 to vector<1x6xi32>
    %37 = arith.cmpi sge, %35, %36 : vector<1x6xi32>
    %c5_i32 = arith.constant 5 : i32
    %38 = vector.broadcast %c5_i32 : i32 to vector<1x6xi32>
    %39 = arith.cmpi slt, %35, %38 : vector<1x6xi32>
    %40 = arith.andi %37, %39 : vector<1x6xi1>
    %cst_18 = arith.constant 0.000000e+00 : f32
    %41 = vector.shape_cast %40 : vector<1x6xi1> to vector<1x6xi1>
    %42 = vector.broadcast %41 : vector<1x6xi1> to vector<16x6xi1>
    %43 = vector.broadcast %cst_18 : f32 to vector<16x6xf32>
    %44 = arith.select %42, %28, %43 : vector<16x6xi1>, vector<16x6xf32>
    %45 = arith.truncf %44 : vector<16x6xf32> to vector<16x6xbf16>
    %cst_19 = arith.constant 0.000000e+00 : f32
    %46 = vector.broadcast %cst_19 : f32 to vector<16x4xf32>
    %47 = vector.extract_strided_slice %45 {offsets = [0, 0], sizes = [16, 4], strides = [1, 1]} : vector<16x6xbf16> to vector<16x4xbf16>
    %c0_20 = arith.constant 0 : index
    %c0_21 = arith.constant 0 : index
    %c0_22 = arith.constant 0 : index
    %48 = vector.load %arg3[%c0_20, %c0_21, %c0_22] : memref<3x16x16xbf16, #tpu.memory_space<vmem>>, vector<1x16x16xbf16>
    %49 = vector.shape_cast %48 : vector<1x16x16xbf16> to vector<16x16xbf16>
    %cst_23 = arith.constant dense<0.000000e+00> : vector<16x4xf32>
    %50 = tpu.matmul %49, %47, %cst_23 {dimension_numbers = #tpu.dot_dimension_numbers<[1], [0], [0], [1], [0, 0, 1, 1], [], []>} : vector<16x16xbf16>, vector<16x4xbf16>, vector<16x4xf32> -> vector<16x4xf32>
    %51 = arith.addf %46, %50 : vector<16x4xf32>
    %52 = vector.extract_strided_slice %45 {offsets = [0, 1], sizes = [16, 4], strides = [1, 1]} : vector<16x6xbf16> to vector<16x4xbf16>
    %c1 = arith.constant 1 : index
    %c0_24 = arith.constant 0 : index
    %c0_25 = arith.constant 0 : index
    %53 = vector.load %arg3[%c1, %c0_24, %c0_25] : memref<3x16x16xbf16, #tpu.memory_space<vmem>>, vector<1x16x16xbf16>
    %54 = vector.shape_cast %53 : vector<1x16x16xbf16> to vector<16x16xbf16>
    %cst_26 = arith.constant dense<0.000000e+00> : vector<16x4xf32>
    %55 = tpu.matmul %54, %52, %cst_26 {dimension_numbers = #tpu.dot_dimension_numbers<[1], [0], [0], [1], [0, 0, 1, 1], [], []>} : vector<16x16xbf16>, vector<16x4xbf16>, vector<16x4xf32> -> vector<16x4xf32>
    %56 = arith.addf %51, %55 : vector<16x4xf32>
    %57 = vector.extract_strided_slice %45 {offsets = [0, 2], sizes = [16, 4], strides = [1, 1]} : vector<16x6xbf16> to vector<16x4xbf16>
    %c2 = arith.constant 2 : index
    %c0_27 = arith.constant 0 : index
    %c0_28 = arith.constant 0 : index
    %58 = vector.load %arg3[%c2, %c0_27, %c0_28] : memref<3x16x16xbf16, #tpu.memory_space<vmem>>, vector<1x16x16xbf16>
    %59 = vector.shape_cast %58 : vector<1x16x16xbf16> to vector<16x16xbf16>
    %cst_29 = arith.constant dense<0.000000e+00> : vector<16x4xf32>
    %60 = tpu.matmul %59, %57, %cst_29 {dimension_numbers = #tpu.dot_dimension_numbers<[1], [0], [0], [1], [0, 0, 1, 1], [], []>} : vector<16x16xbf16>, vector<16x4xbf16>, vector<16x4xf32> -> vector<16x4xf32>
    %61 = arith.addf %56, %60 : vector<16x4xf32>
    %c0_30 = arith.constant 0 : index
    %c0_31 = arith.constant 0 : index
    %62 = vector.load %arg4[%c0_30, %c0_31] : memref<16x1xf32, #tpu.memory_space<vmem>>, vector<16x1xf32>
    %63 = vector.broadcast %62 : vector<16x1xf32> to vector<16x4xf32>
    %64 = arith.addf %61, %63 : vector<16x4xf32>
    %c0_32 = arith.constant 0 : index
    %c0_33 = arith.constant 0 : index
    %c0_34 = arith.constant 0 : index
    %65 = vector.load %arg9[%c0_32, %c0_33, %c0_34] : memref<1x16x4xf32, #tpu.memory_space<vmem>>, vector<1x16x4xf32>
    %66 = vector.shape_cast %65 : vector<1x16x4xf32> to vector<16x4xf32>
    %67 = arith.addf %64, %66 : vector<16x4xf32>
    %c0_35 = arith.constant 0 : index
    %c0_36 = arith.constant 0 : index
    %c0_37 = arith.constant 0 : index
    %68 = vector.load %arg10[%c0_35, %c0_36, %c0_37] : memref<1x16x4xf32, #tpu.memory_space<vmem>>, vector<1x16x4xf32>
    %69 = vector.shape_cast %68 : vector<1x16x4xf32> to vector<16x4xf32>
    %70 = vector.shape_cast %67 : vector<16x4xf32> to vector<1x16x4xf32>
    tpu.vector_store %arg10[%c0_35, %c0_36, %c0_37], %70 {strides = array<i32>} : memref<1x16x4xf32, #tpu.memory_space<vmem>>, vector<1x16x4xf32>,
    %c0_i32_38 = arith.constant 0 : i32
    %71 = arith.cmpi eq, %arg0, %c0_i32_38 : i32
    %72 = arith.extui %71 : i1 to i32
    %c0_i32_39 = arith.constant 0 : i32
    %73 = arith.cmpi ne, %72, %c0_i32_39 : i32
    scf.if %73 {
      %cst_50 = arith.constant 0.000000e+00 : f32
      %85 = vector.broadcast %cst_50 : f32 to vector<16x1xf32>
      %c0_51 = arith.constant 0 : index
      %c0_52 = arith.constant 0 : index
      %86 = vector.load %arg11[%c0_51, %c0_52] : memref<16x1xf32, #tpu.memory_space<vmem>>, vector<16x1xf32>
      tpu.vector_store %arg11[%c0_51, %c0_52], %85 {strides = array<i32>} : memref<16x1xf32, #tpu.memory_space<vmem>>, vector<16x1xf32>,
      %cst_53 = arith.constant 0.000000e+00 : f32
      %87 = vector.broadcast %cst_53 : f32 to vector<16x1xf32>
      %c0_54 = arith.constant 0 : index
      %c0_55 = arith.constant 0 : index
      %88 = vector.load %arg12[%c0_54, %c0_55] : memref<16x1xf32, #tpu.memory_space<vmem>>, vector<16x1xf32>
      tpu.vector_store %arg12[%c0_54, %c0_55], %87 {strides = array<i32>} : memref<16x1xf32, #tpu.memory_space<vmem>>, vector<16x1xf32>,
    } else {
    }
    %c0_40 = arith.constant 0 : index
    %c0_41 = arith.constant 0 : index
    %74 = vector.load %arg11[%c0_40, %c0_41] : memref<16x1xf32, #tpu.memory_space<vmem>>, vector<16x1xf32>
    %cst_42 = arith.constant dense<0.000000e+00> : vector<16xf32>
    %75 = vector.multi_reduction <add>, %67, %cst_42 [1] : vector<16x4xf32> to vector<16xf32>
    %76 = vector.shape_cast %75 : vector<16xf32> to vector<16x1xf32>
    %77 = arith.addf %74, %76 : vector<16x1xf32>
    %c0_43 = arith.constant 0 : index
    %c0_44 = arith.constant 0 : index
    %78 = vector.load %arg11[%c0_43, %c0_44] : memref<16x1xf32, #tpu.memory_space<vmem>>, vector<16x1xf32>
    tpu.vector_store %arg11[%c0_43, %c0_44], %77 {strides = array<i32>} : memref<16x1xf32, #tpu.memory_space<vmem>>, vector<16x1xf32>,
    %c0_45 = arith.constant 0 : index
    %c0_46 = arith.constant 0 : index
    %79 = vector.load %arg12[%c0_45, %c0_46] : memref<16x1xf32, #tpu.memory_space<vmem>>, vector<16x1xf32>
    %80 = arith.mulf %67, %67 : vector<16x4xf32>
    %cst_47 = arith.constant dense<0.000000e+00> : vector<16xf32>
    %81 = vector.multi_reduction <add>, %80, %cst_47 [1] : vector<16x4xf32> to vector<16xf32>
    %82 = vector.shape_cast %81 : vector<16xf32> to vector<16x1xf32>
    %83 = arith.addf %79, %82 : vector<16x1xf32>
    %c0_48 = arith.constant 0 : index
    %c0_49 = arith.constant 0 : index
    %84 = vector.load %arg12[%c0_48, %c0_49] : memref<16x1xf32, #tpu.memory_space<vmem>>, vector<16x1xf32>
    tpu.vector_store %arg12[%c0_48, %c0_49], %83 {strides = array<i32>} : memref<16x1xf32, #tpu.memory_space<vmem>>, vector<16x1xf32>,
    return
  }
  func.func @transform_0(%arg0: i32, %arg1: i32) -> (i32, i32, i32, i32) {
    %c0_i32 = arith.constant 0 : i32
    %c0_i32_0 = arith.constant 0 : i32
    %c0_i32_1 = arith.constant 0 : i32
    %c0_i32_2 = arith.constant 0 : i32
    return %arg0, %c0_i32, %c0_i32_0, %c0_i32_1 : i32, i32, i32, i32
  }
  func.func @transform_1(%arg0: i32, %arg1: i32) -> (i32, i32, i32) {
    %c0_i32 = arith.constant 0 : i32
    %c0_i32_0 = arith.constant 0 : i32
    %c0_i32_1 = arith.constant 0 : i32
    %c0_i32_2 = arith.constant 0 : i32
    return %c0_i32, %c0_i32_0, %c0_i32_1 : i32, i32, i32
  }
  func.func @transform_2(%arg0: i32, %arg1: i32) -> (i32, i32) {
    %c0_i32 = arith.constant 0 : i32
    %c0_i32_0 = arith.constant 0 : i32
    %c0_i32_1 = arith.constant 0 : i32
    return %c0_i32, %c0_i32_0 : i32, i32
  }
  func.func @transform_3(%arg0: i32, %arg1: i32) -> (i32, i32) {
    %c0_i32 = arith.constant 0 : i32
    %c0_i32_0 = arith.constant 0 : i32
    %c0_i32_1 = arith.constant 0 : i32
    return %c0_i32, %c0_i32_0 : i32, i32
  }
  func.func @transform_4(%arg0: i32, %arg1: i32) -> (i32, i32) {
    %c0_i32 = arith.constant 0 : i32
    %c0_i32_0 = arith.constant 0 : i32
    %c0_i32_1 = arith.constant 0 : i32
    return %c0_i32, %c0_i32_0 : i32, i32
  }
  func.func @transform_5(%arg0: i32, %arg1: i32) -> (i32, i32) {
    %c0_i32 = arith.constant 0 : i32
    %c0_i32_0 = arith.constant 0 : i32
    %c0_i32_1 = arith.constant 0 : i32
    return %c0_i32, %c0_i32_0 : i32, i32
  }
  func.func @transform_6(%arg0: i32, %arg1: i32) -> (i32, i32) {
    %c0_i32 = arith.constant 0 : i32
    %c0_i32_0 = arith.constant 0 : i32
    %c0_i32_1 = arith.constant 0 : i32
    return %c0_i32, %c0_i32_0 : i32, i32
  }
  func.func @transform_7(%arg0: i32, %arg1: i32) -> (i32, i32, i32) {
    %c0_i32 = arith.constant 0 : i32
    %c0_i32_0 = arith.constant 0 : i32
    return %arg0, %c0_i32, %arg1 : i32, i32, i32
  }
  func.func @transform_8(%arg0: i32, %arg1: i32) -> (i32, i32, i32) {
    %c0_i32 = arith.constant 0 : i32
    %c0_i32_0 = arith.constant 0 : i32
    return %arg0, %c0_i32, %arg1 : i32, i32, i32
  }
  func.func @transform_9(%arg0: i32, %arg1: i32) -> (i32, i32) {
    %c0_i32 = arith.constant 0 : i32
    %c0_i32_0 = arith.constant 0 : i32
    %c0_i32_1 = arith.constant 0 : i32
    return %c0_i32, %c0_i32_0 : i32, i32
  }
  func.func @transform_10(%arg0: i32, %arg1: i32) -> (i32, i32) {
    %c0_i32 = arith.constant 0 : i32
    %c0_i32_0 = arith.constant 0 : i32
    %c0_i32_1 = arith.constant 0 : i32
    return %c0_i32, %c0_i32_0 : i32, i32
  }
}

module attributes {stable_mosaic.version = 11 : i64} {
  func.func @kernel(%arg0: i32, %arg1: i32, %arg2: memref<1x1x16x6xf32, #tpu.memory_space<vmem>>, %arg3: memref<3x16x16xbf16, #tpu.memory_space<vmem>>, %arg4: memref<16x1xf32, #tpu.memory_space<vmem>>, %arg5: memref<16x1xf32, #tpu.memory_space<vmem>>, %arg6: memref<16x1xf32, #tpu.memory_space<vmem>>, %arg7: memref<16x1xf32, #tpu.memory_space<vmem>>, %arg8: memref<16x1xf32, #tpu.memory_space<vmem>>, %arg9: memref<1x16x4xf32, #tpu.memory_space<vmem>>, %arg10: memref<16x1xf32, #tpu.memory_space<vmem>>, %arg11: memref<16x1xf32, #tpu.memory_space<vmem>>) attributes {dimension_semantics = [#tpu.dimension_semantics<arbitrary>, #tpu.dimension_semantics<arbitrary>], iteration_bounds = array<i64: 2, 1>, scalar_prefetch = 0 : i64, scratch_operands = 0 : i64, tpu.core_type = #tpu.core_type<tc>, window_params = [{transform_indices = @transform_0, window_bounds = array<i64: 1, 1, 16, 6>}, {pipeline_mode = #tpu.pipeline_mode<synchronous>, transform_indices = @transform_1, window_bounds = array<i64: 3, 16, 16>}, {pipeline_mode = #tpu.pipeline_mode<synchronous>, transform_indices = @transform_2, window_bounds = array<i64: 16, 1>}, {pipeline_mode = #tpu.pipeline_mode<synchronous>, transform_indices = @transform_3, window_bounds = array<i64: 16, 1>}, {pipeline_mode = #tpu.pipeline_mode<synchronous>, transform_indices = @transform_4, window_bounds = array<i64: 16, 1>}, {pipeline_mode = #tpu.pipeline_mode<synchronous>, transform_indices = @transform_5, window_bounds = array<i64: 16, 1>}, {pipeline_mode = #tpu.pipeline_mode<synchronous>, transform_indices = @transform_6, window_bounds = array<i64: 16, 1>}, {transform_indices = @transform_7, window_bounds = array<i64: 1, 16, 4>}, {pipeline_mode = #tpu.pipeline_mode<synchronous>, transform_indices = @transform_8, window_bounds = array<i64: 16, 1>}, {pipeline_mode = #tpu.pipeline_mode<synchronous>, transform_indices = @transform_9, window_bounds = array<i64: 16, 1>}]} {
    %c0 = arith.constant 0 : index
    %c0_0 = arith.constant 0 : index
    %0 = vector.load %arg5[%c0, %c0_0] : memref<16x1xf32, #tpu.memory_space<vmem>>, vector<16x1xf32>
    %cst = arith.constant 1.250000e-01 : f32
    %1 = vector.broadcast %cst : f32 to vector<16x1xf32>
    %2 = arith.mulf %0, %1 : vector<16x1xf32>
    %c0_1 = arith.constant 0 : index
    %c0_2 = arith.constant 0 : index
    %3 = vector.load %arg6[%c0_1, %c0_2] : memref<16x1xf32, #tpu.memory_space<vmem>>, vector<16x1xf32>
    %cst_3 = arith.constant 1.250000e-01 : f32
    %4 = vector.broadcast %cst_3 : f32 to vector<16x1xf32>
    %5 = arith.mulf %3, %4 : vector<16x1xf32>
    %6 = arith.mulf %2, %2 : vector<16x1xf32>
    %7 = arith.subf %5, %6 : vector<16x1xf32>
    %cst_4 = arith.constant 0.000000e+00 : f32
    %8 = vector.broadcast %cst_4 : f32 to vector<16x1xf32>
    %9 = arith.maximumf %7, %8 : vector<16x1xf32>
    %c0_5 = arith.constant 0 : index
    %c0_6 = arith.constant 0 : index
    %10 = vector.load %arg7[%c0_5, %c0_6] : memref<16x1xf32, #tpu.memory_space<vmem>>, vector<16x1xf32>
    %cst_7 = arith.constant 9.99999974E-6 : f32
    %11 = vector.broadcast %cst_7 : f32 to vector<16x1xf32>
    %12 = arith.addf %9, %11 : vector<16x1xf32>
    %13 = math.rsqrt %12 : vector<16x1xf32>
    %14 = arith.mulf %10, %13 : vector<16x1xf32>
    %c0_8 = arith.constant 0 : index
    %c0_9 = arith.constant 0 : index
    %15 = vector.load %arg8[%c0_8, %c0_9] : memref<16x1xf32, #tpu.memory_space<vmem>>, vector<16x1xf32>
    %16 = arith.mulf %2, %14 : vector<16x1xf32>
    %17 = arith.subf %15, %16 : vector<16x1xf32>
    %c0_10 = arith.constant 0 : index
    %c0_11 = arith.constant 0 : index
    %c0_12 = arith.constant 0 : index
    %c0_13 = arith.constant 0 : index
    %18 = vector.load %arg2[%c0_10, %c0_11, %c0_12, %c0_13] : memref<1x1x16x6xf32, #tpu.memory_space<vmem>>, vector<1x1x16x6xf32>
    %19 = vector.shape_cast %18 : vector<1x1x16x6xf32> to vector<16x6xf32>
    %20 = vector.broadcast %14 : vector<16x1xf32> to vector<16x6xf32>
    %21 = arith.mulf %19, %20 : vector<16x6xf32>
    %22 = vector.broadcast %17 : vector<16x1xf32> to vector<16x6xf32>
    %23 = arith.addf %21, %22 : vector<16x6xf32>
    %cst_14 = arith.constant 0.000000e+00 : f32
    %24 = vector.broadcast %cst_14 : f32 to vector<16x6xf32>
    %25 = arith.cmpf ogt, %23, %24 : vector<16x6xf32>
    %cst_15 = arith.constant 2.000000e-01 : f32
    %26 = vector.broadcast %cst_15 : f32 to vector<16x6xf32>
    %27 = arith.mulf %26, %23 : vector<16x6xf32>
    %28 = arith.select %25, %23, %27 : vector<16x6xi1>, vector<16x6xf32>
    %29 = tpu.iota {dimensions = array<i32: 1>} : vector<1x6xi32>
    %c0_i32 = arith.constant 0 : i32
    %30 = vector.broadcast %c0_i32 : i32 to vector<1x6xi32>
    %31 = arith.addi %30, %29 : vector<1x6xi32>
    %c1_i32 = arith.constant 1 : i32
    %32 = vector.broadcast %c1_i32 : i32 to vector<1x6xi32>
    %33 = arith.muli %31, %32 : vector<1x6xi32>
    %c0_i32_16 = arith.constant 0 : i32
    %34 = vector.broadcast %c0_i32_16 : i32 to vector<1x6xi32>
    %35 = arith.addi %33, %34 : vector<1x6xi32>
    %c1_i32_17 = arith.constant 1 : i32
    %36 = vector.broadcast %c1_i32_17 : i32 to vector<1x6xi32>
    %37 = arith.cmpi sge, %35, %36 : vector<1x6xi32>
    %c5_i32 = arith.constant 5 : i32
    %38 = vector.broadcast %c5_i32 : i32 to vector<1x6xi32>
    %39 = arith.cmpi slt, %35, %38 : vector<1x6xi32>
    %40 = arith.andi %37, %39 : vector<1x6xi1>
    %cst_18 = arith.constant 0.000000e+00 : f32
    %41 = vector.shape_cast %40 : vector<1x6xi1> to vector<1x6xi1>
    %42 = vector.broadcast %41 : vector<1x6xi1> to vector<16x6xi1>
    %43 = vector.broadcast %cst_18 : f32 to vector<16x6xf32>
    %44 = arith.select %42, %28, %43 : vector<16x6xi1>, vector<16x6xf32>
    %45 = arith.truncf %44 : vector<16x6xf32> to vector<16x6xbf16>
    %cst_19 = arith.constant 0.000000e+00 : f32
    %46 = vector.broadcast %cst_19 : f32 to vector<16x4xf32>
    %47 = vector.extract_strided_slice %45 {offsets = [0, 0], sizes = [16, 4], strides = [1, 1]} : vector<16x6xbf16> to vector<16x4xbf16>
    %c0_20 = arith.constant 0 : index
    %c0_21 = arith.constant 0 : index
    %c0_22 = arith.constant 0 : index
    %48 = vector.load %arg3[%c0_20, %c0_21, %c0_22] : memref<3x16x16xbf16, #tpu.memory_space<vmem>>, vector<1x16x16xbf16>
    %49 = vector.shape_cast %48 : vector<1x16x16xbf16> to vector<16x16xbf16>
    %cst_23 = arith.constant dense<0.000000e+00> : vector<16x4xf32>
    %50 = tpu.matmul %49, %47, %cst_23 {dimension_numbers = #tpu.dot_dimension_numbers<[1], [0], [0], [1], [0, 0, 1, 1], [], []>} : vector<16x16xbf16>, vector<16x4xbf16>, vector<16x4xf32> -> vector<16x4xf32>
    %51 = arith.addf %46, %50 : vector<16x4xf32>
    %52 = vector.extract_strided_slice %45 {offsets = [0, 1], sizes = [16, 4], strides = [1, 1]} : vector<16x6xbf16> to vector<16x4xbf16>
    %c1 = arith.constant 1 : index
    %c0_24 = arith.constant 0 : index
    %c0_25 = arith.constant 0 : index
    %53 = vector.load %arg3[%c1, %c0_24, %c0_25] : memref<3x16x16xbf16, #tpu.memory_space<vmem>>, vector<1x16x16xbf16>
    %54 = vector.shape_cast %53 : vector<1x16x16xbf16> to vector<16x16xbf16>
    %cst_26 = arith.constant dense<0.000000e+00> : vector<16x4xf32>
    %55 = tpu.matmul %54, %52, %cst_26 {dimension_numbers = #tpu.dot_dimension_numbers<[1], [0], [0], [1], [0, 0, 1, 1], [], []>} : vector<16x16xbf16>, vector<16x4xbf16>, vector<16x4xf32> -> vector<16x4xf32>
    %56 = arith.addf %51, %55 : vector<16x4xf32>
    %57 = vector.extract_strided_slice %45 {offsets = [0, 2], sizes = [16, 4], strides = [1, 1]} : vector<16x6xbf16> to vector<16x4xbf16>
    %c2 = arith.constant 2 : index
    %c0_27 = arith.constant 0 : index
    %c0_28 = arith.constant 0 : index
    %58 = vector.load %arg3[%c2, %c0_27, %c0_28] : memref<3x16x16xbf16, #tpu.memory_space<vmem>>, vector<1x16x16xbf16>
    %59 = vector.shape_cast %58 : vector<1x16x16xbf16> to vector<16x16xbf16>
    %cst_29 = arith.constant dense<0.000000e+00> : vector<16x4xf32>
    %60 = tpu.matmul %59, %57, %cst_29 {dimension_numbers = #tpu.dot_dimension_numbers<[1], [0], [0], [1], [0, 0, 1, 1], [], []>} : vector<16x16xbf16>, vector<16x4xbf16>, vector<16x4xf32> -> vector<16x4xf32>
    %61 = arith.addf %56, %60 : vector<16x4xf32>
    %c0_30 = arith.constant 0 : index
    %c0_31 = arith.constant 0 : index
    %62 = vector.load %arg4[%c0_30, %c0_31] : memref<16x1xf32, #tpu.memory_space<vmem>>, vector<16x1xf32>
    %63 = vector.broadcast %62 : vector<16x1xf32> to vector<16x4xf32>
    %64 = arith.addf %61, %63 : vector<16x4xf32>
    %c0_32 = arith.constant 0 : index
    %c0_33 = arith.constant 0 : index
    %c0_34 = arith.constant 0 : index
    %65 = vector.load %arg9[%c0_32, %c0_33, %c0_34] : memref<1x16x4xf32, #tpu.memory_space<vmem>>, vector<1x16x4xf32>
    %66 = vector.shape_cast %65 : vector<1x16x4xf32> to vector<16x4xf32>
    %67 = vector.shape_cast %64 : vector<16x4xf32> to vector<1x16x4xf32>
    tpu.vector_store %arg9[%c0_32, %c0_33, %c0_34], %67 {strides = array<i32>} : memref<1x16x4xf32, #tpu.memory_space<vmem>>, vector<1x16x4xf32>,
    %c0_i32_35 = arith.constant 0 : i32
    %68 = arith.cmpi eq, %arg0, %c0_i32_35 : i32
    %69 = arith.extui %68 : i1 to i32
    %c0_i32_36 = arith.constant 0 : i32
    %70 = arith.cmpi ne, %69, %c0_i32_36 : i32
    scf.if %70 {
      %cst_47 = arith.constant 0.000000e+00 : f32
      %82 = vector.broadcast %cst_47 : f32 to vector<16x1xf32>
      %c0_48 = arith.constant 0 : index
      %c0_49 = arith.constant 0 : index
      %83 = vector.load %arg10[%c0_48, %c0_49] : memref<16x1xf32, #tpu.memory_space<vmem>>, vector<16x1xf32>
      tpu.vector_store %arg10[%c0_48, %c0_49], %82 {strides = array<i32>} : memref<16x1xf32, #tpu.memory_space<vmem>>, vector<16x1xf32>,
      %cst_50 = arith.constant 0.000000e+00 : f32
      %84 = vector.broadcast %cst_50 : f32 to vector<16x1xf32>
      %c0_51 = arith.constant 0 : index
      %c0_52 = arith.constant 0 : index
      %85 = vector.load %arg11[%c0_51, %c0_52] : memref<16x1xf32, #tpu.memory_space<vmem>>, vector<16x1xf32>
      tpu.vector_store %arg11[%c0_51, %c0_52], %84 {strides = array<i32>} : memref<16x1xf32, #tpu.memory_space<vmem>>, vector<16x1xf32>,
    } else {
    }
    %c0_37 = arith.constant 0 : index
    %c0_38 = arith.constant 0 : index
    %71 = vector.load %arg10[%c0_37, %c0_38] : memref<16x1xf32, #tpu.memory_space<vmem>>, vector<16x1xf32>
    %cst_39 = arith.constant dense<0.000000e+00> : vector<16xf32>
    %72 = vector.multi_reduction <add>, %64, %cst_39 [1] : vector<16x4xf32> to vector<16xf32>
    %73 = vector.shape_cast %72 : vector<16xf32> to vector<16x1xf32>
    %74 = arith.addf %71, %73 : vector<16x1xf32>
    %c0_40 = arith.constant 0 : index
    %c0_41 = arith.constant 0 : index
    %75 = vector.load %arg10[%c0_40, %c0_41] : memref<16x1xf32, #tpu.memory_space<vmem>>, vector<16x1xf32>
    tpu.vector_store %arg10[%c0_40, %c0_41], %74 {strides = array<i32>} : memref<16x1xf32, #tpu.memory_space<vmem>>, vector<16x1xf32>,
    %c0_42 = arith.constant 0 : index
    %c0_43 = arith.constant 0 : index
    %76 = vector.load %arg11[%c0_42, %c0_43] : memref<16x1xf32, #tpu.memory_space<vmem>>, vector<16x1xf32>
    %77 = arith.mulf %64, %64 : vector<16x4xf32>
    %cst_44 = arith.constant dense<0.000000e+00> : vector<16xf32>
    %78 = vector.multi_reduction <add>, %77, %cst_44 [1] : vector<16x4xf32> to vector<16xf32>
    %79 = vector.shape_cast %78 : vector<16xf32> to vector<16x1xf32>
    %80 = arith.addf %76, %79 : vector<16x1xf32>
    %c0_45 = arith.constant 0 : index
    %c0_46 = arith.constant 0 : index
    %81 = vector.load %arg11[%c0_45, %c0_46] : memref<16x1xf32, #tpu.memory_space<vmem>>, vector<16x1xf32>
    tpu.vector_store %arg11[%c0_45, %c0_46], %80 {strides = array<i32>} : memref<16x1xf32, #tpu.memory_space<vmem>>, vector<16x1xf32>,
    return
  }
  func.func @transform_0(%arg0: i32, %arg1: i32) -> (i32, i32, i32, i32) {
    %c0_i32 = arith.constant 0 : i32
    %c0_i32_0 = arith.constant 0 : i32
    %c0_i32_1 = arith.constant 0 : i32
    %c0_i32_2 = arith.constant 0 : i32
    return %arg0, %c0_i32, %c0_i32_0, %c0_i32_1 : i32, i32, i32, i32
  }
  func.func @transform_1(%arg0: i32, %arg1: i32) -> (i32, i32, i32) {
    %c0_i32 = arith.constant 0 : i32
    %c0_i32_0 = arith.constant 0 : i32
    %c0_i32_1 = arith.constant 0 : i32
    %c0_i32_2 = arith.constant 0 : i32
    return %c0_i32, %c0_i32_0, %c0_i32_1 : i32, i32, i32
  }
  func.func @transform_2(%arg0: i32, %arg1: i32) -> (i32, i32) {
    %c0_i32 = arith.constant 0 : i32
    %c0_i32_0 = arith.constant 0 : i32
    %c0_i32_1 = arith.constant 0 : i32
    return %c0_i32, %c0_i32_0 : i32, i32
  }
  func.func @transform_3(%arg0: i32, %arg1: i32) -> (i32, i32) {
    %c0_i32 = arith.constant 0 : i32
    %c0_i32_0 = arith.constant 0 : i32
    %c0_i32_1 = arith.constant 0 : i32
    return %c0_i32, %c0_i32_0 : i32, i32
  }
  func.func @transform_4(%arg0: i32, %arg1: i32) -> (i32, i32) {
    %c0_i32 = arith.constant 0 : i32
    %c0_i32_0 = arith.constant 0 : i32
    %c0_i32_1 = arith.constant 0 : i32
    return %c0_i32, %c0_i32_0 : i32, i32
  }
  func.func @transform_5(%arg0: i32, %arg1: i32) -> (i32, i32) {
    %c0_i32 = arith.constant 0 : i32
    %c0_i32_0 = arith.constant 0 : i32
    %c0_i32_1 = arith.constant 0 : i32
    return %c0_i32, %c0_i32_0 : i32, i32
  }
  func.func @transform_6(%arg0: i32, %arg1: i32) -> (i32, i32) {
    %c0_i32 = arith.constant 0 : i32
    %c0_i32_0 = arith.constant 0 : i32
    %c0_i32_1 = arith.constant 0 : i32
    return %c0_i32, %c0_i32_0 : i32, i32
  }
  func.func @transform_7(%arg0: i32, %arg1: i32) -> (i32, i32, i32) {
    %c0_i32 = arith.constant 0 : i32
    %c0_i32_0 = arith.constant 0 : i32
    return %arg0, %c0_i32, %arg1 : i32, i32, i32
  }
  func.func @transform_8(%arg0: i32, %arg1: i32) -> (i32, i32) {
    %c0_i32 = arith.constant 0 : i32
    %c0_i32_0 = arith.constant 0 : i32
    %c0_i32_1 = arith.constant 0 : i32
    return %c0_i32, %c0_i32_0 : i32, i32
  }
  func.func @transform_9(%arg0: i32, %arg1: i32) -> (i32, i32) {
    %c0_i32 = arith.constant 0 : i32
    %c0_i32_0 = arith.constant 0 : i32
    %c0_i32_1 = arith.constant 0 : i32
    return %c0_i32, %c0_i32_0 : i32, i32
  }
}

module attributes {stable_mosaic.version = 11 : i64} {
  func.func @kernel(%arg0: i32, %arg1: i32, %arg2: memref<1x1x16x6xf32, #tpu.memory_space<vmem>>, %arg3: memref<3x16x16xbf16, #tpu.memory_space<vmem>>, %arg4: memref<16x1xf32, #tpu.memory_space<vmem>>, %arg5: memref<1x16x4xf32, #tpu.memory_space<vmem>>) attributes {dimension_semantics = [#tpu.dimension_semantics<parallel>, #tpu.dimension_semantics<parallel>], iteration_bounds = array<i64: 2, 1>, scalar_prefetch = 0 : i64, scratch_operands = 0 : i64, tpu.core_type = #tpu.core_type<tc>, window_params = [{transform_indices = @transform_0, window_bounds = array<i64: 1, 1, 16, 6>}, {pipeline_mode = #tpu.pipeline_mode<synchronous>, transform_indices = @transform_1, window_bounds = array<i64: 3, 16, 16>}, {pipeline_mode = #tpu.pipeline_mode<synchronous>, transform_indices = @transform_2, window_bounds = array<i64: 16, 1>}, {transform_indices = @transform_3, window_bounds = array<i64: 1, 16, 4>}]} {
    %c0 = arith.constant 0 : index
    %c0_0 = arith.constant 0 : index
    %c0_1 = arith.constant 0 : index
    %c0_2 = arith.constant 0 : index
    %0 = vector.load %arg2[%c0, %c0_0, %c0_1, %c0_2] : memref<1x1x16x6xf32, #tpu.memory_space<vmem>>, vector<1x1x16x6xf32>
    %1 = vector.shape_cast %0 : vector<1x1x16x6xf32> to vector<16x6xf32>
    %2 = arith.truncf %1 : vector<16x6xf32> to vector<16x6xbf16>
    %cst = arith.constant 0.000000e+00 : f32
    %3 = vector.broadcast %cst : f32 to vector<16x4xf32>
    %4 = vector.extract_strided_slice %2 {offsets = [0, 0], sizes = [16, 4], strides = [1, 1]} : vector<16x6xbf16> to vector<16x4xbf16>
    %c0_3 = arith.constant 0 : index
    %c0_4 = arith.constant 0 : index
    %c0_5 = arith.constant 0 : index
    %5 = vector.load %arg3[%c0_3, %c0_4, %c0_5] : memref<3x16x16xbf16, #tpu.memory_space<vmem>>, vector<1x16x16xbf16>
    %6 = vector.shape_cast %5 : vector<1x16x16xbf16> to vector<16x16xbf16>
    %cst_6 = arith.constant dense<0.000000e+00> : vector<16x4xf32>
    %7 = tpu.matmul %6, %4, %cst_6 {dimension_numbers = #tpu.dot_dimension_numbers<[1], [0], [0], [1], [0, 0, 1, 1], [], []>} : vector<16x16xbf16>, vector<16x4xbf16>, vector<16x4xf32> -> vector<16x4xf32>
    %8 = arith.addf %3, %7 : vector<16x4xf32>
    %9 = vector.extract_strided_slice %2 {offsets = [0, 1], sizes = [16, 4], strides = [1, 1]} : vector<16x6xbf16> to vector<16x4xbf16>
    %c1 = arith.constant 1 : index
    %c0_7 = arith.constant 0 : index
    %c0_8 = arith.constant 0 : index
    %10 = vector.load %arg3[%c1, %c0_7, %c0_8] : memref<3x16x16xbf16, #tpu.memory_space<vmem>>, vector<1x16x16xbf16>
    %11 = vector.shape_cast %10 : vector<1x16x16xbf16> to vector<16x16xbf16>
    %cst_9 = arith.constant dense<0.000000e+00> : vector<16x4xf32>
    %12 = tpu.matmul %11, %9, %cst_9 {dimension_numbers = #tpu.dot_dimension_numbers<[1], [0], [0], [1], [0, 0, 1, 1], [], []>} : vector<16x16xbf16>, vector<16x4xbf16>, vector<16x4xf32> -> vector<16x4xf32>
    %13 = arith.addf %8, %12 : vector<16x4xf32>
    %14 = vector.extract_strided_slice %2 {offsets = [0, 2], sizes = [16, 4], strides = [1, 1]} : vector<16x6xbf16> to vector<16x4xbf16>
    %c2 = arith.constant 2 : index
    %c0_10 = arith.constant 0 : index
    %c0_11 = arith.constant 0 : index
    %15 = vector.load %arg3[%c2, %c0_10, %c0_11] : memref<3x16x16xbf16, #tpu.memory_space<vmem>>, vector<1x16x16xbf16>
    %16 = vector.shape_cast %15 : vector<1x16x16xbf16> to vector<16x16xbf16>
    %cst_12 = arith.constant dense<0.000000e+00> : vector<16x4xf32>
    %17 = tpu.matmul %16, %14, %cst_12 {dimension_numbers = #tpu.dot_dimension_numbers<[1], [0], [0], [1], [0, 0, 1, 1], [], []>} : vector<16x16xbf16>, vector<16x4xbf16>, vector<16x4xf32> -> vector<16x4xf32>
    %18 = arith.addf %13, %17 : vector<16x4xf32>
    %c0_13 = arith.constant 0 : index
    %c0_14 = arith.constant 0 : index
    %19 = vector.load %arg4[%c0_13, %c0_14] : memref<16x1xf32, #tpu.memory_space<vmem>>, vector<16x1xf32>
    %20 = vector.broadcast %19 : vector<16x1xf32> to vector<16x4xf32>
    %21 = arith.addf %18, %20 : vector<16x4xf32>
    %c0_15 = arith.constant 0 : index
    %c0_16 = arith.constant 0 : index
    %c0_17 = arith.constant 0 : index
    %22 = vector.load %arg5[%c0_15, %c0_16, %c0_17] : memref<1x16x4xf32, #tpu.memory_space<vmem>>, vector<1x16x4xf32>
    %23 = vector.shape_cast %22 : vector<1x16x4xf32> to vector<16x4xf32>
    %24 = vector.shape_cast %21 : vector<16x4xf32> to vector<1x16x4xf32>
    tpu.vector_store %arg5[%c0_15, %c0_16, %c0_17], %24 {strides = array<i32>} : memref<1x16x4xf32, #tpu.memory_space<vmem>>, vector<1x16x4xf32>,
    return
  }
  func.func @transform_0(%arg0: i32, %arg1: i32) -> (i32, i32, i32, i32) {
    %c0_i32 = arith.constant 0 : i32
    %c0_i32_0 = arith.constant 0 : i32
    %c0_i32_1 = arith.constant 0 : i32
    %c0_i32_2 = arith.constant 0 : i32
    return %arg0, %c0_i32, %c0_i32_0, %c0_i32_1 : i32, i32, i32, i32
  }
  func.func @transform_1(%arg0: i32, %arg1: i32) -> (i32, i32, i32) {
    %c0_i32 = arith.constant 0 : i32
    %c0_i32_0 = arith.constant 0 : i32
    %c0_i32_1 = arith.constant 0 : i32
    %c0_i32_2 = arith.constant 0 : i32
    return %c0_i32, %c0_i32_0, %c0_i32_1 : i32, i32, i32
  }
  func.func @transform_2(%arg0: i32, %arg1: i32) -> (i32, i32) {
    %c0_i32 = arith.constant 0 : i32
    %c0_i32_0 = arith.constant 0 : i32
    %c0_i32_1 = arith.constant 0 : i32
    return %c0_i32, %c0_i32_0 : i32, i32
  }
  func.func @transform_3(%arg0: i32, %arg1: i32) -> (i32, i32, i32) {
    %c0_i32 = arith.constant 0 : i32
    %c0_i32_0 = arith.constant 0 : i32
    return %arg0, %c0_i32, %arg1 : i32, i32, i32
  }
}

module attributes {stable_mosaic.version = 11 : i64} {
  func.func @kernel(%arg0: i32, %arg1: i32, %arg2: memref<1x1x16x6xf32, #tpu.memory_space<vmem>>, %arg3: memref<3x8x16xbf16, #tpu.memory_space<vmem>>, %arg4: memref<8x1xf32, #tpu.memory_space<vmem>>, %arg5: memref<16x1xf32, #tpu.memory_space<vmem>>, %arg6: memref<16x1xf32, #tpu.memory_space<vmem>>, %arg7: memref<16x1xf32, #tpu.memory_space<vmem>>, %arg8: memref<16x1xf32, #tpu.memory_space<vmem>>, %arg9: memref<1x8x4xf32, #tpu.memory_space<vmem>>) attributes {dimension_semantics = [#tpu.dimension_semantics<parallel>, #tpu.dimension_semantics<parallel>], iteration_bounds = array<i64: 2, 1>, scalar_prefetch = 0 : i64, scratch_operands = 0 : i64, tpu.core_type = #tpu.core_type<tc>, window_params = [{transform_indices = @transform_0, window_bounds = array<i64: 1, 1, 16, 6>}, {pipeline_mode = #tpu.pipeline_mode<synchronous>, transform_indices = @transform_1, window_bounds = array<i64: 3, 8, 16>}, {pipeline_mode = #tpu.pipeline_mode<synchronous>, transform_indices = @transform_2, window_bounds = array<i64: 8, 1>}, {pipeline_mode = #tpu.pipeline_mode<synchronous>, transform_indices = @transform_3, window_bounds = array<i64: 16, 1>}, {pipeline_mode = #tpu.pipeline_mode<synchronous>, transform_indices = @transform_4, window_bounds = array<i64: 16, 1>}, {pipeline_mode = #tpu.pipeline_mode<synchronous>, transform_indices = @transform_5, window_bounds = array<i64: 16, 1>}, {pipeline_mode = #tpu.pipeline_mode<synchronous>, transform_indices = @transform_6, window_bounds = array<i64: 16, 1>}, {transform_indices = @transform_7, window_bounds = array<i64: 1, 8, 4>}]} {
    %c0 = arith.constant 0 : index
    %c0_0 = arith.constant 0 : index
    %0 = vector.load %arg5[%c0, %c0_0] : memref<16x1xf32, #tpu.memory_space<vmem>>, vector<16x1xf32>
    %cst = arith.constant 1.250000e-01 : f32
    %1 = vector.broadcast %cst : f32 to vector<16x1xf32>
    %2 = arith.mulf %0, %1 : vector<16x1xf32>
    %c0_1 = arith.constant 0 : index
    %c0_2 = arith.constant 0 : index
    %3 = vector.load %arg6[%c0_1, %c0_2] : memref<16x1xf32, #tpu.memory_space<vmem>>, vector<16x1xf32>
    %cst_3 = arith.constant 1.250000e-01 : f32
    %4 = vector.broadcast %cst_3 : f32 to vector<16x1xf32>
    %5 = arith.mulf %3, %4 : vector<16x1xf32>
    %6 = arith.mulf %2, %2 : vector<16x1xf32>
    %7 = arith.subf %5, %6 : vector<16x1xf32>
    %cst_4 = arith.constant 0.000000e+00 : f32
    %8 = vector.broadcast %cst_4 : f32 to vector<16x1xf32>
    %9 = arith.maximumf %7, %8 : vector<16x1xf32>
    %c0_5 = arith.constant 0 : index
    %c0_6 = arith.constant 0 : index
    %10 = vector.load %arg7[%c0_5, %c0_6] : memref<16x1xf32, #tpu.memory_space<vmem>>, vector<16x1xf32>
    %cst_7 = arith.constant 9.99999974E-6 : f32
    %11 = vector.broadcast %cst_7 : f32 to vector<16x1xf32>
    %12 = arith.addf %9, %11 : vector<16x1xf32>
    %13 = math.rsqrt %12 : vector<16x1xf32>
    %14 = arith.mulf %10, %13 : vector<16x1xf32>
    %c0_8 = arith.constant 0 : index
    %c0_9 = arith.constant 0 : index
    %15 = vector.load %arg8[%c0_8, %c0_9] : memref<16x1xf32, #tpu.memory_space<vmem>>, vector<16x1xf32>
    %16 = arith.mulf %2, %14 : vector<16x1xf32>
    %17 = arith.subf %15, %16 : vector<16x1xf32>
    %c0_10 = arith.constant 0 : index
    %c0_11 = arith.constant 0 : index
    %c0_12 = arith.constant 0 : index
    %c0_13 = arith.constant 0 : index
    %18 = vector.load %arg2[%c0_10, %c0_11, %c0_12, %c0_13] : memref<1x1x16x6xf32, #tpu.memory_space<vmem>>, vector<1x1x16x6xf32>
    %19 = vector.shape_cast %18 : vector<1x1x16x6xf32> to vector<16x6xf32>
    %20 = vector.broadcast %14 : vector<16x1xf32> to vector<16x6xf32>
    %21 = arith.mulf %19, %20 : vector<16x6xf32>
    %22 = vector.broadcast %17 : vector<16x1xf32> to vector<16x6xf32>
    %23 = arith.addf %21, %22 : vector<16x6xf32>
    %cst_14 = arith.constant 0.000000e+00 : f32
    %24 = vector.broadcast %cst_14 : f32 to vector<16x6xf32>
    %25 = arith.cmpf ogt, %23, %24 : vector<16x6xf32>
    %cst_15 = arith.constant 2.000000e-01 : f32
    %26 = vector.broadcast %cst_15 : f32 to vector<16x6xf32>
    %27 = arith.mulf %26, %23 : vector<16x6xf32>
    %28 = arith.select %25, %23, %27 : vector<16x6xi1>, vector<16x6xf32>
    %29 = tpu.iota {dimensions = array<i32: 1>} : vector<1x6xi32>
    %c0_i32 = arith.constant 0 : i32
    %30 = vector.broadcast %c0_i32 : i32 to vector<1x6xi32>
    %31 = arith.addi %30, %29 : vector<1x6xi32>
    %c1_i32 = arith.constant 1 : i32
    %32 = vector.broadcast %c1_i32 : i32 to vector<1x6xi32>
    %33 = arith.muli %31, %32 : vector<1x6xi32>
    %c0_i32_16 = arith.constant 0 : i32
    %34 = vector.broadcast %c0_i32_16 : i32 to vector<1x6xi32>
    %35 = arith.addi %33, %34 : vector<1x6xi32>
    %c1_i32_17 = arith.constant 1 : i32
    %36 = vector.broadcast %c1_i32_17 : i32 to vector<1x6xi32>
    %37 = arith.cmpi sge, %35, %36 : vector<1x6xi32>
    %c5_i32 = arith.constant 5 : i32
    %38 = vector.broadcast %c5_i32 : i32 to vector<1x6xi32>
    %39 = arith.cmpi slt, %35, %38 : vector<1x6xi32>
    %40 = arith.andi %37, %39 : vector<1x6xi1>
    %cst_18 = arith.constant 0.000000e+00 : f32
    %41 = vector.shape_cast %40 : vector<1x6xi1> to vector<1x6xi1>
    %42 = vector.broadcast %41 : vector<1x6xi1> to vector<16x6xi1>
    %43 = vector.broadcast %cst_18 : f32 to vector<16x6xf32>
    %44 = arith.select %42, %28, %43 : vector<16x6xi1>, vector<16x6xf32>
    %45 = arith.truncf %44 : vector<16x6xf32> to vector<16x6xbf16>
    %cst_19 = arith.constant 0.000000e+00 : f32
    %46 = vector.broadcast %cst_19 : f32 to vector<8x4xf32>
    %47 = vector.extract_strided_slice %45 {offsets = [0, 0], sizes = [16, 4], strides = [1, 1]} : vector<16x6xbf16> to vector<16x4xbf16>
    %c0_20 = arith.constant 0 : index
    %c0_21 = arith.constant 0 : index
    %c0_22 = arith.constant 0 : index
    %48 = vector.load %arg3[%c0_20, %c0_21, %c0_22] : memref<3x8x16xbf16, #tpu.memory_space<vmem>>, vector<1x8x16xbf16>
    %49 = vector.shape_cast %48 : vector<1x8x16xbf16> to vector<8x16xbf16>
    %cst_23 = arith.constant dense<0.000000e+00> : vector<8x4xf32>
    %50 = tpu.matmul %49, %47, %cst_23 {dimension_numbers = #tpu.dot_dimension_numbers<[1], [0], [0], [1], [0, 0, 1, 1], [], []>} : vector<8x16xbf16>, vector<16x4xbf16>, vector<8x4xf32> -> vector<8x4xf32>
    %51 = arith.addf %46, %50 : vector<8x4xf32>
    %52 = vector.extract_strided_slice %45 {offsets = [0, 1], sizes = [16, 4], strides = [1, 1]} : vector<16x6xbf16> to vector<16x4xbf16>
    %c1 = arith.constant 1 : index
    %c0_24 = arith.constant 0 : index
    %c0_25 = arith.constant 0 : index
    %53 = vector.load %arg3[%c1, %c0_24, %c0_25] : memref<3x8x16xbf16, #tpu.memory_space<vmem>>, vector<1x8x16xbf16>
    %54 = vector.shape_cast %53 : vector<1x8x16xbf16> to vector<8x16xbf16>
    %cst_26 = arith.constant dense<0.000000e+00> : vector<8x4xf32>
    %55 = tpu.matmul %54, %52, %cst_26 {dimension_numbers = #tpu.dot_dimension_numbers<[1], [0], [0], [1], [0, 0, 1, 1], [], []>} : vector<8x16xbf16>, vector<16x4xbf16>, vector<8x4xf32> -> vector<8x4xf32>
    %56 = arith.addf %51, %55 : vector<8x4xf32>
    %57 = vector.extract_strided_slice %45 {offsets = [0, 2], sizes = [16, 4], strides = [1, 1]} : vector<16x6xbf16> to vector<16x4xbf16>
    %c2 = arith.constant 2 : index
    %c0_27 = arith.constant 0 : index
    %c0_28 = arith.constant 0 : index
    %58 = vector.load %arg3[%c2, %c0_27, %c0_28] : memref<3x8x16xbf16, #tpu.memory_space<vmem>>, vector<1x8x16xbf16>
    %59 = vector.shape_cast %58 : vector<1x8x16xbf16> to vector<8x16xbf16>
    %cst_29 = arith.constant dense<0.000000e+00> : vector<8x4xf32>
    %60 = tpu.matmul %59, %57, %cst_29 {dimension_numbers = #tpu.dot_dimension_numbers<[1], [0], [0], [1], [0, 0, 1, 1], [], []>} : vector<8x16xbf16>, vector<16x4xbf16>, vector<8x4xf32> -> vector<8x4xf32>
    %61 = arith.addf %56, %60 : vector<8x4xf32>
    %c0_30 = arith.constant 0 : index
    %c0_31 = arith.constant 0 : index
    %62 = vector.load %arg4[%c0_30, %c0_31] : memref<8x1xf32, #tpu.memory_space<vmem>>, vector<8x1xf32>
    %63 = vector.broadcast %62 : vector<8x1xf32> to vector<8x4xf32>
    %64 = arith.addf %61, %63 : vector<8x4xf32>
    %c0_32 = arith.constant 0 : index
    %c0_33 = arith.constant 0 : index
    %c0_34 = arith.constant 0 : index
    %65 = vector.load %arg9[%c0_32, %c0_33, %c0_34] : memref<1x8x4xf32, #tpu.memory_space<vmem>>, vector<1x8x4xf32>
    %66 = vector.shape_cast %65 : vector<1x8x4xf32> to vector<8x4xf32>
    %67 = vector.shape_cast %64 : vector<8x4xf32> to vector<1x8x4xf32>
    tpu.vector_store %arg9[%c0_32, %c0_33, %c0_34], %67 {strides = array<i32>} : memref<1x8x4xf32, #tpu.memory_space<vmem>>, vector<1x8x4xf32>,
    return
  }
  func.func @transform_0(%arg0: i32, %arg1: i32) -> (i32, i32, i32, i32) {
    %c0_i32 = arith.constant 0 : i32
    %c0_i32_0 = arith.constant 0 : i32
    %c0_i32_1 = arith.constant 0 : i32
    %c0_i32_2 = arith.constant 0 : i32
    return %arg0, %c0_i32, %c0_i32_0, %c0_i32_1 : i32, i32, i32, i32
  }
  func.func @transform_1(%arg0: i32, %arg1: i32) -> (i32, i32, i32) {
    %c0_i32 = arith.constant 0 : i32
    %c0_i32_0 = arith.constant 0 : i32
    %c0_i32_1 = arith.constant 0 : i32
    %c0_i32_2 = arith.constant 0 : i32
    return %c0_i32, %c0_i32_0, %c0_i32_1 : i32, i32, i32
  }
  func.func @transform_2(%arg0: i32, %arg1: i32) -> (i32, i32) {
    %c0_i32 = arith.constant 0 : i32
    %c0_i32_0 = arith.constant 0 : i32
    %c0_i32_1 = arith.constant 0 : i32
    return %c0_i32, %c0_i32_0 : i32, i32
  }
  func.func @transform_3(%arg0: i32, %arg1: i32) -> (i32, i32) {
    %c0_i32 = arith.constant 0 : i32
    %c0_i32_0 = arith.constant 0 : i32
    %c0_i32_1 = arith.constant 0 : i32
    return %c0_i32, %c0_i32_0 : i32, i32
  }
  func.func @transform_4(%arg0: i32, %arg1: i32) -> (i32, i32) {
    %c0_i32 = arith.constant 0 : i32
    %c0_i32_0 = arith.constant 0 : i32
    %c0_i32_1 = arith.constant 0 : i32
    return %c0_i32, %c0_i32_0 : i32, i32
  }
  func.func @transform_5(%arg0: i32, %arg1: i32) -> (i32, i32) {
    %c0_i32 = arith.constant 0 : i32
    %c0_i32_0 = arith.constant 0 : i32
    %c0_i32_1 = arith.constant 0 : i32
    return %c0_i32, %c0_i32_0 : i32, i32
  }
  func.func @transform_6(%arg0: i32, %arg1: i32) -> (i32, i32) {
    %c0_i32 = arith.constant 0 : i32
    %c0_i32_0 = arith.constant 0 : i32
    %c0_i32_1 = arith.constant 0 : i32
    return %c0_i32, %c0_i32_0 : i32, i32
  }
  func.func @transform_7(%arg0: i32, %arg1: i32) -> (i32, i32, i32) {
    %c0_i32 = arith.constant 0 : i32
    %c0_i32_0 = arith.constant 0 : i32
    return %arg0, %c0_i32, %arg1 : i32, i32, i32
  }
}

</mosaic_0001>

<bundles_post_ra>
// kernel: encoder_convd_forward.23
= control target key start
LH: loop header
LB: loop body
LE: loop exit
PB: predicated region body
PF: predicated region fallthrough
CT: control target
= control target key end

     0   :  { %s526_s18 = smov 0   ;;  %s528_s19 = smov 0   ;;  %s607_s0 = inlined_call_operand.vmem [shape: f32[2,1,4,34], index: 0, kind: input, shape index: {}]   ;;  %s608_s1 = inlined_call_operand.vmem [shape: bf16[3,8,4], index: 1, kind: input, shape index: {}]   ;;  %s609_s2 = inlined_call_operand.vmem [shape: f32[8,1], index: 2, kind: input, shape index: {}]   ;;  %s610_s3 = inlined_call_operand.vmem [shape: f32[2,8,32], index: 3, kind: output, shape index: {0}]   ;;  %s611_s4 = inlined_call_operand.vmem [shape: f32[8,1], index: 4, kind: output, shape index: {1}]   ;;  %s612_s5 = inlined_call_operand.vmem [shape: f32[8,1], index: 5, kind: output, shape index: {2}]  }
   0x1   :  { %s530_s20 = smov 0  }
   0x2 LB: > { %s28_s21 = sadd.s32 1, %s486_s19  ;;  %p427_p0 = scmp.ge.s32.totalorder %s490_s20, 1  ;;  %s490_s20 = sphi %s530_s20, %s16_s20   ;;  %s486_s19 = sphi %s528_s19, %s614_s19   ;;  %s482_s18 = sphi %s526_s18, %s613_s18  }
   0x3   : > { %p30_p1 = scmp.ge.s32.totalorder %s28_s21, 2  ;;  %p195_p2 = scmp.lt.s32.totalorder %s490_s20, 3 }
   0x5   : > { %s616_s21 = smov (%p30_p1, %s28_s21), 0  ;;  %p196_p3 = pnand %p427_p0, %p195_p2 }
   0x6   : > { %p224_p4 = scmp.lt.s32.totalorder (!%p196_p3), %s482_s18, 1  ;;  %s492_s27 = smov (!%p196_p3), 126  }
   0x7   : > { %199 = sbr.rel (%p196_p3) target bundleno = 415 (0x19f), region = 32  ;;  %s493_s28 = smov (!%p196_p3), 127  }
   0x8   : > { %p435_p5 = scmp.ne.s32.totalorder (!%p196_p3), %s482_s18, 0 }
   0xc   : > { %s548_s22 = scalar_select %p224_p4, %s482_s18, 1  ;;  %vm250_vm0 = vcmask 1041408   ;;  %v238_v5 = vld [vmem:[%s608_s1] sm:$0xf]  ;;  %vm246_vm1 = vcmask 31744   ;;  %v494_v7 = vmov 0  }
   0xd   : > { %v310_v6 = vld [vmem:[%s609_s2] sm:$0xff]  ;;  %466 = vset.pattern.permute.xlu1 %v494_v7  ;;  %467 = vset.pattern.permute.xlu0 %v494_v7  ;;  %v433_v10 = vld [vmem:[%s608_s1 + $0x8] sm:$0xf]  ;;  %vm317_vm2 = vcmask 261120  }
   0xe   : > { %s428_s23 = sshll.u32 %s548_s22, 2  ;;  %313 = vperm.xlu1 %466, %v310_v6   ;;  %v430_v13 = vld [vmem:[%s608_s1 + $0x4] sm:$0xf]  ;;  %s429_s12 = sshll.u32 %s548_s22, 3 }
   0xf   : > { %s227_s26 = scalar_lea.vmem %s607_s0, %s428_s23  ;;  %s234_s15 = scalar_lea.vmem %s610_s3, %s429_s12 }
  0x10   : > { %v236_v0 = vld [vmem:[%s227_s26] sm:$0xf] }
  0x11   : > { %v237_v1 = vpack.c.bf16 %v236_v0, %v236_v0 }
  0x13   : > { %v242_v2 = vunpack.c.l.b16 %v237_v1  ;;  %v271_v4 = vsel %vm250_vm0, %v237_v1, 0 }
  0x14   : > { %280 = vmatpush.bf16.msra.mxu1 %v271_v4 }
  0x15   : > { %v243_v3 = vpack.c.b16 %v242_v2, %v242_v2 }
  0x17   : > { %288 = vrot.lane.b32.xlu0 %v243_v3, %s492_s27  ;;  %432 = vmatmul.msk.bf16.vlgmr.msra.gmra.mxu1 %vm246_vm1, %v238_v5 }
  0x1f   : > { %244 = vrot.lane.b32.xlu0 %v243_v3, %s493_s28 }
  0x80   : > { %v314_v19 = vpop.permute.xlu1 %313 }
  0x89   : > { %v289_v8 = vpop.permute.xlu0 %288 }
  0x8a   : > { %v294_v9 = vsel %vm250_vm0, %v289_v8, 0 }
  0x8b   : > { %303 = vmatpush.bf16.msra.mxu2 %v294_v9 }
  0x8e   : > { %434 = vmatmul.msk.bf16.vlgmr.msra.gmra.mxu2 %vm246_vm1, %v433_v10 }
  0x91   : > { %v245_v11 = vpop.permute.xlu0 %244 }
  0x92   : > { %v252_v12 = vsel %vm250_vm0, %v245_v11, 0 }
  0x93   : > { %261 = vmatpush.bf16.msra.mxu0 %v252_v12 }
  0x94   : > { %v282_v14 = vpop.f32.mrf.mxu1 }
  0x96   : > { %431 = vmatmul.msk.bf16.vlgmr.msra.gmra.mxu0 %vm246_vm1, %v430_v13 }
  0x9c   : > { %v284_v15 = vpop.f32.mrf.mxu1 }
 0x111   : > { %v305_v16 = vpop.f32.mrf.mxu2 }
 0x113   : > { %v263_v17 = vpop.f32.mrf.mxu0 }
 0x114   : > { %v283_v18 = vadd.f32 %v282_v14, %v263_v17 }
 0x116   : > { %v309_v20 = vadd.f32 %v305_v16, %v283_v18 }
 0x117   : > { %322 = sbr.rel (%p435_p5) target bundleno = 287 (0x11f), region = 36 }
 0x118   : > { %v316_v21 = vadd.f32 %v314_v19, %v309_v20 }
 0x119   : > { %v307_v22 = vpop.f32.mrf.mxu2 }
 0x11a   : > { %318 = vst.msk [vmem:[%s234_s15] sm:$0xff] %vm317_vm2, %v316_v21 }
 0x11b   : > { %v265_v23 = vpop.f32.mrf.mxu0 }
 0x11c   : > { %vm323_vm3 = vcmask 7168   ;;  %v495_v24 = vmov 0.0  }
 0x11d   : > { %324 = vst.msk [vmem:[%s611_s4] sm:$0xff] %vm323_vm3, %v495_v24 }
 0x11e   : > { %325 = vst.msk [vmem:[%s612_s5] sm:$0xff] %vm323_vm3, %v495_v24 }
 0x11f PF: > { %v327_v25 = vsel %vm317_vm2, %v316_v21, 0.0  ;;  %v334_v26 = vmul.f32 %v316_v21, %v316_v21  ;;  %vm331_vm4 = vcmask 7168  }
 0x120   : > { %328 = vadd.xlane.f32.xlu0 %v327_v25 }
 0x121   : > { %v335_v27 = vsel %vm317_vm2, %v334_v26, 0.0 }
 0x124   : > { %v326_v28 = vld [vmem:[%s611_s4] sm:$0xff] }
 0x125   : > { %v333_v31 = vld [vmem:[%s612_s5] sm:$0xff] }
 0x128   : > { %336 = vadd.xlane.f32.xlu0 %v335_v27 }
 0x193   : > { %v329_v29 = vpop.xlane.xlu0 %328 }
 0x194   : > { %v330_v30 = vadd.f32 %v329_v29, %v326_v28 }
 0x196   : > { %332 = vst.msk [vmem:[%s611_s4] sm:$0xff] %vm331_vm4, %v330_v30 }
 0x19b   : > { %v337_v32 = vpop.xlane.xlu0 %336 }
 0x19c   : > { %v338_v33 = vadd.f32 %v337_v32, %v333_v31 }
 0x19e   : > { %339 = vst.msk [vmem:[%s612_s5] sm:$0xff] %vm331_vm4, %v338_v33 }
 0x19f PF: > { %s16_s20 = sadd.s32 1, %s490_s20   ;;  %s613_s18 = smov %s486_s19 }
 0x1a0   : > { %p13_p6 = scmp.ge.s32.totalorder %s16_s20, 4   ;;  %s614_s19 = smov %s616_s21 }
 0x1a2   :  { %15 = sbr.rel (!%p13_p6) target bundleno = 2 (0x2), region = 84 }

// kernel: encoder_convd_forward.25
= control target key start
LH: loop header
LB: loop body
LE: loop exit
PB: predicated region body
PF: predicated region fallthrough
CT: control target
= control target key end

     0   :  { %s435_s12 = smov 0   ;;  %s437_s13 = smov 0   ;;  %s487_s0 = inlined_call_operand.vmem [shape: f32[2,2,8,17], index: 0, kind: input, shape index: {}]   ;;  %s488_s1 = inlined_call_operand.vmem [shape: bf16[3,8,8], index: 1, kind: input, shape index: {}]   ;;  %s489_s2 = inlined_call_operand.vmem [shape: f32[8,1], index: 2, kind: input, shape index: {}]   ;;  %s490_s3 = inlined_call_operand.vmem [shape: f32[2,8,16], index: 3, kind: output, shape index: {}]  }
   0x1   :  { %s439_s14 = smov 0  }
   0x2 LB: > { %s25_s15 = sadd.s32 1, %s407_s13  ;;  %p349_p0 = scmp.ge.s32.totalorder %s411_s14, 1  ;;  %s411_s14 = sphi %s439_s14, %s13_s14   ;;  %s407_s13 = sphi %s437_s13, %s492_s13   ;;  %s403_s12 = sphi %s435_s12, %s491_s12  }
   0x3   : > { %p27_p1 = scmp.ge.s32.totalorder %s25_s15, 2  ;;  %p151_p2 = scmp.lt.s32.totalorder %s411_s14, 3 }
   0x5   : > { %s494_s15 = smov (%p27_p1, %s25_s15), 0  ;;  %p152_p3 = pnand %p349_p0, %p151_p2 }
   0x6   : > { %p177_p4 = scmp.lt.s32.totalorder (!%p152_p3), %s403_s12, 1  ;;  %s413_s20 = smov (!%p152_p3), 127  }
   0x7   : > { %155 = sbr.rel (%p152_p3) target bundleno = 281 (0x119), region = 32 }
   0xc   : > { %s496_s12 = smov (!%p177_p4, %s403_s12), 1  ;;  %vm202_vm0 = vcmask 1043456   ;;  %v354_v8 = vld [vmem:[%s488_s1 + $0x4] sm:$0xf]  ;;  %vm198_vm1 = vcmask 64512   ;;  %v414_v11 = vmov 0  }
   0xd   : > { %s361_s16 = sshll.u32 %s496_s12, 4  ;;  %v195_v9 = vld [vmem:[%s488_s1] sm:$0xf]  ;;  %388 = vset.pattern.permute.xlu0 %v414_v11  ;;  %v357_v14 = vld [vmem:[%s488_s1 + $0x8] sm:$0xf]  ;;  %s352_s29 = sshll.u32 %s496_s12, 3 }
   0xe   : > { %s181_s19 = scalar_lea.vmem %s487_s0, %s361_s16  ;;  %v265_v10 = vld [vmem:[%s489_s2] sm:$0xff]  ;;  %s188_s5 = scalar_lea.vmem %s490_s3, %s352_s29  ;;  %vm272_vm2 = vcmask 130048  }
   0xf   : > { %v190_v0 = vld [vmem:[%s181_s19] sm:$0xff]  ;;  %v353_v1 = vld [vmem:[%s181_s19 + $0x8] sm:$0xff] }
  0x10   : > { %v191_v2 = vpack.c.bf16 %v190_v0, %v190_v0  ;;  %v194_v3 = vpack.c.bf16 %v353_v1, %v353_v1 }
  0x12   : > { %v241_v4 = vunpack.c.l.b16 %v191_v2  ;;  %v204_v5 = vsel %vm202_vm0, %v194_v3, 0  ;;  %v223_v7 = vsel %vm202_vm0, %v191_v2, 0 }
  0x13   : > { %213 = vmatpush.bf16.msra.mxu0 %v204_v5  ;;  %232 = vmatpush.bf16.msra.mxu1 %v223_v7 }
  0x14   : > { %v242_v6 = vpack.c.b16 %v241_v4, %v241_v4 }
  0x16   : > { %243 = vrot.lane.b32.xlu0 %v242_v6, %s413_s20  ;;  %355 = vmatmul.msk.bf16.vlgmr.msra.gmra.mxu0 %vm198_vm1, %v354_v8 }
  0x17   : > { %356 = vmatmul.msk.bf16.vlgmr.msra.gmra.mxu1 %vm198_vm1, %v195_v9 }
  0x1e   : > { %268 = vperm.xlu0 %388, %v265_v10  }
  0x88   : > { %v244_v12 = vpop.permute.xlu0 %243 }
  0x89   : > { %v249_v13 = vsel %vm202_vm0, %v244_v12, 0 }
  0x8a   : > { %258 = vmatpush.bf16.msra.mxu2 %v249_v13 }
  0x8d   : > { %358 = vmatmul.msk.bf16.vlgmr.msra.gmra.mxu2 %vm198_vm1, %v357_v14 }
  0x90   : > { %v269_v21 = vpop.permute.xlu0 %268 }
  0x93   : > { %v215_v15 = vpop.f32.mrf.mxu0 }
  0x94   : > { %v234_v16 = vpop.f32.mrf.mxu1 }
  0x95   : > { %v235_v19 = vadd.f32 %v234_v16, %v215_v15 }
  0x9b   : > { %v217_v17 = vpop.f32.mrf.mxu0 }
  0x9c   : > { %v236_v18 = vpop.f32.mrf.mxu1 }
 0x110   : > { %v260_v20 = vpop.f32.mrf.mxu2 }
 0x111   : > { %v264_v22 = vadd.f32 %v260_v20, %v235_v19 }
 0x113   : > { %v271_v23 = vadd.f32 %v269_v21, %v264_v22 }
 0x115   : > { %273 = vst.msk [vmem:[%s188_s5] sm:$0xff] %vm272_vm2, %v271_v23 }
 0x118   : > { %v262_v24 = vpop.f32.mrf.mxu2 }
 0x119 PF: > { %s13_s14 = sadd.s32 1, %s411_s14   ;;  %s491_s12 = smov %s407_s13 }
 0x11a   : > { %p10_p5 = scmp.ge.s32.totalorder %s13_s14, 4   ;;  %s492_s13 = smov %s494_s15 }
 0x11c   :  { %12 = sbr.rel (!%p10_p5) target bundleno = 2 (0x2), region = 65 }

// kernel: encoder_convd_forward.24
= control target key start
LH: loop header
LB: loop body
LE: loop exit
PB: predicated region body
PF: predicated region fallthrough
CT: control target
= control target key end

     0   :  { %s720_s30 = smov 0   ;;  %s722_s10 = smov 0   ;;  %s807_s0 = inlined_call_operand.vmem [shape: f32[2,2,8,17], index: 0, kind: input, shape index: {}]   ;;  %s808_s1 = inlined_call_operand.vmem [shape: bf16[3,8,8], index: 1, kind: input, shape index: {}]   ;;  %s809_s2 = inlined_call_operand.vmem [shape: f32[8,1], index: 2, kind: input, shape index: {}]   ;;  %s810_s3 = inlined_call_operand.vmem [shape: f32[8,1], index: 3, kind: input, shape index: {}]   ;;  %s811_s4 = inlined_call_operand.vmem [shape: f32[8,1], index: 4, kind: input, shape index: {}]   ;;  %s812_s5 = inlined_call_operand.vmem [shape: f32[8,1], index: 5, kind: input, shape index: {}]   ;;  %s813_s6 = inlined_call_operand.vmem [shape: f32[8,1], index: 6, kind: input, shape index: {}]   ;;  %s814_s7 = inlined_call_operand.vmem [shape: f32[2,8,16], index: 7, kind: output, shape index: {0}]   ;;  %s815_s8 = inlined_call_operand.vmem [shape: f32[8,1], index: 8, kind: output, shape index: {1}]   ;;  %s816_s9 = inlined_call_operand.vmem [shape: f32[8,1], index: 9, kind: output, shape index: {2}]  }
   0x1   :  { %s724_s11 = smov 0  }
   0x2 LB: > { %s32_s12 = sadd.s32 1, %s661_s10  ;;  %p598_p0 = scmp.ge.s32.totalorder %s665_s11, 1  ;;  %s665_s11 = sphi %s724_s11, %s20_s11   ;;  %s661_s10 = sphi %s722_s10, %s818_s10   ;;  %s657_s30 = sphi %s720_s30, %s817_s30  }
   0x3   : > { %p34_p1 = scmp.ge.s32.totalorder %s32_s12, 2  ;;  %p296_p2 = scmp.lt.s32.totalorder %s665_s11, 3 }
   0x5   : > { %s820_s12 = smov (%p34_p1, %s32_s12), 0  ;;  %p297_p3 = pnand %p598_p0, %p296_p2 }
   0x6   : > { %p334_p4 = scmp.lt.s32.totalorder (!%p297_p3), %s657_s30, 1  ;;  %s668_s26 = smov (!%p297_p3), 127  }
   0x7   : > { %300 = sbr.rel (%p297_p3) target bundleno = 568 (0x238), region = 48  ;;  %p608_p5 = scmp.ne.s32.totalorder (!%p297_p3), %s657_s30, 0 }
   0xc   : > { %v347_v0 = vld [vmem:[%s810_s3] sm:$0xff]  ;;  %v667_v2 = vmov 0   ;;  %v386_v21 = vlaneseq  ;;  %s754_s21 = scalar_select %p334_p4, %s657_s30, 1  ;;  %vm418_vm11 = vcmask 1043456   ;;  %vm414_vm12 = vcmask 64512  }
   0xd   : > { %v349_v1 = vld [vmem:[%s811_s4] sm:$0xff]  ;;  %639 = vset.pattern.permute.xlu0 %v667_v2  ;;  %v348_v3 = vmul.f32 0.015625, %v347_v0  ;;  %640 = vset.pattern.permute.xlu1 %v667_v2  ;;  %v606_v50 = vld [vmem:[%s808_s1 + $0x8] sm:$0xf]  ;;  %vm488_vm13 = vcmask 130048  }
   0xe   : > { %v350_v4 = vmul.f32 0.015625, %v349_v1  ;;  %v354_v14 = vld [vmem:[%s812_s5] sm:$0xff]  ;;  %v387_v22 = vand.u32 127, %v386_v21  ;;  %s611_s22 = sshll.u32 %s754_s21, 4  ;;  %s601_s18 = sshll.u32 %s754_s21, 3 }
   0xf   : > { %v351_v5 = vmul.f32 %v348_v3, %v348_v3  ;;  %v367_v19 = vld [vmem:[%s813_s6] sm:$0xff]  ;;  %s338_s25 = scalar_lea.vmem %s807_s0, %s611_s22  ;;  %s345_s22 = scalar_lea.vmem %s814_s7, %s601_s18 }
  0x10   : > { %v388_v23 = vmul.u32 2, %v387_v22  ;;  %v370_v26 = vld [vmem:[%s338_s25] sm:$0xff]  ;;  %v602_v27 = vld [vmem:[%s338_s25 + $0x8] sm:$0xff] }
  0x11   : > { %v352_v6 = vsub.f32 %v350_v4, %v351_v5  ;;  %v603_v45 = vld [vmem:[%s808_s1 + $0x4] sm:$0xf]  ;;  %v411_v46 = vld [vmem:[%s808_s1] sm:$0xf] }
  0x12   : > { %v403_v25 = vadd.s32 1, %v388_v23  ;;  %vm389_vm5 = vcmp.ge.s32.totalorder %v388_v23, 1  ;;  %vm390_vm6 = vcmp.lt.s32.totalorder %v388_v23, 33  ;;  %v481_v47 = vld [vmem:[%s809_s2] sm:$0xff] }
  0x13   : > { %v353_v7 = vmax.f32 %v352_v6, 0.0  ;;  %vm391_vm10 = vmand %vm389_vm5, %vm390_vm6 }
  0x14   : > { %vm404_vm3 = vcmp.ge.s32.totalorder %v403_v25, 1  ;;  %vm405_vm4 = vcmp.lt.s32.totalorder %v403_v25, 33 }
  0x15   : > { %v355_v8 = vadd.f32 1e-05, %v353_v7  ;;  %vm406_vm7 = vmand %vm404_vm3, %vm405_vm4 }
  0x17   : > { %641 = vrsqrt.f32 %v355_v8  ;;  %vm362_vm0 = vweird.f32 %v355_v8 }
  0x1d   : > { %v642_v9 = vpop.eup %641 }
  0x1e   : > { %v357_v10 = vmul.f32 %v642_v9, %v355_v8  ;;  %vm363_vm1 = vweird.f32 %v642_v9 }
  0x1f   : > { %vm364_vm2 = vmor %vm362_vm0, %vm363_vm1 }
  0x20   : > { %v358_v11 = vmul.f32 %v642_v9, %v357_v10 }
  0x22   : > { %v359_v12 = vmul.f32 0.5, %v358_v11 }
  0x24   : > { %v360_v13 = vsub.f32 1.5, %v359_v12 }
  0x26   : > { %v361_v15 = vmul.f32 %v642_v9, %v360_v13 }
  0x28   : > { %v365_v16 = vsel %vm364_vm2, %v642_v9, %v361_v15 }
  0x29   : > { %v366_v17 = vmul.f32 %v365_v16, %v354_v14 }
  0x2b   : > { %373 = vperm.xlu0 %639, %v366_v17   ;;  %v368_v18 = vmul.f32 %v366_v17, %v348_v3 }
  0x2d   : > { %v369_v20 = vsub.f32 %v367_v19, %v368_v18 }
  0x33   : > { %379 = vperm.xlu0 %639, %v369_v20  }
  0x9d   : > { %v374_v24 = vpop.permute.xlu0 %373 }
  0x9e   : > { %v376_v28 = vmul.f32 %v374_v24, %v370_v26  ;;  %v398_v29 = vmul.f32 %v602_v27, %v374_v24 }
  0xa5   : > { %v380_v30 = vpop.permute.xlu0 %379 }
  0xa6   : > { %v382_v31 = vadd.f32 %v380_v30, %v376_v28  ;;  %v399_v32 = vadd.f32 %v398_v29, %v380_v30 }
  0xa8   : > { %vm383_vm8 = vcmp.gt.f32.partialorder %v382_v31, 0.0  ;;  %v384_v33 = vmul.f32 0.2, %v382_v31  ;;  %vm400_vm9 = vcmp.gt.f32.partialorder %v399_v32, 0.0  ;;  %v401_v34 = vmul.f32 0.2, %v399_v32 }
  0xaa   : > { %v402_v35 = vsel %vm400_vm9, %v399_v32, %v401_v34  ;;  %v385_v36 = vsel %vm383_vm8, %v382_v31, %v384_v33 }
  0xab   : > { %v409_v37 = vsel %vm406_vm7, %v402_v35, 0.0  ;;  %v394_v38 = vsel %vm391_vm10, %v385_v36, 0.0 }
  0xac   : > { %v410_v39 = vpack.c.bf16 %v409_v37, %v409_v37  ;;  %v395_v40 = vpack.c.bf16 %v394_v38, %v394_v38 }
  0xae   : > { %v420_v41 = vsel %vm418_vm11, %v410_v39, 0  ;;  %v439_v42 = vsel %vm418_vm11, %v395_v40, 0  ;;  %v457_v43 = vunpack.c.l.b16 %v395_v40 }
  0xaf   : > { %429 = vmatpush.bf16.msra.mxu0 %v420_v41  ;;  %448 = vmatpush.bf16.msra.mxu1 %v439_v42 }
  0xb0   : > { %v458_v44 = vpack.c.b16 %v457_v43, %v457_v43 }
  0xb2   : > { %459 = vrot.lane.b32.xlu1 %v458_v44, %s668_s26  ;;  %604 = vmatmul.msk.bf16.vlgmr.msra.gmra.mxu0 %vm414_vm12, %v603_v45 }
  0xb3   : > { %605 = vmatmul.msk.bf16.vlgmr.msra.gmra.mxu1 %vm414_vm12, %v411_v46 }
  0xba   : > { %484 = vperm.xlu1 %640, %v481_v47  }
 0x124   : > { %v460_v48 = vpop.permute.xlu1 %459 }
 0x125   : > { %v465_v49 = vsel %vm418_vm11, %v460_v48, 0 }
 0x126   : > { %474 = vmatpush.bf16.msra.mxu2 %v465_v49 }
 0x129   : > { %607 = vmatmul.msk.bf16.vlgmr.msra.gmra.mxu2 %vm414_vm12, %v606_v50 }
 0x12c   : > { %v485_v57 = vpop.permute.xlu1 %484 }
 0x12f   : > { %v431_v51 = vpop.f32.mrf.mxu0 }
 0x130   : > { %v450_v52 = vpop.f32.mrf.mxu1 }
 0x131   : > { %v451_v55 = vadd.f32 %v450_v52, %v431_v51 }
 0x137   : > { %v433_v53 = vpop.f32.mrf.mxu0 }
 0x138   : > { %v452_v54 = vpop.f32.mrf.mxu1 }
 0x1ac   : > { %v476_v56 = vpop.f32.mrf.mxu2 }
 0x1ad   : > { %v480_v58 = vadd.f32 %v476_v56, %v451_v55 }
 0x1af   : > { %v487_v59 = vadd.f32 %v485_v57, %v480_v58 }
 0x1b0   : > { %493 = sbr.rel (%p608_p5) target bundleno = 440 (0x1b8), region = 52 }
 0x1b1   : > { %489 = vst.msk [vmem:[%s345_s22] sm:$0xff] %vm488_vm13, %v487_v59 }
 0x1b4   : > { %v478_v60 = vpop.f32.mrf.mxu2 }
 0x1b5   : > { %vm494_vm14 = vcmask 7168   ;;  %v669_v61 = vmov 0.0  }
 0x1b6   : > { %495 = vst.msk [vmem:[%s815_s8] sm:$0xff] %vm494_vm14, %v669_v61 }
 0x1b7   : > { %496 = vst.msk [vmem:[%s816_s9] sm:$0xff] %vm494_vm14, %v669_v61 }
 0x1b8 PF: > { %v498_v62 = vsel %vm488_vm13, %v487_v59, 0.0  ;;  %v505_v63 = vmul.f32 %v487_v59, %v487_v59  ;;  %vm502_vm15 = vcmask 7168  }
 0x1b9   : > { %499 = vadd.xlane.f32.xlu0 %v498_v62 }
 0x1ba   : > { %v506_v0 = vsel %vm488_vm13, %v505_v63, 0.0 }
 0x1bd   : > { %v497_v1 = vld [vmem:[%s815_s8] sm:$0xff] }
 0x1be   : > { %v504_v4 = vld [vmem:[%s816_s9] sm:$0xff] }
 0x1c1   : > { %507 = vadd.xlane.f32.xlu0 %v506_v0 }
 0x22c   : > { %v500_v2 = vpop.xlane.xlu0 %499 }
 0x22d   : > { %v501_v3 = vadd.f32 %v500_v2, %v497_v1 }
 0x22f   : > { %503 = vst.msk [vmem:[%s815_s8] sm:$0xff] %vm502_vm15, %v501_v3 }
 0x234   : > { %v508_v5 = vpop.xlane.xlu0 %507 }
 0x235   : > { %v509_v6 = vadd.f32 %v508_v5, %v504_v4 }
 0x237   : > { %510 = vst.msk [vmem:[%s816_s9] sm:$0xff] %vm502_vm15, %v509_v6 }
 0x238 PF: > { %s20_s11 = sadd.s32 1, %s665_s11   ;;  %s817_s30 = smov %s661_s10 }
 0x239   : > { %p17_p6 = scmp.ge.s32.totalorder %s20_s11, 4   ;;  %s818_s10 = smov %s820_s12 }
 0x23b   :  { %19 = sbr.rel (!%p17_p6) target bundleno = 2 (0x2), region = 101 }

// kernel: encoder_convd_forward.26
= control target key start
LH: loop header
LB: loop body
LE: loop exit
PB: predicated region body
PF: predicated region fallthrough
CT: control target
= control target key end

     0   :  { %s780_s13 = smov 0   ;;  %s782_s14 = smov 0   ;;  %s871_s0 = inlined_call_operand.vmem [shape: f32[2,1,8,18], index: 0, kind: input, shape index: {}]   ;;  %s872_s1 = inlined_call_operand.vmem [shape: bf16[3,8,8], index: 1, kind: input, shape index: {}]   ;;  %s873_s2 = inlined_call_operand.vmem [shape: f32[8,1], index: 2, kind: input, shape index: {}]   ;;  %s874_s3 = inlined_call_operand.vmem [shape: f32[8,1], index: 3, kind: input, shape index: {}]   ;;  %s875_s4 = inlined_call_operand.vmem [shape: f32[8,1], index: 4, kind: input, shape index: {}]   ;;  %s876_s5 = inlined_call_operand.vmem [shape: f32[8,1], index: 5, kind: input, shape index: {}]   ;;  %s877_s6 = inlined_call_operand.vmem [shape: f32[8,1], index: 6, kind: input, shape index: {}]   ;;  %s878_s7 = inlined_call_operand.vmem [shape: f32[2,8,16], index: 7, kind: input, shape index: {}, may-alias: {7,8}]   ;;  %s879_s8 = inlined_call_operand.vmem [shape: f32[2,8,16], index: 8, kind: output, shape index: {0}, may-alias: {7,8}]   ;;  %s880_s9 = inlined_call_operand.vmem [shape: f32[8,1], index: 9, kind: output, shape index: {1}]   ;;  %s881_s10 = inlined_call_operand.vmem [shape: f32[8,1], index: 10, kind: output, shape index: {2}]  }
   0x1   :  { %s784_s15 = smov 0  }
   0x2 LB: > { %s33_s16 = sadd.s32 1, %s715_s14  ;;  %p653_p0 = scmp.ge.s32.totalorder %s719_s15, 1  ;;  %s719_s15 = sphi %s784_s15, %s21_s15   ;;  %s715_s14 = sphi %s782_s14, %s883_s14   ;;  %s711_s13 = sphi %s780_s13, %s882_s13  }
   0x3   : > { %p35_p1 = scmp.ge.s32.totalorder %s33_s16, 2  ;;  %p334_p2 = scmp.lt.s32.totalorder %s719_s15, 3 }
   0x5   : > { %s885_s16 = smov (%p35_p1, %s33_s16), 0  ;;  %p335_p3 = pnand %p653_p0, %p334_p2 }
   0x6   : > { %p380_p4 = scmp.lt.s32.totalorder (!%p335_p3), %s711_s13, 1  ;;  %s722_s30 = smov (!%p335_p3), 126  }
   0x7   : > { %338 = sbr.rel (%p335_p3) target bundleno = 571 (0x23b), region = 52  ;;  %s723_s11 = smov (!%p335_p3), 127  }
   0x8   : > { %p662_p5 = scmp.ne.s32.totalorder (!%p335_p3), %s711_s13, 0 }
   0xc   : > { %v399_v0 = vld [vmem:[%s874_s3] sm:$0xff]  ;;  %v721_v2 = vmov 0   ;;  %s381_s25 = scalar_select %p380_p4, %s711_s13, 1  ;;  %v438_v22 = vlaneseq  ;;  %vm459_vm7 = vcmask 1043456   ;;  %vm455_vm8 = vcmask 64512  }
   0xd   : > { %v401_v1 = vld [vmem:[%s875_s4] sm:$0xff]  ;;  %693 = vset.pattern.permute.xlu0 %v721_v2  ;;  %v400_v3 = vmul.f32 0.03125, %v399_v0  ;;  %694 = vset.pattern.permute.xlu2 %v721_v2  ;;  %v660_v39 = vld [vmem:[%s872_s1 + $0x8] sm:$0xf]  ;;  %vm528_vm9 = vcmask 130048  }
   0xe   : > { %v402_v4 = vmul.f32 0.03125, %v401_v1  ;;  %v406_v14 = vld [vmem:[%s876_s5] sm:$0xff]  ;;  %s814_s26 = sshll.u32 %s381_s25, 3  ;;  %v439_v24 = vand.u32 127, %v438_v22 }
   0xf   : > { %v403_v5 = vmul.f32 %v400_v3, %v400_v3  ;;  %v419_v19 = vld [vmem:[%s877_s6] sm:$0xff]  ;;  %s383_s29 = scalar_lea.vmem %s871_s0, %s814_s26  ;;  %s390_s27 = scalar_lea.vmem %s878_s7, %s814_s26 }
  0x10   : > { %v422_v23 = vld [vmem:[%s383_s29] sm:$0xff]  ;;  %vm440_vm3 = vcmp.ge.s32.totalorder %v439_v24, 1  ;;  %vm441_vm4 = vcmp.lt.s32.totalorder %v439_v24, 17 }
  0x11   : > { %v404_v6 = vsub.f32 %v402_v4, %v403_v5  ;;  %vm442_vm6 = vmand %vm440_vm3, %vm441_vm4  ;;  %v447_v35 = vld [vmem:[%s872_s1] sm:$0xf]  ;;  %v657_v42 = vld [vmem:[%s872_s1 + $0x4] sm:$0xf] }
  0x12   : > { %v519_v36 = vld [vmem:[%s873_s2] sm:$0xff] }
  0x13   : > { %v405_v7 = vmax.f32 %v404_v6, 0.0  ;;  %522 = vperm.xlu2 %694, %v519_v36   ;;  %v526_v50 = vld [vmem:[%s390_s27] sm:$0xff] }
  0x15   : > { %v407_v8 = vadd.f32 1e-05, %v405_v7 }
  0x17   : > { %695 = vrsqrt.f32 %v407_v8  ;;  %vm414_vm0 = vweird.f32 %v407_v8 }
  0x1d   : > { %v696_v9 = vpop.eup %695 }
  0x1e   : > { %v409_v10 = vmul.f32 %v696_v9, %v407_v8  ;;  %vm415_vm1 = vweird.f32 %v696_v9 }
  0x1f   : > { %vm416_vm2 = vmor %vm414_vm0, %vm415_vm1 }
  0x20   : > { %v410_v11 = vmul.f32 %v696_v9, %v409_v10 }
  0x22   : > { %v411_v12 = vmul.f32 0.5, %v410_v11 }
  0x24   : > { %v412_v13 = vsub.f32 1.5, %v411_v12 }
  0x26   : > { %v413_v15 = vmul.f32 %v696_v9, %v412_v13 }
  0x28   : > { %v417_v16 = vsel %vm416_vm2, %v696_v9, %v413_v15 }
  0x29   : > { %v418_v17 = vmul.f32 %v417_v16, %v406_v14 }
  0x2b   : > { %425 = vperm.xlu0 %693, %v418_v17   ;;  %v420_v18 = vmul.f32 %v418_v17, %v400_v3 }
  0x2d   : > { %v421_v20 = vsub.f32 %v419_v19, %v420_v18 }
  0x33   : > { %431 = vperm.xlu0 %693, %v421_v20  }
  0x6d   : > { %v523_v48 = vpop.permute.xlu2 %522 }
  0x9d   : > { %v426_v21 = vpop.permute.xlu0 %425 }
  0x9e   : > { %v428_v25 = vmul.f32 %v426_v21, %v422_v23 }
  0xa5   : > { %v432_v26 = vpop.permute.xlu0 %431 }
  0xa6   : > { %v434_v27 = vadd.f32 %v432_v26, %v428_v25 }
  0xa8   : > { %vm435_vm5 = vcmp.gt.f32.partialorder %v434_v27, 0.0  ;;  %v436_v28 = vmul.f32 0.2, %v434_v27 }
  0xaa   : > { %v437_v29 = vsel %vm435_vm5, %v434_v27, %v436_v28 }
  0xab   : > { %v445_v30 = vsel %vm442_vm6, %v437_v29, 0.0 }
  0xac   : > { %v446_v31 = vpack.c.bf16 %v445_v30, %v445_v30 }
  0xae   : > { %v480_v32 = vsel %vm459_vm7, %v446_v31, 0  ;;  %v451_v33 = vunpack.c.l.b16 %v446_v31 }
  0xaf   : > { %489 = vmatpush.bf16.msra.mxu1 %v480_v32 }
  0xb0   : > { %v452_v34 = vpack.c.b16 %v451_v33, %v451_v33 }
  0xb2   : > { %497 = vrot.lane.b32.xlu1 %v452_v34, %s722_s30  ;;  %659 = vmatmul.msk.bf16.vlgmr.msra.gmra.mxu1 %vm455_vm8, %v447_v35  ;;  %s397_s30 = scalar_lea.vmem %s879_s8, %s814_s26 }
  0xba   : > { %453 = vrot.lane.b32.xlu1 %v452_v34, %s723_s11 }
 0x124   : > { %v498_v37 = vpop.permute.xlu1 %497 }
 0x125   : > { %v503_v38 = vsel %vm459_vm7, %v498_v37, 0 }
 0x126   : > { %512 = vmatpush.bf16.msra.mxu2 %v503_v38 }
 0x129   : > { %661 = vmatmul.msk.bf16.vlgmr.msra.gmra.mxu2 %vm455_vm8, %v660_v39 }
 0x12c   : > { %v454_v40 = vpop.permute.xlu1 %453 }
 0x12d   : > { %v461_v41 = vsel %vm459_vm7, %v454_v40, 0 }
 0x12e   : > { %470 = vmatpush.bf16.msra.mxu0 %v461_v41 }
 0x12f   : > { %v491_v43 = vpop.f32.mrf.mxu1 }
 0x131   : > { %658 = vmatmul.msk.bf16.vlgmr.msra.gmra.mxu0 %vm455_vm8, %v657_v42 }
 0x137   : > { %v493_v44 = vpop.f32.mrf.mxu1 }
 0x1ac   : > { %v514_v45 = vpop.f32.mrf.mxu2 }
 0x1ae   : > { %v472_v46 = vpop.f32.mrf.mxu0 }
 0x1af   : > { %v492_v47 = vadd.f32 %v491_v43, %v472_v46 }
 0x1b1   : > { %v518_v49 = vadd.f32 %v514_v45, %v492_v47 }
 0x1b3   : > { %v525_v51 = vadd.f32 %v523_v48, %v518_v49  ;;  %533 = sbr.rel (%p662_p5) target bundleno = 443 (0x1bb), region = 56 }
 0x1b4   : > { %v516_v52 = vpop.f32.mrf.mxu2 }
 0x1b5   : > { %v527_v53 = vadd.f32 %v526_v50, %v525_v51 }
 0x1b6   : > { %v474_v54 = vpop.f32.mrf.mxu0 }
 0x1b7   : > { %529 = vst.msk [vmem:[%s397_s30] sm:$0xff] %vm528_vm9, %v527_v53 }
 0x1b8   : > { %vm534_vm10 = vcmask 7168   ;;  %v724_v55 = vmov 0.0  }
 0x1b9   : > { %535 = vst.msk [vmem:[%s880_s9] sm:$0xff] %vm534_vm10, %v724_v55 }
 0x1ba   : > { %536 = vst.msk [vmem:[%s881_s10] sm:$0xff] %vm534_vm10, %v724_v55 }
 0x1bb PF: > { %v538_v56 = vsel %vm528_vm9, %v527_v53, 0.0  ;;  %v545_v57 = vmul.f32 %v527_v53, %v527_v53  ;;  %vm542_vm11 = vcmask 7168  }
 0x1bc   : > { %539 = vadd.xlane.f32.xlu0 %v538_v56 }
 0x1bd   : > { %v546_v58 = vsel %vm528_vm9, %v545_v57, 0.0 }
 0x1c0   : > { %v537_v59 = vld [vmem:[%s880_s9] sm:$0xff] }
 0x1c1   : > { %v544_v62 = vld [vmem:[%s881_s10] sm:$0xff] }
 0x1c4   : > { %547 = vadd.xlane.f32.xlu0 %v546_v58 }
 0x22f   : > { %v540_v60 = vpop.xlane.xlu0 %539 }
 0x230   : > { %v541_v61 = vadd.f32 %v540_v60, %v537_v59 }
 0x232   : > { %543 = vst.msk [vmem:[%s880_s9] sm:$0xff] %vm542_vm11, %v541_v61 }
 0x237   : > { %v548_v63 = vpop.xlane.xlu0 %547 }
 0x238   : > { %v549_v0 = vadd.f32 %v548_v63, %v544_v62 }
 0x23a   : > { %550 = vst.msk [vmem:[%s881_s10] sm:$0xff] %vm542_vm11, %v549_v0 }
 0x23b PF: > { %s21_s15 = sadd.s32 1, %s719_s15   ;;  %s882_s13 = smov %s715_s14 }
 0x23c   : > { %p18_p6 = scmp.ge.s32.totalorder %s21_s15, 4   ;;  %s883_s14 = smov %s885_s16 }
 0x23e   :  { %20 = sbr.rel (!%p18_p6) target bundleno = 2 (0x2), region = 107 }

// kernel: encoder_convd_forward.27
= control target key start
LH: loop header
LB: loop body
LE: loop exit
PB: predicated region body
PF: predicated region fallthrough
CT: control target
= control target key end

     0   :  { %s702_s30 = smov 0   ;;  %s704_s10 = smov 0   ;;  %s792_s0 = inlined_call_operand.vmem [shape: f32[2,1,8,18], index: 0, kind: input, shape index: {}]   ;;  %s793_s1 = inlined_call_operand.vmem [shape: bf16[3,8,8], index: 1, kind: input, shape index: {}]   ;;  %s794_s2 = inlined_call_operand.vmem [shape: f32[8,1], index: 2, kind: input, shape index: {}]   ;;  %s795_s3 = inlined_call_operand.vmem [shape: f32[8,1], index: 3, kind: input, shape index: {}]   ;;  %s796_s4 = inlined_call_operand.vmem [shape: f32[8,1], index: 4, kind: input, shape index: {}]   ;;  %s797_s5 = inlined_call_operand.vmem [shape: f32[8,1], index: 5, kind: input, shape index: {}]   ;;  %s798_s6 = inlined_call_operand.vmem [shape: f32[8,1], index: 6, kind: input, shape index: {}]   ;;  %s799_s7 = inlined_call_operand.vmem [shape: f32[2,8,16], index: 7, kind: output, shape index: {0}]   ;;  %s800_s8 = inlined_call_operand.vmem [shape: f32[8,1], index: 8, kind: output, shape index: {1}]   ;;  %s801_s9 = inlined_call_operand.vmem [shape: f32[8,1], index: 9, kind: output, shape index: {2}]  }
   0x1   :  { %s706_s11 = smov 0  }
   0x2 LB: > { %s32_s12 = sadd.s32 1, %s642_s10  ;;  %p581_p0 = scmp.ge.s32.totalorder %s646_s11, 1  ;;  %s646_s11 = sphi %s706_s11, %s20_s11   ;;  %s642_s10 = sphi %s704_s10, %s803_s10   ;;  %s638_s30 = sphi %s702_s30, %s802_s30  }
   0x3   : > { %p34_p1 = scmp.ge.s32.totalorder %s32_s12, 2  ;;  %p295_p2 = scmp.lt.s32.totalorder %s646_s11, 3 }
   0x5   : > { %s805_s12 = smov (%p34_p1, %s32_s12), 0  ;;  %p296_p3 = pnand %p581_p0, %p295_p2 }
   0x6   : > { %p332_p4 = scmp.lt.s32.totalorder (!%p296_p3), %s638_s30, 1  ;;  %s649_s26 = smov (!%p296_p3), 126  }
   0x7   : > { %299 = sbr.rel (%p296_p3) target bundleno = 570 (0x23a), region = 48  ;;  %s650_s27 = smov (!%p296_p3), 127  }
   0x8   : > { %p589_p5 = scmp.ne.s32.totalorder (!%p296_p3), %s638_s30, 0 }
   0xc   : > { %v344_v0 = vld [vmem:[%s795_s3] sm:$0xff]  ;;  %v648_v2 = vmov 0   ;;  %s736_s21 = scalar_select %p332_p4, %s638_s30, 1  ;;  %v383_v22 = vlaneseq  ;;  %vm404_vm7 = vcmask 1043456   ;;  %vm400_vm8 = vcmask 64512  }
   0xd   : > { %v346_v1 = vld [vmem:[%s796_s4] sm:$0xff]  ;;  %620 = vset.pattern.permute.xlu0 %v648_v2  ;;  %v345_v3 = vmul.f32 0.03125, %v344_v0  ;;  %621 = vset.pattern.permute.xlu2 %v648_v2  ;;  %v587_v39 = vld [vmem:[%s793_s1 + $0x8] sm:$0xf]  ;;  %vm471_vm9 = vcmask 130048  }
   0xe   : > { %v347_v4 = vmul.f32 0.03125, %v346_v1  ;;  %v351_v14 = vld [vmem:[%s797_s5] sm:$0xff]  ;;  %s582_s22 = sshll.u32 %s736_s21, 3  ;;  %v384_v24 = vand.u32 127, %v383_v22 }
   0xf   : > { %v348_v5 = vmul.f32 %v345_v3, %v345_v3  ;;  %v364_v19 = vld [vmem:[%s798_s6] sm:$0xff]  ;;  %s335_s25 = scalar_lea.vmem %s792_s0, %s582_s22  ;;  %s342_s23 = scalar_lea.vmem %s799_s7, %s582_s22 }
  0x10   : > { %v367_v23 = vld [vmem:[%s335_s25] sm:$0xff]  ;;  %vm385_vm3 = vcmp.ge.s32.totalorder %v384_v24, 1  ;;  %vm386_vm4 = vcmp.lt.s32.totalorder %v384_v24, 17 }
  0x11   : > { %v349_v6 = vsub.f32 %v347_v4, %v348_v5  ;;  %vm387_vm6 = vmand %vm385_vm3, %vm386_vm4  ;;  %v392_v35 = vld [vmem:[%s793_s1] sm:$0xf]  ;;  %v584_v42 = vld [vmem:[%s793_s1 + $0x4] sm:$0xf] }
  0x12   : > { %v464_v36 = vld [vmem:[%s794_s2] sm:$0xff] }
  0x13   : > { %v350_v7 = vmax.f32 %v349_v6, 0.0  ;;  %467 = vperm.xlu2 %621, %v464_v36  }
  0x15   : > { %v352_v8 = vadd.f32 1e-05, %v350_v7 }
  0x17   : > { %622 = vrsqrt.f32 %v352_v8  ;;  %vm359_vm0 = vweird.f32 %v352_v8 }
  0x1d   : > { %v623_v9 = vpop.eup %622 }
  0x1e   : > { %v354_v10 = vmul.f32 %v623_v9, %v352_v8  ;;  %vm360_vm1 = vweird.f32 %v623_v9 }
  0x1f   : > { %vm361_vm2 = vmor %vm359_vm0, %vm360_vm1 }
  0x20   : > { %v355_v11 = vmul.f32 %v623_v9, %v354_v10 }
  0x22   : > { %v356_v12 = vmul.f32 0.5, %v355_v11 }
  0x24   : > { %v357_v13 = vsub.f32 1.5, %v356_v12 }
  0x26   : > { %v358_v15 = vmul.f32 %v623_v9, %v357_v13 }
  0x28   : > { %v362_v16 = vsel %vm361_vm2, %v623_v9, %v358_v15 }
  0x29   : > { %v363_v17 = vmul.f32 %v362_v16, %v351_v14 }
  0x2b   : > { %370 = vperm.xlu0 %620, %v363_v17   ;;  %v365_v18 = vmul.f32 %v363_v17, %v345_v3 }
  0x2d   : > { %v366_v20 = vsub.f32 %v364_v19, %v365_v18 }
  0x33   : > { %376 = vperm.xlu0 %620, %v366_v20  }
  0x6d   : > { %v468_v48 = vpop.permute.xlu2 %467 }
  0x9d   : > { %v371_v21 = vpop.permute.xlu0 %370 }
  0x9e   : > { %v373_v25 = vmul.f32 %v371_v21, %v367_v23 }
  0xa5   : > { %v377_v26 = vpop.permute.xlu0 %376 }
  0xa6   : > { %v379_v27 = vadd.f32 %v377_v26, %v373_v25 }
  0xa8   : > { %vm380_vm5 = vcmp.gt.f32.partialorder %v379_v27, 0.0  ;;  %v381_v28 = vmul.f32 0.2, %v379_v27 }
  0xaa   : > { %v382_v29 = vsel %vm380_vm5, %v379_v27, %v381_v28 }
  0xab   : > { %v390_v30 = vsel %vm387_vm6, %v382_v29, 0.0 }
  0xac   : > { %v391_v31 = vpack.c.bf16 %v390_v30, %v390_v30 }
  0xae   : > { %v425_v32 = vsel %vm404_vm7, %v391_v31, 0  ;;  %v396_v33 = vunpack.c.l.b16 %v391_v31 }
  0xaf   : > { %434 = vmatpush.bf16.msra.mxu1 %v425_v32 }
  0xb0   : > { %v397_v34 = vpack.c.b16 %v396_v33, %v396_v33 }
  0xb2   : > { %442 = vrot.lane.b32.xlu1 %v397_v34, %s649_s26  ;;  %586 = vmatmul.msk.bf16.vlgmr.msra.gmra.mxu1 %vm400_vm8, %v392_v35 }
  0xba   : > { %398 = vrot.lane.b32.xlu1 %v397_v34, %s650_s27 }
 0x124   : > { %v443_v37 = vpop.permute.xlu1 %442 }
 0x125   : > { %v448_v38 = vsel %vm404_vm7, %v443_v37, 0 }
 0x126   : > { %457 = vmatpush.bf16.msra.mxu2 %v448_v38 }
 0x129   : > { %588 = vmatmul.msk.bf16.vlgmr.msra.gmra.mxu2 %vm400_vm8, %v587_v39 }
 0x12c   : > { %v399_v40 = vpop.permute.xlu1 %398 }
 0x12d   : > { %v406_v41 = vsel %vm404_vm7, %v399_v40, 0 }
 0x12e   : > { %415 = vmatpush.bf16.msra.mxu0 %v406_v41 }
 0x12f   : > { %v436_v43 = vpop.f32.mrf.mxu1 }
 0x131   : > { %585 = vmatmul.msk.bf16.vlgmr.msra.gmra.mxu0 %vm400_vm8, %v584_v42 }
 0x137   : > { %v438_v44 = vpop.f32.mrf.mxu1 }
 0x1ac   : > { %v459_v45 = vpop.f32.mrf.mxu2 }
 0x1ae   : > { %v417_v46 = vpop.f32.mrf.mxu0 }
 0x1af   : > { %v437_v47 = vadd.f32 %v436_v43, %v417_v46 }
 0x1b1   : > { %v463_v49 = vadd.f32 %v459_v45, %v437_v47 }
 0x1b2   : > { %476 = sbr.rel (%p589_p5) target bundleno = 442 (0x1ba), region = 52 }
 0x1b3   : > { %v470_v50 = vadd.f32 %v468_v48, %v463_v49 }
 0x1b4   : > { %v461_v51 = vpop.f32.mrf.mxu2 }
 0x1b5   : > { %472 = vst.msk [vmem:[%s342_s23] sm:$0xff] %vm471_vm9, %v470_v50 }
 0x1b6   : > { %v419_v52 = vpop.f32.mrf.mxu0 }
 0x1b7   : > { %vm477_vm10 = vcmask 7168   ;;  %v651_v53 = vmov 0.0  }
 0x1b8   : > { %478 = vst.msk [vmem:[%s800_s8] sm:$0xff] %vm477_vm10, %v651_v53 }
 0x1b9   : > { %479 = vst.msk [vmem:[%s801_s9] sm:$0xff] %vm477_vm10, %v651_v53 }
 0x1ba PF: > { %v481_v54 = vsel %vm471_vm9, %v470_v50, 0.0  ;;  %v488_v55 = vmul.f32 %v470_v50, %v470_v50  ;;  %vm485_vm11 = vcmask 7168  }
 0x1bb   : > { %482 = vadd.xlane.f32.xlu0 %v481_v54 }
 0x1bc   : > { %v489_v56 = vsel %vm471_vm9, %v488_v55, 0.0 }
 0x1bf   : > { %v480_v57 = vld [vmem:[%s800_s8] sm:$0xff] }
 0x1c0   : > { %v487_v60 = vld [vmem:[%s801_s9] sm:$0xff] }
 0x1c3   : > { %490 = vadd.xlane.f32.xlu0 %v489_v56 }
 0x22e   : > { %v483_v58 = vpop.xlane.xlu0 %482 }
 0x22f   : > { %v484_v59 = vadd.f32 %v483_v58, %v480_v57 }
 0x231   : > { %486 = vst.msk [vmem:[%s800_s8] sm:$0xff] %vm485_vm11, %v484_v59 }
 0x236   : > { %v491_v61 = vpop.xlane.xlu0 %490 }
 0x237   : > { %v492_v62 = vadd.f32 %v491_v61, %v487_v60 }
 0x239   : > { %493 = vst.msk [vmem:[%s801_s9] sm:$0xff] %vm485_vm11, %v492_v62 }
 0x23a PF: > { %s20_s11 = sadd.s32 1, %s646_s11   ;;  %s802_s30 = smov %s642_s10 }
 0x23b   : > { %p17_p6 = scmp.ge.s32.totalorder %s20_s11, 4   ;;  %s803_s10 = smov %s805_s12 }
 0x23d   :  { %19 = sbr.rel (!%p17_p6) target bundleno = 2 (0x2), region = 100 }

// kernel: encoder_convd_forward.28
= control target key start
LH: loop header
LB: loop body
LE: loop exit
PB: predicated region body
PF: predicated region fallthrough
CT: control target
= control target key end

     0   :  { %s431_s12 = smov 0   ;;  %s433_s13 = smov 0   ;;  %s489_s0 = inlined_call_operand.vmem [shape: f32[2,1,8,18], index: 0, kind: input, shape index: {}]   ;;  %s490_s1 = inlined_call_operand.vmem [shape: bf16[3,8,8], index: 1, kind: input, shape index: {}]   ;;  %s491_s2 = inlined_call_operand.vmem [shape: f32[8,1], index: 2, kind: input, shape index: {}]   ;;  %s492_s3 = inlined_call_operand.vmem [shape: f32[2,8,16], index: 3, kind: output, shape index: {}]  }
   0x1   :  { %s435_s14 = smov 0  }
   0x2 LB: > { %s25_s15 = sadd.s32 1, %s402_s13  ;;  %p345_p0 = scmp.ge.s32.totalorder %s406_s14, 1  ;;  %s406_s14 = sphi %s435_s14, %s13_s14   ;;  %s402_s13 = sphi %s433_s13, %s494_s13   ;;  %s398_s12 = sphi %s431_s12, %s493_s12  }
   0x3   : > { %p27_p1 = scmp.ge.s32.totalorder %s25_s15, 2  ;;  %p150_p2 = scmp.lt.s32.totalorder %s406_s14, 3 }
   0x5   : > { %s496_s15 = smov (%p27_p1, %s25_s15), 0  ;;  %p151_p3 = pnand %p345_p0, %p150_p2 }
   0x6   : > { %p175_p4 = scmp.lt.s32.totalorder (!%p151_p3), %s398_s12, 1  ;;  %s408_s20 = smov (!%p151_p3), 126  }
   0x7   : > { %154 = sbr.rel (%p151_p3) target bundleno = 283 (0x11b), region = 32  ;;  %s409_s21 = smov (!%p151_p3), 127  }
   0xc   : > { %s498_s12 = smov (!%p175_p4, %s398_s12), 1  ;;  %vm201_vm0 = vcmask 1043456   ;;  %v189_v5 = vld [vmem:[%s490_s1] sm:$0xf]  ;;  %vm197_vm1 = vcmask 64512   ;;  %v410_v7 = vmov 0  }
   0xd   : > { %s346_s16 = sshll.u32 %s498_s12, 3  ;;  %v261_v6 = vld [vmem:[%s491_s2] sm:$0xff]  ;;  %382 = vset.pattern.permute.xlu1 %v410_v7  ;;  %383 = vset.pattern.permute.xlu0 %v410_v7  ;;  %v351_v10 = vld [vmem:[%s490_s1 + $0x8] sm:$0xf]  ;;  %vm268_vm2 = vcmask 130048  }
   0xe   : > { %s178_s19 = scalar_lea.vmem %s489_s0, %s346_s16  ;;  %264 = vperm.xlu1 %382, %v261_v6   ;;  %v348_v13 = vld [vmem:[%s490_s1 + $0x4] sm:$0xf]  ;;  %s185_s5 = scalar_lea.vmem %s492_s3, %s346_s16 }
   0xf   : > { %v187_v0 = vld [vmem:[%s178_s19] sm:$0xff] }
  0x10   : > { %v188_v1 = vpack.c.bf16 %v187_v0, %v187_v0 }
  0x12   : > { %v193_v2 = vunpack.c.l.b16 %v188_v1  ;;  %v222_v4 = vsel %vm201_vm0, %v188_v1, 0 }
  0x13   : > { %231 = vmatpush.bf16.msra.mxu1 %v222_v4 }
  0x14   : > { %v194_v3 = vpack.c.b16 %v193_v2, %v193_v2 }
  0x16   : > { %239 = vrot.lane.b32.xlu0 %v194_v3, %s408_s20  ;;  %350 = vmatmul.msk.bf16.vlgmr.msra.gmra.mxu1 %vm197_vm1, %v189_v5 }
  0x1e   : > { %195 = vrot.lane.b32.xlu0 %v194_v3, %s409_s21 }
  0x80   : > { %v265_v19 = vpop.permute.xlu1 %264 }
  0x88   : > { %v240_v8 = vpop.permute.xlu0 %239 }
  0x89   : > { %v245_v9 = vsel %vm201_vm0, %v240_v8, 0 }
  0x8a   : > { %254 = vmatpush.bf16.msra.mxu2 %v245_v9 }
  0x8d   : > { %352 = vmatmul.msk.bf16.vlgmr.msra.gmra.mxu2 %vm197_vm1, %v351_v10 }
  0x90   : > { %v196_v11 = vpop.permute.xlu0 %195 }
  0x91   : > { %v203_v12 = vsel %vm201_vm0, %v196_v11, 0 }
  0x92   : > { %212 = vmatpush.bf16.msra.mxu0 %v203_v12 }
  0x93   : > { %v233_v14 = vpop.f32.mrf.mxu1 }
  0x95   : > { %349 = vmatmul.msk.bf16.vlgmr.msra.gmra.mxu0 %vm197_vm1, %v348_v13 }
  0x9b   : > { %v235_v15 = vpop.f32.mrf.mxu1 }
 0x110   : > { %v256_v16 = vpop.f32.mrf.mxu2 }
 0x112   : > { %v214_v17 = vpop.f32.mrf.mxu0 }
 0x113   : > { %v234_v18 = vadd.f32 %v233_v14, %v214_v17 }
 0x115   : > { %v260_v20 = vadd.f32 %v256_v16, %v234_v18 }
 0x117   : > { %v267_v21 = vadd.f32 %v265_v19, %v260_v20 }
 0x118   : > { %v258_v22 = vpop.f32.mrf.mxu2 }
 0x119   : > { %269 = vst.msk [vmem:[%s185_s5] sm:$0xff] %vm268_vm2, %v267_v21 }
 0x11a   : > { %v216_v23 = vpop.f32.mrf.mxu0 }
 0x11b PF: > { %s13_s14 = sadd.s32 1, %s406_s14   ;;  %s493_s12 = smov %s402_s13 }
 0x11c   : > { %p10_p5 = scmp.ge.s32.totalorder %s13_s14, 4   ;;  %s494_s13 = smov %s496_s15 }
 0x11e   :  { %12 = sbr.rel (!%p10_p5) target bundleno = 2 (0x2), region = 64 }

// kernel: encoder_convd_forward.30
= control target key start
LH: loop header
LB: loop body
LE: loop exit
PB: predicated region body
PF: predicated region fallthrough
CT: control target
= control target key end

     0   :  { %s792_s30 = smov 0   ;;  %s794_s10 = smov 0   ;;  %s912_s0 = inlined_call_operand.vmem [shape: f32[2,2,8,9], index: 0, kind: input, shape index: {}]   ;;  %s913_s1 = inlined_call_operand.vmem [shape: bf16[3,16,8], index: 1, kind: input, shape index: {}]   ;;  %s914_s2 = inlined_call_operand.vmem [shape: f32[16,1], index: 2, kind: input, shape index: {}]   ;;  %s915_s3 = inlined_call_operand.vmem [shape: f32[8,1], index: 3, kind: input, shape index: {}]   ;;  %s916_s4 = inlined_call_operand.vmem [shape: f32[8,1], index: 4, kind: input, shape index: {}]   ;;  %s917_s5 = inlined_call_operand.vmem [shape: f32[8,1], index: 5, kind: input, shape index: {}]   ;;  %s918_s6 = inlined_call_operand.vmem [shape: f32[8,1], index: 6, kind: input, shape index: {}]   ;;  %s919_s7 = inlined_call_operand.vmem [shape: f32[2,16,8], index: 7, kind: output, shape index: {0}]   ;;  %s920_s8 = inlined_call_operand.vmem [shape: f32[16,1], index: 8, kind: output, shape index: {1}]   ;;  %s921_s9 = inlined_call_operand.vmem [shape: f32[16,1], index: 9, kind: output, shape index: {2}]  }
   0x1   :  { %s796_s11 = smov 0  }
   0x2 LB: > { %s32_s12 = sadd.s32 1, %s733_s10  ;;  %p650_p0 = scmp.ge.s32.totalorder %s737_s11, 1  ;;  %s737_s11 = sphi %s796_s11, %s20_s11   ;;  %s733_s10 = sphi %s794_s10, %s923_s10   ;;  %s729_s30 = sphi %s792_s30, %s922_s30  }
   0x3   : > { %p34_p1 = scmp.ge.s32.totalorder %s32_s12, 2  ;;  %p296_p2 = scmp.lt.s32.totalorder %s737_s11, 3 }
   0x5   : > { %s925_s12 = smov (%p34_p1, %s32_s12), 0  ;;  %p297_p3 = pnand %p650_p0, %p296_p2 }
   0x6   : > { %p335_p4 = scmp.lt.s32.totalorder (!%p297_p3), %s729_s30, 1  ;;  %s740_s26 = smov (!%p297_p3), 127  }
   0x7   : > { %300 = sbr.rel (%p297_p3) target bundleno = 577 (0x241), region = 48  ;;  %p675_p5 = scmp.ne.s32.totalorder (!%p297_p3), %s729_s30, 0 }
   0xc   : > { %v349_v0 = vld [vmem:[%s915_s3] sm:$0xff]  ;;  %v739_v2 = vmov 0   ;;  %v388_v21 = vlaneseq  ;;  %s826_s21 = scalar_select %p335_p4, %s729_s30, 1  ;;  %vm427_vm11 = vcmask 1043456   ;;  %v681_v45 = vld [vmem:[%s913_s1 + $0x8] sm:$0xff]  ;;  %vm423_vm12 = vcmask 64512  }
   0xd   : > { %v351_v1 = vld [vmem:[%s916_s4] sm:$0xff]  ;;  %710 = vset.pattern.permute.xlu0 %v739_v2  ;;  %v350_v3 = vmul.f32 0.03125, %v349_v0  ;;  %711 = vset.pattern.permute.xlu1 %v739_v2  ;;  %v506_v48 = vld [vmem:[%s914_s2 + $0x8] sm:$0xff]  ;;  %v682_v51 = vld [vmem:[%s913_s1 + $0x10] sm:$0xff] }
   0xe   : > { %v352_v4 = vmul.f32 0.03125, %v351_v1  ;;  %712 = vset.pattern.permute.xlu2 %v739_v2  ;;  %v356_v14 = vld [vmem:[%s917_s5] sm:$0xff]  ;;  %v389_v22 = vand.u32 127, %v388_v21  ;;  %s678_s22 = sshll.u32 %s826_s21, 4 }
   0xf   : > { %v353_v5 = vmul.f32 %v350_v3, %v350_v3  ;;  %v369_v19 = vld [vmem:[%s918_s6] sm:$0xff]  ;;  %s339_s25 = scalar_lea.vmem %s912_s0, %s678_s22  ;;  %514 = vperm.xlu2 %712, %v506_v48   ;;  %s347_s24 = scalar_lea.vmem %s919_s7, %s678_s22 }
  0x10   : > { %v390_v23 = vmul.u32 2, %v389_v22  ;;  %v372_v26 = vld [vmem:[%s339_s25] sm:$0xff]  ;;  %v655_v27 = vld [vmem:[%s339_s25 + $0x8] sm:$0xff] }
  0x11   : > { %v354_v6 = vsub.f32 %v352_v4, %v353_v5  ;;  %v680_v46 = vld [vmem:[%s913_s1] sm:$0xff] }
  0x12   : > { %v405_v25 = vadd.s32 1, %v390_v23  ;;  %vm391_vm5 = vcmp.ge.s32.totalorder %v390_v23, 1  ;;  %vm392_vm6 = vcmp.lt.s32.totalorder %v390_v23, 17  ;;  %v505_v47 = vld [vmem:[%s914_s2] sm:$0xff] }
  0x13   : > { %v355_v7 = vmax.f32 %v354_v6, 0.0  ;;  %vm393_vm10 = vmand %vm391_vm5, %vm392_vm6 }
  0x14   : > { %vm406_vm3 = vcmp.ge.s32.totalorder %v405_v25, 1  ;;  %vm407_vm4 = vcmp.lt.s32.totalorder %v405_v25, 17 }
  0x15   : > { %v357_v8 = vadd.f32 1e-05, %v355_v7  ;;  %vm408_vm7 = vmand %vm406_vm3, %vm407_vm4 }
  0x17   : > { %713 = vrsqrt.f32 %v357_v8  ;;  %vm364_vm0 = vweird.f32 %v357_v8 }
  0x1d   : > { %v714_v9 = vpop.eup %713 }
  0x1e   : > { %v359_v10 = vmul.f32 %v714_v9, %v357_v8  ;;  %vm365_vm1 = vweird.f32 %v714_v9 }
  0x1f   : > { %vm366_vm2 = vmor %vm364_vm0, %vm365_vm1 }
  0x20   : > { %v360_v11 = vmul.f32 %v714_v9, %v359_v10 }
  0x22   : > { %v361_v12 = vmul.f32 0.5, %v360_v11 }
  0x24   : > { %v362_v13 = vsub.f32 1.5, %v361_v12 }
  0x26   : > { %v363_v15 = vmul.f32 %v714_v9, %v362_v13 }
  0x28   : > { %v367_v16 = vsel %vm366_vm2, %v714_v9, %v363_v15 }
  0x29   : > { %v368_v17 = vmul.f32 %v367_v16, %v356_v14 }
  0x2b   : > { %375 = vperm.xlu0 %710, %v368_v17   ;;  %v370_v18 = vmul.f32 %v368_v17, %v350_v3 }
  0x2d   : > { %v371_v20 = vsub.f32 %v369_v19, %v370_v18 }
  0x33   : > { %381 = vperm.xlu0 %710, %v371_v20  }
  0x69   : > { %v515_v63 = vpop.permute.xlu2 %514 }
  0x9d   : > { %v376_v24 = vpop.permute.xlu0 %375 }
  0x9e   : > { %v378_v28 = vmul.f32 %v376_v24, %v372_v26  ;;  %v400_v29 = vmul.f32 %v655_v27, %v376_v24 }
  0xa5   : > { %v382_v30 = vpop.permute.xlu0 %381 }
  0xa6   : > { %v384_v31 = vadd.f32 %v382_v30, %v378_v28  ;;  %v401_v32 = vadd.f32 %v400_v29, %v382_v30 }
  0xa8   : > { %vm385_vm8 = vcmp.gt.f32.partialorder %v384_v31, 0.0  ;;  %v386_v33 = vmul.f32 0.2, %v384_v31  ;;  %vm402_vm9 = vcmp.gt.f32.partialorder %v401_v32, 0.0  ;;  %v403_v34 = vmul.f32 0.2, %v401_v32 }
  0xaa   : > { %v404_v35 = vsel %vm402_vm9, %v401_v32, %v403_v34  ;;  %v387_v36 = vsel %vm385_vm8, %v384_v31, %v386_v33 }
  0xab   : > { %v411_v37 = vsel %vm408_vm7, %v404_v35, 0.0  ;;  %v396_v38 = vsel %vm393_vm10, %v387_v36, 0.0 }
  0xac   : > { %v412_v39 = vpack.c.bf16 %v411_v37, %v411_v37  ;;  %v397_v40 = vpack.c.bf16 %v396_v38, %v396_v38 }
  0xae   : > { %v429_v41 = vsel %vm427_vm11, %v412_v39, 0  ;;  %v454_v42 = vsel %vm427_vm11, %v397_v40, 0  ;;  %v479_v43 = vunpack.c.l.b16 %v397_v40 }
  0xaf   : > { %438 = vmatpush.bf16.msra.mxu0 %v429_v41  ;;  %463 = vmatpush.bf16.msra.mxu1 %v454_v42 }
  0xb0   : > { %v480_v44 = vpack.c.b16 %v479_v43, %v479_v43 }
  0xb2   : > { %481 = vrot.lane.b32.xlu1 %v480_v44, %s740_s26  ;;  %662 = vmatmul.msk.bf16.vlgmr.msra.gmra.mxu0 %vm423_vm12, %v681_v45 }
  0xb3   : > { %667 = vmatmul.msk.bf16.vlgmr.msra.gmra.mxu1 %vm423_vm12, %v680_v46 }
  0xba   : > { %509 = vperm.xlu1 %711, %v505_v47  }
 0x124   : > { %v482_v49 = vpop.permute.xlu1 %481 }
 0x125   : > { %v487_v50 = vsel %vm427_vm11, %v482_v49, 0 }
 0x126   : > { %496 = vmatpush.bf16.msra.mxu2 %v487_v50 }
 0x129   : > { %674 = vmatmul.msk.bf16.vlgmr.msra.gmra.mxu2 %vm423_vm12, %v682_v51 }
 0x12c   : > { %v510_v56 = vpop.permute.xlu1 %509 }
 0x12f   : > { %v440_v52 = vpop.f32.mrf.mxu0 }
 0x130   : > { %v465_v53 = vpop.f32.mrf.mxu1 }
 0x131   : > { %v466_v54 = vadd.f32 %v465_v53, %v440_v52 }
 0x137   : > { %v442_v59 = vpop.f32.mrf.mxu0 }
 0x138   : > { %v467_v60 = vpop.f32.mrf.mxu1 }
 0x139   : > { %v468_v61 = vadd.f32 %v467_v60, %v442_v59 }
 0x1ac   : > { %v498_v55 = vpop.f32.mrf.mxu2 }
 0x1ad   : > { %v503_v57 = vadd.f32 %v498_v55, %v466_v54 }
 0x1af   : > { %v517_v58 = vadd.f32 %v510_v56, %v503_v57 }
 0x1b1   : > { %519 = vst.msk [vmem:[%s347_s24] sm:$0xff] %vm423_vm12, %v517_v58 }
 0x1b4   : > { %v500_v62 = vpop.f32.mrf.mxu2 }
 0x1b5   : > { %v504_v0 = vadd.f32 %v500_v62, %v468_v61  ;;  %524 = sbr.rel (%p675_p5) target bundleno = 447 (0x1bf), region = 52 }
 0x1b7   : > { %v518_v1 = vadd.f32 %v515_v63, %v504_v0 }
 0x1b9   : > { %520 = vst.msk [vmem:[%s347_s24 + $0x8] sm:$0xff] %vm423_vm12, %v518_v1 }
 0x1ba   : > { %vm525_vm13 = vcmask 7168   ;;  %v741_v2 = vmov 0.0  }
 0x1bb   : > { %526 = vst.msk [vmem:[%s920_s8] sm:$0xff] %vm525_vm13, %v741_v2 }
 0x1bc   : > { %527 = vst.msk [vmem:[%s920_s8 + $0x8] sm:$0xff] %vm525_vm13, %v741_v2 }
 0x1bd   : > { %528 = vst.msk [vmem:[%s921_s9] sm:$0xff] %vm525_vm13, %v741_v2 }
 0x1be   : > { %529 = vst.msk [vmem:[%s921_s9 + $0x8] sm:$0xff] %vm525_vm13, %v741_v2 }
 0x1bf PF: > { %v545_v3 = vmul.f32 %v517_v58, %v517_v58  ;;  %v532_v4 = vsel %vm423_vm12, %v517_v58, 0.0  ;;  %v546_v6 = vmul.f32 %v518_v1, %v518_v1  ;;  %v535_v7 = vsel %vm423_vm12, %v518_v1, 0.0 }
 0x1c0   : > { %533 = vadd.xlane.f32.xlu0 %v532_v4  ;;  %vm540_vm14 = vcmask 7168  }
 0x1c1   : > { %v547_v5 = vsel %vm423_vm12, %v545_v3, 0.0  ;;  %v550_v8 = vsel %vm423_vm12, %v546_v6, 0.0 }
 0x1c2   : > { %548 = vadd.xlane.f32.xlu1 %v547_v5  ;;  %v530_v9 = vld [vmem:[%s920_s8] sm:$0xff] }
 0x1c3   : > { %v531_v15 = vld [vmem:[%s920_s8 + $0x8] sm:$0xff] }
 0x1c4   : > { %v543_v10 = vld [vmem:[%s921_s9] sm:$0xff] }
 0x1c5   : > { %v544_v16 = vld [vmem:[%s921_s9 + $0x8] sm:$0xff] }
 0x1c8   : > { %536 = vadd.xlane.f32.xlu0 %v535_v7 }
 0x1ca   : > { %551 = vadd.xlane.f32.xlu1 %v550_v8 }
 0x233   : > { %v534_v11 = vpop.xlane.xlu0 %533 }
 0x234   : > { %v538_v12 = vadd.f32 %v534_v11, %v530_v9 }
 0x235   : > { %v549_v13 = vpop.xlane.xlu1 %548 }
 0x236   : > { %v553_v14 = vadd.f32 %v549_v13, %v543_v10  ;;  %541 = vst.msk [vmem:[%s920_s8] sm:$0xff] %vm540_vm14, %v538_v12 }
 0x238   : > { %555 = vst.msk [vmem:[%s921_s9] sm:$0xff] %vm540_vm14, %v553_v14 }
 0x23b   : > { %v537_v17 = vpop.xlane.xlu0 %536 }
 0x23c   : > { %v539_v18 = vadd.f32 %v537_v17, %v531_v15 }
 0x23d   : > { %v552_v19 = vpop.xlane.xlu1 %551 }
 0x23e   : > { %v554_v20 = vadd.f32 %v552_v19, %v544_v16  ;;  %542 = vst.msk [vmem:[%s920_s8 + $0x8] sm:$0xff] %vm540_vm14, %v539_v18 }
 0x240   : > { %556 = vst.msk [vmem:[%s921_s9 + $0x8] sm:$0xff] %vm540_vm14, %v554_v20 }
 0x241 PF: > { %s20_s11 = sadd.s32 1, %s737_s11   ;;  %s922_s30 = smov %s733_s10 }
 0x242   : > { %p17_p6 = scmp.ge.s32.totalorder %s20_s11, 4   ;;  %s923_s10 = smov %s925_s12 }
 0x244   :  { %19 = sbr.rel (!%p17_p6) target bundleno = 2 (0x2), region = 101 }

// kernel: encoder_convd_forward.31
= control target key start
LH: loop header
LB: loop body
LE: loop exit
PB: predicated region body
PF: predicated region fallthrough
CT: control target
= control target key end

     0   :  { %s492_s12 = smov 0   ;;  %s494_s13 = smov 0   ;;  %s555_s0 = inlined_call_operand.vmem [shape: f32[2,2,8,9], index: 0, kind: input, shape index: {}]   ;;  %s556_s1 = inlined_call_operand.vmem [shape: bf16[3,16,8], index: 1, kind: input, shape index: {}]   ;;  %s557_s2 = inlined_call_operand.vmem [shape: f32[16,1], index: 2, kind: input, shape index: {}]   ;;  %s558_s3 = inlined_call_operand.vmem [shape: f32[2,16,8], index: 3, kind: output, shape index: {}]  }
   0x1   :  { %s496_s14 = smov 0  }
   0x2 LB: > { %s25_s15 = sadd.s32 1, %s464_s13  ;;  %p386_p0 = scmp.ge.s32.totalorder %s468_s14, 1  ;;  %s468_s14 = sphi %s496_s14, %s13_s14   ;;  %s464_s13 = sphi %s494_s13, %s560_s13   ;;  %s460_s12 = sphi %s492_s12, %s559_s12  }
   0x3   : > { %p27_p1 = scmp.ge.s32.totalorder %s25_s15, 2  ;;  %p151_p2 = scmp.lt.s32.totalorder %s468_s14, 3 }
   0x5   : > { %s562_s15 = smov (%p27_p1, %s25_s15), 0  ;;  %p152_p3 = pnand %p386_p0, %p151_p2 }
   0x6   : > { %p178_p4 = scmp.lt.s32.totalorder (!%p152_p3), %s460_s12, 1  ;;  %s470_s20 = smov (!%p152_p3), 127  }
   0x7   : > { %155 = sbr.rel (%p152_p3) target bundleno = 286 (0x11e), region = 32 }
   0xc   : > { %s564_s12 = smov (!%p178_p4, %s460_s12), 1  ;;  %vm211_vm0 = vcmask 1043456   ;;  %v416_v8 = vld [vmem:[%s556_s1 + $0x8] sm:$0xff]  ;;  %v415_v9 = vld [vmem:[%s556_s1] sm:$0xff]  ;;  %vm207_vm1 = vcmask 64512   ;;  %v471_v12 = vmov 0  }
   0xd   : > { %s413_s16 = sshll.u32 %s564_s12, 4  ;;  %v289_v10 = vld [vmem:[%s557_s2] sm:$0xff]  ;;  %v290_v11 = vld [vmem:[%s557_s2 + $0x8] sm:$0xff]  ;;  %444 = vset.pattern.permute.xlu0 %v471_v12  ;;  %445 = vset.pattern.permute.xlu1 %v471_v12  ;;  %v417_v15 = vld [vmem:[%s556_s1 + $0x10] sm:$0xff] }
   0xe   : > { %s182_s19 = scalar_lea.vmem %s555_s0, %s413_s16  ;;  %298 = vperm.xlu1 %445, %v290_v11   ;;  %s190_s6 = scalar_lea.vmem %s558_s3, %s413_s16 }
   0xf   : > { %v192_v0 = vld [vmem:[%s182_s19] sm:$0xff]  ;;  %v391_v1 = vld [vmem:[%s182_s19 + $0x8] sm:$0xff] }
  0x10   : > { %v193_v2 = vpack.c.bf16 %v192_v0, %v192_v0  ;;  %v196_v3 = vpack.c.bf16 %v391_v1, %v391_v1 }
  0x12   : > { %v263_v4 = vunpack.c.l.b16 %v193_v2  ;;  %v213_v5 = vsel %vm211_vm0, %v196_v3, 0  ;;  %v238_v6 = vsel %vm211_vm0, %v193_v2, 0 }
  0x13   : > { %222 = vmatpush.bf16.msra.mxu0 %v213_v5  ;;  %247 = vmatpush.bf16.msra.mxu1 %v238_v6 }
  0x14   : > { %v264_v7 = vpack.c.b16 %v263_v4, %v263_v4 }
  0x16   : > { %265 = vrot.lane.b32.xlu0 %v264_v7, %s470_s20  ;;  %398 = vmatmul.msk.bf16.vlgmr.msra.gmra.mxu0 %vm207_vm1, %v416_v8 }
  0x17   : > { %403 = vmatmul.msk.bf16.vlgmr.msra.gmra.mxu1 %vm207_vm1, %v415_v9 }
  0x1e   : > { %293 = vperm.xlu0 %444, %v289_v10  }
  0x80   : > { %v299_v27 = vpop.permute.xlu1 %298 }
  0x88   : > { %v266_v13 = vpop.permute.xlu0 %265 }
  0x89   : > { %v271_v14 = vsel %vm211_vm0, %v266_v13, 0 }
  0x8a   : > { %280 = vmatpush.bf16.msra.mxu2 %v271_v14 }
  0x8d   : > { %410 = vmatmul.msk.bf16.vlgmr.msra.gmra.mxu2 %vm207_vm1, %v417_v15 }
  0x90   : > { %v294_v20 = vpop.permute.xlu0 %293 }
  0x93   : > { %v224_v16 = vpop.f32.mrf.mxu0 }
  0x94   : > { %v249_v17 = vpop.f32.mrf.mxu1 }
  0x95   : > { %v250_v18 = vadd.f32 %v249_v17, %v224_v16 }
  0x9b   : > { %v226_v23 = vpop.f32.mrf.mxu0 }
  0x9c   : > { %v251_v24 = vpop.f32.mrf.mxu1 }
  0x9d   : > { %v252_v25 = vadd.f32 %v251_v24, %v226_v23 }
 0x110   : > { %v282_v19 = vpop.f32.mrf.mxu2 }
 0x111   : > { %v287_v21 = vadd.f32 %v282_v19, %v250_v18 }
 0x113   : > { %v301_v22 = vadd.f32 %v294_v20, %v287_v21 }
 0x115   : > { %303 = vst.msk [vmem:[%s190_s6] sm:$0xff] %vm207_vm1, %v301_v22 }
 0x118   : > { %v284_v26 = vpop.f32.mrf.mxu2 }
 0x119   : > { %v288_v28 = vadd.f32 %v284_v26, %v252_v25 }
 0x11b   : > { %v302_v29 = vadd.f32 %v299_v27, %v288_v28 }
 0x11d   : > { %304 = vst.msk [vmem:[%s190_s6 + $0x8] sm:$0xff] %vm207_vm1, %v302_v29 }
 0x11e PF: > { %s13_s14 = sadd.s32 1, %s468_s14   ;;  %s559_s12 = smov %s464_s13 }
 0x11f   : > { %p10_p5 = scmp.ge.s32.totalorder %s13_s14, 4   ;;  %s560_s13 = smov %s562_s15 }
 0x121   :  { %12 = sbr.rel (!%p10_p5) target bundleno = 2 (0x2), region = 65 }

// kernel: encoder_convd_forward.32
= control target key start
LH: loop header
LB: loop body
LE: loop exit
PB: predicated region body
PF: predicated region fallthrough
CT: control target
= control target key end

     0   :  { %s905_s13 = smov 0   ;;  %s907_s14 = smov 0   ;;  %s1032_s0 = inlined_call_operand.vmem [shape: f32[2,1,16,10], index: 0, kind: input, shape index: {}]   ;;  %s1033_s1 = inlined_call_operand.vmem [shape: bf16[3,16,16], index: 1, kind: input, shape index: {}]   ;;  %s1034_s2 = inlined_call_operand.vmem [shape: f32[16,1], index: 2, kind: input, shape index: {}]   ;;  %s1035_s3 = inlined_call_operand.vmem [shape: f32[16,1], index: 3, kind: input, shape index: {}]   ;;  %s1036_s4 = inlined_call_operand.vmem [shape: f32[16,1], index: 4, kind: input, shape index: {}]   ;;  %s1037_s5 = inlined_call_operand.vmem [shape: f32[16,1], index: 5, kind: input, shape index: {}]   ;;  %s1038_s6 = inlined_call_operand.vmem [shape: f32[16,1], index: 6, kind: input, shape index: {}]   ;;  %s1039_s7 = inlined_call_operand.vmem [shape: f32[2,16,8], index: 7, kind: input, shape index: {}, may-alias: {7,8}]   ;;  %s1040_s8 = inlined_call_operand.vmem [shape: f32[2,16,8], index: 8, kind: output, shape index: {0}, may-alias: {7,8}]   ;;  %s1041_s9 = inlined_call_operand.vmem [shape: f32[16,1], index: 9, kind: output, shape index: {1}]   ;;  %s1042_s10 = inlined_call_operand.vmem [shape: f32[16,1], index: 10, kind: output, shape index: {2}]  }
   0x1   :  { %s909_s15 = smov 0  }
   0x2 LB: > { %s33_s16 = sadd.s32 1, %s840_s14  ;;  %p753_p0 = scmp.ge.s32.totalorder %s844_s15, 1  ;;  %s844_s15 = sphi %s909_s15, %s21_s15   ;;  %s840_s14 = sphi %s907_s14, %s1044_s14   ;;  %s836_s13 = sphi %s905_s13, %s1043_s13  }
   0x3   : > { %p35_p1 = scmp.ge.s32.totalorder %s33_s16, 2  ;;  %p336_p2 = scmp.lt.s32.totalorder %s844_s15, 3 }
   0x5   : > { %s1046_s16 = smov (%p35_p1, %s33_s16), 0  ;;  %p337_p3 = pnand %p753_p0, %p336_p2 }
   0x6   : > { %p385_p4 = scmp.lt.s32.totalorder (!%p337_p3), %s836_s13, 1  ;;  %s847_s26 = smov (!%p337_p3), 126  }
   0x7   : > { %340 = sbr.rel (%p337_p3) target bundleno = 562 (0x232), region = 52  ;;  %s848_s27 = smov (!%p337_p3), 127  }
   0x8   : > { %p779_p5 = scmp.ne.s32.totalorder (!%p337_p3), %s836_s13, 0 }
   0xc   : > { %v407_v0 = vld [vmem:[%s1035_s3] sm:$0xff]  ;;  %v846_v2 = vmov 0   ;;  %v408_v5 = vld [vmem:[%s1035_s3 + $0x8] sm:$0xff]  ;;  %s386_s21 = scalar_select %p385_p4, %s836_s13, 1  ;;  %v485_v45 = vlaneseq  ;;  %vm514_vm11 = vcmask 130048   ;;  %vm603_vm12 = vcmask 64512  }
   0xd   : > { %v411_v1 = vld [vmem:[%s1036_s4] sm:$0xff]  ;;  %816 = vset.pattern.permute.xlu0 %v846_v2  ;;  %v409_v3 = vmul.f32 0.0625, %v407_v0  ;;  %817 = vset.pattern.permute.xlu1 %v846_v2  ;;  %v412_v6 = vld [vmem:[%s1036_s4 + $0x8] sm:$0xff]  ;;  %v410_v7 = vmul.f32 0.0625, %v408_v5 }
   0xe   : > { %v413_v4 = vmul.f32 0.0625, %v411_v1  ;;  %v414_v8 = vmul.f32 0.0625, %v412_v6  ;;  %v421_v27 = vld [vmem:[%s1037_s5] sm:$0xff]  ;;  %v422_v31 = vld [vmem:[%s1037_s5 + $0x8] sm:$0xff]  ;;  %s957_s22 = sshll.u32 %s386_s21, 4  ;;  %v486_v47 = vand.u32 127, %v485_v45 }
   0xf   : > { %v415_v9 = vmul.f32 %v409_v3, %v409_v3  ;;  %v416_v10 = vmul.f32 %v410_v7, %v410_v7  ;;  %v447_v34 = vld [vmem:[%s1038_s6] sm:$0xff]  ;;  %v448_v39 = vld [vmem:[%s1038_s6 + $0x8] sm:$0xff]  ;;  %s389_s25 = scalar_lea.vmem %s1032_s0, %s957_s22  ;;  %s397_s20 = scalar_lea.vmem %s1039_s7, %s957_s22 }
  0x10   : > { %v585_v41 = vld [vmem:[%s1034_s2] sm:$0xff]  ;;  %v586_v42 = vld [vmem:[%s1034_s2 + $0x8] sm:$0xff]  ;;  %vm487_vm6 = vcmp.ge.s32.totalorder %v486_v47, 1  ;;  %vm488_vm7 = vcmp.lt.s32.totalorder %v486_v47, 9  ;;  %s405_s24 = scalar_lea.vmem %s1040_s8, %s957_s22 }
  0x11   : > { %v417_v11 = vsub.f32 %v413_v4, %v415_v9  ;;  %v418_v12 = vsub.f32 %v414_v8, %v416_v10  ;;  %v453_v43 = vld [vmem:[%s389_s25] sm:$0xff]  ;;  %v454_v52 = vld [vmem:[%s389_s25 + $0x8] sm:$0xff]  ;;  %vm489_vm9 = vmand %vm487_vm6, %vm488_vm7 }
  0x12   : > { %v785_v2 = vld [vmem:[%s1033_s1] sm:$0xff]  ;;  %v787_v4 = vld [vmem:[%s1033_s1 + $0x10] sm:$0xff]  ;;  %v786_v6 = vld [vmem:[%s1033_s1 + $0x8] sm:$0xff] }
  0x13   : > { %v419_v13 = vmax.f32 %v417_v11, 0.0  ;;  %v420_v14 = vmax.f32 %v418_v12, 0.0  ;;  %v599_v12 = vld [vmem:[%s397_s20] sm:$0xff] }
  0x15   : > { %v423_v15 = vadd.f32 1e-05, %v419_v13  ;;  %v424_v16 = vadd.f32 1e-05, %v420_v14 }
  0x17   : > { %818 = vrsqrt.f32 %v423_v15  ;;  %vm431_vm0 = vweird.f32 %v423_v15  ;;  %vm441_vm2 = vweird.f32 %v424_v16 }
  0x18   : > { %820 = vrsqrt.f32 %v424_v16 }
  0x1d   : > { %v819_v17 = vpop.eup %818 }
  0x1e   : > { %v821_v18 = vpop.eup %820  ;;  %v426_v19 = vmul.f32 %v819_v17, %v423_v15  ;;  %vm432_vm1 = vweird.f32 %v819_v17  ;;  %v600_v15 = vld [vmem:[%s397_s20 + $0x8] sm:$0xff] }
  0x1f   : > { %v436_v20 = vmul.f32 %v821_v18, %v424_v16  ;;  %vm442_vm3 = vweird.f32 %v821_v18  ;;  %vm433_vm4 = vmor %vm431_vm0, %vm432_vm1 }
  0x20   : > { %v427_v21 = vmul.f32 %v819_v17, %v426_v19  ;;  %vm443_vm5 = vmor %vm441_vm2, %vm442_vm3 }
  0x21   : > { %v437_v22 = vmul.f32 %v821_v18, %v436_v20 }
  0x22   : > { %v428_v23 = vmul.f32 0.5, %v427_v21 }
  0x23   : > { %v438_v24 = vmul.f32 0.5, %v437_v22 }
  0x24   : > { %v429_v25 = vsub.f32 1.5, %v428_v23 }
  0x25   : > { %v439_v26 = vsub.f32 1.5, %v438_v24 }
  0x26   : > { %v430_v28 = vmul.f32 %v819_v17, %v429_v25 }
  0x27   : > { %v440_v29 = vmul.f32 %v821_v18, %v439_v26 }
  0x28   : > { %v434_v30 = vsel %vm433_vm4, %v819_v17, %v430_v28 }
  0x29   : > { %v445_v32 = vmul.f32 %v434_v30, %v421_v27  ;;  %v444_v33 = vsel %vm443_vm5, %v821_v18, %v440_v29 }
  0x2a   : > { %v446_v36 = vmul.f32 %v444_v33, %v422_v31 }
  0x2b   : > { %457 = vperm.xlu0 %816, %v445_v32   ;;  %v449_v35 = vmul.f32 %v445_v32, %v409_v3 }
  0x2c   : > { %v450_v38 = vmul.f32 %v446_v36, %v410_v7 }
  0x2d   : > { %v451_v37 = vsub.f32 %v447_v34, %v449_v35 }
  0x2e   : > { %v452_v40 = vsub.f32 %v448_v39, %v450_v38 }
  0x2f   : > { %469 = vperm.xlu1 %817, %v451_v37  }
  0x33   : > { %462 = vperm.xlu0 %816, %v446_v36  }
  0x37   : > { %474 = vperm.xlu1 %817, %v452_v40  }
  0x3b   : > { %589 = vperm.xlu0 %816, %v585_v41  }
  0x3f   : > { %594 = vperm.xlu1 %817, %v586_v42  }
  0x9d   : > { %v458_v44 = vpop.permute.xlu0 %457 }
  0x9e   : > { %v465_v46 = vmul.f32 %v458_v44, %v453_v43 }
  0xa1   : > { %v470_v48 = vpop.permute.xlu1 %469 }
  0xa2   : > { %v477_v49 = vadd.f32 %v470_v48, %v465_v46 }
  0xa4   : > { %v481_v50 = vmul.f32 0.2, %v477_v49  ;;  %vm479_vm8 = vcmp.gt.f32.partialorder %v477_v49, 0.0 }
  0xa5   : > { %v463_v51 = vpop.permute.xlu0 %462 }
  0xa6   : > { %v483_v53 = vsel %vm479_vm8, %v477_v49, %v481_v50  ;;  %v466_v54 = vmul.f32 %v463_v51, %v454_v52 }
  0xa7   : > { %v492_v57 = vsel %vm489_vm9, %v483_v53, 0.0 }
  0xa8   : > { %v494_v59 = vpack.c.bf16 %v492_v57, %v492_v57 }
  0xa9   : > { %v475_v55 = vpop.permute.xlu1 %474 }
  0xaa   : > { %v478_v56 = vadd.f32 %v475_v55, %v466_v54  ;;  %v508_v63 = vunpack.c.l.b16 %v494_v59 }
  0xac   : > { %vm480_vm10 = vcmp.gt.f32.partialorder %v478_v56, 0.0  ;;  %v482_v58 = vmul.f32 0.2, %v478_v56 }
  0xad   : > { %v590_v13 = vpop.permute.xlu0 %589 }
  0xae   : > { %v484_v60 = vsel %vm480_vm10, %v478_v56, %v482_v58 }
  0xaf   : > { %v493_v61 = vsel %vm489_vm9, %v484_v60, 0.0 }
  0xb0   : > { %v495_v62 = vpack.c.bf16 %v493_v61, %v493_v61 }
  0xb1   : > { %v595_v22 = vpop.permute.xlu1 %594 }
  0xb2   : > { %v509_v0 = vunpack.c.l.b16 %v495_v62 }
  0xb4   : > { %v510_v1 = vpack.c.b16 %v509_v0, %v508_v63 }
  0xb6   : > { %563 = vrot.lane.b32.xlu2 %v510_v1, %s847_s26  ;;  %548 = vmatpush.bf16.msra.mxu1 %v510_v1 }
  0xb9   : > { %771 = vmatmul.msk.bf16.vlgmr.msra.gmra.mxu1 %vm514_vm11, %v785_v2 }
  0xbe   : > { %511 = vrot.lane.b32.xlu2 %v510_v1, %s848_s27 }
 0x110   : > { %v564_v3 = vpop.permute.xlu2 %563 }
 0x111   : > { %576 = vmatpush.bf16.msra.mxu2 %v564_v3 }
 0x114   : > { %778 = vmatmul.msk.bf16.vlgmr.msra.gmra.mxu2 %vm514_vm11, %v787_v4 }
 0x118   : > { %v512_v5 = vpop.permute.xlu2 %511 }
 0x119   : > { %525 = vmatpush.bf16.msra.mxu0 %v512_v5 }
 0x11c   : > { %766 = vmatmul.msk.bf16.vlgmr.msra.gmra.mxu0 %vm514_vm11, %v786_v6 }
 0x136   : > { %v550_v7 = vpop.f32.mrf.mxu1 }
 0x13e   : > { %v552_v17 = vpop.f32.mrf.mxu1 }
 0x197   : > { %v578_v8 = vpop.f32.mrf.mxu2 }
 0x199   : > { %v527_v9 = vpop.f32.mrf.mxu0 }
 0x19a   : > { %v551_v10 = vadd.f32 %v550_v7, %v527_v9 }
 0x19c   : > { %v583_v11 = vadd.f32 %v578_v8, %v551_v10 }
 0x19e   : > { %v597_v14 = vadd.f32 %v590_v13, %v583_v11 }
 0x19f   : > { %v580_v20 = vpop.f32.mrf.mxu2 }
 0x1a0   : > { %v601_v16 = vadd.f32 %v599_v12, %v597_v14 }
 0x1a1   : > { %v529_v18 = vpop.f32.mrf.mxu0 }
 0x1a2   : > { %604 = vst.msk [vmem:[%s405_s24] sm:$0xff] %vm603_vm12, %v601_v16  ;;  %v553_v19 = vadd.f32 %v552_v17, %v529_v18 }
 0x1a4   : > { %v584_v21 = vadd.f32 %v580_v20, %v553_v19 }
 0x1a6   : > { %v598_v23 = vadd.f32 %v595_v22, %v584_v21  ;;  %609 = sbr.rel (%p779_p5) target bundleno = 432 (0x1b0), region = 56 }
 0x1a8   : > { %v602_v24 = vadd.f32 %v600_v15, %v598_v23 }
 0x1aa   : > { %605 = vst.msk [vmem:[%s405_s24 + $0x8] sm:$0xff] %vm603_vm12, %v602_v24 }
 0x1ab   : > { %vm610_vm13 = vcmask 7168   ;;  %v849_v25 = vmov 0.0  }
 0x1ac   : > { %611 = vst.msk [vmem:[%s1041_s9] sm:$0xff] %vm610_vm13, %v849_v25 }
 0x1ad   : > { %612 = vst.msk [vmem:[%s1041_s9 + $0x8] sm:$0xff] %vm610_vm13, %v849_v25 }
 0x1ae   : > { %613 = vst.msk [vmem:[%s1042_s10] sm:$0xff] %vm610_vm13, %v849_v25 }
 0x1af   : > { %614 = vst.msk [vmem:[%s1042_s10 + $0x8] sm:$0xff] %vm610_vm13, %v849_v25 }
 0x1b0 PF: > { %v630_v26 = vmul.f32 %v601_v16, %v601_v16  ;;  %v617_v27 = vsel %vm603_vm12, %v601_v16, 0.0  ;;  %v631_v29 = vmul.f32 %v602_v24, %v602_v24  ;;  %v620_v30 = vsel %vm603_vm12, %v602_v24, 0.0 }
 0x1b1   : > { %618 = vadd.xlane.f32.xlu0 %v617_v27  ;;  %vm625_vm14 = vcmask 7168  }
 0x1b2   : > { %v632_v28 = vsel %vm603_vm12, %v630_v26, 0.0  ;;  %v635_v31 = vsel %vm603_vm12, %v631_v29, 0.0 }
 0x1b3   : > { %633 = vadd.xlane.f32.xlu1 %v632_v28  ;;  %v615_v32 = vld [vmem:[%s1041_s9] sm:$0xff] }
 0x1b4   : > { %v616_v38 = vld [vmem:[%s1041_s9 + $0x8] sm:$0xff] }
 0x1b5   : > { %v628_v33 = vld [vmem:[%s1042_s10] sm:$0xff] }
 0x1b6   : > { %v629_v39 = vld [vmem:[%s1042_s10 + $0x8] sm:$0xff] }
 0x1b9   : > { %621 = vadd.xlane.f32.xlu0 %v620_v30 }
 0x1bb   : > { %636 = vadd.xlane.f32.xlu1 %v635_v31 }
 0x224   : > { %v619_v34 = vpop.xlane.xlu0 %618 }
 0x225   : > { %v623_v35 = vadd.f32 %v619_v34, %v615_v32 }
 0x226   : > { %v634_v36 = vpop.xlane.xlu1 %633 }
 0x227   : > { %v638_v37 = vadd.f32 %v634_v36, %v628_v33  ;;  %626 = vst.msk [vmem:[%s1041_s9] sm:$0xff] %vm625_vm14, %v623_v35 }
 0x229   : > { %640 = vst.msk [vmem:[%s1042_s10] sm:$0xff] %vm625_vm14, %v638_v37 }
 0x22c   : > { %v622_v40 = vpop.xlane.xlu0 %621 }
 0x22d   : > { %v624_v41 = vadd.f32 %v622_v40, %v616_v38 }
 0x22e   : > { %v637_v42 = vpop.xlane.xlu1 %636 }
 0x22f   : > { %v639_v43 = vadd.f32 %v637_v42, %v629_v39  ;;  %627 = vst.msk [vmem:[%s1041_s9 + $0x8] sm:$0xff] %vm625_vm14, %v624_v41 }
 0x231   : > { %641 = vst.msk [vmem:[%s1042_s10 + $0x8] sm:$0xff] %vm625_vm14, %v639_v43 }
 0x232 PF: > { %s21_s15 = sadd.s32 1, %s844_s15   ;;  %s1043_s13 = smov %s840_s14 }
 0x233   : > { %p18_p6 = scmp.ge.s32.totalorder %s21_s15, 4   ;;  %s1044_s14 = smov %s1046_s16 }
 0x235   :  { %20 = sbr.rel (!%p18_p6) target bundleno = 2 (0x2), region = 107 }

// kernel: encoder_convd_forward.33
= control target key start
LH: loop header
LB: loop body
LE: loop exit
PB: predicated region body
PF: predicated region fallthrough
CT: control target
= control target key end

     0   :  { %s817_s30 = smov 0   ;;  %s819_s10 = smov 0   ;;  %s943_s0 = inlined_call_operand.vmem [shape: f32[2,1,16,10], index: 0, kind: input, shape index: {}]   ;;  %s944_s1 = inlined_call_operand.vmem [shape: bf16[3,16,16], index: 1, kind: input, shape index: {}]   ;;  %s945_s2 = inlined_call_operand.vmem [shape: f32[16,1], index: 2, kind: input, shape index: {}]   ;;  %s946_s3 = inlined_call_operand.vmem [shape: f32[16,1], index: 3, kind: input, shape index: {}]   ;;  %s947_s4 = inlined_call_operand.vmem [shape: f32[16,1], index: 4, kind: input, shape index: {}]   ;;  %s948_s5 = inlined_call_operand.vmem [shape: f32[16,1], index: 5, kind: input, shape index: {}]   ;;  %s949_s6 = inlined_call_operand.vmem [shape: f32[16,1], index: 6, kind: input, shape index: {}]   ;;  %s950_s7 = inlined_call_operand.vmem [shape: f32[2,16,8], index: 7, kind: output, shape index: {0}]   ;;  %s951_s8 = inlined_call_operand.vmem [shape: f32[16,1], index: 8, kind: output, shape index: {1}]   ;;  %s952_s9 = inlined_call_operand.vmem [shape: f32[16,1], index: 9, kind: output, shape index: {2}]  }
   0x1   :  { %s821_s11 = smov 0  }
   0x2 LB: > { %s32_s12 = sadd.s32 1, %s757_s10  ;;  %p673_p0 = scmp.ge.s32.totalorder %s761_s11, 1  ;;  %s761_s11 = sphi %s821_s11, %s20_s11   ;;  %s757_s10 = sphi %s819_s10, %s954_s10   ;;  %s753_s30 = sphi %s817_s30, %s953_s30  }
   0x3   : > { %p34_p1 = scmp.ge.s32.totalorder %s32_s12, 2  ;;  %p296_p2 = scmp.lt.s32.totalorder %s761_s11, 3 }
   0x5   : > { %s956_s12 = smov (%p34_p1, %s32_s12), 0  ;;  %p297_p3 = pnand %p673_p0, %p296_p2 }
   0x6   : > { %p335_p4 = scmp.lt.s32.totalorder (!%p297_p3), %s753_s30, 1  ;;  %s764_s21 = smov (!%p297_p3), 126  }
   0x7   : > { %300 = sbr.rel (%p297_p3) target bundleno = 560 (0x230), region = 48  ;;  %s765_s22 = smov (!%p297_p3), 127  }
   0x8   : > { %p697_p5 = scmp.ne.s32.totalorder (!%p297_p3), %s753_s30, 0 }
   0xc   : > { %v349_v0 = vld [vmem:[%s946_s3] sm:$0xff]  ;;  %v763_v2 = vmov 0   ;;  %v350_v5 = vld [vmem:[%s946_s3 + $0x8] sm:$0xff]  ;;  %s869_s16 = scalar_select %p335_p4, %s753_s30, 1  ;;  %v427_v45 = vlaneseq  ;;  %vm456_vm11 = vcmask 130048   ;;  %vm541_vm12 = vcmask 64512  }
   0xd   : > { %v353_v1 = vld [vmem:[%s947_s4] sm:$0xff]  ;;  %733 = vset.pattern.permute.xlu0 %v763_v2  ;;  %v351_v3 = vmul.f32 0.0625, %v349_v0  ;;  %734 = vset.pattern.permute.xlu1 %v763_v2  ;;  %v354_v6 = vld [vmem:[%s947_s4 + $0x8] sm:$0xff]  ;;  %v352_v7 = vmul.f32 0.0625, %v350_v5 }
   0xe   : > { %v355_v4 = vmul.f32 0.0625, %v353_v1  ;;  %v356_v8 = vmul.f32 0.0625, %v354_v6  ;;  %v363_v27 = vld [vmem:[%s948_s5] sm:$0xff]  ;;  %v364_v31 = vld [vmem:[%s948_s5 + $0x8] sm:$0xff]  ;;  %s700_s17 = sshll.u32 %s869_s16, 4  ;;  %v428_v47 = vand.u32 127, %v427_v45 }
   0xf   : > { %v357_v9 = vmul.f32 %v351_v3, %v351_v3  ;;  %v358_v10 = vmul.f32 %v352_v7, %v352_v7  ;;  %v389_v34 = vld [vmem:[%s949_s6] sm:$0xff]  ;;  %v390_v39 = vld [vmem:[%s949_s6 + $0x8] sm:$0xff]  ;;  %s339_s20 = scalar_lea.vmem %s943_s0, %s700_s17  ;;  %s347_s14 = scalar_lea.vmem %s950_s7, %s700_s17 }
  0x10   : > { %v527_v41 = vld [vmem:[%s945_s2] sm:$0xff]  ;;  %v528_v42 = vld [vmem:[%s945_s2 + $0x8] sm:$0xff]  ;;  %vm429_vm6 = vcmp.ge.s32.totalorder %v428_v47, 1  ;;  %vm430_vm7 = vcmp.lt.s32.totalorder %v428_v47, 9 }
  0x11   : > { %v359_v11 = vsub.f32 %v355_v4, %v357_v9  ;;  %v360_v12 = vsub.f32 %v356_v8, %v358_v10  ;;  %v395_v43 = vld [vmem:[%s339_s20] sm:$0xff]  ;;  %v396_v52 = vld [vmem:[%s339_s20 + $0x8] sm:$0xff]  ;;  %vm431_vm9 = vmand %vm429_vm6, %vm430_vm7 }
  0x12   : > { %v702_v2 = vld [vmem:[%s944_s1] sm:$0xff]  ;;  %v704_v4 = vld [vmem:[%s944_s1 + $0x10] sm:$0xff]  ;;  %v703_v6 = vld [vmem:[%s944_s1 + $0x8] sm:$0xff] }
  0x13   : > { %v361_v13 = vmax.f32 %v359_v11, 0.0  ;;  %v362_v14 = vmax.f32 %v360_v12, 0.0 }
  0x15   : > { %v365_v15 = vadd.f32 1e-05, %v361_v13  ;;  %v366_v16 = vadd.f32 1e-05, %v362_v14 }
  0x17   : > { %735 = vrsqrt.f32 %v365_v15  ;;  %vm373_vm0 = vweird.f32 %v365_v15  ;;  %vm383_vm2 = vweird.f32 %v366_v16 }
  0x18   : > { %737 = vrsqrt.f32 %v366_v16 }
  0x1d   : > { %v736_v17 = vpop.eup %735 }
  0x1e   : > { %v738_v18 = vpop.eup %737  ;;  %v368_v19 = vmul.f32 %v736_v17, %v365_v15  ;;  %vm374_vm1 = vweird.f32 %v736_v17 }
  0x1f   : > { %v378_v20 = vmul.f32 %v738_v18, %v366_v16  ;;  %vm384_vm3 = vweird.f32 %v738_v18  ;;  %vm375_vm4 = vmor %vm373_vm0, %vm374_vm1 }
  0x20   : > { %v369_v21 = vmul.f32 %v736_v17, %v368_v19  ;;  %vm385_vm5 = vmor %vm383_vm2, %vm384_vm3 }
  0x21   : > { %v379_v22 = vmul.f32 %v738_v18, %v378_v20 }
  0x22   : > { %v370_v23 = vmul.f32 0.5, %v369_v21 }
  0x23   : > { %v380_v24 = vmul.f32 0.5, %v379_v22 }
  0x24   : > { %v371_v25 = vsub.f32 1.5, %v370_v23 }
  0x25   : > { %v381_v26 = vsub.f32 1.5, %v380_v24 }
  0x26   : > { %v372_v28 = vmul.f32 %v736_v17, %v371_v25 }
  0x27   : > { %v382_v29 = vmul.f32 %v738_v18, %v381_v26 }
  0x28   : > { %v376_v30 = vsel %vm375_vm4, %v736_v17, %v372_v28 }
  0x29   : > { %v387_v32 = vmul.f32 %v376_v30, %v363_v27  ;;  %v386_v33 = vsel %vm385_vm5, %v738_v18, %v382_v29 }
  0x2a   : > { %v388_v36 = vmul.f32 %v386_v33, %v364_v31 }
  0x2b   : > { %399 = vperm.xlu0 %733, %v387_v32   ;;  %v391_v35 = vmul.f32 %v387_v32, %v351_v3 }
  0x2c   : > { %v392_v38 = vmul.f32 %v388_v36, %v352_v7 }
  0x2d   : > { %v393_v37 = vsub.f32 %v389_v34, %v391_v35 }
  0x2e   : > { %v394_v40 = vsub.f32 %v390_v39, %v392_v38 }
  0x2f   : > { %411 = vperm.xlu1 %734, %v393_v37  }
  0x33   : > { %404 = vperm.xlu0 %733, %v388_v36  }
  0x37   : > { %416 = vperm.xlu1 %734, %v394_v40  }
  0x3b   : > { %531 = vperm.xlu0 %733, %v527_v41  }
  0x3f   : > { %536 = vperm.xlu1 %734, %v528_v42  }
  0x9d   : > { %v400_v44 = vpop.permute.xlu0 %399 }
  0x9e   : > { %v407_v46 = vmul.f32 %v400_v44, %v395_v43 }
  0xa1   : > { %v412_v48 = vpop.permute.xlu1 %411 }
  0xa2   : > { %v419_v49 = vadd.f32 %v412_v48, %v407_v46 }
  0xa4   : > { %v423_v50 = vmul.f32 0.2, %v419_v49  ;;  %vm421_vm8 = vcmp.gt.f32.partialorder %v419_v49, 0.0 }
  0xa5   : > { %v405_v51 = vpop.permute.xlu0 %404 }
  0xa6   : > { %v425_v53 = vsel %vm421_vm8, %v419_v49, %v423_v50  ;;  %v408_v54 = vmul.f32 %v405_v51, %v396_v52 }
  0xa7   : > { %v434_v57 = vsel %vm431_vm9, %v425_v53, 0.0 }
  0xa8   : > { %v436_v59 = vpack.c.bf16 %v434_v57, %v434_v57 }
  0xa9   : > { %v417_v55 = vpop.permute.xlu1 %416 }
  0xaa   : > { %v420_v56 = vadd.f32 %v417_v55, %v408_v54  ;;  %v450_v63 = vunpack.c.l.b16 %v436_v59 }
  0xac   : > { %vm422_vm10 = vcmp.gt.f32.partialorder %v420_v56, 0.0  ;;  %v424_v58 = vmul.f32 0.2, %v420_v56 }
  0xad   : > { %v532_v12 = vpop.permute.xlu0 %531 }
  0xae   : > { %v426_v60 = vsel %vm422_vm10, %v420_v56, %v424_v58 }
  0xaf   : > { %v435_v61 = vsel %vm431_vm9, %v426_v60, 0.0 }
  0xb0   : > { %v437_v62 = vpack.c.bf16 %v435_v61, %v435_v61 }
  0xb1   : > { %v537_v19 = vpop.permute.xlu1 %536 }
  0xb2   : > { %v451_v0 = vunpack.c.l.b16 %v437_v62 }
  0xb4   : > { %v452_v1 = vpack.c.b16 %v451_v0, %v450_v63 }
  0xb6   : > { %505 = vrot.lane.b32.xlu2 %v452_v1, %s764_s21  ;;  %490 = vmatpush.bf16.msra.mxu1 %v452_v1 }
  0xb9   : > { %689 = vmatmul.msk.bf16.vlgmr.msra.gmra.mxu1 %vm456_vm11, %v702_v2 }
  0xbe   : > { %453 = vrot.lane.b32.xlu2 %v452_v1, %s765_s22 }
 0x110   : > { %v506_v3 = vpop.permute.xlu2 %505 }
 0x111   : > { %518 = vmatpush.bf16.msra.mxu2 %v506_v3 }
 0x114   : > { %696 = vmatmul.msk.bf16.vlgmr.msra.gmra.mxu2 %vm456_vm11, %v704_v4 }
 0x118   : > { %v454_v5 = vpop.permute.xlu2 %453 }
 0x119   : > { %467 = vmatpush.bf16.msra.mxu0 %v454_v5 }
 0x11c   : > { %684 = vmatmul.msk.bf16.vlgmr.msra.gmra.mxu0 %vm456_vm11, %v703_v6 }
 0x136   : > { %v492_v7 = vpop.f32.mrf.mxu1 }
 0x13e   : > { %v494_v14 = vpop.f32.mrf.mxu1 }
 0x197   : > { %v520_v8 = vpop.f32.mrf.mxu2 }
 0x199   : > { %v469_v9 = vpop.f32.mrf.mxu0 }
 0x19a   : > { %v493_v10 = vadd.f32 %v492_v7, %v469_v9 }
 0x19c   : > { %v525_v11 = vadd.f32 %v520_v8, %v493_v10 }
 0x19e   : > { %v539_v13 = vadd.f32 %v532_v12, %v525_v11 }
 0x19f   : > { %v522_v17 = vpop.f32.mrf.mxu2 }
 0x1a0   : > { %542 = vst.msk [vmem:[%s347_s14] sm:$0xff] %vm541_vm12, %v539_v13 }
 0x1a1   : > { %v471_v15 = vpop.f32.mrf.mxu0 }
 0x1a2   : > { %v495_v16 = vadd.f32 %v494_v14, %v471_v15 }
 0x1a4   : > { %v526_v18 = vadd.f32 %v522_v17, %v495_v16  ;;  %547 = sbr.rel (%p697_p5) target bundleno = 430 (0x1ae), region = 52 }
 0x1a6   : > { %v540_v20 = vadd.f32 %v537_v19, %v526_v18 }
 0x1a8   : > { %543 = vst.msk [vmem:[%s347_s14 + $0x8] sm:$0xff] %vm541_vm12, %v540_v20 }
 0x1a9   : > { %vm548_vm13 = vcmask 7168   ;;  %v766_v21 = vmov 0.0  }
 0x1aa   : > { %549 = vst.msk [vmem:[%s951_s8] sm:$0xff] %vm548_vm13, %v766_v21 }
 0x1ab   : > { %550 = vst.msk [vmem:[%s951_s8 + $0x8] sm:$0xff] %vm548_vm13, %v766_v21 }
 0x1ac   : > { %551 = vst.msk [vmem:[%s952_s9] sm:$0xff] %vm548_vm13, %v766_v21 }
 0x1ad   : > { %552 = vst.msk [vmem:[%s952_s9 + $0x8] sm:$0xff] %vm548_vm13, %v766_v21 }
 0x1ae PF: > { %v568_v22 = vmul.f32 %v539_v13, %v539_v13  ;;  %v555_v23 = vsel %vm541_vm12, %v539_v13, 0.0  ;;  %v569_v25 = vmul.f32 %v540_v20, %v540_v20  ;;  %v558_v26 = vsel %vm541_vm12, %v540_v20, 0.0 }
 0x1af   : > { %556 = vadd.xlane.f32.xlu0 %v555_v23  ;;  %vm563_vm14 = vcmask 7168  }
 0x1b0   : > { %v570_v24 = vsel %vm541_vm12, %v568_v22, 0.0  ;;  %v573_v27 = vsel %vm541_vm12, %v569_v25, 0.0 }
 0x1b1   : > { %571 = vadd.xlane.f32.xlu1 %v570_v24  ;;  %v553_v28 = vld [vmem:[%s951_s8] sm:$0xff] }
 0x1b2   : > { %v554_v34 = vld [vmem:[%s951_s8 + $0x8] sm:$0xff] }
 0x1b3   : > { %v566_v29 = vld [vmem:[%s952_s9] sm:$0xff] }
 0x1b4   : > { %v567_v35 = vld [vmem:[%s952_s9 + $0x8] sm:$0xff] }
 0x1b7   : > { %559 = vadd.xlane.f32.xlu0 %v558_v26 }
 0x1b9   : > { %574 = vadd.xlane.f32.xlu1 %v573_v27 }
 0x222   : > { %v557_v30 = vpop.xlane.xlu0 %556 }
 0x223   : > { %v561_v31 = vadd.f32 %v557_v30, %v553_v28 }
 0x224   : > { %v572_v32 = vpop.xlane.xlu1 %571 }
 0x225   : > { %v576_v33 = vadd.f32 %v572_v32, %v566_v29  ;;  %564 = vst.msk [vmem:[%s951_s8] sm:$0xff] %vm563_vm14, %v561_v31 }
 0x227   : > { %578 = vst.msk [vmem:[%s952_s9] sm:$0xff] %vm563_vm14, %v576_v33 }
 0x22a   : > { %v560_v36 = vpop.xlane.xlu0 %559 }
 0x22b   : > { %v562_v37 = vadd.f32 %v560_v36, %v554_v34 }
 0x22c   : > { %v575_v38 = vpop.xlane.xlu1 %574 }
 0x22d   : > { %v577_v39 = vadd.f32 %v575_v38, %v567_v35  ;;  %565 = vst.msk [vmem:[%s951_s8 + $0x8] sm:$0xff] %vm563_vm14, %v562_v37 }
 0x22f   : > { %579 = vst.msk [vmem:[%s952_s9 + $0x8] sm:$0xff] %vm563_vm14, %v577_v39 }
 0x230 PF: > { %s20_s11 = sadd.s32 1, %s761_s11   ;;  %s953_s30 = smov %s757_s10 }
 0x231   : > { %p17_p6 = scmp.ge.s32.totalorder %s20_s11, 4   ;;  %s954_s10 = smov %s956_s12 }
 0x233   :  { %19 = sbr.rel (!%p17_p6) target bundleno = 2 (0x2), region = 100 }

// kernel: encoder_convd_forward.34
= control target key start
LH: loop header
LB: loop body
LE: loop exit
PB: predicated region body
PF: predicated region fallthrough
CT: control target
= control target key end

     0   :  { %s490_s12 = smov 0   ;;  %s492_s13 = smov 0   ;;  %s548_s0 = inlined_call_operand.vmem [shape: f32[2,1,16,10], index: 0, kind: input, shape index: {}]   ;;  %s549_s1 = inlined_call_operand.vmem [shape: bf16[3,16,16], index: 1, kind: input, shape index: {}]   ;;  %s550_s2 = inlined_call_operand.vmem [shape: f32[16,1], index: 2, kind: input, shape index: {}]   ;;  %s551_s3 = inlined_call_operand.vmem [shape: f32[2,16,8], index: 3, kind: output, shape index: {}]  }
   0x1   :  { %s494_s14 = smov 0  }
   0x2 LB: > { %s25_s15 = sadd.s32 1, %s461_s13  ;;  %p383_p0 = scmp.ge.s32.totalorder %s465_s14, 1  ;;  %s465_s14 = sphi %s494_s14, %s13_s14   ;;  %s461_s13 = sphi %s492_s13, %s553_s13   ;;  %s457_s12 = sphi %s490_s12, %s552_s12  }
   0x3   : > { %p27_p1 = scmp.ge.s32.totalorder %s25_s15, 2  ;;  %p151_p2 = scmp.lt.s32.totalorder %s465_s14, 3 }
   0x5   : > { %s555_s15 = smov (%p27_p1, %s25_s15), 0  ;;  %p152_p3 = pnand %p383_p0, %p151_p2 }
   0x6   : > { %p178_p4 = scmp.lt.s32.totalorder (!%p152_p3), %s457_s12, 1  ;;  %s467_s20 = smov (!%p152_p3), 126  }
   0x7   : > { %155 = sbr.rel (%p152_p3) target bundleno = 289 (0x121), region = 32  ;;  %s468_s21 = smov (!%p152_p3), 127  }
   0xc   : > { %s557_s12 = smov (!%p178_p4, %s457_s12), 1  ;;  %v411_v7 = vld [vmem:[%s549_s1] sm:$0xff]  ;;  %vm214_vm0 = vcmask 130048   ;;  %v469_v9 = vmov 0   ;;  %v286_v10 = vld [vmem:[%s550_s2 + $0x8] sm:$0xff]  ;;  %v413_v12 = vld [vmem:[%s549_s1 + $0x10] sm:$0xff] }
   0xd   : > { %s409_s16 = sshll.u32 %s557_s12, 4  ;;  %v285_v8 = vld [vmem:[%s550_s2] sm:$0xff]  ;;  %441 = vset.pattern.permute.xlu1 %v469_v9  ;;  %442 = vset.pattern.permute.xlu0 %v469_v9  ;;  %v412_v14 = vld [vmem:[%s549_s1 + $0x8] sm:$0xff]  ;;  %vm299_vm1 = vcmask 64512  }
   0xe   : > { %s182_s19 = scalar_lea.vmem %s548_s0, %s409_s16  ;;  %289 = vperm.xlu1 %441, %v285_v8   ;;  %s190_s7 = scalar_lea.vmem %s551_s3, %s409_s16 }
   0xf   : > { %v192_v0 = vld [vmem:[%s182_s19] sm:$0xff]  ;;  %v193_v1 = vld [vmem:[%s182_s19 + $0x8] sm:$0xff] }
  0x10   : > { %v194_v2 = vpack.c.bf16 %v192_v0, %v192_v0  ;;  %v195_v3 = vpack.c.bf16 %v193_v1, %v193_v1 }
  0x12   : > { %v208_v4 = vunpack.c.l.b16 %v194_v2  ;;  %v209_v5 = vunpack.c.l.b16 %v195_v3 }
  0x14   : > { %v210_v6 = vpack.c.b16 %v209_v5, %v208_v4 }
  0x16   : > { %263 = vrot.lane.b32.xlu0 %v210_v6, %s467_s20  ;;  %248 = vmatpush.bf16.msra.mxu1 %v210_v6 }
  0x17   : > { %294 = vperm.xlu1 %441, %v286_v10  }
  0x19   : > { %399 = vmatmul.msk.bf16.vlgmr.msra.gmra.mxu1 %vm214_vm0, %v411_v7 }
  0x1e   : > { %211 = vrot.lane.b32.xlu0 %v210_v6, %s468_s21 }
  0x80   : > { %v290_v19 = vpop.permute.xlu1 %289 }
  0x88   : > { %v264_v11 = vpop.permute.xlu0 %263 }
  0x89   : > { %276 = vmatpush.bf16.msra.mxu2 %v264_v11  ;;  %v295_v27 = vpop.permute.xlu1 %294 }
  0x8c   : > { %406 = vmatmul.msk.bf16.vlgmr.msra.gmra.mxu2 %vm214_vm0, %v413_v12 }
  0x90   : > { %v212_v13 = vpop.permute.xlu0 %211 }
  0x91   : > { %225 = vmatpush.bf16.msra.mxu0 %v212_v13 }
  0x94   : > { %394 = vmatmul.msk.bf16.vlgmr.msra.gmra.mxu0 %vm214_vm0, %v412_v14 }
  0x96   : > { %v250_v15 = vpop.f32.mrf.mxu1 }
  0x9e   : > { %v252_v22 = vpop.f32.mrf.mxu1 }
 0x10f   : > { %v278_v16 = vpop.f32.mrf.mxu2 }
 0x111   : > { %v227_v17 = vpop.f32.mrf.mxu0 }
 0x112   : > { %v251_v18 = vadd.f32 %v250_v15, %v227_v17 }
 0x114   : > { %v283_v20 = vadd.f32 %v278_v16, %v251_v18 }
 0x116   : > { %v297_v21 = vadd.f32 %v290_v19, %v283_v20 }
 0x117   : > { %v280_v25 = vpop.f32.mrf.mxu2 }
 0x118   : > { %300 = vst.msk [vmem:[%s190_s7] sm:$0xff] %vm299_vm1, %v297_v21 }
 0x119   : > { %v229_v23 = vpop.f32.mrf.mxu0 }
 0x11a   : > { %v253_v24 = vadd.f32 %v252_v22, %v229_v23 }
 0x11c   : > { %v284_v26 = vadd.f32 %v280_v25, %v253_v24 }
 0x11e   : > { %v298_v28 = vadd.f32 %v295_v27, %v284_v26 }
 0x120   : > { %301 = vst.msk [vmem:[%s190_s7 + $0x8] sm:$0xff] %vm299_vm1, %v298_v28 }
 0x121 PF: > { %s13_s14 = sadd.s32 1, %s465_s14   ;;  %s552_s12 = smov %s461_s13 }
 0x122   : > { %p10_p5 = scmp.ge.s32.totalorder %s13_s14, 4   ;;  %s553_s13 = smov %s555_s15 }
 0x124   :  { %12 = sbr.rel (!%p10_p5) target bundleno = 2 (0x2), region = 64 }

// kernel: encoder_convd_forward.37
= control target key start
LH: loop header
LB: loop body
LE: loop exit
PB: predicated region body
PF: predicated region fallthrough
CT: control target
= control target key end

     0   :  { %s498_s12 = smov 0   ;;  %s500_s13 = smov 0   ;;  %s550_s0 = inlined_call_operand.vmem [shape: f32[2,2,16,5], index: 0, kind: input, shape index: {}]   ;;  %s551_s1 = inlined_call_operand.vmem [shape: bf16[3,16,16], index: 1, kind: input, shape index: {}]   ;;  %s552_s2 = inlined_call_operand.vmem [shape: f32[16,1], index: 2, kind: input, shape index: {}]   ;;  %s553_s3 = inlined_call_operand.vmem [shape: f32[2,16,4], index: 3, kind: output, shape index: {}]  }
   0x1   :  { %s502_s14 = smov 0  }
   0x2 LB: > { %s25_s15 = sadd.s32 1, %s470_s13  ;;  %p391_p0 = scmp.ge.s32.totalorder %s474_s14, 1  ;;  %s474_s14 = sphi %s502_s14, %s13_s14   ;;  %s470_s13 = sphi %s500_s13, %s555_s13   ;;  %s466_s12 = sphi %s498_s12, %s554_s12  }
   0x3   : > { %p27_p1 = scmp.ge.s32.totalorder %s25_s15, 2  ;;  %p151_p2 = scmp.lt.s32.totalorder %s474_s14, 3 }
   0x5   : > { %s557_s15 = smov (%p27_p1, %s25_s15), 0  ;;  %p152_p3 = pnand %p391_p0, %p151_p2 }
   0x6   : > { %p178_p4 = scmp.lt.s32.totalorder (!%p152_p3), %s466_s12, 1  ;;  %s476_s20 = smov (!%p152_p3), 127  }
   0x7   : > { %155 = sbr.rel (%p152_p3) target bundleno = 285 (0x11d), region = 32 }
   0xc   : > { %s559_s12 = smov (!%p178_p4, %s466_s12), 1  ;;  %v422_v14 = vld [vmem:[%s551_s1 + $0x8] sm:$0xff]  ;;  %vm217_vm0 = vcmask 130048   ;;  %v421_v15 = vld [vmem:[%s551_s1] sm:$0xff]  ;;  %v477_v18 = vmov 0   ;;  %v423_v20 = vld [vmem:[%s551_s1 + $0x10] sm:$0xff] }
   0xd   : > { %s419_s16 = sshll.u32 %s559_s12, 5  ;;  %v293_v16 = vld [vmem:[%s552_s2] sm:$0xff]  ;;  %v294_v17 = vld [vmem:[%s552_s2 + $0x8] sm:$0xff]  ;;  %450 = vset.pattern.permute.xlu0 %v477_v18  ;;  %451 = vset.pattern.permute.xlu1 %v477_v18  ;;  %s420_s4 = sshll.u32 %s559_s12, 4  ;;  %vm307_vm1 = vcmask 31744  }
   0xe   : > { %s182_s19 = scalar_lea.vmem %s550_s0, %s419_s16  ;;  %302 = vperm.xlu1 %451, %v294_v17   ;;  %s190_s7 = scalar_lea.vmem %s553_s3, %s420_s4 }
   0xf   : > { %v192_v0 = vld [vmem:[%s182_s19] sm:$0xff]  ;;  %v193_v1 = vld [vmem:[%s182_s19 + $0x8] sm:$0xff]  ;;  %v396_v2 = vld [vmem:[%s182_s19 + $0x10] sm:$0xff] }
  0x10   : > { %v194_v3 = vpack.c.bf16 %v192_v0, %v192_v0  ;;  %v195_v4 = vpack.c.bf16 %v193_v1, %v193_v1  ;;  %v397_v5 = vld [vmem:[%s182_s19 + $0x18] sm:$0xff]  ;;  %v199_v6 = vpack.c.bf16 %v396_v2, %v396_v2 }
  0x11   : > { %v200_v7 = vpack.c.bf16 %v397_v5, %v397_v5 }
  0x12   : > { %v242_v8 = vunpack.c.l.b16 %v194_v3  ;;  %v243_v9 = vunpack.c.l.b16 %v195_v4  ;;  %v213_v10 = vunpack.c.l.b16 %v199_v6 }
  0x13   : > { %v214_v11 = vunpack.c.l.b16 %v200_v7 }
  0x14   : > { %v244_v12 = vpack.c.b16 %v243_v9, %v242_v8 }
  0x15   : > { %v215_v13 = vpack.c.b16 %v214_v11, %v213_v10 }
  0x16   : > { %271 = vrot.lane.b32.xlu0 %v244_v12, %s476_s20  ;;  %256 = vmatpush.bf16.msra.mxu1 %v244_v12 }
  0x17   : > { %228 = vmatpush.bf16.msra.mxu0 %v215_v13 }
  0x19   : > { %409 = vmatmul.msk.bf16.vlgmr.msra.gmra.mxu1 %vm217_vm0, %v421_v15 }
  0x1a   : > { %404 = vmatmul.msk.bf16.vlgmr.msra.gmra.mxu0 %vm217_vm0, %v422_v14 }
  0x1e   : > { %297 = vperm.xlu0 %450, %v293_v16  }
  0x80   : > { %v303_v32 = vpop.permute.xlu1 %302 }
  0x88   : > { %v272_v19 = vpop.permute.xlu0 %271 }
  0x89   : > { %284 = vmatpush.bf16.msra.mxu2 %v272_v19 }
  0x8c   : > { %416 = vmatmul.msk.bf16.vlgmr.msra.gmra.mxu2 %vm217_vm0, %v423_v20 }
  0x90   : > { %v298_v25 = vpop.permute.xlu0 %297 }
  0x96   : > { %v258_v22 = vpop.f32.mrf.mxu1 }
  0x97   : > { %v230_v21 = vpop.f32.mrf.mxu0 }
  0x98   : > { %v259_v23 = vadd.f32 %v258_v22, %v230_v21 }
  0x9e   : > { %v260_v29 = vpop.f32.mrf.mxu1 }
  0x9f   : > { %v232_v28 = vpop.f32.mrf.mxu0 }
  0xa0   : > { %v261_v30 = vadd.f32 %v260_v29, %v232_v28 }
 0x10f   : > { %v286_v24 = vpop.f32.mrf.mxu2 }
 0x110   : > { %v291_v26 = vadd.f32 %v286_v24, %v259_v23 }
 0x112   : > { %v305_v27 = vadd.f32 %v298_v25, %v291_v26 }
 0x114   : > { %308 = vst.msk [vmem:[%s190_s7] sm:$0xff] %vm307_vm1, %v305_v27 }
 0x117   : > { %v288_v31 = vpop.f32.mrf.mxu2 }
 0x118   : > { %v292_v33 = vadd.f32 %v288_v31, %v261_v30 }
 0x11a   : > { %v306_v34 = vadd.f32 %v303_v32, %v292_v33 }
 0x11c   : > { %309 = vst.msk [vmem:[%s190_s7 + $0x8] sm:$0xff] %vm307_vm1, %v306_v34 }
 0x11d PF: > { %s13_s14 = sadd.s32 1, %s474_s14   ;;  %s554_s12 = smov %s470_s13 }
 0x11e   : > { %p10_p5 = scmp.ge.s32.totalorder %s13_s14, 4   ;;  %s555_s13 = smov %s557_s15 }
 0x120   :  { %12 = sbr.rel (!%p10_p5) target bundleno = 2 (0x2), region = 65 }

// kernel: encoder_convd_forward.36
= control target key start
LH: loop header
LB: loop body
LE: loop exit
PB: predicated region body
PF: predicated region fallthrough
CT: control target
= control target key end

     0   :  { %s845_s30 = smov 0   ;;  %s847_s10 = smov 0   ;;  %s976_s0 = inlined_call_operand.vmem [shape: f32[2,2,16,5], index: 0, kind: input, shape index: {}]   ;;  %s977_s1 = inlined_call_operand.vmem [shape: bf16[3,16,16], index: 1, kind: input, shape index: {}]   ;;  %s978_s2 = inlined_call_operand.vmem [shape: f32[16,1], index: 2, kind: input, shape index: {}]   ;;  %s979_s3 = inlined_call_operand.vmem [shape: f32[16,1], index: 3, kind: input, shape index: {}]   ;;  %s980_s4 = inlined_call_operand.vmem [shape: f32[16,1], index: 4, kind: input, shape index: {}]   ;;  %s981_s5 = inlined_call_operand.vmem [shape: f32[16,1], index: 5, kind: input, shape index: {}]   ;;  %s982_s6 = inlined_call_operand.vmem [shape: f32[16,1], index: 6, kind: input, shape index: {}]   ;;  %s983_s7 = inlined_call_operand.vmem [shape: f32[2,16,4], index: 7, kind: output, shape index: {0}]   ;;  %s984_s8 = inlined_call_operand.vmem [shape: f32[16,1], index: 8, kind: output, shape index: {1}]   ;;  %s985_s9 = inlined_call_operand.vmem [shape: f32[16,1], index: 9, kind: output, shape index: {2}]  }
   0x1   :  { %s849_s11 = smov 0  }
   0x2 LB: > { %s32_s12 = sadd.s32 1, %s786_s10  ;;  %p700_p0 = scmp.ge.s32.totalorder %s790_s11, 1  ;;  %s790_s11 = sphi %s849_s11, %s20_s11   ;;  %s786_s10 = sphi %s847_s10, %s989_s10   ;;  %s782_s30 = sphi %s845_s30, %s988_s30  }
   0x3   : > { %p34_p1 = scmp.ge.s32.totalorder %s32_s12, 2  ;;  %p296_p2 = scmp.lt.s32.totalorder %s790_s11, 3 }
   0x5   : > { %s991_s12 = smov (%p34_p1, %s32_s12), 0  ;;  %p297_p3 = pnand %p700_p0, %p296_p2 }
   0x6   : > { %p335_p4 = scmp.lt.s32.totalorder (!%p297_p3), %s782_s30, 1  ;;  %s793_s21 = smov (!%p297_p3), 127  }
   0x7   : > { %300 = sbr.rel (%p297_p3) target bundleno = 556 (0x22c), region = 48  ;;  %p726_p5 = scmp.ne.s32.totalorder (!%p297_p3), %s782_s30, 0 }
   0xc   : > { %v349_v0 = vld [vmem:[%s979_s3] sm:$0xff]  ;;  %v792_v2 = vmov 0   ;;  %v350_v5 = vld [vmem:[%s979_s3 + $0x8] sm:$0xff]  ;;  %s894_s14 = scalar_select %p335_p4, %s782_s30, 1  ;;  %v427_v42 = vlaneseq }
   0xd   : > { %v353_v1 = vld [vmem:[%s980_s4] sm:$0xff]  ;;  %761 = vset.pattern.permute.xlu0 %v792_v2  ;;  %v351_v3 = vmul.f32 0.0625, %v349_v0  ;;  %762 = vset.pattern.permute.xlu1 %v792_v2  ;;  %v354_v6 = vld [vmem:[%s980_s4 + $0x8] sm:$0xff]  ;;  %v352_v7 = vmul.f32 0.0625, %v350_v5 }
   0xe   : > { %v355_v4 = vmul.f32 0.0625, %v353_v1  ;;  %v356_v8 = vmul.f32 0.0625, %v354_v6  ;;  %763 = vset.pattern.permute.xlu2 %v792_v2  ;;  %v363_v27 = vld [vmem:[%s981_s5] sm:$0xff]  ;;  %v364_v31 = vld [vmem:[%s981_s5 + $0x8] sm:$0xff]  ;;  %s729_s15 = sshll.u32 %s894_s14, 5  ;;  %v428_v43 = vand.u32 127, %v427_v42 }
   0xf   : > { %v357_v9 = vmul.f32 %v351_v3, %v351_v3  ;;  %v358_v10 = vmul.f32 %v352_v7, %v352_v7  ;;  %v389_v34 = vld [vmem:[%s982_s6] sm:$0xff]  ;;  %v390_v39 = vld [vmem:[%s982_s6 + $0x8] sm:$0xff]  ;;  %s339_s18 = scalar_lea.vmem %s976_s0, %s729_s15  ;;  %s730_s28 = sshll.u32 %s894_s14, 4 }
  0x10   : > { %v555_v41 = vld [vmem:[%s978_s2 + $0x8] sm:$0xff]  ;;  %v395_v44 = vld [vmem:[%s339_s18] sm:$0xff]  ;;  %v705_v45 = vld [vmem:[%s339_s18 + $0x10] sm:$0xff]  ;;  %v429_v46 = vmul.u32 2, %v428_v43  ;;  %s347_s15 = scalar_lea.vmem %s983_s7, %s730_s28 }
  0x11   : > { %v359_v11 = vsub.f32 %v355_v4, %v357_v9  ;;  %v360_v12 = vsub.f32 %v356_v8, %v358_v10  ;;  %v396_v57 = vld [vmem:[%s339_s18 + $0x8] sm:$0xff]  ;;  %v706_v58 = vld [vmem:[%s339_s18 + $0x18] sm:$0xff] }
  0x12   : > { %v452_v50 = vadd.s32 1, %v429_v46  ;;  %vm430_vm10 = vcmp.ge.s32.totalorder %v429_v46, 1  ;;  %vm431_vm11 = vcmp.lt.s32.totalorder %v429_v46, 9 }
  0x13   : > { %v361_v13 = vmax.f32 %v359_v11, 0.0  ;;  %v362_v14 = vmax.f32 %v360_v12, 0.0  ;;  %vm432_vm13 = vmand %vm430_vm10, %vm431_vm11 }
  0x14   : > { %vm453_vm6 = vcmp.ge.s32.totalorder %v452_v50, 1  ;;  %vm454_vm7 = vcmp.lt.s32.totalorder %v452_v50, 9 }
  0x15   : > { %v365_v15 = vadd.f32 1e-05, %v361_v13  ;;  %v366_v16 = vadd.f32 1e-05, %v362_v14  ;;  %vm900_vm12 = vmand %vm453_vm6, %vm454_vm7 }
  0x17   : > { %764 = vrsqrt.f32 %v365_v15  ;;  %vm373_vm0 = vweird.f32 %v365_v15  ;;  %vm383_vm2 = vweird.f32 %v366_v16 }
  0x18   : > { %766 = vrsqrt.f32 %v366_v16 }
  0x1d   : > { %v765_v17 = vpop.eup %764 }
  0x1e   : > { %v767_v18 = vpop.eup %766  ;;  %v368_v19 = vmul.f32 %v765_v17, %v365_v15  ;;  %vm374_vm1 = vweird.f32 %v765_v17 }
  0x1f   : > { %v378_v20 = vmul.f32 %v767_v18, %v366_v16  ;;  %vm384_vm3 = vweird.f32 %v767_v18  ;;  %vm375_vm4 = vmor %vm373_vm0, %vm374_vm1  ;;  %vm478_vm0 = vcmask 130048   ;;  %vm568_vm1 = vcmask 31744  }
  0x20   : > { %v369_v21 = vmul.f32 %v765_v17, %v368_v19  ;;  %vm385_vm5 = vmor %vm383_vm2, %vm384_vm3 }
  0x21   : > { %v379_v22 = vmul.f32 %v767_v18, %v378_v20 }
  0x22   : > { %v370_v23 = vmul.f32 0.5, %v369_v21  ;;  %v732_v21 = vld [vmem:[%s977_s1 + $0x8] sm:$0xff] }
  0x23   : > { %v380_v24 = vmul.f32 0.5, %v379_v22  ;;  %v731_v22 = vld [vmem:[%s977_s1] sm:$0xff] }
  0x24   : > { %v371_v25 = vsub.f32 1.5, %v370_v23  ;;  %v554_v23 = vld [vmem:[%s978_s2] sm:$0xff] }
  0x25   : > { %v381_v26 = vsub.f32 1.5, %v380_v24 }
  0x26   : > { %v372_v28 = vmul.f32 %v765_v17, %v371_v25  ;;  %v733_v25 = vld [vmem:[%s977_s1 + $0x10] sm:$0xff] }
  0x27   : > { %v382_v29 = vmul.f32 %v767_v18, %v381_v26 }
  0x28   : > { %v376_v30 = vsel %vm375_vm4, %v765_v17, %v372_v28 }
  0x29   : > { %v387_v32 = vmul.f32 %v376_v30, %v363_v27  ;;  %v386_v33 = vsel %vm385_vm5, %v767_v18, %v382_v29 }
  0x2a   : > { %v388_v36 = vmul.f32 %v386_v33, %v364_v31 }
  0x2b   : > { %399 = vperm.xlu0 %761, %v387_v32   ;;  %v391_v35 = vmul.f32 %v387_v32, %v351_v3 }
  0x2c   : > { %v392_v38 = vmul.f32 %v388_v36, %v352_v7 }
  0x2d   : > { %v393_v37 = vsub.f32 %v389_v34, %v391_v35 }
  0x2e   : > { %v394_v40 = vsub.f32 %v390_v39, %v392_v38 }
  0x2f   : > { %411 = vperm.xlu1 %762, %v393_v37  }
  0x33   : > { %404 = vperm.xlu0 %761, %v388_v36  }
  0x37   : > { %416 = vperm.xlu1 %762, %v394_v40  }
  0x3b   : > { %563 = vperm.xlu0 %761, %v555_v41  }
  0x9d   : > { %v400_v47 = vpop.permute.xlu0 %399 }
  0x9e   : > { %v407_v48 = vmul.f32 %v400_v47, %v395_v44  ;;  %v442_v49 = vmul.f32 %v705_v45, %v400_v47 }
  0xa1   : > { %v412_v51 = vpop.permute.xlu1 %411 }
  0xa2   : > { %v419_v52 = vadd.f32 %v412_v51, %v407_v48  ;;  %v444_v53 = vadd.f32 %v442_v49, %v412_v51 }
  0xa4   : > { %v423_v54 = vmul.f32 0.2, %v419_v52  ;;  %v448_v55 = vmul.f32 0.2, %v444_v53  ;;  %vm421_vm8 = vcmp.gt.f32.partialorder %v419_v52, 0.0  ;;  %vm446_vm9 = vcmp.gt.f32.partialorder %v444_v53, 0.0 }
  0xa5   : > { %v405_v56 = vpop.permute.xlu0 %404 }
  0xa6   : > { %v408_v60 = vmul.f32 %v405_v56, %v396_v57  ;;  %v443_v61 = vmul.f32 %v706_v58, %v405_v56  ;;  %v450_v62 = vsel %vm446_vm9, %v444_v53, %v448_v55  ;;  %v425_v63 = vsel %vm421_vm8, %v419_v52, %v423_v54 }
  0xa7   : > { %v458_v3 = vsel %vm900_vm12, %v450_v62, 0.0  ;;  %v435_v4 = vsel %vm432_vm13, %v425_v63, 0.0 }
  0xa8   : > { %v460_v9 = vpack.c.bf16 %v458_v3, %v458_v3  ;;  %v437_v10 = vpack.c.bf16 %v435_v4, %v435_v4 }
  0xa9   : > { %v417_v0 = vpop.permute.xlu1 %416 }
  0xaa   : > { %v420_v1 = vadd.f32 %v417_v0, %v408_v60  ;;  %v445_v2 = vadd.f32 %v443_v61, %v417_v0  ;;  %v474_v15 = vunpack.c.l.b16 %v460_v9  ;;  %v503_v17 = vunpack.c.l.b16 %v437_v10 }
  0xac   : > { %vm422_vm14 = vcmp.gt.f32.partialorder %v420_v1, 0.0  ;;  %v424_v5 = vmul.f32 0.2, %v420_v1  ;;  %vm447_vm15 = vcmp.gt.f32.partialorder %v445_v2, 0.0  ;;  %v449_v6 = vmul.f32 0.2, %v445_v2 }
  0xad   : > { %v564_v38 = vpop.permute.xlu0 %563 }
  0xae   : > { %v426_v7 = vsel %vm422_vm14, %v420_v1, %v424_v5  ;;  %v451_v8 = vsel %vm447_vm15, %v445_v2, %v449_v6 }
  0xaf   : > { %v459_v11 = vsel %vm900_vm12, %v451_v8, 0.0  ;;  %v436_v12 = vsel %vm432_vm13, %v426_v7, 0.0 }
  0xb0   : > { %v461_v13 = vpack.c.bf16 %v459_v11, %v459_v11  ;;  %v438_v14 = vpack.c.bf16 %v436_v12, %v436_v12 }
  0xb2   : > { %v475_v16 = vunpack.c.l.b16 %v461_v13  ;;  %v504_v18 = vunpack.c.l.b16 %v438_v14 }
  0xb4   : > { %v476_v19 = vpack.c.b16 %v475_v16, %v474_v15  ;;  %v505_v20 = vpack.c.b16 %v504_v18, %v503_v17 }
  0xb6   : > { %489 = vmatpush.bf16.msra.mxu0 %v476_v19  ;;  %532 = vrot.lane.b32.xlu2 %v505_v20, %s793_s21 }
  0xb7   : > { %517 = vmatpush.bf16.msra.mxu1 %v505_v20 }
  0xb9   : > { %713 = vmatmul.msk.bf16.vlgmr.msra.gmra.mxu0 %vm478_vm0, %v732_v21 }
  0xba   : > { %718 = vmatmul.msk.bf16.vlgmr.msra.gmra.mxu1 %vm478_vm0, %v731_v22 }
  0xbe   : > { %558 = vperm.xlu2 %763, %v554_v23  }
 0x110   : > { %v533_v24 = vpop.permute.xlu2 %532 }
 0x111   : > { %545 = vmatpush.bf16.msra.mxu2 %v533_v24 }
 0x114   : > { %725 = vmatmul.msk.bf16.vlgmr.msra.gmra.mxu2 %vm478_vm0, %v733_v25 }
 0x118   : > { %v559_v30 = vpop.permute.xlu2 %558 }
 0x136   : > { %v491_v26 = vpop.f32.mrf.mxu0 }
 0x137   : > { %v519_v27 = vpop.f32.mrf.mxu1 }
 0x138   : > { %v520_v28 = vadd.f32 %v519_v27, %v491_v26 }
 0x13e   : > { %v493_v33 = vpop.f32.mrf.mxu0 }
 0x13f   : > { %v521_v34 = vpop.f32.mrf.mxu1 }
 0x140   : > { %v522_v35 = vadd.f32 %v521_v34, %v493_v33 }
 0x197   : > { %v547_v29 = vpop.f32.mrf.mxu2 }
 0x198   : > { %v552_v31 = vadd.f32 %v547_v29, %v520_v28 }
 0x19a   : > { %v566_v32 = vadd.f32 %v559_v30, %v552_v31 }
 0x19c   : > { %569 = vst.msk [vmem:[%s347_s15] sm:$0xff] %vm568_vm1, %v566_v32 }
 0x19f   : > { %v549_v36 = vpop.f32.mrf.mxu2 }
 0x1a0   : > { %v553_v37 = vadd.f32 %v549_v36, %v522_v35  ;;  %574 = sbr.rel (%p726_p5) target bundleno = 426 (0x1aa), region = 52 }
 0x1a2   : > { %v567_v39 = vadd.f32 %v564_v38, %v553_v37 }
 0x1a4   : > { %570 = vst.msk [vmem:[%s347_s15 + $0x8] sm:$0xff] %vm568_vm1, %v567_v39 }
 0x1a5   : > { %vm575_vm2 = vcmask 7168   ;;  %v794_v40 = vmov 0.0  }
 0x1a6   : > { %576 = vst.msk [vmem:[%s984_s8] sm:$0xff] %vm575_vm2, %v794_v40 }
 0x1a7   : > { %577 = vst.msk [vmem:[%s984_s8 + $0x8] sm:$0xff] %vm575_vm2, %v794_v40 }
 0x1a8   : > { %578 = vst.msk [vmem:[%s985_s9] sm:$0xff] %vm575_vm2, %v794_v40 }
 0x1a9   : > { %579 = vst.msk [vmem:[%s985_s9 + $0x8] sm:$0xff] %vm575_vm2, %v794_v40 }
 0x1aa PF: > { %v595_v41 = vmul.f32 %v566_v32, %v566_v32  ;;  %v582_v42 = vsel %vm568_vm1, %v566_v32, 0.0  ;;  %v596_v44 = vmul.f32 %v567_v39, %v567_v39  ;;  %v585_v45 = vsel %vm568_vm1, %v567_v39, 0.0 }
 0x1ab   : > { %583 = vadd.xlane.f32.xlu0 %v582_v42  ;;  %vm590_vm3 = vcmask 7168  }
 0x1ac   : > { %v597_v43 = vsel %vm568_vm1, %v595_v41, 0.0  ;;  %v600_v46 = vsel %vm568_vm1, %v596_v44, 0.0 }
 0x1ad   : > { %598 = vadd.xlane.f32.xlu1 %v597_v43  ;;  %v580_v47 = vld [vmem:[%s984_s8] sm:$0xff] }
 0x1ae   : > { %v581_v53 = vld [vmem:[%s984_s8 + $0x8] sm:$0xff] }
 0x1af   : > { %v593_v48 = vld [vmem:[%s985_s9] sm:$0xff] }
 0x1b0   : > { %v594_v54 = vld [vmem:[%s985_s9 + $0x8] sm:$0xff] }
 0x1b3   : > { %586 = vadd.xlane.f32.xlu0 %v585_v45 }
 0x1b5   : > { %601 = vadd.xlane.f32.xlu1 %v600_v46 }
 0x21e   : > { %v584_v49 = vpop.xlane.xlu0 %583 }
 0x21f   : > { %v588_v50 = vadd.f32 %v584_v49, %v580_v47 }
 0x220   : > { %v599_v51 = vpop.xlane.xlu1 %598 }
 0x221   : > { %v603_v52 = vadd.f32 %v599_v51, %v593_v48  ;;  %591 = vst.msk [vmem:[%s984_s8] sm:$0xff] %vm590_vm3, %v588_v50 }
 0x223   : > { %605 = vst.msk [vmem:[%s985_s9] sm:$0xff] %vm590_vm3, %v603_v52 }
 0x226   : > { %v587_v55 = vpop.xlane.xlu0 %586 }
 0x227   : > { %v589_v56 = vadd.f32 %v587_v55, %v581_v53 }
 0x228   : > { %v602_v57 = vpop.xlane.xlu1 %601 }
 0x229   : > { %v604_v58 = vadd.f32 %v602_v57, %v594_v54  ;;  %592 = vst.msk [vmem:[%s984_s8 + $0x8] sm:$0xff] %vm590_vm3, %v589_v56 }
 0x22b   : > { %606 = vst.msk [vmem:[%s985_s9 + $0x8] sm:$0xff] %vm590_vm3, %v604_v58 }
 0x22c PF: > { %s20_s11 = sadd.s32 1, %s790_s11   ;;  %s988_s30 = smov %s786_s10 }
 0x22d   : > { %p17_p6 = scmp.ge.s32.totalorder %s20_s11, 4   ;;  %s989_s10 = smov %s991_s12 }
 0x22f   :  { %19 = sbr.rel (!%p17_p6) target bundleno = 2 (0x2), region = 101 }

// kernel: encoder_convd_forward.38
= control target key start
LH: loop header
LB: loop body
LE: loop exit
PB: predicated region body
PF: predicated region fallthrough
CT: control target
= control target key end

     0   :  { %s905_s13 = smov 0   ;;  %s907_s14 = smov 0   ;;  %s1032_s0 = inlined_call_operand.vmem [shape: f32[2,1,16,6], index: 0, kind: input, shape index: {}]   ;;  %s1033_s1 = inlined_call_operand.vmem [shape: bf16[3,16,16], index: 1, kind: input, shape index: {}]   ;;  %s1034_s2 = inlined_call_operand.vmem [shape: f32[16,1], index: 2, kind: input, shape index: {}]   ;;  %s1035_s3 = inlined_call_operand.vmem [shape: f32[16,1], index: 3, kind: input, shape index: {}]   ;;  %s1036_s4 = inlined_call_operand.vmem [shape: f32[16,1], index: 4, kind: input, shape index: {}]   ;;  %s1037_s5 = inlined_call_operand.vmem [shape: f32[16,1], index: 5, kind: input, shape index: {}]   ;;  %s1038_s6 = inlined_call_operand.vmem [shape: f32[16,1], index: 6, kind: input, shape index: {}]   ;;  %s1039_s7 = inlined_call_operand.vmem [shape: f32[2,16,4], index: 7, kind: input, shape index: {}, may-alias: {7,8}]   ;;  %s1040_s8 = inlined_call_operand.vmem [shape: f32[2,16,4], index: 8, kind: output, shape index: {0}, may-alias: {7,8}]   ;;  %s1041_s9 = inlined_call_operand.vmem [shape: f32[16,1], index: 9, kind: output, shape index: {1}]   ;;  %s1042_s10 = inlined_call_operand.vmem [shape: f32[16,1], index: 10, kind: output, shape index: {2}]  }
   0x1   :  { %s909_s15 = smov 0  }
   0x2 LB: > { %s33_s16 = sadd.s32 1, %s840_s14  ;;  %p753_p0 = scmp.ge.s32.totalorder %s844_s15, 1  ;;  %s844_s15 = sphi %s909_s15, %s21_s15   ;;  %s840_s14 = sphi %s907_s14, %s1044_s14   ;;  %s836_s13 = sphi %s905_s13, %s1043_s13  }
   0x3   : > { %p35_p1 = scmp.ge.s32.totalorder %s33_s16, 2  ;;  %p336_p2 = scmp.lt.s32.totalorder %s844_s15, 3 }
   0x5   : > { %s1046_s16 = smov (%p35_p1, %s33_s16), 0  ;;  %p337_p3 = pnand %p753_p0, %p336_p2 }
   0x6   : > { %p385_p4 = scmp.lt.s32.totalorder (!%p337_p3), %s836_s13, 1  ;;  %s847_s26 = smov (!%p337_p3), 126  }
   0x7   : > { %340 = sbr.rel (%p337_p3) target bundleno = 562 (0x232), region = 52  ;;  %s848_s27 = smov (!%p337_p3), 127  }
   0x8   : > { %p779_p5 = scmp.ne.s32.totalorder (!%p337_p3), %s836_s13, 0 }
   0xc   : > { %v407_v0 = vld [vmem:[%s1035_s3] sm:$0xff]  ;;  %v846_v2 = vmov 0   ;;  %v408_v5 = vld [vmem:[%s1035_s3 + $0x8] sm:$0xff]  ;;  %s386_s21 = scalar_select %p385_p4, %s836_s13, 1  ;;  %v485_v45 = vlaneseq  ;;  %vm514_vm11 = vcmask 130048   ;;  %vm603_vm12 = vcmask 31744  }
   0xd   : > { %v411_v1 = vld [vmem:[%s1036_s4] sm:$0xff]  ;;  %816 = vset.pattern.permute.xlu0 %v846_v2  ;;  %v409_v3 = vmul.f32 0.125, %v407_v0  ;;  %817 = vset.pattern.permute.xlu1 %v846_v2  ;;  %v412_v6 = vld [vmem:[%s1036_s4 + $0x8] sm:$0xff]  ;;  %v410_v7 = vmul.f32 0.125, %v408_v5 }
   0xe   : > { %v413_v4 = vmul.f32 0.125, %v411_v1  ;;  %v414_v8 = vmul.f32 0.125, %v412_v6  ;;  %v421_v27 = vld [vmem:[%s1037_s5] sm:$0xff]  ;;  %v422_v31 = vld [vmem:[%s1037_s5 + $0x8] sm:$0xff]  ;;  %s957_s22 = sshll.u32 %s386_s21, 4  ;;  %v486_v47 = vand.u32 127, %v485_v45 }
   0xf   : > { %v415_v9 = vmul.f32 %v409_v3, %v409_v3  ;;  %v416_v10 = vmul.f32 %v410_v7, %v410_v7  ;;  %v447_v34 = vld [vmem:[%s1038_s6] sm:$0xff]  ;;  %v448_v39 = vld [vmem:[%s1038_s6 + $0x8] sm:$0xff]  ;;  %s389_s25 = scalar_lea.vmem %s1032_s0, %s957_s22  ;;  %s397_s20 = scalar_lea.vmem %s1039_s7, %s957_s22 }
  0x10   : > { %v585_v41 = vld [vmem:[%s1034_s2] sm:$0xff]  ;;  %v586_v42 = vld [vmem:[%s1034_s2 + $0x8] sm:$0xff]  ;;  %vm487_vm6 = vcmp.ge.s32.totalorder %v486_v47, 1  ;;  %vm488_vm7 = vcmp.lt.s32.totalorder %v486_v47, 5  ;;  %s405_s24 = scalar_lea.vmem %s1040_s8, %s957_s22 }
  0x11   : > { %v417_v11 = vsub.f32 %v413_v4, %v415_v9  ;;  %v418_v12 = vsub.f32 %v414_v8, %v416_v10  ;;  %v453_v43 = vld [vmem:[%s389_s25] sm:$0xff]  ;;  %v454_v52 = vld [vmem:[%s389_s25 + $0x8] sm:$0xff]  ;;  %vm489_vm9 = vmand %vm487_vm6, %vm488_vm7 }
  0x12   : > { %v785_v2 = vld [vmem:[%s1033_s1] sm:$0xff]  ;;  %v787_v4 = vld [vmem:[%s1033_s1 + $0x10] sm:$0xff]  ;;  %v786_v6 = vld [vmem:[%s1033_s1 + $0x8] sm:$0xff] }
  0x13   : > { %v419_v13 = vmax.f32 %v417_v11, 0.0  ;;  %v420_v14 = vmax.f32 %v418_v12, 0.0  ;;  %v599_v12 = vld [vmem:[%s397_s20] sm:$0xff] }
  0x15   : > { %v423_v15 = vadd.f32 1e-05, %v419_v13  ;;  %v424_v16 = vadd.f32 1e-05, %v420_v14 }
  0x17   : > { %818 = vrsqrt.f32 %v423_v15  ;;  %vm431_vm0 = vweird.f32 %v423_v15  ;;  %vm441_vm2 = vweird.f32 %v424_v16 }
  0x18   : > { %820 = vrsqrt.f32 %v424_v16 }
  0x1d   : > { %v819_v17 = vpop.eup %818 }
  0x1e   : > { %v821_v18 = vpop.eup %820  ;;  %v426_v19 = vmul.f32 %v819_v17, %v423_v15  ;;  %vm432_vm1 = vweird.f32 %v819_v17  ;;  %v600_v15 = vld [vmem:[%s397_s20 + $0x8] sm:$0xff] }
  0x1f   : > { %v436_v20 = vmul.f32 %v821_v18, %v424_v16  ;;  %vm442_vm3 = vweird.f32 %v821_v18  ;;  %vm433_vm4 = vmor %vm431_vm0, %vm432_vm1 }
  0x20   : > { %v427_v21 = vmul.f32 %v819_v17, %v426_v19  ;;  %vm443_vm5 = vmor %vm441_vm2, %vm442_vm3 }
  0x21   : > { %v437_v22 = vmul.f32 %v821_v18, %v436_v20 }
  0x22   : > { %v428_v23 = vmul.f32 0.5, %v427_v21 }
  0x23   : > { %v438_v24 = vmul.f32 0.5, %v437_v22 }
  0x24   : > { %v429_v25 = vsub.f32 1.5, %v428_v23 }
  0x25   : > { %v439_v26 = vsub.f32 1.5, %v438_v24 }
  0x26   : > { %v430_v28 = vmul.f32 %v819_v17, %v429_v25 }
  0x27   : > { %v440_v29 = vmul.f32 %v821_v18, %v439_v26 }
  0x28   : > { %v434_v30 = vsel %vm433_vm4, %v819_v17, %v430_v28 }
  0x29   : > { %v445_v32 = vmul.f32 %v434_v30, %v421_v27  ;;  %v444_v33 = vsel %vm443_vm5, %v821_v18, %v440_v29 }
  0x2a   : > { %v446_v36 = vmul.f32 %v444_v33, %v422_v31 }
  0x2b   : > { %457 = vperm.xlu0 %816, %v445_v32   ;;  %v449_v35 = vmul.f32 %v445_v32, %v409_v3 }
  0x2c   : > { %v450_v38 = vmul.f32 %v446_v36, %v410_v7 }
  0x2d   : > { %v451_v37 = vsub.f32 %v447_v34, %v449_v35 }
  0x2e   : > { %v452_v40 = vsub.f32 %v448_v39, %v450_v38 }
  0x2f   : > { %469 = vperm.xlu1 %817, %v451_v37  }
  0x33   : > { %462 = vperm.xlu0 %816, %v446_v36  }
  0x37   : > { %474 = vperm.xlu1 %817, %v452_v40  }
  0x3b   : > { %589 = vperm.xlu0 %816, %v585_v41  }
  0x3f   : > { %594 = vperm.xlu1 %817, %v586_v42  }
  0x9d   : > { %v458_v44 = vpop.permute.xlu0 %457 }
  0x9e   : > { %v465_v46 = vmul.f32 %v458_v44, %v453_v43 }
  0xa1   : > { %v470_v48 = vpop.permute.xlu1 %469 }
  0xa2   : > { %v477_v49 = vadd.f32 %v470_v48, %v465_v46 }
  0xa4   : > { %v481_v50 = vmul.f32 0.2, %v477_v49  ;;  %vm479_vm8 = vcmp.gt.f32.partialorder %v477_v49, 0.0 }
  0xa5   : > { %v463_v51 = vpop.permute.xlu0 %462 }
  0xa6   : > { %v483_v53 = vsel %vm479_vm8, %v477_v49, %v481_v50  ;;  %v466_v54 = vmul.f32 %v463_v51, %v454_v52 }
  0xa7   : > { %v492_v57 = vsel %vm489_vm9, %v483_v53, 0.0 }
  0xa8   : > { %v494_v59 = vpack.c.bf16 %v492_v57, %v492_v57 }
  0xa9   : > { %v475_v55 = vpop.permute.xlu1 %474 }
  0xaa   : > { %v478_v56 = vadd.f32 %v475_v55, %v466_v54  ;;  %v508_v63 = vunpack.c.l.b16 %v494_v59 }
  0xac   : > { %vm480_vm10 = vcmp.gt.f32.partialorder %v478_v56, 0.0  ;;  %v482_v58 = vmul.f32 0.2, %v478_v56 }
  0xad   : > { %v590_v13 = vpop.permute.xlu0 %589 }
  0xae   : > { %v484_v60 = vsel %vm480_vm10, %v478_v56, %v482_v58 }
  0xaf   : > { %v493_v61 = vsel %vm489_vm9, %v484_v60, 0.0 }
  0xb0   : > { %v495_v62 = vpack.c.bf16 %v493_v61, %v493_v61 }
  0xb1   : > { %v595_v22 = vpop.permute.xlu1 %594 }
  0xb2   : > { %v509_v0 = vunpack.c.l.b16 %v495_v62 }
  0xb4   : > { %v510_v1 = vpack.c.b16 %v509_v0, %v508_v63 }
  0xb6   : > { %563 = vrot.lane.b32.xlu2 %v510_v1, %s847_s26  ;;  %548 = vmatpush.bf16.msra.mxu1 %v510_v1 }
  0xb9   : > { %771 = vmatmul.msk.bf16.vlgmr.msra.gmra.mxu1 %vm514_vm11, %v785_v2 }
  0xbe   : > { %511 = vrot.lane.b32.xlu2 %v510_v1, %s848_s27 }
 0x110   : > { %v564_v3 = vpop.permute.xlu2 %563 }
 0x111   : > { %576 = vmatpush.bf16.msra.mxu2 %v564_v3 }
 0x114   : > { %778 = vmatmul.msk.bf16.vlgmr.msra.gmra.mxu2 %vm514_vm11, %v787_v4 }
 0x118   : > { %v512_v5 = vpop.permute.xlu2 %511 }
 0x119   : > { %525 = vmatpush.bf16.msra.mxu0 %v512_v5 }
 0x11c   : > { %766 = vmatmul.msk.bf16.vlgmr.msra.gmra.mxu0 %vm514_vm11, %v786_v6 }
 0x136   : > { %v550_v7 = vpop.f32.mrf.mxu1 }
 0x13e   : > { %v552_v17 = vpop.f32.mrf.mxu1 }
 0x197   : > { %v578_v8 = vpop.f32.mrf.mxu2 }
 0x199   : > { %v527_v9 = vpop.f32.mrf.mxu0 }
 0x19a   : > { %v551_v10 = vadd.f32 %v550_v7, %v527_v9 }
 0x19c   : > { %v583_v11 = vadd.f32 %v578_v8, %v551_v10 }
 0x19e   : > { %v597_v14 = vadd.f32 %v590_v13, %v583_v11 }
 0x19f   : > { %v580_v20 = vpop.f32.mrf.mxu2 }
 0x1a0   : > { %v601_v16 = vadd.f32 %v599_v12, %v597_v14 }
 0x1a1   : > { %v529_v18 = vpop.f32.mrf.mxu0 }
 0x1a2   : > { %604 = vst.msk [vmem:[%s405_s24] sm:$0xff] %vm603_vm12, %v601_v16  ;;  %v553_v19 = vadd.f32 %v552_v17, %v529_v18 }
 0x1a4   : > { %v584_v21 = vadd.f32 %v580_v20, %v553_v19 }
 0x1a6   : > { %v598_v23 = vadd.f32 %v595_v22, %v584_v21  ;;  %609 = sbr.rel (%p779_p5) target bundleno = 432 (0x1b0), region = 56 }
 0x1a8   : > { %v602_v24 = vadd.f32 %v600_v15, %v598_v23 }
 0x1aa   : > { %605 = vst.msk [vmem:[%s405_s24 + $0x8] sm:$0xff] %vm603_vm12, %v602_v24 }
 0x1ab   : > { %vm610_vm13 = vcmask 7168   ;;  %v849_v25 = vmov 0.0  }
 0x1ac   : > { %611 = vst.msk [vmem:[%s1041_s9] sm:$0xff] %vm610_vm13, %v849_v25 }
 0x1ad   : > { %612 = vst.msk [vmem:[%s1041_s9 + $0x8] sm:$0xff] %vm610_vm13, %v849_v25 }
 0x1ae   : > { %613 = vst.msk [vmem:[%s1042_s10] sm:$0xff] %vm610_vm13, %v849_v25 }
 0x1af   : > { %614 = vst.msk [vmem:[%s1042_s10 + $0x8] sm:$0xff] %vm610_vm13, %v849_v25 }
 0x1b0 PF: > { %v630_v26 = vmul.f32 %v601_v16, %v601_v16  ;;  %v617_v27 = vsel %vm603_vm12, %v601_v16, 0.0  ;;  %v631_v29 = vmul.f32 %v602_v24, %v602_v24  ;;  %v620_v30 = vsel %vm603_vm12, %v602_v24, 0.0 }
 0x1b1   : > { %618 = vadd.xlane.f32.xlu0 %v617_v27  ;;  %vm625_vm14 = vcmask 7168  }
 0x1b2   : > { %v632_v28 = vsel %vm603_vm12, %v630_v26, 0.0  ;;  %v635_v31 = vsel %vm603_vm12, %v631_v29, 0.0 }
 0x1b3   : > { %633 = vadd.xlane.f32.xlu1 %v632_v28  ;;  %v615_v32 = vld [vmem:[%s1041_s9] sm:$0xff] }
 0x1b4   : > { %v616_v38 = vld [vmem:[%s1041_s9 + $0x8] sm:$0xff] }
 0x1b5   : > { %v628_v33 = vld [vmem:[%s1042_s10] sm:$0xff] }
 0x1b6   : > { %v629_v39 = vld [vmem:[%s1042_s10 + $0x8] sm:$0xff] }
 0x1b9   : > { %621 = vadd.xlane.f32.xlu0 %v620_v30 }
 0x1bb   : > { %636 = vadd.xlane.f32.xlu1 %v635_v31 }
 0x224   : > { %v619_v34 = vpop.xlane.xlu0 %618 }
 0x225   : > { %v623_v35 = vadd.f32 %v619_v34, %v615_v32 }
 0x226   : > { %v634_v36 = vpop.xlane.xlu1 %633 }
 0x227   : > { %v638_v37 = vadd.f32 %v634_v36, %v628_v33  ;;  %626 = vst.msk [vmem:[%s1041_s9] sm:$0xff] %vm625_vm14, %v623_v35 }
 0x229   : > { %640 = vst.msk [vmem:[%s1042_s10] sm:$0xff] %vm625_vm14, %v638_v37 }
 0x22c   : > { %v622_v40 = vpop.xlane.xlu0 %621 }
 0x22d   : > { %v624_v41 = vadd.f32 %v622_v40, %v616_v38 }
 0x22e   : > { %v637_v42 = vpop.xlane.xlu1 %636 }
 0x22f   : > { %v639_v43 = vadd.f32 %v637_v42, %v629_v39  ;;  %627 = vst.msk [vmem:[%s1041_s9 + $0x8] sm:$0xff] %vm625_vm14, %v624_v41 }
 0x231   : > { %641 = vst.msk [vmem:[%s1042_s10 + $0x8] sm:$0xff] %vm625_vm14, %v639_v43 }
 0x232 PF: > { %s21_s15 = sadd.s32 1, %s844_s15   ;;  %s1043_s13 = smov %s840_s14 }
 0x233   : > { %p18_p6 = scmp.ge.s32.totalorder %s21_s15, 4   ;;  %s1044_s14 = smov %s1046_s16 }
 0x235   :  { %20 = sbr.rel (!%p18_p6) target bundleno = 2 (0x2), region = 107 }

// kernel: encoder_convd_forward.39
= control target key start
LH: loop header
LB: loop body
LE: loop exit
PB: predicated region body
PF: predicated region fallthrough
CT: control target
= control target key end

     0   :  { %s817_s30 = smov 0   ;;  %s819_s10 = smov 0   ;;  %s943_s0 = inlined_call_operand.vmem [shape: f32[2,1,16,6], index: 0, kind: input, shape index: {}]   ;;  %s944_s1 = inlined_call_operand.vmem [shape: bf16[3,16,16], index: 1, kind: input, shape index: {}]   ;;  %s945_s2 = inlined_call_operand.vmem [shape: f32[16,1], index: 2, kind: input, shape index: {}]   ;;  %s946_s3 = inlined_call_operand.vmem [shape: f32[16,1], index: 3, kind: input, shape index: {}]   ;;  %s947_s4 = inlined_call_operand.vmem [shape: f32[16,1], index: 4, kind: input, shape index: {}]   ;;  %s948_s5 = inlined_call_operand.vmem [shape: f32[16,1], index: 5, kind: input, shape index: {}]   ;;  %s949_s6 = inlined_call_operand.vmem [shape: f32[16,1], index: 6, kind: input, shape index: {}]   ;;  %s950_s7 = inlined_call_operand.vmem [shape: f32[2,16,4], index: 7, kind: output, shape index: {0}]   ;;  %s951_s8 = inlined_call_operand.vmem [shape: f32[16,1], index: 8, kind: output, shape index: {1}]   ;;  %s952_s9 = inlined_call_operand.vmem [shape: f32[16,1], index: 9, kind: output, shape index: {2}]  }
   0x1   :  { %s821_s11 = smov 0  }
   0x2 LB: > { %s32_s12 = sadd.s32 1, %s757_s10  ;;  %p673_p0 = scmp.ge.s32.totalorder %s761_s11, 1  ;;  %s761_s11 = sphi %s821_s11, %s20_s11   ;;  %s757_s10 = sphi %s819_s10, %s954_s10   ;;  %s753_s30 = sphi %s817_s30, %s953_s30  }
   0x3   : > { %p34_p1 = scmp.ge.s32.totalorder %s32_s12, 2  ;;  %p296_p2 = scmp.lt.s32.totalorder %s761_s11, 3 }
   0x5   : > { %s956_s12 = smov (%p34_p1, %s32_s12), 0  ;;  %p297_p3 = pnand %p673_p0, %p296_p2 }
   0x6   : > { %p335_p4 = scmp.lt.s32.totalorder (!%p297_p3), %s753_s30, 1  ;;  %s764_s21 = smov (!%p297_p3), 126  }
   0x7   : > { %300 = sbr.rel (%p297_p3) target bundleno = 560 (0x230), region = 48  ;;  %s765_s22 = smov (!%p297_p3), 127  }
   0x8   : > { %p697_p5 = scmp.ne.s32.totalorder (!%p297_p3), %s753_s30, 0 }
   0xc   : > { %v349_v0 = vld [vmem:[%s946_s3] sm:$0xff]  ;;  %v763_v2 = vmov 0   ;;  %v350_v5 = vld [vmem:[%s946_s3 + $0x8] sm:$0xff]  ;;  %s869_s16 = scalar_select %p335_p4, %s753_s30, 1  ;;  %v427_v45 = vlaneseq  ;;  %vm456_vm11 = vcmask 130048   ;;  %vm541_vm12 = vcmask 31744  }
   0xd   : > { %v353_v1 = vld [vmem:[%s947_s4] sm:$0xff]  ;;  %733 = vset.pattern.permute.xlu0 %v763_v2  ;;  %v351_v3 = vmul.f32 0.125, %v349_v0  ;;  %734 = vset.pattern.permute.xlu1 %v763_v2  ;;  %v354_v6 = vld [vmem:[%s947_s4 + $0x8] sm:$0xff]  ;;  %v352_v7 = vmul.f32 0.125, %v350_v5 }
   0xe   : > { %v355_v4 = vmul.f32 0.125, %v353_v1  ;;  %v356_v8 = vmul.f32 0.125, %v354_v6  ;;  %v363_v27 = vld [vmem:[%s948_s5] sm:$0xff]  ;;  %v364_v31 = vld [vmem:[%s948_s5 + $0x8] sm:$0xff]  ;;  %s700_s17 = sshll.u32 %s869_s16, 4  ;;  %v428_v47 = vand.u32 127, %v427_v45 }
   0xf   : > { %v357_v9 = vmul.f32 %v351_v3, %v351_v3  ;;  %v358_v10 = vmul.f32 %v352_v7, %v352_v7  ;;  %v389_v34 = vld [vmem:[%s949_s6] sm:$0xff]  ;;  %v390_v39 = vld [vmem:[%s949_s6 + $0x8] sm:$0xff]  ;;  %s339_s20 = scalar_lea.vmem %s943_s0, %s700_s17  ;;  %s347_s14 = scalar_lea.vmem %s950_s7, %s700_s17 }
  0x10   : > { %v527_v41 = vld [vmem:[%s945_s2] sm:$0xff]  ;;  %v528_v42 = vld [vmem:[%s945_s2 + $0x8] sm:$0xff]  ;;  %vm429_vm6 = vcmp.ge.s32.totalorder %v428_v47, 1  ;;  %vm430_vm7 = vcmp.lt.s32.totalorder %v428_v47, 5 }
  0x11   : > { %v359_v11 = vsub.f32 %v355_v4, %v357_v9  ;;  %v360_v12 = vsub.f32 %v356_v8, %v358_v10  ;;  %v395_v43 = vld [vmem:[%s339_s20] sm:$0xff]  ;;  %v396_v52 = vld [vmem:[%s339_s20 + $0x8] sm:$0xff]  ;;  %vm431_vm9 = vmand %vm429_vm6, %vm430_vm7 }
  0x12   : > { %v702_v2 = vld [vmem:[%s944_s1] sm:$0xff]  ;;  %v704_v4 = vld [vmem:[%s944_s1 + $0x10] sm:$0xff]  ;;  %v703_v6 = vld [vmem:[%s944_s1 + $0x8] sm:$0xff] }
  0x13   : > { %v361_v13 = vmax.f32 %v359_v11, 0.0  ;;  %v362_v14 = vmax.f32 %v360_v12, 0.0 }
  0x15   : > { %v365_v15 = vadd.f32 1e-05, %v361_v13  ;;  %v366_v16 = vadd.f32 1e-05, %v362_v14 }
  0x17   : > { %735 = vrsqrt.f32 %v365_v15  ;;  %vm373_vm0 = vweird.f32 %v365_v15  ;;  %vm383_vm2 = vweird.f32 %v366_v16 }
  0x18   : > { %737 = vrsqrt.f32 %v366_v16 }
  0x1d   : > { %v736_v17 = vpop.eup %735 }
  0x1e   : > { %v738_v18 = vpop.eup %737  ;;  %v368_v19 = vmul.f32 %v736_v17, %v365_v15  ;;  %vm374_vm1 = vweird.f32 %v736_v17 }
  0x1f   : > { %v378_v20 = vmul.f32 %v738_v18, %v366_v16  ;;  %vm384_vm3 = vweird.f32 %v738_v18  ;;  %vm375_vm4 = vmor %vm373_vm0, %vm374_vm1 }
  0x20   : > { %v369_v21 = vmul.f32 %v736_v17, %v368_v19  ;;  %vm385_vm5 = vmor %vm383_vm2, %vm384_vm3 }
  0x21   : > { %v379_v22 = vmul.f32 %v738_v18, %v378_v20 }
  0x22   : > { %v370_v23 = vmul.f32 0.5, %v369_v21 }
  0x23   : > { %v380_v24 = vmul.f32 0.5, %v379_v22 }
  0x24   : > { %v371_v25 = vsub.f32 1.5, %v370_v23 }
  0x25   : > { %v381_v26 = vsub.f32 1.5, %v380_v24 }
  0x26   : > { %v372_v28 = vmul.f32 %v736_v17, %v371_v25 }
  0x27   : > { %v382_v29 = vmul.f32 %v738_v18, %v381_v26 }
  0x28   : > { %v376_v30 = vsel %vm375_vm4, %v736_v17, %v372_v28 }
  0x29   : > { %v387_v32 = vmul.f32 %v376_v30, %v363_v27  ;;  %v386_v33 = vsel %vm385_vm5, %v738_v18, %v382_v29 }
  0x2a   : > { %v388_v36 = vmul.f32 %v386_v33, %v364_v31 }
  0x2b   : > { %399 = vperm.xlu0 %733, %v387_v32   ;;  %v391_v35 = vmul.f32 %v387_v32, %v351_v3 }
  0x2c   : > { %v392_v38 = vmul.f32 %v388_v36, %v352_v7 }
  0x2d   : > { %v393_v37 = vsub.f32 %v389_v34, %v391_v35 }
  0x2e   : > { %v394_v40 = vsub.f32 %v390_v39, %v392_v38 }
  0x2f   : > { %411 = vperm.xlu1 %734, %v393_v37  }
  0x33   : > { %404 = vperm.xlu0 %733, %v388_v36  }
  0x37   : > { %416 = vperm.xlu1 %734, %v394_v40  }
  0x3b   : > { %531 = vperm.xlu0 %733, %v527_v41  }
  0x3f   : > { %536 = vperm.xlu1 %734, %v528_v42  }
  0x9d   : > { %v400_v44 = vpop.permute.xlu0 %399 }
  0x9e   : > { %v407_v46 = vmul.f32 %v400_v44, %v395_v43 }
  0xa1   : > { %v412_v48 = vpop.permute.xlu1 %411 }
  0xa2   : > { %v419_v49 = vadd.f32 %v412_v48, %v407_v46 }
  0xa4   : > { %v423_v50 = vmul.f32 0.2, %v419_v49  ;;  %vm421_vm8 = vcmp.gt.f32.partialorder %v419_v49, 0.0 }
  0xa5   : > { %v405_v51 = vpop.permute.xlu0 %404 }
  0xa6   : > { %v425_v53 = vsel %vm421_vm8, %v419_v49, %v423_v50  ;;  %v408_v54 = vmul.f32 %v405_v51, %v396_v52 }
  0xa7   : > { %v434_v57 = vsel %vm431_vm9, %v425_v53, 0.0 }
  0xa8   : > { %v436_v59 = vpack.c.bf16 %v434_v57, %v434_v57 }
  0xa9   : > { %v417_v55 = vpop.permute.xlu1 %416 }
  0xaa   : > { %v420_v56 = vadd.f32 %v417_v55, %v408_v54  ;;  %v450_v63 = vunpack.c.l.b16 %v436_v59 }
  0xac   : > { %vm422_vm10 = vcmp.gt.f32.partialorder %v420_v56, 0.0  ;;  %v424_v58 = vmul.f32 0.2, %v420_v56 }
  0xad   : > { %v532_v12 = vpop.permute.xlu0 %531 }
  0xae   : > { %v426_v60 = vsel %vm422_vm10, %v420_v56, %v424_v58 }
  0xaf   : > { %v435_v61 = vsel %vm431_vm9, %v426_v60, 0.0 }
  0xb0   : > { %v437_v62 = vpack.c.bf16 %v435_v61, %v435_v61 }
  0xb1   : > { %v537_v19 = vpop.permute.xlu1 %536 }
  0xb2   : > { %v451_v0 = vunpack.c.l.b16 %v437_v62 }
  0xb4   : > { %v452_v1 = vpack.c.b16 %v451_v0, %v450_v63 }
  0xb6   : > { %505 = vrot.lane.b32.xlu2 %v452_v1, %s764_s21  ;;  %490 = vmatpush.bf16.msra.mxu1 %v452_v1 }
  0xb9   : > { %689 = vmatmul.msk.bf16.vlgmr.msra.gmra.mxu1 %vm456_vm11, %v702_v2 }
  0xbe   : > { %453 = vrot.lane.b32.xlu2 %v452_v1, %s765_s22 }
 0x110   : > { %v506_v3 = vpop.permute.xlu2 %505 }
 0x111   : > { %518 = vmatpush.bf16.msra.mxu2 %v506_v3 }
 0x114   : > { %696 = vmatmul.msk.bf16.vlgmr.msra.gmra.mxu2 %vm456_vm11, %v704_v4 }
 0x118   : > { %v454_v5 = vpop.permute.xlu2 %453 }
 0x119   : > { %467 = vmatpush.bf16.msra.mxu0 %v454_v5 }
 0x11c   : > { %684 = vmatmul.msk.bf16.vlgmr.msra.gmra.mxu0 %vm456_vm11, %v703_v6 }
 0x136   : > { %v492_v7 = vpop.f32.mrf.mxu1 }
 0x13e   : > { %v494_v14 = vpop.f32.mrf.mxu1 }
 0x197   : > { %v520_v8 = vpop.f32.mrf.mxu2 }
 0x199   : > { %v469_v9 = vpop.f32.mrf.mxu0 }
 0x19a   : > { %v493_v10 = vadd.f32 %v492_v7, %v469_v9 }
 0x19c   : > { %v525_v11 = vadd.f32 %v520_v8, %v493_v10 }
 0x19e   : > { %v539_v13 = vadd.f32 %v532_v12, %v525_v11 }
 0x19f   : > { %v522_v17 = vpop.f32.mrf.mxu2 }
 0x1a0   : > { %542 = vst.msk [vmem:[%s347_s14] sm:$0xff] %vm541_vm12, %v539_v13 }
 0x1a1   : > { %v471_v15 = vpop.f32.mrf.mxu0 }
 0x1a2   : > { %v495_v16 = vadd.f32 %v494_v14, %v471_v15 }
 0x1a4   : > { %v526_v18 = vadd.f32 %v522_v17, %v495_v16  ;;  %547 = sbr.rel (%p697_p5) target bundleno = 430 (0x1ae), region = 52 }
 0x1a6   : > { %v540_v20 = vadd.f32 %v537_v19, %v526_v18 }
 0x1a8   : > { %543 = vst.msk [vmem:[%s347_s14 + $0x8] sm:$0xff] %vm541_vm12, %v540_v20 }
 0x1a9   : > { %vm548_vm13 = vcmask 7168   ;;  %v766_v21 = vmov 0.0  }
 0x1aa   : > { %549 = vst.msk [vmem:[%s951_s8] sm:$0xff] %vm548_vm13, %v766_v21 }
 0x1ab   : > { %550 = vst.msk [vmem:[%s951_s8 + $0x8] sm:$0xff] %vm548_vm13, %v766_v21 }
 0x1ac   : > { %551 = vst.msk [vmem:[%s952_s9] sm:$0xff] %vm548_vm13, %v766_v21 }
 0x1ad   : > { %552 = vst.msk [vmem:[%s952_s9 + $0x8] sm:$0xff] %vm548_vm13, %v766_v21 }
 0x1ae PF: > { %v568_v22 = vmul.f32 %v539_v13, %v539_v13  ;;  %v555_v23 = vsel %vm541_vm12, %v539_v13, 0.0  ;;  %v569_v25 = vmul.f32 %v540_v20, %v540_v20  ;;  %v558_v26 = vsel %vm541_vm12, %v540_v20, 0.0 }
 0x1af   : > { %556 = vadd.xlane.f32.xlu0 %v555_v23  ;;  %vm563_vm14 = vcmask 7168  }
 0x1b0   : > { %v570_v24 = vsel %vm541_vm12, %v568_v22, 0.0  ;;  %v573_v27 = vsel %vm541_vm12, %v569_v25, 0.0 }
 0x1b1   : > { %571 = vadd.xlane.f32.xlu1 %v570_v24  ;;  %v553_v28 = vld [vmem:[%s951_s8] sm:$0xff] }
 0x1b2   : > { %v554_v34 = vld [vmem:[%s951_s8 + $0x8] sm:$0xff] }
 0x1b3   : > { %v566_v29 = vld [vmem:[%s952_s9] sm:$0xff] }
 0x1b4   : > { %v567_v35 = vld [vmem:[%s952_s9 + $0x8] sm:$0xff] }
 0x1b7   : > { %559 = vadd.xlane.f32.xlu0 %v558_v26 }
 0x1b9   : > { %574 = vadd.xlane.f32.xlu1 %v573_v27 }
 0x222   : > { %v557_v30 = vpop.xlane.xlu0 %556 }
 0x223   : > { %v561_v31 = vadd.f32 %v557_v30, %v553_v28 }
 0x224   : > { %v572_v32 = vpop.xlane.xlu1 %571 }
 0x225   : > { %v576_v33 = vadd.f32 %v572_v32, %v566_v29  ;;  %564 = vst.msk [vmem:[%s951_s8] sm:$0xff] %vm563_vm14, %v561_v31 }
 0x227   : > { %578 = vst.msk [vmem:[%s952_s9] sm:$0xff] %vm563_vm14, %v576_v33 }
 0x22a   : > { %v560_v36 = vpop.xlane.xlu0 %559 }
 0x22b   : > { %v562_v37 = vadd.f32 %v560_v36, %v554_v34 }
 0x22c   : > { %v575_v38 = vpop.xlane.xlu1 %574 }
 0x22d   : > { %v577_v39 = vadd.f32 %v575_v38, %v567_v35  ;;  %565 = vst.msk [vmem:[%s951_s8 + $0x8] sm:$0xff] %vm563_vm14, %v562_v37 }
 0x22f   : > { %579 = vst.msk [vmem:[%s952_s9 + $0x8] sm:$0xff] %vm563_vm14, %v577_v39 }
 0x230 PF: > { %s20_s11 = sadd.s32 1, %s761_s11   ;;  %s953_s30 = smov %s757_s10 }
 0x231   : > { %p17_p6 = scmp.ge.s32.totalorder %s20_s11, 4   ;;  %s954_s10 = smov %s956_s12 }
 0x233   :  { %19 = sbr.rel (!%p17_p6) target bundleno = 2 (0x2), region = 100 }

// kernel: encoder_convd_forward.40
= control target key start
LH: loop header
LB: loop body
LE: loop exit
PB: predicated region body
PF: predicated region fallthrough
CT: control target
= control target key end

     0   :  { %s490_s12 = smov 0   ;;  %s492_s13 = smov 0   ;;  %s548_s0 = inlined_call_operand.vmem [shape: f32[2,1,16,6], index: 0, kind: input, shape index: {}]   ;;  %s549_s1 = inlined_call_operand.vmem [shape: bf16[3,16,16], index: 1, kind: input, shape index: {}]   ;;  %s550_s2 = inlined_call_operand.vmem [shape: f32[16,1], index: 2, kind: input, shape index: {}]   ;;  %s551_s3 = inlined_call_operand.vmem [shape: f32[2,16,4], index: 3, kind: output, shape index: {}]  }
   0x1   :  { %s494_s14 = smov 0  }
   0x2 LB: > { %s25_s15 = sadd.s32 1, %s461_s13  ;;  %p383_p0 = scmp.ge.s32.totalorder %s465_s14, 1  ;;  %s465_s14 = sphi %s494_s14, %s13_s14   ;;  %s461_s13 = sphi %s492_s13, %s553_s13   ;;  %s457_s12 = sphi %s490_s12, %s552_s12  }
   0x3   : > { %p27_p1 = scmp.ge.s32.totalorder %s25_s15, 2  ;;  %p151_p2 = scmp.lt.s32.totalorder %s465_s14, 3 }
   0x5   : > { %s555_s15 = smov (%p27_p1, %s25_s15), 0  ;;  %p152_p3 = pnand %p383_p0, %p151_p2 }
   0x6   : > { %p178_p4 = scmp.lt.s32.totalorder (!%p152_p3), %s457_s12, 1  ;;  %s467_s20 = smov (!%p152_p3), 126  }
   0x7   : > { %155 = sbr.rel (%p152_p3) target bundleno = 289 (0x121), region = 32  ;;  %s468_s21 = smov (!%p152_p3), 127  }
   0xc   : > { %s557_s12 = smov (!%p178_p4, %s457_s12), 1  ;;  %v411_v7 = vld [vmem:[%s549_s1] sm:$0xff]  ;;  %vm214_vm0 = vcmask 130048   ;;  %v469_v9 = vmov 0   ;;  %v286_v10 = vld [vmem:[%s550_s2 + $0x8] sm:$0xff]  ;;  %v413_v12 = vld [vmem:[%s549_s1 + $0x10] sm:$0xff] }
   0xd   : > { %s409_s16 = sshll.u32 %s557_s12, 4  ;;  %v285_v8 = vld [vmem:[%s550_s2] sm:$0xff]  ;;  %441 = vset.pattern.permute.xlu1 %v469_v9  ;;  %442 = vset.pattern.permute.xlu0 %v469_v9  ;;  %v412_v14 = vld [vmem:[%s549_s1 + $0x8] sm:$0xff]  ;;  %vm299_vm1 = vcmask 31744  }
   0xe   : > { %s182_s19 = scalar_lea.vmem %s548_s0, %s409_s16  ;;  %289 = vperm.xlu1 %441, %v285_v8   ;;  %s190_s7 = scalar_lea.vmem %s551_s3, %s409_s16 }
   0xf   : > { %v192_v0 = vld [vmem:[%s182_s19] sm:$0xff]  ;;  %v193_v1 = vld [vmem:[%s182_s19 + $0x8] sm:$0xff] }
  0x10   : > { %v194_v2 = vpack.c.bf16 %v192_v0, %v192_v0  ;;  %v195_v3 = vpack.c.bf16 %v193_v1, %v193_v1 }
  0x12   : > { %v208_v4 = vunpack.c.l.b16 %v194_v2  ;;  %v209_v5 = vunpack.c.l.b16 %v195_v3 }
  0x14   : > { %v210_v6 = vpack.c.b16 %v209_v5, %v208_v4 }
  0x16   : > { %263 = vrot.lane.b32.xlu0 %v210_v6, %s467_s20  ;;  %248 = vmatpush.bf16.msra.mxu1 %v210_v6 }
  0x17   : > { %294 = vperm.xlu1 %441, %v286_v10  }
  0x19   : > { %399 = vmatmul.msk.bf16.vlgmr.msra.gmra.mxu1 %vm214_vm0, %v411_v7 }
  0x1e   : > { %211 = vrot.lane.b32.xlu0 %v210_v6, %s468_s21 }
  0x80   : > { %v290_v19 = vpop.permute.xlu1 %289 }
  0x88   : > { %v264_v11 = vpop.permute.xlu0 %263 }
  0x89   : > { %276 = vmatpush.bf16.msra.mxu2 %v264_v11  ;;  %v295_v27 = vpop.permute.xlu1 %294 }
  0x8c   : > { %406 = vmatmul.msk.bf16.vlgmr.msra.gmra.mxu2 %vm214_vm0, %v413_v12 }
  0x90   : > { %v212_v13 = vpop.permute.xlu0 %211 }
  0x91   : > { %225 = vmatpush.bf16.msra.mxu0 %v212_v13 }
  0x94   : > { %394 = vmatmul.msk.bf16.vlgmr.msra.gmra.mxu0 %vm214_vm0, %v412_v14 }
  0x96   : > { %v250_v15 = vpop.f32.mrf.mxu1 }
  0x9e   : > { %v252_v22 = vpop.f32.mrf.mxu1 }
 0x10f   : > { %v278_v16 = vpop.f32.mrf.mxu2 }
 0x111   : > { %v227_v17 = vpop.f32.mrf.mxu0 }
 0x112   : > { %v251_v18 = vadd.f32 %v250_v15, %v227_v17 }
 0x114   : > { %v283_v20 = vadd.f32 %v278_v16, %v251_v18 }
 0x116   : > { %v297_v21 = vadd.f32 %v290_v19, %v283_v20 }
 0x117   : > { %v280_v25 = vpop.f32.mrf.mxu2 }
 0x118   : > { %300 = vst.msk [vmem:[%s190_s7] sm:$0xff] %vm299_vm1, %v297_v21 }
 0x119   : > { %v229_v23 = vpop.f32.mrf.mxu0 }
 0x11a   : > { %v253_v24 = vadd.f32 %v252_v22, %v229_v23 }
 0x11c   : > { %v284_v26 = vadd.f32 %v280_v25, %v253_v24 }
 0x11e   : > { %v298_v28 = vadd.f32 %v295_v27, %v284_v26 }
 0x120   : > { %301 = vst.msk [vmem:[%s190_s7 + $0x8] sm:$0xff] %vm299_vm1, %v298_v28 }
 0x121 PF: > { %s13_s14 = sadd.s32 1, %s465_s14   ;;  %s552_s12 = smov %s461_s13 }
 0x122   : > { %p10_p5 = scmp.ge.s32.totalorder %s13_s14, 4   ;;  %s553_s13 = smov %s555_s15 }
 0x124   :  { %12 = sbr.rel (!%p10_p5) target bundleno = 2 (0x2), region = 64 }

// kernel: encoder_convd_forward.45
= control target key start
LH: loop header
LB: loop body
LE: loop exit
PB: predicated region body
PF: predicated region fallthrough
CT: control target
= control target key end

     0   :  { %s650_s24 = smov 0   ;;  %s652_s25 = smov 0   ;;  %s727_s0 = inlined_call_operand.vmem [shape: f32[2,1,16,6], index: 0, kind: input, shape index: {}]   ;;  %s728_s1 = inlined_call_operand.vmem [shape: bf16[3,8,16], index: 1, kind: input, shape index: {}]   ;;  %s729_s2 = inlined_call_operand.vmem [shape: f32[8,1], index: 2, kind: input, shape index: {}]   ;;  %s730_s3 = inlined_call_operand.vmem [shape: f32[16,1], index: 3, kind: input, shape index: {}]   ;;  %s731_s4 = inlined_call_operand.vmem [shape: f32[16,1], index: 4, kind: input, shape index: {}]   ;;  %s732_s5 = inlined_call_operand.vmem [shape: f32[16,1], index: 5, kind: input, shape index: {}]   ;;  %s733_s6 = inlined_call_operand.vmem [shape: f32[16,1], index: 6, kind: input, shape index: {}]   ;;  %s734_s7 = inlined_call_operand.vmem [shape: f32[2,8,4], index: 7, kind: output, shape index: {}]  }
   0x1   :  { %s654_s26 = smov 0  }
   0x2 LB: > { %s29_s27 = sadd.s32 1, %s601_s25  ;;  %p538_p0 = scmp.ge.s32.totalorder %s605_s26, 1  ;;  %s605_s26 = sphi %s654_s26, %s17_s26   ;;  %s601_s25 = sphi %s652_s25, %s736_s25   ;;  %s597_s24 = sphi %s650_s24, %s735_s24  }
   0x3   : > { %p31_p1 = scmp.ge.s32.totalorder %s29_s27, 2  ;;  %p251_p2 = scmp.lt.s32.totalorder %s605_s26, 3 }
   0x5   : > { %s738_s27 = smov (%p31_p1, %s29_s27), 0  ;;  %p252_p3 = pnand %p538_p0, %p251_p2 }
   0x6   : > { %p285_p4 = scmp.lt.s32.totalorder (!%p252_p3), %s597_s24, 1  ;;  %s608_s8 = smov (!%p252_p3), 126  }
   0x7   : > { %255 = sbr.rel (%p252_p3) target bundleno = 418 (0x1a2), region = 48  ;;  %s609_s9 = smov (!%p252_p3), 127  }
   0xc   : > { %v298_v0 = vld [vmem:[%s730_s3] sm:$0xff]  ;;  %v607_v2 = vmov 0   ;;  %v299_v5 = vld [vmem:[%s730_s3 + $0x8] sm:$0xff]  ;;  %s740_s24 = smov (!%p285_p4, %s597_s24), 1  ;;  %v376_v44 = vlaneseq  ;;  %vm398_vm11 = vcmask 130048   ;;  %vm461_vm12 = vcmask 31744  }
   0xd   : > { %v302_v1 = vld [vmem:[%s731_s4] sm:$0xff]  ;;  %577 = vset.pattern.permute.xlu0 %v607_v2  ;;  %v300_v3 = vmul.f32 0.125, %v298_v0  ;;  %578 = vset.pattern.permute.xlu1 %v607_v2  ;;  %v303_v6 = vld [vmem:[%s731_s4 + $0x8] sm:$0xff]  ;;  %v301_v7 = vmul.f32 0.125, %v299_v5  ;;  %s549_s23 = sshll.u32 %s740_s24, 4  ;;  %s541_s16 = sshll.u32 %s740_s24, 3 }
   0xe   : > { %v304_v4 = vmul.f32 0.125, %v302_v1  ;;  %v305_v8 = vmul.f32 0.125, %v303_v6  ;;  %v312_v27 = vld [vmem:[%s732_s5] sm:$0xff]  ;;  %v313_v31 = vld [vmem:[%s732_s5 + $0x8] sm:$0xff]  ;;  %s289_s30 = scalar_lea.vmem %s727_s0, %s549_s23  ;;  %v377_v46 = vand.u32 127, %v376_v44  ;;  %s296_s19 = scalar_lea.vmem %s734_s7, %s541_s16 }
   0xf   : > { %v306_v9 = vmul.f32 %v300_v3, %v300_v3  ;;  %v307_v10 = vmul.f32 %v301_v7, %v301_v7  ;;  %v338_v34 = vld [vmem:[%s733_s6] sm:$0xff]  ;;  %v339_v39 = vld [vmem:[%s733_s6 + $0x8] sm:$0xff] }
  0x10   : > { %v454_v41 = vld [vmem:[%s729_s2] sm:$0xff]  ;;  %vm378_vm6 = vcmp.ge.s32.totalorder %v377_v46, 1  ;;  %vm379_vm7 = vcmp.lt.s32.totalorder %v377_v46, 5  ;;  %v345_v51 = vld [vmem:[%s289_s30 + $0x8] sm:$0xff] }
  0x11   : > { %v308_v11 = vsub.f32 %v304_v4, %v306_v9  ;;  %v309_v12 = vsub.f32 %v305_v8, %v307_v10  ;;  %v344_v42 = vld [vmem:[%s289_s30] sm:$0xff]  ;;  %vm380_vm9 = vmand %vm378_vm6, %vm379_vm7 }
  0x12   : > { %v387_v1 = vld [vmem:[%s728_s1] sm:$0xf]  ;;  %v542_v5 = vld [vmem:[%s728_s1 + $0x4] sm:$0xf] }
  0x13   : > { %v310_v13 = vmax.f32 %v308_v11, 0.0  ;;  %v311_v14 = vmax.f32 %v309_v12, 0.0 }
  0x15   : > { %v314_v15 = vadd.f32 1e-05, %v310_v13  ;;  %v315_v16 = vadd.f32 1e-05, %v311_v14 }
  0x17   : > { %579 = vrsqrt.f32 %v314_v15  ;;  %vm322_vm0 = vweird.f32 %v314_v15  ;;  %vm332_vm2 = vweird.f32 %v315_v16 }
  0x18   : > { %581 = vrsqrt.f32 %v315_v16 }
  0x1d   : > { %v580_v17 = vpop.eup %579 }
  0x1e   : > { %v582_v18 = vpop.eup %581  ;;  %v317_v19 = vmul.f32 %v580_v17, %v314_v15  ;;  %vm323_vm1 = vweird.f32 %v580_v17 }
  0x1f   : > { %v327_v20 = vmul.f32 %v582_v18, %v315_v16  ;;  %vm333_vm3 = vweird.f32 %v582_v18  ;;  %vm324_vm4 = vmor %vm322_vm0, %vm323_vm1 }
  0x20   : > { %v318_v21 = vmul.f32 %v580_v17, %v317_v19  ;;  %vm334_vm5 = vmor %vm332_vm2, %vm333_vm3 }
  0x21   : > { %v328_v22 = vmul.f32 %v582_v18, %v327_v20 }
  0x22   : > { %v319_v23 = vmul.f32 0.5, %v318_v21 }
  0x23   : > { %v329_v24 = vmul.f32 0.5, %v328_v22 }
  0x24   : > { %v320_v25 = vsub.f32 1.5, %v319_v23 }
  0x25   : > { %v330_v26 = vsub.f32 1.5, %v329_v24 }
  0x26   : > { %v321_v28 = vmul.f32 %v580_v17, %v320_v25 }
  0x27   : > { %v331_v29 = vmul.f32 %v582_v18, %v330_v26 }
  0x28   : > { %v325_v30 = vsel %vm324_vm4, %v580_v17, %v321_v28 }
  0x29   : > { %v336_v32 = vmul.f32 %v325_v30, %v312_v27  ;;  %v335_v33 = vsel %vm334_vm5, %v582_v18, %v331_v29 }
  0x2a   : > { %v337_v36 = vmul.f32 %v335_v33, %v313_v31 }
  0x2b   : > { %348 = vperm.xlu0 %577, %v336_v32   ;;  %v340_v35 = vmul.f32 %v336_v32, %v300_v3  ;;  %v545_v3 = vld [vmem:[%s728_s1 + $0x8] sm:$0xf] }
  0x2c   : > { %v341_v38 = vmul.f32 %v337_v36, %v301_v7 }
  0x2d   : > { %v342_v37 = vsub.f32 %v338_v34, %v340_v35 }
  0x2e   : > { %v343_v40 = vsub.f32 %v339_v39, %v341_v38 }
  0x2f   : > { %360 = vperm.xlu1 %578, %v342_v37  }
  0x33   : > { %353 = vperm.xlu0 %577, %v337_v36  }
  0x37   : > { %365 = vperm.xlu1 %578, %v343_v40  }
  0x3b   : > { %457 = vperm.xlu0 %577, %v454_v41  }
  0x9d   : > { %v349_v43 = vpop.permute.xlu0 %348 }
  0x9e   : > { %v356_v45 = vmul.f32 %v349_v43, %v344_v42 }
  0xa1   : > { %v361_v47 = vpop.permute.xlu1 %360 }
  0xa2   : > { %v368_v48 = vadd.f32 %v361_v47, %v356_v45 }
  0xa4   : > { %v372_v49 = vmul.f32 0.2, %v368_v48  ;;  %vm370_vm8 = vcmp.gt.f32.partialorder %v368_v48, 0.0 }
  0xa5   : > { %v354_v50 = vpop.permute.xlu0 %353 }
  0xa6   : > { %v374_v52 = vsel %vm370_vm8, %v368_v48, %v372_v49  ;;  %v357_v53 = vmul.f32 %v354_v50, %v345_v51 }
  0xa7   : > { %v383_v56 = vsel %vm380_vm9, %v374_v52, 0.0 }
  0xa8   : > { %v385_v58 = vpack.c.bf16 %v383_v56, %v383_v56 }
  0xa9   : > { %v366_v54 = vpop.permute.xlu1 %365 }
  0xaa   : > { %v369_v55 = vadd.f32 %v366_v54, %v357_v53  ;;  %v392_v62 = vunpack.c.l.b16 %v385_v58 }
  0xac   : > { %vm371_vm10 = vcmp.gt.f32.partialorder %v369_v55, 0.0  ;;  %v373_v57 = vmul.f32 0.2, %v369_v55 }
  0xad   : > { %v458_v12 = vpop.permute.xlu0 %457 }
  0xae   : > { %v375_v59 = vsel %vm371_vm10, %v369_v55, %v373_v57 }
  0xaf   : > { %v384_v60 = vsel %vm380_vm9, %v375_v59, 0.0 }
  0xb0   : > { %v386_v61 = vpack.c.bf16 %v384_v60, %v384_v60 }
  0xb2   : > { %v393_v63 = vunpack.c.l.b16 %v386_v61 }
  0xb4   : > { %v394_v0 = vpack.c.b16 %v393_v63, %v392_v62 }
  0xb6   : > { %434 = vrot.lane.b32.xlu2 %v394_v0, %s608_s8  ;;  %426 = vmatpush.bf16.msra.mxu1 %v394_v0 }
  0xb9   : > { %544 = vmatmul.msk.bf16.vlgmr.msra.gmra.mxu1 %vm398_vm11, %v387_v1 }
  0xbe   : > { %395 = vrot.lane.b32.xlu2 %v394_v0, %s609_s9 }
 0x110   : > { %v435_v2 = vpop.permute.xlu2 %434 }
 0x111   : > { %447 = vmatpush.bf16.msra.mxu2 %v435_v2 }
 0x114   : > { %546 = vmatmul.msk.bf16.vlgmr.msra.gmra.mxu2 %vm398_vm11, %v545_v3 }
 0x118   : > { %v396_v4 = vpop.permute.xlu2 %395 }
 0x119   : > { %409 = vmatpush.bf16.msra.mxu0 %v396_v4 }
 0x11c   : > { %543 = vmatmul.msk.bf16.vlgmr.msra.gmra.mxu0 %vm398_vm11, %v542_v5 }
 0x136   : > { %v428_v6 = vpop.f32.mrf.mxu1 }
 0x13e   : > { %v430_v7 = vpop.f32.mrf.mxu1 }
 0x197   : > { %v449_v8 = vpop.f32.mrf.mxu2 }
 0x199   : > { %v411_v9 = vpop.f32.mrf.mxu0 }
 0x19a   : > { %v429_v10 = vadd.f32 %v428_v6, %v411_v9 }
 0x19c   : > { %v453_v11 = vadd.f32 %v449_v8, %v429_v10 }
 0x19e   : > { %v460_v13 = vadd.f32 %v458_v12, %v453_v11 }
 0x19f   : > { %v451_v14 = vpop.f32.mrf.mxu2 }
 0x1a0   : > { %462 = vst.msk [vmem:[%s296_s19] sm:$0xff] %vm461_vm12, %v460_v13 }
 0x1a1   : > { %v413_v15 = vpop.f32.mrf.mxu0 }
 0x1a2 PF: > { %s17_s26 = sadd.s32 1, %s605_s26   ;;  %s735_s24 = smov %s601_s25 }
 0x1a3   : > { %p14_p5 = scmp.ge.s32.totalorder %s17_s26, 4   ;;  %s736_s25 = smov %s738_s27 }
 0x1a5   :  { %16 = sbr.rel (!%p14_p5) target bundleno = 2 (0x2), region = 80 }

</bundles_post_ra>
